<compile_context>
chip_gen: v6e
topology: v6e:2x2x1
jax: 0.10.0
libtpu: 0.0.40
codegen_flags: <defaults>
</compile_context>

<pallas_src>
import functools
import math

import jax
import jax.numpy as jnp
from jax.experimental import pallas as pl
from jax.experimental.pallas import tpu as pltpu

LRELU_SLOPE = 0.1   # modules.LRELU_SLOPE in the reference repo
_T_TILE = 512       # max time tile (sublane dim of the lane-dense output block)
_DENSE_OC = 256     # output-column chunk for groups==1 Pallas layers (full MXU width)


# --------------------------------- Pallas kernel ------------------------------------
def _conv_tap_kernel(cols_ref, w_ref, b_ref, o_ref, *, nq, tt, apply_lrelu):
    """One (batch, out-chunk, time-tile) step of a strided Conv1d.

    cols_ref: (tt + nq - 1, csg)  bf16   phase-interleaved input rows (+ halo)
    w_ref:    (nq, csg, oc)       bf16   per-tap weight for this output chunk
    b_ref:    (1, oc)             f32    bias slice
    o_ref:    (tt, oc)            bf16   lane-dense output tile

    out = LeakyReLU( sum_q cols[q:q+tt, :] @ w[q]  +  b ),  accumulated in f32.
    """
    acc = jnp.zeros(o_ref.shape, jnp.float32)
    for q in range(nq):
        acc = acc + jnp.dot(cols_ref[q:q + tt, :], w_ref[q],
                            preferred_element_type=jnp.float32)
    y = acc + b_ref[...]
    if apply_lrelu:
        y = jnp.where(y >= 0.0, y, LRELU_SLOPE * y)
    o_ref[...] = y.astype(o_ref.dtype)


# ------------------------------------ XLA prep ---------------------------------------
def _pick_time_tile(t_out, cap=_T_TILE):
    """Largest divisor of t_out that is <= cap (t_out itself if small)."""
    if t_out <= cap:
        return t_out
    for cand in range(cap, 0, -1):
        if t_out % cand == 0:
            return cand
    return t_out


def _prep_cols(h, *, kernel_size, stride, padding, tt, nq):
    """h: (B, L, Cin) bf16 -> (B, nT, tt + nq - 1, Cin*stride) phase-interleaved tiles.

    Lane index is in_channel*stride + phase, so tap k = q*stride + r of output t reads
    cols[b, t // tt, (t % tt) + q, c*stride + r].  Only the ~(nq-1)-row halo per time
    tile is duplicated (~2% at tt=512), no K-fold im2col blowup.
    """
    bsz, length, cin = h.shape
    s, qmax = stride, nq - 1
    t_out = (length + 2 * padding - kernel_size) // s + 1
    assert t_out % tt == 0
    n_t = t_out // tt
    lp = max(length + 2 * padding, (t_out + qmax) * s)
    lp = -(-lp // s) * s
    x = jnp.pad(h, ((0, 0), (padding, lp - length - padding), (0, 0)))
    x = x.reshape(bsz, lp // s, s, cin).transpose(0, 1, 3, 2)
    x = x.reshape(bsz, lp // s, cin * s)
    rows = jnp.arange(n_t)[:, None] * tt + jnp.arange(tt + qmax)[None, :]
    return x[:, rows, :], t_out


def _prep_weight(w, *, groups, stride, nq, dense_oc=_DENSE_OC):
    """torch-layout weight (Cout, Cin_g, K) -> (n_blk, nq, csg, oc) bf16 tap matrices.

    groups == 1: the Cout axis is split into n_blk chunks of `oc` columns.
    groups  > 1: `m` adjacent conv groups are merged block-diagonally into supergroups
                 of oc = m*Cg (~128) output channels; csg = m*Cin_g*stride input lanes.
    Row index inside a chunk is in_channel_within_chunk*stride + phase, matching the
    cols layout produced by _prep_cols.  Channel ordering is unchanged.
    """
    cout, cin_g, k = w.shape
    s = stride
    cg = cout // groups
    if groups == 1:
        m = 1
    else:
        m = math.gcd(groups, max(1, 128 // cg))
        if (m * cg) % 128 != 0 or (m * cin_g * s) % 128 != 0:
            m = groups                      # fall back to one fully merged block
    g_eff = groups // m
    oc = cg * m
    csg = cin_g * m * s

    w_pad = jnp.pad(w, ((0, 0), (0, 0), (0, nq * s - k)))
    w5 = w_pad.reshape(g_eff, m, cg, cin_g, nq, s)
    eye = jnp.eye(m, dtype=w.dtype)
    # wt[g, q, d, b, r, a, c] = w5[g, a, c, b, q, r] * delta(a, d)  (block-diag merge)
    wt = jnp.einsum("gacbqr,ad->gqdbrac", w5, eye)
    wt = wt.reshape(g_eff, nq, csg, oc)

    if groups == 1 and cout > dense_oc and cout % dense_oc == 0:
        n_blk = cout // dense_oc
        wt = wt[0].reshape(nq, csg, n_blk, dense_oc).transpose(2, 0, 1, 3)
        oc = dense_oc
    else:
        n_blk = g_eff
    return wt.astype(jnp.bfloat16), n_blk, csg, oc


# -------------------------------- Pallas conv wrapper --------------------------------
def conv1d_pallas(h, w, b, *, stride, padding, groups, apply_lrelu):
    """Conv1d matching torch.nn.Conv1d(stride, padding, groups) (+ optional LeakyReLU).

    h: (B, L, Cin) NWC (bf16) -> (B, T, Cout) NWC bf16.
    """
    bsz, length, cin = h.shape
    cout, cin_g, k = w.shape
    assert cin == cin_g * groups and cout % groups == 0

    s = stride
    nq = -(-k // s)                                   # ceil(K / stride) taps
    t_out = (length + 2 * padding - k) // s + 1
    tt = _pick_time_tile(t_out)
    n_t = t_out // tt

    wt, n_blk, csg, oc = _prep_weight(w, groups=groups, stride=s, nq=nq)
    cols, t_chk = _prep_cols(h.astype(jnp.bfloat16), kernel_size=k, stride=s,
                             padding=padding, tt=tt, nq=nq)
    assert t_chk == t_out
    b_row = b.reshape(1, cout).astype(jnp.float32)

    sliced = csg < cin * s            # grouped path: each chunk reads its own lane slice
    if sliced:
        cols_idx = lambda bi, ji, ti: (bi, ti, 0, ji)
    else:
        cols_idx = lambda bi, ji, ti: (bi, ti, 0, 0)

    kernel = functools.partial(_conv_tap_kernel, nq=nq, tt=tt, apply_lrelu=apply_lrelu)
    return pl.pallas_call(
        kernel,
        out_shape=jax.ShapeDtypeStruct((bsz, t_out, cout), jnp.bfloat16),
        grid_spec=pltpu.PrefetchScalarGridSpec(
            num_scalar_prefetch=0,
            # Grid order (B, chunk, T): the weight chunk's block index is constant over
            # the inner time sweep, so Pallas keeps it resident (no per-tile re-DMA).
            grid=(bsz, n_blk, n_t),
            in_specs=[
                pl.BlockSpec((None, None, tt + nq - 1, csg), cols_idx),
                pl.BlockSpec((None, nq, csg, oc), lambda bi, ji, ti: (ji, 0, 0, 0)),
                pl.BlockSpec((1, oc), lambda bi, ji, ti: (0, ji)),
            ],
            out_specs=pl.BlockSpec((None, tt, oc), lambda bi, ji, ti: (bi, ti, ji)),
        ),
        compiler_params=pltpu.CompilerParams(
            dimension_semantics=("parallel", "parallel", "parallel"),
            vmem_limit_bytes=32 * 1024 * 1024),
    )(cols, wt, b_row)


# -------------------------- tiny layers kept in plain XLA ----------------------------
def _conv1d_xla(h, w, b, *, stride, padding, apply_lrelu):
    """groups==1 Conv1d in NWC, f32 (used for layer 1 and conv_post per perf review)."""
    out = jax.lax.conv_general_dilated(
        h, jnp.transpose(w, (2, 1, 0)),               # (K, Cin, Cout)
        window_strides=(stride,), padding=[(padding, padding)],
        dimension_numbers=("NWC", "WIO", "NWC"),
        precision=jax.lax.Precision.HIGHEST)
    out = out + b[None, None, :]
    if apply_lrelu:
        out = jnp.where(out >= 0.0, out, LRELU_SLOPE * out)
    return out


# ------------------------------ parameter construction ------------------------------
# (cin, cout, kernel, stride, padding, groups) for self.convs, then conv_post.
_CONV_SPECS = [
    (1,    16,   15, 1, 7,  1),
    (16,   64,   41, 4, 20, 4),
    (64,   256,  41, 4, 20, 16),
    (256,  1024, 41, 4, 20, 64),
    (1024, 1024, 41, 4, 20, 256),
    (1024, 1024, 5,  1, 2,  1),
]
_POST_SPEC = (1024, 1, 3, 1, 1, 1)


def init_discriminator_s_params(key):
    # Deterministic synthetic init (weight_norm at init equals the plain conv forward).
    params = {"convs": [], "conv_post": None}
    specs = _CONV_SPECS + [_POST_SPEC]
    keys = jax.random.split(key, 2 * len(specs))
    for i, (cin, cout, k, _stride, _pad, groups) in enumerate(specs):
        kw, kb = keys[2 * i], keys[2 * i + 1]
        w = 0.05 * jax.random.normal(kw, (cout, cin // groups, k), dtype=jnp.float32)
        b = 0.01 * jax.random.normal(kb, (cout,), dtype=jnp.float32)
        if i < len(_CONV_SPECS):
            params["convs"].append((w, b))
        else:
            params["conv_post"] = (w, b)
    return params


# ---------------------------------- forward pass ------------------------------------
def discriminator_s_forward(params, x):
    """x: (B, 1, L) NCW f32 (as in the PyTorch module).
    Returns (flattened logits (B, L_post) f32, fmap list of 7 NCW f32 tensors)."""
    h = jnp.transpose(x, (0, 2, 1))                    # -> NWC (B, L, 1) f32
    fmap = []

    # Layer 1 (1 -> 16 channels): too lane-starved for Pallas -> plain XLA conv.
    w, b = params["convs"][0]
    _, _, _, stride, pad, _ = _CONV_SPECS[0]
    h = _conv1d_xla(h, w, b, stride=stride, padding=pad, apply_lrelu=True)
    fmap.append(jnp.transpose(h, (0, 2, 1)))           # NCW, matching torch fmap
    h = h.astype(jnp.bfloat16)                         # bf16 inter-layer activations

    # Layers 2-6: Pallas tap-matmul conv kernels.
    for (w, b), (_, _, _, stride, pad, groups) in zip(params["convs"][1:],
                                                      _CONV_SPECS[1:]):
        h = conv1d_pallas(h, w, b, stride=stride, padding=pad, groups=groups,
                          apply_lrelu=True)
        fmap.append(jnp.transpose(h, (0, 2, 1)).astype(jnp.float32))

    # conv_post (1024 -> 1 channel): plain XLA conv per perf review.
    w, b = params["conv_post"]
    _, _, _, stride, pad, _ = _POST_SPEC
    h = _conv1d_xla(h.astype(jnp.float32), w, b, stride=stride, padding=pad,
                    apply_lrelu=False)
    fmap.append(jnp.transpose(h, (0, 2, 1)))
    logits = h.reshape(h.shape[0], -1)                  # == torch.flatten(x, 1, -1)
    return logits, fmap


# ------------------------------ pure-JAX reference ----------------------------------
def _reference_fmaps(params, x):
    h = x
    outs = []
    specs = _CONV_SPECS + [_POST_SPEC]
    weights = list(params["convs"]) + [params["conv_post"]]
    for i, ((w, b), (_, _, _, stride, pad, groups)) in enumerate(zip(weights, specs)):
        h = jax.lax.conv_general_dilated(
            h, w, window_strides=(stride,), padding=[(pad, pad)],
            feature_group_count=groups,
            dimension_numbers=("NCH", "OIH", "NCH"),
            precision=jax.lax.Precision.HIGHEST)
        h = h + b[None, :, None]
        if i < len(_CONV_SPECS):
            h = jnp.where(h >= 0.0, h, LRELU_SLOPE * h)
        outs.append(h)
    return outs


if __name__ == "__main__":
    key = jax.random.PRNGKey(0)
    pkey, xkey = jax.random.split(key)
    params = init_discriminator_s_params(pkey)

    B, L = 2, 1024  # small audio-like input: (batch, 1 channel, time)
    x = jax.random.normal(xkey, (B, 1, L), dtype=jnp.float32)

    fwd = jax.jit(discriminator_s_forward)
    logits, fmap = fwd(params, x)
    logits = jax.block_until_ready(logits)
    fmap = [jax.block_until_ready(f) for f in fmap]

    # sanity checks on shapes implied by the PyTorch module
    assert logits.shape == (B, 4)
    assert [tuple(f.shape) for f in fmap] == [
        (B, 16, 1024), (B, 64, 256), (B, 256, 64), (B, 1024, 16),
        (B, 1024, 4), (B, 1024, 4), (B, 1, 4),
    ]

    # numerical check against a pure-JAX f32 reference
    # (kernels use bf16 operands and bf16 inter-layer activations, hence the tolerance;
    #  group-ordering / tap-indexing bugs would blow far past it)
    ref = _reference_fmaps(params, x)
    for got, want in zip(fmap, ref):
        scale = float(jnp.max(jnp.abs(want)))
        err = float(jnp.max(jnp.abs(got.astype(jnp.float32) - want)))
        assert err <= 0.1 * scale + 1e-3, (err, scale)

    print("KERNEL_OK")
</pallas_src>

<mosaic_0001>
module attributes {stable_mosaic.version = 11 : i64} {
  func.func @_conv_tap_kernel(%arg0: i32, %arg1: i32, %arg2: i32, %arg3: memref<1x1x266x64xbf16, #tpu.memory_space<vmem>>, %arg4: memref<1x11x64x64xbf16, #tpu.memory_space<vmem>>, %arg5: memref<1x64xf32, #tpu.memory_space<vmem>>, %arg6: memref<1x256x64xbf16, #tpu.memory_space<vmem>>) attributes {dimension_semantics = [#tpu.dimension_semantics<parallel>, #tpu.dimension_semantics<parallel>, #tpu.dimension_semantics<parallel>], iteration_bounds = array<i64: 2, 1, 1>, scalar_prefetch = 0 : i64, scratch_operands = 0 : i64, tpu.core_type = #tpu.core_type<tc>, window_params = [{transform_indices = @transform_0, window_bounds = array<i64: 1, 1, 266, 64>}, {transform_indices = @transform_1, window_bounds = array<i64: 1, 11, 64, 64>}, {transform_indices = @transform_2, window_bounds = array<i64: 1, 64>}, {transform_indices = @transform_3, window_bounds = array<i64: 1, 256, 64>}]} {
    %cst = arith.constant 0.000000e+00 : f32
    %0 = vector.broadcast %cst : f32 to vector<256x64xf32>
    %c0 = arith.constant 0 : index
    %c0_0 = arith.constant 0 : index
    %c0_1 = arith.constant 0 : index
    %c0_2 = arith.constant 0 : index
    %1 = vector.load %arg3[%c0, %c0_0, %c0_1, %c0_2] : memref<1x1x266x64xbf16, #tpu.memory_space<vmem>>, vector<1x1x256x64xbf16>
    %2 = vector.shape_cast %1 : vector<1x1x256x64xbf16> to vector<256x64xbf16>
    %c0_3 = arith.constant 0 : index
    %c0_4 = arith.constant 0 : index
    %c0_5 = arith.constant 0 : index
    %c0_6 = arith.constant 0 : index
    %3 = vector.load %arg4[%c0_3, %c0_4, %c0_5, %c0_6] : memref<1x11x64x64xbf16, #tpu.memory_space<vmem>>, vector<1x1x64x64xbf16>
    %4 = vector.shape_cast %3 : vector<1x1x64x64xbf16> to vector<64x64xbf16>
    %cst_7 = arith.constant dense<0.000000e+00> : vector<256x64xf32>
    %5 = tpu.matmul %2, %4, %cst_7 {dimension_numbers = #tpu.dot_dimension_numbers<[1], [0], [0], [1], [0, 0, 1, 1], [], []>} : vector<256x64xbf16>, vector<64x64xbf16>, vector<256x64xf32> -> vector<256x64xf32>
    %6 = arith.addf %0, %5 : vector<256x64xf32>
    %c0_8 = arith.constant 0 : index
    %c0_9 = arith.constant 0 : index
    %c1 = arith.constant 1 : index
    %c0_10 = arith.constant 0 : index
    %7 = vector.load %arg3[%c0_8, %c0_9, %c1, %c0_10] : memref<1x1x266x64xbf16, #tpu.memory_space<vmem>>, vector<1x1x256x64xbf16>
    %8 = vector.shape_cast %7 : vector<1x1x256x64xbf16> to vector<256x64xbf16>
    %c0_11 = arith.constant 0 : index
    %c1_12 = arith.constant 1 : index
    %c0_13 = arith.constant 0 : index
    %c0_14 = arith.constant 0 : index
    %9 = vector.load %arg4[%c0_11, %c1_12, %c0_13, %c0_14] : memref<1x11x64x64xbf16, #tpu.memory_space<vmem>>, vector<1x1x64x64xbf16>
    %10 = vector.shape_cast %9 : vector<1x1x64x64xbf16> to vector<64x64xbf16>
    %cst_15 = arith.constant dense<0.000000e+00> : vector<256x64xf32>
    %11 = tpu.matmul %8, %10, %cst_15 {dimension_numbers = #tpu.dot_dimension_numbers<[1], [0], [0], [1], [0, 0, 1, 1], [], []>} : vector<256x64xbf16>, vector<64x64xbf16>, vector<256x64xf32> -> vector<256x64xf32>
    %12 = arith.addf %6, %11 : vector<256x64xf32>
    %c0_16 = arith.constant 0 : index
    %c0_17 = arith.constant 0 : index
    %c2 = arith.constant 2 : index
    %c0_18 = arith.constant 0 : index
    %13 = vector.load %arg3[%c0_16, %c0_17, %c2, %c0_18] : memref<1x1x266x64xbf16, #tpu.memory_space<vmem>>, vector<1x1x256x64xbf16>
    %14 = vector.shape_cast %13 : vector<1x1x256x64xbf16> to vector<256x64xbf16>
    %c0_19 = arith.constant 0 : index
    %c2_20 = arith.constant 2 : index
    %c0_21 = arith.constant 0 : index
    %c0_22 = arith.constant 0 : index
    %15 = vector.load %arg4[%c0_19, %c2_20, %c0_21, %c0_22] : memref<1x11x64x64xbf16, #tpu.memory_space<vmem>>, vector<1x1x64x64xbf16>
    %16 = vector.shape_cast %15 : vector<1x1x64x64xbf16> to vector<64x64xbf16>
    %cst_23 = arith.constant dense<0.000000e+00> : vector<256x64xf32>
    %17 = tpu.matmul %14, %16, %cst_23 {dimension_numbers = #tpu.dot_dimension_numbers<[1], [0], [0], [1], [0, 0, 1, 1], [], []>} : vector<256x64xbf16>, vector<64x64xbf16>, vector<256x64xf32> -> vector<256x64xf32>
    %18 = arith.addf %12, %17 : vector<256x64xf32>
    %c0_24 = arith.constant 0 : index
    %c0_25 = arith.constant 0 : index
    %c3 = arith.constant 3 : index
    %c0_26 = arith.constant 0 : index
    %19 = vector.load %arg3[%c0_24, %c0_25, %c3, %c0_26] : memref<1x1x266x64xbf16, #tpu.memory_space<vmem>>, vector<1x1x256x64xbf16>
    %20 = vector.shape_cast %19 : vector<1x1x256x64xbf16> to vector<256x64xbf16>
    %c0_27 = arith.constant 0 : index
    %c3_28 = arith.constant 3 : index
    %c0_29 = arith.constant 0 : index
    %c0_30 = arith.constant 0 : index
    %21 = vector.load %arg4[%c0_27, %c3_28, %c0_29, %c0_30] : memref<1x11x64x64xbf16, #tpu.memory_space<vmem>>, vector<1x1x64x64xbf16>
    %22 = vector.shape_cast %21 : vector<1x1x64x64xbf16> to vector<64x64xbf16>
    %cst_31 = arith.constant dense<0.000000e+00> : vector<256x64xf32>
    %23 = tpu.matmul %20, %22, %cst_31 {dimension_numbers = #tpu.dot_dimension_numbers<[1], [0], [0], [1], [0, 0, 1, 1], [], []>} : vector<256x64xbf16>, vector<64x64xbf16>, vector<256x64xf32> -> vector<256x64xf32>
    %24 = arith.addf %18, %23 : vector<256x64xf32>
    %c0_32 = arith.constant 0 : index
    %c0_33 = arith.constant 0 : index
    %c4 = arith.constant 4 : index
    %c0_34 = arith.constant 0 : index
    %25 = vector.load %arg3[%c0_32, %c0_33, %c4, %c0_34] : memref<1x1x266x64xbf16, #tpu.memory_space<vmem>>, vector<1x1x256x64xbf16>
    %26 = vector.shape_cast %25 : vector<1x1x256x64xbf16> to vector<256x64xbf16>
    %c0_35 = arith.constant 0 : index
    %c4_36 = arith.constant 4 : index
    %c0_37 = arith.constant 0 : index
    %c0_38 = arith.constant 0 : index
    %27 = vector.load %arg4[%c0_35, %c4_36, %c0_37, %c0_38] : memref<1x11x64x64xbf16, #tpu.memory_space<vmem>>, vector<1x1x64x64xbf16>
    %28 = vector.shape_cast %27 : vector<1x1x64x64xbf16> to vector<64x64xbf16>
    %cst_39 = arith.constant dense<0.000000e+00> : vector<256x64xf32>
    %29 = tpu.matmul %26, %28, %cst_39 {dimension_numbers = #tpu.dot_dimension_numbers<[1], [0], [0], [1], [0, 0, 1, 1], [], []>} : vector<256x64xbf16>, vector<64x64xbf16>, vector<256x64xf32> -> vector<256x64xf32>
    %30 = arith.addf %24, %29 : vector<256x64xf32>
    %c0_40 = arith.constant 0 : index
    %c0_41 = arith.constant 0 : index
    %c5 = arith.constant 5 : index
    %c0_42 = arith.constant 0 : index
    %31 = vector.load %arg3[%c0_40, %c0_41, %c5, %c0_42] : memref<1x1x266x64xbf16, #tpu.memory_space<vmem>>, vector<1x1x256x64xbf16>
    %32 = vector.shape_cast %31 : vector<1x1x256x64xbf16> to vector<256x64xbf16>
    %c0_43 = arith.constant 0 : index
    %c5_44 = arith.constant 5 : index
    %c0_45 = arith.constant 0 : index
    %c0_46 = arith.constant 0 : index
    %33 = vector.load %arg4[%c0_43, %c5_44, %c0_45, %c0_46] : memref<1x11x64x64xbf16, #tpu.memory_space<vmem>>, vector<1x1x64x64xbf16>
    %34 = vector.shape_cast %33 : vector<1x1x64x64xbf16> to vector<64x64xbf16>
    %cst_47 = arith.constant dense<0.000000e+00> : vector<256x64xf32>
    %35 = tpu.matmul %32, %34, %cst_47 {dimension_numbers = #tpu.dot_dimension_numbers<[1], [0], [0], [1], [0, 0, 1, 1], [], []>} : vector<256x64xbf16>, vector<64x64xbf16>, vector<256x64xf32> -> vector<256x64xf32>
    %36 = arith.addf %30, %35 : vector<256x64xf32>
    %c0_48 = arith.constant 0 : index
    %c0_49 = arith.constant 0 : index
    %c6 = arith.constant 6 : index
    %c0_50 = arith.constant 0 : index
    %37 = vector.load %arg3[%c0_48, %c0_49, %c6, %c0_50] : memref<1x1x266x64xbf16, #tpu.memory_space<vmem>>, vector<1x1x256x64xbf16>
    %38 = vector.shape_cast %37 : vector<1x1x256x64xbf16> to vector<256x64xbf16>
    %c0_51 = arith.constant 0 : index
    %c6_52 = arith.constant 6 : index
    %c0_53 = arith.constant 0 : index
    %c0_54 = arith.constant 0 : index
    %39 = vector.load %arg4[%c0_51, %c6_52, %c0_53, %c0_54] : memref<1x11x64x64xbf16, #tpu.memory_space<vmem>>, vector<1x1x64x64xbf16>
    %40 = vector.shape_cast %39 : vector<1x1x64x64xbf16> to vector<64x64xbf16>
    %cst_55 = arith.constant dense<0.000000e+00> : vector<256x64xf32>
    %41 = tpu.matmul %38, %40, %cst_55 {dimension_numbers = #tpu.dot_dimension_numbers<[1], [0], [0], [1], [0, 0, 1, 1], [], []>} : vector<256x64xbf16>, vector<64x64xbf16>, vector<256x64xf32> -> vector<256x64xf32>
    %42 = arith.addf %36, %41 : vector<256x64xf32>
    %c0_56 = arith.constant 0 : index
    %c0_57 = arith.constant 0 : index
    %c7 = arith.constant 7 : index
    %c0_58 = arith.constant 0 : index
    %43 = vector.load %arg3[%c0_56, %c0_57, %c7, %c0_58] : memref<1x1x266x64xbf16, #tpu.memory_space<vmem>>, vector<1x1x256x64xbf16>
    %44 = vector.shape_cast %43 : vector<1x1x256x64xbf16> to vector<256x64xbf16>
    %c0_59 = arith.constant 0 : index
    %c7_60 = arith.constant 7 : index
    %c0_61 = arith.constant 0 : index
    %c0_62 = arith.constant 0 : index
    %45 = vector.load %arg4[%c0_59, %c7_60, %c0_61, %c0_62] : memref<1x11x64x64xbf16, #tpu.memory_space<vmem>>, vector<1x1x64x64xbf16>
    %46 = vector.shape_cast %45 : vector<1x1x64x64xbf16> to vector<64x64xbf16>
    %cst_63 = arith.constant dense<0.000000e+00> : vector<256x64xf32>
    %47 = tpu.matmul %44, %46, %cst_63 {dimension_numbers = #tpu.dot_dimension_numbers<[1], [0], [0], [1], [0, 0, 1, 1], [], []>} : vector<256x64xbf16>, vector<64x64xbf16>, vector<256x64xf32> -> vector<256x64xf32>
    %48 = arith.addf %42, %47 : vector<256x64xf32>
    %c0_64 = arith.constant 0 : index
    %c0_65 = arith.constant 0 : index
    %c8 = arith.constant 8 : index
    %c0_66 = arith.constant 0 : index
    %49 = vector.load %arg3[%c0_64, %c0_65, %c8, %c0_66] : memref<1x1x266x64xbf16, #tpu.memory_space<vmem>>, vector<1x1x256x64xbf16>
    %50 = vector.shape_cast %49 : vector<1x1x256x64xbf16> to vector<256x64xbf16>
    %c0_67 = arith.constant 0 : index
    %c8_68 = arith.constant 8 : index
    %c0_69 = arith.constant 0 : index
    %c0_70 = arith.constant 0 : index
    %51 = vector.load %arg4[%c0_67, %c8_68, %c0_69, %c0_70] : memref<1x11x64x64xbf16, #tpu.memory_space<vmem>>, vector<1x1x64x64xbf16>
    %52 = vector.shape_cast %51 : vector<1x1x64x64xbf16> to vector<64x64xbf16>
    %cst_71 = arith.constant dense<0.000000e+00> : vector<256x64xf32>
    %53 = tpu.matmul %50, %52, %cst_71 {dimension_numbers = #tpu.dot_dimension_numbers<[1], [0], [0], [1], [0, 0, 1, 1], [], []>} : vector<256x64xbf16>, vector<64x64xbf16>, vector<256x64xf32> -> vector<256x64xf32>
    %54 = arith.addf %48, %53 : vector<256x64xf32>
    %c0_72 = arith.constant 0 : index
    %c0_73 = arith.constant 0 : index
    %c9 = arith.constant 9 : index
    %c0_74 = arith.constant 0 : index
    %55 = vector.load %arg3[%c0_72, %c0_73, %c9, %c0_74] : memref<1x1x266x64xbf16, #tpu.memory_space<vmem>>, vector<1x1x256x64xbf16>
    %56 = vector.shape_cast %55 : vector<1x1x256x64xbf16> to vector<256x64xbf16>
    %c0_75 = arith.constant 0 : index
    %c9_76 = arith.constant 9 : index
    %c0_77 = arith.constant 0 : index
    %c0_78 = arith.constant 0 : index
    %57 = vector.load %arg4[%c0_75, %c9_76, %c0_77, %c0_78] : memref<1x11x64x64xbf16, #tpu.memory_space<vmem>>, vector<1x1x64x64xbf16>
    %58 = vector.shape_cast %57 : vector<1x1x64x64xbf16> to vector<64x64xbf16>
    %cst_79 = arith.constant dense<0.000000e+00> : vector<256x64xf32>
    %59 = tpu.matmul %56, %58, %cst_79 {dimension_numbers = #tpu.dot_dimension_numbers<[1], [0], [0], [1], [0, 0, 1, 1], [], []>} : vector<256x64xbf16>, vector<64x64xbf16>, vector<256x64xf32> -> vector<256x64xf32>
    %60 = arith.addf %54, %59 : vector<256x64xf32>
    %c0_80 = arith.constant 0 : index
    %c0_81 = arith.constant 0 : index
    %c10 = arith.constant 10 : index
    %c0_82 = arith.constant 0 : index
    %61 = vector.load %arg3[%c0_80, %c0_81, %c10, %c0_82] : memref<1x1x266x64xbf16, #tpu.memory_space<vmem>>, vector<1x1x256x64xbf16>
    %62 = vector.shape_cast %61 : vector<1x1x256x64xbf16> to vector<256x64xbf16>
    %c0_83 = arith.constant 0 : index
    %c10_84 = arith.constant 10 : index
    %c0_85 = arith.constant 0 : index
    %c0_86 = arith.constant 0 : index
    %63 = vector.load %arg4[%c0_83, %c10_84, %c0_85, %c0_86] : memref<1x11x64x64xbf16, #tpu.memory_space<vmem>>, vector<1x1x64x64xbf16>
    %64 = vector.shape_cast %63 : vector<1x1x64x64xbf16> to vector<64x64xbf16>
    %cst_87 = arith.constant dense<0.000000e+00> : vector<256x64xf32>
    %65 = tpu.matmul %62, %64, %cst_87 {dimension_numbers = #tpu.dot_dimension_numbers<[1], [0], [0], [1], [0, 0, 1, 1], [], []>} : vector<256x64xbf16>, vector<64x64xbf16>, vector<256x64xf32> -> vector<256x64xf32>
    %66 = arith.addf %60, %65 : vector<256x64xf32>
    %c0_88 = arith.constant 0 : index
    %c0_89 = arith.constant 0 : index
    %67 = vector.load %arg5[%c0_88, %c0_89] : memref<1x64xf32, #tpu.memory_space<vmem>>, vector<1x64xf32>
    %68 = vector.broadcast %67 : vector<1x64xf32> to vector<256x64xf32>
    %69 = arith.addf %66, %68 : vector<256x64xf32>
    %cst_90 = arith.constant 0.000000e+00 : f32
    %70 = vector.broadcast %cst_90 : f32 to vector<256x64xf32>
    %71 = arith.cmpf oge, %69, %70 : vector<256x64xf32>
    %cst_91 = arith.constant 1.000000e-01 : f32
    %72 = vector.broadcast %cst_91 : f32 to vector<256x64xf32>
    %73 = arith.mulf %72, %69 : vector<256x64xf32>
    %74 = arith.select %71, %69, %73 : vector<256x64xi1>, vector<256x64xf32>
    %75 = arith.truncf %74 : vector<256x64xf32> to vector<256x64xbf16>
    %c0_92 = arith.constant 0 : index
    %c0_93 = arith.constant 0 : index
    %c0_94 = arith.constant 0 : index
    %76 = vector.load %arg6[%c0_92, %c0_93, %c0_94] : memref<1x256x64xbf16, #tpu.memory_space<vmem>>, vector<1x256x64xbf16>
    %77 = vector.shape_cast %76 : vector<1x256x64xbf16> to vector<256x64xbf16>
    %78 = vector.shape_cast %75 : vector<256x64xbf16> to vector<1x256x64xbf16>
    tpu.vector_store %arg6[%c0_92, %c0_93, %c0_94], %78 {strides = array<i32>} : memref<1x256x64xbf16, #tpu.memory_space<vmem>>, vector<1x256x64xbf16>,
    return
  }
  func.func @transform_0(%arg0: i32, %arg1: i32, %arg2: i32) -> (i32, i32, i32, i32) {
    %c0_i32 = arith.constant 0 : i32
    %c0_i32_0 = arith.constant 0 : i32
    %c0_i32_1 = arith.constant 0 : i32
    return %arg0, %arg2, %c0_i32, %c0_i32_0 : i32, i32, i32, i32
  }
  func.func @transform_1(%arg0: i32, %arg1: i32, %arg2: i32) -> (i32, i32, i32, i32) {
    %c0_i32 = arith.constant 0 : i32
    %c0_i32_0 = arith.constant 0 : i32
    %c0_i32_1 = arith.constant 0 : i32
    %c0_i32_2 = arith.constant 0 : i32
    return %arg1, %c0_i32, %c0_i32_0, %c0_i32_1 : i32, i32, i32, i32
  }
  func.func @transform_2(%arg0: i32, %arg1: i32, %arg2: i32) -> (i32, i32) {
    %c0_i32 = arith.constant 0 : i32
    %c0_i32_0 = arith.constant 0 : i32
    return %c0_i32, %arg1 : i32, i32
  }
  func.func @transform_3(%arg0: i32, %arg1: i32, %arg2: i32) -> (i32, i32, i32) {
    %c0_i32 = arith.constant 0 : i32
    return %arg0, %arg2, %arg1 : i32, i32, i32
  }
}

module attributes {stable_mosaic.version = 11 : i64} {
  func.func @_conv_tap_kernel(%arg0: i32, %arg1: i32, %arg2: i32, %arg3: memref<1x1x74x128xbf16, #tpu.memory_space<vmem>>, %arg4: memref<1x11x128x128xbf16, #tpu.memory_space<vmem>>, %arg5: memref<1x128xf32, #tpu.memory_space<vmem>>, %arg6: memref<1x64x128xbf16, #tpu.memory_space<vmem>>) attributes {dimension_semantics = [#tpu.dimension_semantics<parallel>, #tpu.dimension_semantics<parallel>, #tpu.dimension_semantics<parallel>], iteration_bounds = array<i64: 2, 2, 1>, scalar_prefetch = 0 : i64, scratch_operands = 0 : i64, tpu.core_type = #tpu.core_type<tc>, window_params = [{transform_indices = @transform_0, window_bounds = array<i64: 1, 1, 74, 128>}, {transform_indices = @transform_1, window_bounds = array<i64: 1, 11, 128, 128>}, {transform_indices = @transform_2, window_bounds = array<i64: 1, 128>}, {transform_indices = @transform_3, window_bounds = array<i64: 1, 64, 128>}]} {
    %cst = arith.constant 0.000000e+00 : f32
    %0 = vector.broadcast %cst : f32 to vector<64x128xf32>
    %c0 = arith.constant 0 : index
    %c0_0 = arith.constant 0 : index
    %c0_1 = arith.constant 0 : index
    %c0_2 = arith.constant 0 : index
    %1 = vector.load %arg3[%c0, %c0_0, %c0_1, %c0_2] : memref<1x1x74x128xbf16, #tpu.memory_space<vmem>>, vector<1x1x64x128xbf16>
    %2 = vector.shape_cast %1 : vector<1x1x64x128xbf16> to vector<64x128xbf16>
    %c0_3 = arith.constant 0 : index
    %c0_4 = arith.constant 0 : index
    %c0_5 = arith.constant 0 : index
    %c0_6 = arith.constant 0 : index
    %3 = vector.load %arg4[%c0_3, %c0_4, %c0_5, %c0_6] : memref<1x11x128x128xbf16, #tpu.memory_space<vmem>>, vector<1x1x128x128xbf16>
    %4 = vector.shape_cast %3 : vector<1x1x128x128xbf16> to vector<128x128xbf16>
    %cst_7 = arith.constant dense<0.000000e+00> : vector<64x128xf32>
    %5 = tpu.matmul %2, %4, %cst_7 {dimension_numbers = #tpu.dot_dimension_numbers<[1], [0], [0], [1], [0, 0, 1, 1], [], []>} : vector<64x128xbf16>, vector<128x128xbf16>, vector<64x128xf32> -> vector<64x128xf32>
    %6 = arith.addf %0, %5 : vector<64x128xf32>
    %c0_8 = arith.constant 0 : index
    %c0_9 = arith.constant 0 : index
    %c1 = arith.constant 1 : index
    %c0_10 = arith.constant 0 : index
    %7 = vector.load %arg3[%c0_8, %c0_9, %c1, %c0_10] : memref<1x1x74x128xbf16, #tpu.memory_space<vmem>>, vector<1x1x64x128xbf16>
    %8 = vector.shape_cast %7 : vector<1x1x64x128xbf16> to vector<64x128xbf16>
    %c0_11 = arith.constant 0 : index
    %c1_12 = arith.constant 1 : index
    %c0_13 = arith.constant 0 : index
    %c0_14 = arith.constant 0 : index
    %9 = vector.load %arg4[%c0_11, %c1_12, %c0_13, %c0_14] : memref<1x11x128x128xbf16, #tpu.memory_space<vmem>>, vector<1x1x128x128xbf16>
    %10 = vector.shape_cast %9 : vector<1x1x128x128xbf16> to vector<128x128xbf16>
    %cst_15 = arith.constant dense<0.000000e+00> : vector<64x128xf32>
    %11 = tpu.matmul %8, %10, %cst_15 {dimension_numbers = #tpu.dot_dimension_numbers<[1], [0], [0], [1], [0, 0, 1, 1], [], []>} : vector<64x128xbf16>, vector<128x128xbf16>, vector<64x128xf32> -> vector<64x128xf32>
    %12 = arith.addf %6, %11 : vector<64x128xf32>
    %c0_16 = arith.constant 0 : index
    %c0_17 = arith.constant 0 : index
    %c2 = arith.constant 2 : index
    %c0_18 = arith.constant 0 : index
    %13 = vector.load %arg3[%c0_16, %c0_17, %c2, %c0_18] : memref<1x1x74x128xbf16, #tpu.memory_space<vmem>>, vector<1x1x64x128xbf16>
    %14 = vector.shape_cast %13 : vector<1x1x64x128xbf16> to vector<64x128xbf16>
    %c0_19 = arith.constant 0 : index
    %c2_20 = arith.constant 2 : index
    %c0_21 = arith.constant 0 : index
    %c0_22 = arith.constant 0 : index
    %15 = vector.load %arg4[%c0_19, %c2_20, %c0_21, %c0_22] : memref<1x11x128x128xbf16, #tpu.memory_space<vmem>>, vector<1x1x128x128xbf16>
    %16 = vector.shape_cast %15 : vector<1x1x128x128xbf16> to vector<128x128xbf16>
    %cst_23 = arith.constant dense<0.000000e+00> : vector<64x128xf32>
    %17 = tpu.matmul %14, %16, %cst_23 {dimension_numbers = #tpu.dot_dimension_numbers<[1], [0], [0], [1], [0, 0, 1, 1], [], []>} : vector<64x128xbf16>, vector<128x128xbf16>, vector<64x128xf32> -> vector<64x128xf32>
    %18 = arith.addf %12, %17 : vector<64x128xf32>
    %c0_24 = arith.constant 0 : index
    %c0_25 = arith.constant 0 : index
    %c3 = arith.constant 3 : index
    %c0_26 = arith.constant 0 : index
    %19 = vector.load %arg3[%c0_24, %c0_25, %c3, %c0_26] : memref<1x1x74x128xbf16, #tpu.memory_space<vmem>>, vector<1x1x64x128xbf16>
    %20 = vector.shape_cast %19 : vector<1x1x64x128xbf16> to vector<64x128xbf16>
    %c0_27 = arith.constant 0 : index
    %c3_28 = arith.constant 3 : index
    %c0_29 = arith.constant 0 : index
    %c0_30 = arith.constant 0 : index
    %21 = vector.load %arg4[%c0_27, %c3_28, %c0_29, %c0_30] : memref<1x11x128x128xbf16, #tpu.memory_space<vmem>>, vector<1x1x128x128xbf16>
    %22 = vector.shape_cast %21 : vector<1x1x128x128xbf16> to vector<128x128xbf16>
    %cst_31 = arith.constant dense<0.000000e+00> : vector<64x128xf32>
    %23 = tpu.matmul %20, %22, %cst_31 {dimension_numbers = #tpu.dot_dimension_numbers<[1], [0], [0], [1], [0, 0, 1, 1], [], []>} : vector<64x128xbf16>, vector<128x128xbf16>, vector<64x128xf32> -> vector<64x128xf32>
    %24 = arith.addf %18, %23 : vector<64x128xf32>
    %c0_32 = arith.constant 0 : index
    %c0_33 = arith.constant 0 : index
    %c4 = arith.constant 4 : index
    %c0_34 = arith.constant 0 : index
    %25 = vector.load %arg3[%c0_32, %c0_33, %c4, %c0_34] : memref<1x1x74x128xbf16, #tpu.memory_space<vmem>>, vector<1x1x64x128xbf16>
    %26 = vector.shape_cast %25 : vector<1x1x64x128xbf16> to vector<64x128xbf16>
    %c0_35 = arith.constant 0 : index
    %c4_36 = arith.constant 4 : index
    %c0_37 = arith.constant 0 : index
    %c0_38 = arith.constant 0 : index
    %27 = vector.load %arg4[%c0_35, %c4_36, %c0_37, %c0_38] : memref<1x11x128x128xbf16, #tpu.memory_space<vmem>>, vector<1x1x128x128xbf16>
    %28 = vector.shape_cast %27 : vector<1x1x128x128xbf16> to vector<128x128xbf16>
    %cst_39 = arith.constant dense<0.000000e+00> : vector<64x128xf32>
    %29 = tpu.matmul %26, %28, %cst_39 {dimension_numbers = #tpu.dot_dimension_numbers<[1], [0], [0], [1], [0, 0, 1, 1], [], []>} : vector<64x128xbf16>, vector<128x128xbf16>, vector<64x128xf32> -> vector<64x128xf32>
    %30 = arith.addf %24, %29 : vector<64x128xf32>
    %c0_40 = arith.constant 0 : index
    %c0_41 = arith.constant 0 : index
    %c5 = arith.constant 5 : index
    %c0_42 = arith.constant 0 : index
    %31 = vector.load %arg3[%c0_40, %c0_41, %c5, %c0_42] : memref<1x1x74x128xbf16, #tpu.memory_space<vmem>>, vector<1x1x64x128xbf16>
    %32 = vector.shape_cast %31 : vector<1x1x64x128xbf16> to vector<64x128xbf16>
    %c0_43 = arith.constant 0 : index
    %c5_44 = arith.constant 5 : index
    %c0_45 = arith.constant 0 : index
    %c0_46 = arith.constant 0 : index
    %33 = vector.load %arg4[%c0_43, %c5_44, %c0_45, %c0_46] : memref<1x11x128x128xbf16, #tpu.memory_space<vmem>>, vector<1x1x128x128xbf16>
    %34 = vector.shape_cast %33 : vector<1x1x128x128xbf16> to vector<128x128xbf16>
    %cst_47 = arith.constant dense<0.000000e+00> : vector<64x128xf32>
    %35 = tpu.matmul %32, %34, %cst_47 {dimension_numbers = #tpu.dot_dimension_numbers<[1], [0], [0], [1], [0, 0, 1, 1], [], []>} : vector<64x128xbf16>, vector<128x128xbf16>, vector<64x128xf32> -> vector<64x128xf32>
    %36 = arith.addf %30, %35 : vector<64x128xf32>
    %c0_48 = arith.constant 0 : index
    %c0_49 = arith.constant 0 : index
    %c6 = arith.constant 6 : index
    %c0_50 = arith.constant 0 : index
    %37 = vector.load %arg3[%c0_48, %c0_49, %c6, %c0_50] : memref<1x1x74x128xbf16, #tpu.memory_space<vmem>>, vector<1x1x64x128xbf16>
    %38 = vector.shape_cast %37 : vector<1x1x64x128xbf16> to vector<64x128xbf16>
    %c0_51 = arith.constant 0 : index
    %c6_52 = arith.constant 6 : index
    %c0_53 = arith.constant 0 : index
    %c0_54 = arith.constant 0 : index
    %39 = vector.load %arg4[%c0_51, %c6_52, %c0_53, %c0_54] : memref<1x11x128x128xbf16, #tpu.memory_space<vmem>>, vector<1x1x128x128xbf16>
    %40 = vector.shape_cast %39 : vector<1x1x128x128xbf16> to vector<128x128xbf16>
    %cst_55 = arith.constant dense<0.000000e+00> : vector<64x128xf32>
    %41 = tpu.matmul %38, %40, %cst_55 {dimension_numbers = #tpu.dot_dimension_numbers<[1], [0], [0], [1], [0, 0, 1, 1], [], []>} : vector<64x128xbf16>, vector<128x128xbf16>, vector<64x128xf32> -> vector<64x128xf32>
    %42 = arith.addf %36, %41 : vector<64x128xf32>
    %c0_56 = arith.constant 0 : index
    %c0_57 = arith.constant 0 : index
    %c7 = arith.constant 7 : index
    %c0_58 = arith.constant 0 : index
    %43 = vector.load %arg3[%c0_56, %c0_57, %c7, %c0_58] : memref<1x1x74x128xbf16, #tpu.memory_space<vmem>>, vector<1x1x64x128xbf16>
    %44 = vector.shape_cast %43 : vector<1x1x64x128xbf16> to vector<64x128xbf16>
    %c0_59 = arith.constant 0 : index
    %c7_60 = arith.constant 7 : index
    %c0_61 = arith.constant 0 : index
    %c0_62 = arith.constant 0 : index
    %45 = vector.load %arg4[%c0_59, %c7_60, %c0_61, %c0_62] : memref<1x11x128x128xbf16, #tpu.memory_space<vmem>>, vector<1x1x128x128xbf16>
    %46 = vector.shape_cast %45 : vector<1x1x128x128xbf16> to vector<128x128xbf16>
    %cst_63 = arith.constant dense<0.000000e+00> : vector<64x128xf32>
    %47 = tpu.matmul %44, %46, %cst_63 {dimension_numbers = #tpu.dot_dimension_numbers<[1], [0], [0], [1], [0, 0, 1, 1], [], []>} : vector<64x128xbf16>, vector<128x128xbf16>, vector<64x128xf32> -> vector<64x128xf32>
    %48 = arith.addf %42, %47 : vector<64x128xf32>
    %c0_64 = arith.constant 0 : index
    %c0_65 = arith.constant 0 : index
    %c8 = arith.constant 8 : index
    %c0_66 = arith.constant 0 : index
    %49 = vector.load %arg3[%c0_64, %c0_65, %c8, %c0_66] : memref<1x1x74x128xbf16, #tpu.memory_space<vmem>>, vector<1x1x64x128xbf16>
    %50 = vector.shape_cast %49 : vector<1x1x64x128xbf16> to vector<64x128xbf16>
    %c0_67 = arith.constant 0 : index
    %c8_68 = arith.constant 8 : index
    %c0_69 = arith.constant 0 : index
    %c0_70 = arith.constant 0 : index
    %51 = vector.load %arg4[%c0_67, %c8_68, %c0_69, %c0_70] : memref<1x11x128x128xbf16, #tpu.memory_space<vmem>>, vector<1x1x128x128xbf16>
    %52 = vector.shape_cast %51 : vector<1x1x128x128xbf16> to vector<128x128xbf16>
    %cst_71 = arith.constant dense<0.000000e+00> : vector<64x128xf32>
    %53 = tpu.matmul %50, %52, %cst_71 {dimension_numbers = #tpu.dot_dimension_numbers<[1], [0], [0], [1], [0, 0, 1, 1], [], []>} : vector<64x128xbf16>, vector<128x128xbf16>, vector<64x128xf32> -> vector<64x128xf32>
    %54 = arith.addf %48, %53 : vector<64x128xf32>
    %c0_72 = arith.constant 0 : index
    %c0_73 = arith.constant 0 : index
    %c9 = arith.constant 9 : index
    %c0_74 = arith.constant 0 : index
    %55 = vector.load %arg3[%c0_72, %c0_73, %c9, %c0_74] : memref<1x1x74x128xbf16, #tpu.memory_space<vmem>>, vector<1x1x64x128xbf16>
    %56 = vector.shape_cast %55 : vector<1x1x64x128xbf16> to vector<64x128xbf16>
    %c0_75 = arith.constant 0 : index
    %c9_76 = arith.constant 9 : index
    %c0_77 = arith.constant 0 : index
    %c0_78 = arith.constant 0 : index
    %57 = vector.load %arg4[%c0_75, %c9_76, %c0_77, %c0_78] : memref<1x11x128x128xbf16, #tpu.memory_space<vmem>>, vector<1x1x128x128xbf16>
    %58 = vector.shape_cast %57 : vector<1x1x128x128xbf16> to vector<128x128xbf16>
    %cst_79 = arith.constant dense<0.000000e+00> : vector<64x128xf32>
    %59 = tpu.matmul %56, %58, %cst_79 {dimension_numbers = #tpu.dot_dimension_numbers<[1], [0], [0], [1], [0, 0, 1, 1], [], []>} : vector<64x128xbf16>, vector<128x128xbf16>, vector<64x128xf32> -> vector<64x128xf32>
    %60 = arith.addf %54, %59 : vector<64x128xf32>
    %c0_80 = arith.constant 0 : index
    %c0_81 = arith.constant 0 : index
    %c10 = arith.constant 10 : index
    %c0_82 = arith.constant 0 : index
    %61 = vector.load %arg3[%c0_80, %c0_81, %c10, %c0_82] : memref<1x1x74x128xbf16, #tpu.memory_space<vmem>>, vector<1x1x64x128xbf16>
    %62 = vector.shape_cast %61 : vector<1x1x64x128xbf16> to vector<64x128xbf16>
    %c0_83 = arith.constant 0 : index
    %c10_84 = arith.constant 10 : index
    %c0_85 = arith.constant 0 : index
    %c0_86 = arith.constant 0 : index
    %63 = vector.load %arg4[%c0_83, %c10_84, %c0_85, %c0_86] : memref<1x11x128x128xbf16, #tpu.memory_space<vmem>>, vector<1x1x128x128xbf16>
    %64 = vector.shape_cast %63 : vector<1x1x128x128xbf16> to vector<128x128xbf16>
    %cst_87 = arith.constant dense<0.000000e+00> : vector<64x128xf32>
    %65 = tpu.matmul %62, %64, %cst_87 {dimension_numbers = #tpu.dot_dimension_numbers<[1], [0], [0], [1], [0, 0, 1, 1], [], []>} : vector<64x128xbf16>, vector<128x128xbf16>, vector<64x128xf32> -> vector<64x128xf32>
    %66 = arith.addf %60, %65 : vector<64x128xf32>
    %c0_88 = arith.constant 0 : index
    %c0_89 = arith.constant 0 : index
    %67 = vector.load %arg5[%c0_88, %c0_89] : memref<1x128xf32, #tpu.memory_space<vmem>>, vector<1x128xf32>
    %68 = vector.broadcast %67 : vector<1x128xf32> to vector<64x128xf32>
    %69 = arith.addf %66, %68 : vector<64x128xf32>
    %cst_90 = arith.constant 0.000000e+00 : f32
    %70 = vector.broadcast %cst_90 : f32 to vector<64x128xf32>
    %71 = arith.cmpf oge, %69, %70 : vector<64x128xf32>
    %cst_91 = arith.constant 1.000000e-01 : f32
    %72 = vector.broadcast %cst_91 : f32 to vector<64x128xf32>
    %73 = arith.mulf %72, %69 : vector<64x128xf32>
    %74 = arith.select %71, %69, %73 : vector<64x128xi1>, vector<64x128xf32>
    %75 = arith.truncf %74 : vector<64x128xf32> to vector<64x128xbf16>
    %c0_92 = arith.constant 0 : index
    %c0_93 = arith.constant 0 : index
    %c0_94 = arith.constant 0 : index
    %76 = vector.load %arg6[%c0_92, %c0_93, %c0_94] : memref<1x64x128xbf16, #tpu.memory_space<vmem>>, vector<1x64x128xbf16>
    %77 = vector.shape_cast %76 : vector<1x64x128xbf16> to vector<64x128xbf16>
    %78 = vector.shape_cast %75 : vector<64x128xbf16> to vector<1x64x128xbf16>
    tpu.vector_store %arg6[%c0_92, %c0_93, %c0_94], %78 {strides = array<i32>} : memref<1x64x128xbf16, #tpu.memory_space<vmem>>, vector<1x64x128xbf16>,
    return
  }
  func.func @transform_0(%arg0: i32, %arg1: i32, %arg2: i32) -> (i32, i32, i32, i32) {
    %c0_i32 = arith.constant 0 : i32
    %c0_i32_0 = arith.constant 0 : i32
    return %arg0, %arg2, %c0_i32, %arg1 : i32, i32, i32, i32
  }
  func.func @transform_1(%arg0: i32, %arg1: i32, %arg2: i32) -> (i32, i32, i32, i32) {
    %c0_i32 = arith.constant 0 : i32
    %c0_i32_0 = arith.constant 0 : i32
    %c0_i32_1 = arith.constant 0 : i32
    %c0_i32_2 = arith.constant 0 : i32
    return %arg1, %c0_i32, %c0_i32_0, %c0_i32_1 : i32, i32, i32, i32
  }
  func.func @transform_2(%arg0: i32, %arg1: i32, %arg2: i32) -> (i32, i32) {
    %c0_i32 = arith.constant 0 : i32
    %c0_i32_0 = arith.constant 0 : i32
    return %c0_i32, %arg1 : i32, i32
  }
  func.func @transform_3(%arg0: i32, %arg1: i32, %arg2: i32) -> (i32, i32, i32) {
    %c0_i32 = arith.constant 0 : i32
    return %arg0, %arg2, %arg1 : i32, i32, i32
  }
}

module attributes {stable_mosaic.version = 11 : i64} {
  func.func @_conv_tap_kernel(%arg0: i32, %arg1: i32, %arg2: i32, %arg3: memref<1x1x26x128xbf16, #tpu.memory_space<vmem>>, %arg4: memref<1x11x128x128xbf16, #tpu.memory_space<vmem>>, %arg5: memref<1x128xf32, #tpu.memory_space<vmem>>, %arg6: memref<1x16x128xbf16, #tpu.memory_space<vmem>>) attributes {dimension_semantics = [#tpu.dimension_semantics<parallel>, #tpu.dimension_semantics<parallel>, #tpu.dimension_semantics<parallel>], iteration_bounds = array<i64: 2, 8, 1>, scalar_prefetch = 0 : i64, scratch_operands = 0 : i64, tpu.core_type = #tpu.core_type<tc>, window_params = [{transform_indices = @transform_0, window_bounds = array<i64: 1, 1, 26, 128>}, {transform_indices = @transform_1, window_bounds = array<i64: 1, 11, 128, 128>}, {transform_indices = @transform_2, window_bounds = array<i64: 1, 128>}, {transform_indices = @transform_3, window_bounds = array<i64: 1, 16, 128>}]} {
    %cst = arith.constant 0.000000e+00 : f32
    %0 = vector.broadcast %cst : f32 to vector<16x128xf32>
    %c0 = arith.constant 0 : index
    %c0_0 = arith.constant 0 : index
    %c0_1 = arith.constant 0 : index
    %c0_2 = arith.constant 0 : index
    %1 = vector.load %arg3[%c0, %c0_0, %c0_1, %c0_2] : memref<1x1x26x128xbf16, #tpu.memory_space<vmem>>, vector<1x1x16x128xbf16>
    %2 = vector.shape_cast %1 : vector<1x1x16x128xbf16> to vector<16x128xbf16>
    %c0_3 = arith.constant 0 : index
    %c0_4 = arith.constant 0 : index
    %c0_5 = arith.constant 0 : index
    %c0_6 = arith.constant 0 : index
    %3 = vector.load %arg4[%c0_3, %c0_4, %c0_5, %c0_6] : memref<1x11x128x128xbf16, #tpu.memory_space<vmem>>, vector<1x1x128x128xbf16>
    %4 = vector.shape_cast %3 : vector<1x1x128x128xbf16> to vector<128x128xbf16>
    %cst_7 = arith.constant dense<0.000000e+00> : vector<16x128xf32>
    %5 = tpu.matmul %2, %4, %cst_7 {dimension_numbers = #tpu.dot_dimension_numbers<[1], [0], [0], [1], [0, 0, 1, 1], [], []>} : vector<16x128xbf16>, vector<128x128xbf16>, vector<16x128xf32> -> vector<16x128xf32>
    %6 = arith.addf %0, %5 : vector<16x128xf32>
    %c0_8 = arith.constant 0 : index
    %c0_9 = arith.constant 0 : index
    %c1 = arith.constant 1 : index
    %c0_10 = arith.constant 0 : index
    %7 = vector.load %arg3[%c0_8, %c0_9, %c1, %c0_10] : memref<1x1x26x128xbf16, #tpu.memory_space<vmem>>, vector<1x1x16x128xbf16>
    %8 = vector.shape_cast %7 : vector<1x1x16x128xbf16> to vector<16x128xbf16>
    %c0_11 = arith.constant 0 : index
    %c1_12 = arith.constant 1 : index
    %c0_13 = arith.constant 0 : index
    %c0_14 = arith.constant 0 : index
    %9 = vector.load %arg4[%c0_11, %c1_12, %c0_13, %c0_14] : memref<1x11x128x128xbf16, #tpu.memory_space<vmem>>, vector<1x1x128x128xbf16>
    %10 = vector.shape_cast %9 : vector<1x1x128x128xbf16> to vector<128x128xbf16>
    %cst_15 = arith.constant dense<0.000000e+00> : vector<16x128xf32>
    %11 = tpu.matmul %8, %10, %cst_15 {dimension_numbers = #tpu.dot_dimension_numbers<[1], [0], [0], [1], [0, 0, 1, 1], [], []>} : vector<16x128xbf16>, vector<128x128xbf16>, vector<16x128xf32> -> vector<16x128xf32>
    %12 = arith.addf %6, %11 : vector<16x128xf32>
    %c0_16 = arith.constant 0 : index
    %c0_17 = arith.constant 0 : index
    %c2 = arith.constant 2 : index
    %c0_18 = arith.constant 0 : index
    %13 = vector.load %arg3[%c0_16, %c0_17, %c2, %c0_18] : memref<1x1x26x128xbf16, #tpu.memory_space<vmem>>, vector<1x1x16x128xbf16>
    %14 = vector.shape_cast %13 : vector<1x1x16x128xbf16> to vector<16x128xbf16>
    %c0_19 = arith.constant 0 : index
    %c2_20 = arith.constant 2 : index
    %c0_21 = arith.constant 0 : index
    %c0_22 = arith.constant 0 : index
    %15 = vector.load %arg4[%c0_19, %c2_20, %c0_21, %c0_22] : memref<1x11x128x128xbf16, #tpu.memory_space<vmem>>, vector<1x1x128x128xbf16>
    %16 = vector.shape_cast %15 : vector<1x1x128x128xbf16> to vector<128x128xbf16>
    %cst_23 = arith.constant dense<0.000000e+00> : vector<16x128xf32>
    %17 = tpu.matmul %14, %16, %cst_23 {dimension_numbers = #tpu.dot_dimension_numbers<[1], [0], [0], [1], [0, 0, 1, 1], [], []>} : vector<16x128xbf16>, vector<128x128xbf16>, vector<16x128xf32> -> vector<16x128xf32>
    %18 = arith.addf %12, %17 : vector<16x128xf32>
    %c0_24 = arith.constant 0 : index
    %c0_25 = arith.constant 0 : index
    %c3 = arith.constant 3 : index
    %c0_26 = arith.constant 0 : index
    %19 = vector.load %arg3[%c0_24, %c0_25, %c3, %c0_26] : memref<1x1x26x128xbf16, #tpu.memory_space<vmem>>, vector<1x1x16x128xbf16>
    %20 = vector.shape_cast %19 : vector<1x1x16x128xbf16> to vector<16x128xbf16>
    %c0_27 = arith.constant 0 : index
    %c3_28 = arith.constant 3 : index
    %c0_29 = arith.constant 0 : index
    %c0_30 = arith.constant 0 : index
    %21 = vector.load %arg4[%c0_27, %c3_28, %c0_29, %c0_30] : memref<1x11x128x128xbf16, #tpu.memory_space<vmem>>, vector<1x1x128x128xbf16>
    %22 = vector.shape_cast %21 : vector<1x1x128x128xbf16> to vector<128x128xbf16>
    %cst_31 = arith.constant dense<0.000000e+00> : vector<16x128xf32>
    %23 = tpu.matmul %20, %22, %cst_31 {dimension_numbers = #tpu.dot_dimension_numbers<[1], [0], [0], [1], [0, 0, 1, 1], [], []>} : vector<16x128xbf16>, vector<128x128xbf16>, vector<16x128xf32> -> vector<16x128xf32>
    %24 = arith.addf %18, %23 : vector<16x128xf32>
    %c0_32 = arith.constant 0 : index
    %c0_33 = arith.constant 0 : index
    %c4 = arith.constant 4 : index
    %c0_34 = arith.constant 0 : index
    %25 = vector.load %arg3[%c0_32, %c0_33, %c4, %c0_34] : memref<1x1x26x128xbf16, #tpu.memory_space<vmem>>, vector<1x1x16x128xbf16>
    %26 = vector.shape_cast %25 : vector<1x1x16x128xbf16> to vector<16x128xbf16>
    %c0_35 = arith.constant 0 : index
    %c4_36 = arith.constant 4 : index
    %c0_37 = arith.constant 0 : index
    %c0_38 = arith.constant 0 : index
    %27 = vector.load %arg4[%c0_35, %c4_36, %c0_37, %c0_38] : memref<1x11x128x128xbf16, #tpu.memory_space<vmem>>, vector<1x1x128x128xbf16>
    %28 = vector.shape_cast %27 : vector<1x1x128x128xbf16> to vector<128x128xbf16>
    %cst_39 = arith.constant dense<0.000000e+00> : vector<16x128xf32>
    %29 = tpu.matmul %26, %28, %cst_39 {dimension_numbers = #tpu.dot_dimension_numbers<[1], [0], [0], [1], [0, 0, 1, 1], [], []>} : vector<16x128xbf16>, vector<128x128xbf16>, vector<16x128xf32> -> vector<16x128xf32>
    %30 = arith.addf %24, %29 : vector<16x128xf32>
    %c0_40 = arith.constant 0 : index
    %c0_41 = arith.constant 0 : index
    %c5 = arith.constant 5 : index
    %c0_42 = arith.constant 0 : index
    %31 = vector.load %arg3[%c0_40, %c0_41, %c5, %c0_42] : memref<1x1x26x128xbf16, #tpu.memory_space<vmem>>, vector<1x1x16x128xbf16>
    %32 = vector.shape_cast %31 : vector<1x1x16x128xbf16> to vector<16x128xbf16>
    %c0_43 = arith.constant 0 : index
    %c5_44 = arith.constant 5 : index
    %c0_45 = arith.constant 0 : index
    %c0_46 = arith.constant 0 : index
    %33 = vector.load %arg4[%c0_43, %c5_44, %c0_45, %c0_46] : memref<1x11x128x128xbf16, #tpu.memory_space<vmem>>, vector<1x1x128x128xbf16>
    %34 = vector.shape_cast %33 : vector<1x1x128x128xbf16> to vector<128x128xbf16>
    %cst_47 = arith.constant dense<0.000000e+00> : vector<16x128xf32>
    %35 = tpu.matmul %32, %34, %cst_47 {dimension_numbers = #tpu.dot_dimension_numbers<[1], [0], [0], [1], [0, 0, 1, 1], [], []>} : vector<16x128xbf16>, vector<128x128xbf16>, vector<16x128xf32> -> vector<16x128xf32>
    %36 = arith.addf %30, %35 : vector<16x128xf32>
    %c0_48 = arith.constant 0 : index
    %c0_49 = arith.constant 0 : index
    %c6 = arith.constant 6 : index
    %c0_50 = arith.constant 0 : index
    %37 = vector.load %arg3[%c0_48, %c0_49, %c6, %c0_50] : memref<1x1x26x128xbf16, #tpu.memory_space<vmem>>, vector<1x1x16x128xbf16>
    %38 = vector.shape_cast %37 : vector<1x1x16x128xbf16> to vector<16x128xbf16>
    %c0_51 = arith.constant 0 : index
    %c6_52 = arith.constant 6 : index
    %c0_53 = arith.constant 0 : index
    %c0_54 = arith.constant 0 : index
    %39 = vector.load %arg4[%c0_51, %c6_52, %c0_53, %c0_54] : memref<1x11x128x128xbf16, #tpu.memory_space<vmem>>, vector<1x1x128x128xbf16>
    %40 = vector.shape_cast %39 : vector<1x1x128x128xbf16> to vector<128x128xbf16>
    %cst_55 = arith.constant dense<0.000000e+00> : vector<16x128xf32>
    %41 = tpu.matmul %38, %40, %cst_55 {dimension_numbers = #tpu.dot_dimension_numbers<[1], [0], [0], [1], [0, 0, 1, 1], [], []>} : vector<16x128xbf16>, vector<128x128xbf16>, vector<16x128xf32> -> vector<16x128xf32>
    %42 = arith.addf %36, %41 : vector<16x128xf32>
    %c0_56 = arith.constant 0 : index
    %c0_57 = arith.constant 0 : index
    %c7 = arith.constant 7 : index
    %c0_58 = arith.constant 0 : index
    %43 = vector.load %arg3[%c0_56, %c0_57, %c7, %c0_58] : memref<1x1x26x128xbf16, #tpu.memory_space<vmem>>, vector<1x1x16x128xbf16>
    %44 = vector.shape_cast %43 : vector<1x1x16x128xbf16> to vector<16x128xbf16>
    %c0_59 = arith.constant 0 : index
    %c7_60 = arith.constant 7 : index
    %c0_61 = arith.constant 0 : index
    %c0_62 = arith.constant 0 : index
    %45 = vector.load %arg4[%c0_59, %c7_60, %c0_61, %c0_62] : memref<1x11x128x128xbf16, #tpu.memory_space<vmem>>, vector<1x1x128x128xbf16>
    %46 = vector.shape_cast %45 : vector<1x1x128x128xbf16> to vector<128x128xbf16>
    %cst_63 = arith.constant dense<0.000000e+00> : vector<16x128xf32>
    %47 = tpu.matmul %44, %46, %cst_63 {dimension_numbers = #tpu.dot_dimension_numbers<[1], [0], [0], [1], [0, 0, 1, 1], [], []>} : vector<16x128xbf16>, vector<128x128xbf16>, vector<16x128xf32> -> vector<16x128xf32>
    %48 = arith.addf %42, %47 : vector<16x128xf32>
    %c0_64 = arith.constant 0 : index
    %c0_65 = arith.constant 0 : index
    %c8 = arith.constant 8 : index
    %c0_66 = arith.constant 0 : index
    %49 = vector.load %arg3[%c0_64, %c0_65, %c8, %c0_66] : memref<1x1x26x128xbf16, #tpu.memory_space<vmem>>, vector<1x1x16x128xbf16>
    %50 = vector.shape_cast %49 : vector<1x1x16x128xbf16> to vector<16x128xbf16>
    %c0_67 = arith.constant 0 : index
    %c8_68 = arith.constant 8 : index
    %c0_69 = arith.constant 0 : index
    %c0_70 = arith.constant 0 : index
    %51 = vector.load %arg4[%c0_67, %c8_68, %c0_69, %c0_70] : memref<1x11x128x128xbf16, #tpu.memory_space<vmem>>, vector<1x1x128x128xbf16>
    %52 = vector.shape_cast %51 : vector<1x1x128x128xbf16> to vector<128x128xbf16>
    %cst_71 = arith.constant dense<0.000000e+00> : vector<16x128xf32>
    %53 = tpu.matmul %50, %52, %cst_71 {dimension_numbers = #tpu.dot_dimension_numbers<[1], [0], [0], [1], [0, 0, 1, 1], [], []>} : vector<16x128xbf16>, vector<128x128xbf16>, vector<16x128xf32> -> vector<16x128xf32>
    %54 = arith.addf %48, %53 : vector<16x128xf32>
    %c0_72 = arith.constant 0 : index
    %c0_73 = arith.constant 0 : index
    %c9 = arith.constant 9 : index
    %c0_74 = arith.constant 0 : index
    %55 = vector.load %arg3[%c0_72, %c0_73, %c9, %c0_74] : memref<1x1x26x128xbf16, #tpu.memory_space<vmem>>, vector<1x1x16x128xbf16>
    %56 = vector.shape_cast %55 : vector<1x1x16x128xbf16> to vector<16x128xbf16>
    %c0_75 = arith.constant 0 : index
    %c9_76 = arith.constant 9 : index
    %c0_77 = arith.constant 0 : index
    %c0_78 = arith.constant 0 : index
    %57 = vector.load %arg4[%c0_75, %c9_76, %c0_77, %c0_78] : memref<1x11x128x128xbf16, #tpu.memory_space<vmem>>, vector<1x1x128x128xbf16>
    %58 = vector.shape_cast %57 : vector<1x1x128x128xbf16> to vector<128x128xbf16>
    %cst_79 = arith.constant dense<0.000000e+00> : vector<16x128xf32>
    %59 = tpu.matmul %56, %58, %cst_79 {dimension_numbers = #tpu.dot_dimension_numbers<[1], [0], [0], [1], [0, 0, 1, 1], [], []>} : vector<16x128xbf16>, vector<128x128xbf16>, vector<16x128xf32> -> vector<16x128xf32>
    %60 = arith.addf %54, %59 : vector<16x128xf32>
    %c0_80 = arith.constant 0 : index
    %c0_81 = arith.constant 0 : index
    %c10 = arith.constant 10 : index
    %c0_82 = arith.constant 0 : index
    %61 = vector.load %arg3[%c0_80, %c0_81, %c10, %c0_82] : memref<1x1x26x128xbf16, #tpu.memory_space<vmem>>, vector<1x1x16x128xbf16>
    %62 = vector.shape_cast %61 : vector<1x1x16x128xbf16> to vector<16x128xbf16>
    %c0_83 = arith.constant 0 : index
    %c10_84 = arith.constant 10 : index
    %c0_85 = arith.constant 0 : index
    %c0_86 = arith.constant 0 : index
    %63 = vector.load %arg4[%c0_83, %c10_84, %c0_85, %c0_86] : memref<1x11x128x128xbf16, #tpu.memory_space<vmem>>, vector<1x1x128x128xbf16>
    %64 = vector.shape_cast %63 : vector<1x1x128x128xbf16> to vector<128x128xbf16>
    %cst_87 = arith.constant dense<0.000000e+00> : vector<16x128xf32>
    %65 = tpu.matmul %62, %64, %cst_87 {dimension_numbers = #tpu.dot_dimension_numbers<[1], [0], [0], [1], [0, 0, 1, 1], [], []>} : vector<16x128xbf16>, vector<128x128xbf16>, vector<16x128xf32> -> vector<16x128xf32>
    %66 = arith.addf %60, %65 : vector<16x128xf32>
    %c0_88 = arith.constant 0 : index
    %c0_89 = arith.constant 0 : index
    %67 = vector.load %arg5[%c0_88, %c0_89] : memref<1x128xf32, #tpu.memory_space<vmem>>, vector<1x128xf32>
    %68 = vector.broadcast %67 : vector<1x128xf32> to vector<16x128xf32>
    %69 = arith.addf %66, %68 : vector<16x128xf32>
    %cst_90 = arith.constant 0.000000e+00 : f32
    %70 = vector.broadcast %cst_90 : f32 to vector<16x128xf32>
    %71 = arith.cmpf oge, %69, %70 : vector<16x128xf32>
    %cst_91 = arith.constant 1.000000e-01 : f32
    %72 = vector.broadcast %cst_91 : f32 to vector<16x128xf32>
    %73 = arith.mulf %72, %69 : vector<16x128xf32>
    %74 = arith.select %71, %69, %73 : vector<16x128xi1>, vector<16x128xf32>
    %75 = arith.truncf %74 : vector<16x128xf32> to vector<16x128xbf16>
    %c0_92 = arith.constant 0 : index
    %c0_93 = arith.constant 0 : index
    %c0_94 = arith.constant 0 : index
    %76 = vector.load %arg6[%c0_92, %c0_93, %c0_94] : memref<1x16x128xbf16, #tpu.memory_space<vmem>>, vector<1x16x128xbf16>
    %77 = vector.shape_cast %76 : vector<1x16x128xbf16> to vector<16x128xbf16>
    %78 = vector.shape_cast %75 : vector<16x128xbf16> to vector<1x16x128xbf16>
    tpu.vector_store %arg6[%c0_92, %c0_93, %c0_94], %78 {strides = array<i32>} : memref<1x16x128xbf16, #tpu.memory_space<vmem>>, vector<1x16x128xbf16>,
    return
  }
  func.func @transform_0(%arg0: i32, %arg1: i32, %arg2: i32) -> (i32, i32, i32, i32) {
    %c0_i32 = arith.constant 0 : i32
    %c0_i32_0 = arith.constant 0 : i32
    return %arg0, %arg2, %c0_i32, %arg1 : i32, i32, i32, i32
  }
  func.func @transform_1(%arg0: i32, %arg1: i32, %arg2: i32) -> (i32, i32, i32, i32) {
    %c0_i32 = arith.constant 0 : i32
    %c0_i32_0 = arith.constant 0 : i32
    %c0_i32_1 = arith.constant 0 : i32
    %c0_i32_2 = arith.constant 0 : i32
    return %arg1, %c0_i32, %c0_i32_0, %c0_i32_1 : i32, i32, i32, i32
  }
  func.func @transform_2(%arg0: i32, %arg1: i32, %arg2: i32) -> (i32, i32) {
    %c0_i32 = arith.constant 0 : i32
    %c0_i32_0 = arith.constant 0 : i32
    return %c0_i32, %arg1 : i32, i32
  }
  func.func @transform_3(%arg0: i32, %arg1: i32, %arg2: i32) -> (i32, i32, i32) {
    %c0_i32 = arith.constant 0 : i32
    return %arg0, %arg2, %arg1 : i32, i32, i32
  }
}

module attributes {stable_mosaic.version = 11 : i64} {
  func.func @_conv_tap_kernel(%arg0: i32, %arg1: i32, %arg2: i32, %arg3: memref<1x1x14x512xbf16, #tpu.memory_space<vmem>>, %arg4: memref<1x11x512x128xbf16, #tpu.memory_space<vmem>>, %arg5: memref<1x128xf32, #tpu.memory_space<vmem>>, %arg6: memref<1x4x128xbf16, #tpu.memory_space<vmem>>) attributes {dimension_semantics = [#tpu.dimension_semantics<parallel>, #tpu.dimension_semantics<parallel>, #tpu.dimension_semantics<parallel>], iteration_bounds = array<i64: 2, 8, 1>, scalar_prefetch = 0 : i64, scratch_operands = 0 : i64, tpu.core_type = #tpu.core_type<tc>, window_params = [{transform_indices = @transform_0, window_bounds = array<i64: 1, 1, 14, 512>}, {transform_indices = @transform_1, window_bounds = array<i64: 1, 11, 512, 128>}, {transform_indices = @transform_2, window_bounds = array<i64: 1, 128>}, {transform_indices = @transform_3, window_bounds = array<i64: 1, 4, 128>}]} {
    %cst = arith.constant 0.000000e+00 : f32
    %0 = vector.broadcast %cst : f32 to vector<4x128xf32>
    %c0 = arith.constant 0 : index
    %c0_0 = arith.constant 0 : index
    %c0_1 = arith.constant 0 : index
    %c0_2 = arith.constant 0 : index
    %1 = vector.load %arg3[%c0, %c0_0, %c0_1, %c0_2] : memref<1x1x14x512xbf16, #tpu.memory_space<vmem>>, vector<1x1x4x512xbf16>
    %2 = vector.shape_cast %1 : vector<1x1x4x512xbf16> to vector<4x512xbf16>
    %c0_3 = arith.constant 0 : index
    %c0_4 = arith.constant 0 : index
    %c0_5 = arith.constant 0 : index
    %c0_6 = arith.constant 0 : index
    %3 = vector.load %arg4[%c0_3, %c0_4, %c0_5, %c0_6] : memref<1x11x512x128xbf16, #tpu.memory_space<vmem>>, vector<1x1x512x128xbf16>
    %4 = vector.shape_cast %3 : vector<1x1x512x128xbf16> to vector<512x128xbf16>
    %cst_7 = arith.constant dense<0.000000e+00> : vector<4x128xf32>
    %5 = tpu.matmul %2, %4, %cst_7 {dimension_numbers = #tpu.dot_dimension_numbers<[1], [0], [0], [1], [0, 0, 1, 1], [], []>} : vector<4x512xbf16>, vector<512x128xbf16>, vector<4x128xf32> -> vector<4x128xf32>
    %6 = arith.addf %0, %5 : vector<4x128xf32>
    %c0_8 = arith.constant 0 : index
    %c0_9 = arith.constant 0 : index
    %c1 = arith.constant 1 : index
    %c0_10 = arith.constant 0 : index
    %7 = vector.load %arg3[%c0_8, %c0_9, %c1, %c0_10] : memref<1x1x14x512xbf16, #tpu.memory_space<vmem>>, vector<1x1x4x512xbf16>
    %8 = vector.shape_cast %7 : vector<1x1x4x512xbf16> to vector<4x512xbf16>
    %c0_11 = arith.constant 0 : index
    %c1_12 = arith.constant 1 : index
    %c0_13 = arith.constant 0 : index
    %c0_14 = arith.constant 0 : index
    %9 = vector.load %arg4[%c0_11, %c1_12, %c0_13, %c0_14] : memref<1x11x512x128xbf16, #tpu.memory_space<vmem>>, vector<1x1x512x128xbf16>
    %10 = vector.shape_cast %9 : vector<1x1x512x128xbf16> to vector<512x128xbf16>
    %cst_15 = arith.constant dense<0.000000e+00> : vector<4x128xf32>
    %11 = tpu.matmul %8, %10, %cst_15 {dimension_numbers = #tpu.dot_dimension_numbers<[1], [0], [0], [1], [0, 0, 1, 1], [], []>} : vector<4x512xbf16>, vector<512x128xbf16>, vector<4x128xf32> -> vector<4x128xf32>
    %12 = arith.addf %6, %11 : vector<4x128xf32>
    %c0_16 = arith.constant 0 : index
    %c0_17 = arith.constant 0 : index
    %c2 = arith.constant 2 : index
    %c0_18 = arith.constant 0 : index
    %13 = vector.load %arg3[%c0_16, %c0_17, %c2, %c0_18] : memref<1x1x14x512xbf16, #tpu.memory_space<vmem>>, vector<1x1x4x512xbf16>
    %14 = vector.shape_cast %13 : vector<1x1x4x512xbf16> to vector<4x512xbf16>
    %c0_19 = arith.constant 0 : index
    %c2_20 = arith.constant 2 : index
    %c0_21 = arith.constant 0 : index
    %c0_22 = arith.constant 0 : index
    %15 = vector.load %arg4[%c0_19, %c2_20, %c0_21, %c0_22] : memref<1x11x512x128xbf16, #tpu.memory_space<vmem>>, vector<1x1x512x128xbf16>
    %16 = vector.shape_cast %15 : vector<1x1x512x128xbf16> to vector<512x128xbf16>
    %cst_23 = arith.constant dense<0.000000e+00> : vector<4x128xf32>
    %17 = tpu.matmul %14, %16, %cst_23 {dimension_numbers = #tpu.dot_dimension_numbers<[1], [0], [0], [1], [0, 0, 1, 1], [], []>} : vector<4x512xbf16>, vector<512x128xbf16>, vector<4x128xf32> -> vector<4x128xf32>
    %18 = arith.addf %12, %17 : vector<4x128xf32>
    %c0_24 = arith.constant 0 : index
    %c0_25 = arith.constant 0 : index
    %c3 = arith.constant 3 : index
    %c0_26 = arith.constant 0 : index
    %19 = vector.load %arg3[%c0_24, %c0_25, %c3, %c0_26] : memref<1x1x14x512xbf16, #tpu.memory_space<vmem>>, vector<1x1x4x512xbf16>
    %20 = vector.shape_cast %19 : vector<1x1x4x512xbf16> to vector<4x512xbf16>
    %c0_27 = arith.constant 0 : index
    %c3_28 = arith.constant 3 : index
    %c0_29 = arith.constant 0 : index
    %c0_30 = arith.constant 0 : index
    %21 = vector.load %arg4[%c0_27, %c3_28, %c0_29, %c0_30] : memref<1x11x512x128xbf16, #tpu.memory_space<vmem>>, vector<1x1x512x128xbf16>
    %22 = vector.shape_cast %21 : vector<1x1x512x128xbf16> to vector<512x128xbf16>
    %cst_31 = arith.constant dense<0.000000e+00> : vector<4x128xf32>
    %23 = tpu.matmul %20, %22, %cst_31 {dimension_numbers = #tpu.dot_dimension_numbers<[1], [0], [0], [1], [0, 0, 1, 1], [], []>} : vector<4x512xbf16>, vector<512x128xbf16>, vector<4x128xf32> -> vector<4x128xf32>
    %24 = arith.addf %18, %23 : vector<4x128xf32>
    %c0_32 = arith.constant 0 : index
    %c0_33 = arith.constant 0 : index
    %c4 = arith.constant 4 : index
    %c0_34 = arith.constant 0 : index
    %25 = vector.load %arg3[%c0_32, %c0_33, %c4, %c0_34] : memref<1x1x14x512xbf16, #tpu.memory_space<vmem>>, vector<1x1x4x512xbf16>
    %26 = vector.shape_cast %25 : vector<1x1x4x512xbf16> to vector<4x512xbf16>
    %c0_35 = arith.constant 0 : index
    %c4_36 = arith.constant 4 : index
    %c0_37 = arith.constant 0 : index
    %c0_38 = arith.constant 0 : index
    %27 = vector.load %arg4[%c0_35, %c4_36, %c0_37, %c0_38] : memref<1x11x512x128xbf16, #tpu.memory_space<vmem>>, vector<1x1x512x128xbf16>
    %28 = vector.shape_cast %27 : vector<1x1x512x128xbf16> to vector<512x128xbf16>
    %cst_39 = arith.constant dense<0.000000e+00> : vector<4x128xf32>
    %29 = tpu.matmul %26, %28, %cst_39 {dimension_numbers = #tpu.dot_dimension_numbers<[1], [0], [0], [1], [0, 0, 1, 1], [], []>} : vector<4x512xbf16>, vector<512x128xbf16>, vector<4x128xf32> -> vector<4x128xf32>
    %30 = arith.addf %24, %29 : vector<4x128xf32>
    %c0_40 = arith.constant 0 : index
    %c0_41 = arith.constant 0 : index
    %c5 = arith.constant 5 : index
    %c0_42 = arith.constant 0 : index
    %31 = vector.load %arg3[%c0_40, %c0_41, %c5, %c0_42] : memref<1x1x14x512xbf16, #tpu.memory_space<vmem>>, vector<1x1x4x512xbf16>
    %32 = vector.shape_cast %31 : vector<1x1x4x512xbf16> to vector<4x512xbf16>
    %c0_43 = arith.constant 0 : index
    %c5_44 = arith.constant 5 : index
    %c0_45 = arith.constant 0 : index
    %c0_46 = arith.constant 0 : index
    %33 = vector.load %arg4[%c0_43, %c5_44, %c0_45, %c0_46] : memref<1x11x512x128xbf16, #tpu.memory_space<vmem>>, vector<1x1x512x128xbf16>
    %34 = vector.shape_cast %33 : vector<1x1x512x128xbf16> to vector<512x128xbf16>
    %cst_47 = arith.constant dense<0.000000e+00> : vector<4x128xf32>
    %35 = tpu.matmul %32, %34, %cst_47 {dimension_numbers = #tpu.dot_dimension_numbers<[1], [0], [0], [1], [0, 0, 1, 1], [], []>} : vector<4x512xbf16>, vector<512x128xbf16>, vector<4x128xf32> -> vector<4x128xf32>
    %36 = arith.addf %30, %35 : vector<4x128xf32>
    %c0_48 = arith.constant 0 : index
    %c0_49 = arith.constant 0 : index
    %c6 = arith.constant 6 : index
    %c0_50 = arith.constant 0 : index
    %37 = vector.load %arg3[%c0_48, %c0_49, %c6, %c0_50] : memref<1x1x14x512xbf16, #tpu.memory_space<vmem>>, vector<1x1x4x512xbf16>
    %38 = vector.shape_cast %37 : vector<1x1x4x512xbf16> to vector<4x512xbf16>
    %c0_51 = arith.constant 0 : index
    %c6_52 = arith.constant 6 : index
    %c0_53 = arith.constant 0 : index
    %c0_54 = arith.constant 0 : index
    %39 = vector.load %arg4[%c0_51, %c6_52, %c0_53, %c0_54] : memref<1x11x512x128xbf16, #tpu.memory_space<vmem>>, vector<1x1x512x128xbf16>
    %40 = vector.shape_cast %39 : vector<1x1x512x128xbf16> to vector<512x128xbf16>
    %cst_55 = arith.constant dense<0.000000e+00> : vector<4x128xf32>
    %41 = tpu.matmul %38, %40, %cst_55 {dimension_numbers = #tpu.dot_dimension_numbers<[1], [0], [0], [1], [0, 0, 1, 1], [], []>} : vector<4x512xbf16>, vector<512x128xbf16>, vector<4x128xf32> -> vector<4x128xf32>
    %42 = arith.addf %36, %41 : vector<4x128xf32>
    %c0_56 = arith.constant 0 : index
    %c0_57 = arith.constant 0 : index
    %c7 = arith.constant 7 : index
    %c0_58 = arith.constant 0 : index
    %43 = vector.load %arg3[%c0_56, %c0_57, %c7, %c0_58] : memref<1x1x14x512xbf16, #tpu.memory_space<vmem>>, vector<1x1x4x512xbf16>
    %44 = vector.shape_cast %43 : vector<1x1x4x512xbf16> to vector<4x512xbf16>
    %c0_59 = arith.constant 0 : index
    %c7_60 = arith.constant 7 : index
    %c0_61 = arith.constant 0 : index
    %c0_62 = arith.constant 0 : index
    %45 = vector.load %arg4[%c0_59, %c7_60, %c0_61, %c0_62] : memref<1x11x512x128xbf16, #tpu.memory_space<vmem>>, vector<1x1x512x128xbf16>
    %46 = vector.shape_cast %45 : vector<1x1x512x128xbf16> to vector<512x128xbf16>
    %cst_63 = arith.constant dense<0.000000e+00> : vector<4x128xf32>
    %47 = tpu.matmul %44, %46, %cst_63 {dimension_numbers = #tpu.dot_dimension_numbers<[1], [0], [0], [1], [0, 0, 1, 1], [], []>} : vector<4x512xbf16>, vector<512x128xbf16>, vector<4x128xf32> -> vector<4x128xf32>
    %48 = arith.addf %42, %47 : vector<4x128xf32>
    %c0_64 = arith.constant 0 : index
    %c0_65 = arith.constant 0 : index
    %c8 = arith.constant 8 : index
    %c0_66 = arith.constant 0 : index
    %49 = vector.load %arg3[%c0_64, %c0_65, %c8, %c0_66] : memref<1x1x14x512xbf16, #tpu.memory_space<vmem>>, vector<1x1x4x512xbf16>
    %50 = vector.shape_cast %49 : vector<1x1x4x512xbf16> to vector<4x512xbf16>
    %c0_67 = arith.constant 0 : index
    %c8_68 = arith.constant 8 : index
    %c0_69 = arith.constant 0 : index
    %c0_70 = arith.constant 0 : index
    %51 = vector.load %arg4[%c0_67, %c8_68, %c0_69, %c0_70] : memref<1x11x512x128xbf16, #tpu.memory_space<vmem>>, vector<1x1x512x128xbf16>
    %52 = vector.shape_cast %51 : vector<1x1x512x128xbf16> to vector<512x128xbf16>
    %cst_71 = arith.constant dense<0.000000e+00> : vector<4x128xf32>
    %53 = tpu.matmul %50, %52, %cst_71 {dimension_numbers = #tpu.dot_dimension_numbers<[1], [0], [0], [1], [0, 0, 1, 1], [], []>} : vector<4x512xbf16>, vector<512x128xbf16>, vector<4x128xf32> -> vector<4x128xf32>
    %54 = arith.addf %48, %53 : vector<4x128xf32>
    %c0_72 = arith.constant 0 : index
    %c0_73 = arith.constant 0 : index
    %c9 = arith.constant 9 : index
    %c0_74 = arith.constant 0 : index
    %55 = vector.load %arg3[%c0_72, %c0_73, %c9, %c0_74] : memref<1x1x14x512xbf16, #tpu.memory_space<vmem>>, vector<1x1x4x512xbf16>
    %56 = vector.shape_cast %55 : vector<1x1x4x512xbf16> to vector<4x512xbf16>
    %c0_75 = arith.constant 0 : index
    %c9_76 = arith.constant 9 : index
    %c0_77 = arith.constant 0 : index
    %c0_78 = arith.constant 0 : index
    %57 = vector.load %arg4[%c0_75, %c9_76, %c0_77, %c0_78] : memref<1x11x512x128xbf16, #tpu.memory_space<vmem>>, vector<1x1x512x128xbf16>
    %58 = vector.shape_cast %57 : vector<1x1x512x128xbf16> to vector<512x128xbf16>
    %cst_79 = arith.constant dense<0.000000e+00> : vector<4x128xf32>
    %59 = tpu.matmul %56, %58, %cst_79 {dimension_numbers = #tpu.dot_dimension_numbers<[1], [0], [0], [1], [0, 0, 1, 1], [], []>} : vector<4x512xbf16>, vector<512x128xbf16>, vector<4x128xf32> -> vector<4x128xf32>
    %60 = arith.addf %54, %59 : vector<4x128xf32>
    %c0_80 = arith.constant 0 : index
    %c0_81 = arith.constant 0 : index
    %c10 = arith.constant 10 : index
    %c0_82 = arith.constant 0 : index
    %61 = vector.load %arg3[%c0_80, %c0_81, %c10, %c0_82] : memref<1x1x14x512xbf16, #tpu.memory_space<vmem>>, vector<1x1x4x512xbf16>
    %62 = vector.shape_cast %61 : vector<1x1x4x512xbf16> to vector<4x512xbf16>
    %c0_83 = arith.constant 0 : index
    %c10_84 = arith.constant 10 : index
    %c0_85 = arith.constant 0 : index
    %c0_86 = arith.constant 0 : index
    %63 = vector.load %arg4[%c0_83, %c10_84, %c0_85, %c0_86] : memref<1x11x512x128xbf16, #tpu.memory_space<vmem>>, vector<1x1x512x128xbf16>
    %64 = vector.shape_cast %63 : vector<1x1x512x128xbf16> to vector<512x128xbf16>
    %cst_87 = arith.constant dense<0.000000e+00> : vector<4x128xf32>
    %65 = tpu.matmul %62, %64, %cst_87 {dimension_numbers = #tpu.dot_dimension_numbers<[1], [0], [0], [1], [0, 0, 1, 1], [], []>} : vector<4x512xbf16>, vector<512x128xbf16>, vector<4x128xf32> -> vector<4x128xf32>
    %66 = arith.addf %60, %65 : vector<4x128xf32>
    %c0_88 = arith.constant 0 : index
    %c0_89 = arith.constant 0 : index
    %67 = vector.load %arg5[%c0_88, %c0_89] : memref<1x128xf32, #tpu.memory_space<vmem>>, vector<1x128xf32>
    %68 = vector.broadcast %67 : vector<1x128xf32> to vector<4x128xf32>
    %69 = arith.addf %66, %68 : vector<4x128xf32>
    %cst_90 = arith.constant 0.000000e+00 : f32
    %70 = vector.broadcast %cst_90 : f32 to vector<4x128xf32>
    %71 = arith.cmpf oge, %69, %70 : vector<4x128xf32>
    %cst_91 = arith.constant 1.000000e-01 : f32
    %72 = vector.broadcast %cst_91 : f32 to vector<4x128xf32>
    %73 = arith.mulf %72, %69 : vector<4x128xf32>
    %74 = arith.select %71, %69, %73 : vector<4x128xi1>, vector<4x128xf32>
    %75 = arith.truncf %74 : vector<4x128xf32> to vector<4x128xbf16>
    %c0_92 = arith.constant 0 : index
    %c0_93 = arith.constant 0 : index
    %c0_94 = arith.constant 0 : index
    %76 = vector.load %arg6[%c0_92, %c0_93, %c0_94] : memref<1x4x128xbf16, #tpu.memory_space<vmem>>, vector<1x4x128xbf16>
    %77 = vector.shape_cast %76 : vector<1x4x128xbf16> to vector<4x128xbf16>
    %78 = vector.shape_cast %75 : vector<4x128xbf16> to vector<1x4x128xbf16>
    tpu.vector_store %arg6[%c0_92, %c0_93, %c0_94], %78 {strides = array<i32>} : memref<1x4x128xbf16, #tpu.memory_space<vmem>>, vector<1x4x128xbf16>,
    return
  }
  func.func @transform_0(%arg0: i32, %arg1: i32, %arg2: i32) -> (i32, i32, i32, i32) {
    %c0_i32 = arith.constant 0 : i32
    %c0_i32_0 = arith.constant 0 : i32
    return %arg0, %arg2, %c0_i32, %arg1 : i32, i32, i32, i32
  }
  func.func @transform_1(%arg0: i32, %arg1: i32, %arg2: i32) -> (i32, i32, i32, i32) {
    %c0_i32 = arith.constant 0 : i32
    %c0_i32_0 = arith.constant 0 : i32
    %c0_i32_1 = arith.constant 0 : i32
    %c0_i32_2 = arith.constant 0 : i32
    return %arg1, %c0_i32, %c0_i32_0, %c0_i32_1 : i32, i32, i32, i32
  }
  func.func @transform_2(%arg0: i32, %arg1: i32, %arg2: i32) -> (i32, i32) {
    %c0_i32 = arith.constant 0 : i32
    %c0_i32_0 = arith.constant 0 : i32
    return %c0_i32, %arg1 : i32, i32
  }
  func.func @transform_3(%arg0: i32, %arg1: i32, %arg2: i32) -> (i32, i32, i32) {
    %c0_i32 = arith.constant 0 : i32
    return %arg0, %arg2, %arg1 : i32, i32, i32
  }
}

module attributes {stable_mosaic.version = 11 : i64} {
  func.func @_conv_tap_kernel(%arg0: i32, %arg1: i32, %arg2: i32, %arg3: memref<1x1x8x1024xbf16, #tpu.memory_space<vmem>>, %arg4: memref<1x5x1024x256xbf16, #tpu.memory_space<vmem>>, %arg5: memref<1x256xf32, #tpu.memory_space<vmem>>, %arg6: memref<1x4x256xbf16, #tpu.memory_space<vmem>>) attributes {dimension_semantics = [#tpu.dimension_semantics<parallel>, #tpu.dimension_semantics<parallel>, #tpu.dimension_semantics<parallel>], iteration_bounds = array<i64: 2, 4, 1>, scalar_prefetch = 0 : i64, scratch_operands = 0 : i64, tpu.core_type = #tpu.core_type<tc>, window_params = [{transform_indices = @transform_0, window_bounds = array<i64: 1, 1, 8, 1024>}, {transform_indices = @transform_1, window_bounds = array<i64: 1, 5, 1024, 256>}, {transform_indices = @transform_2, window_bounds = array<i64: 1, 256>}, {transform_indices = @transform_3, window_bounds = array<i64: 1, 4, 256>}]} {
    %cst = arith.constant 0.000000e+00 : f32
    %0 = vector.broadcast %cst : f32 to vector<4x256xf32>
    %c0 = arith.constant 0 : index
    %c0_0 = arith.constant 0 : index
    %c0_1 = arith.constant 0 : index
    %c0_2 = arith.constant 0 : index
    %1 = vector.load %arg3[%c0, %c0_0, %c0_1, %c0_2] : memref<1x1x8x1024xbf16, #tpu.memory_space<vmem>>, vector<1x1x4x1024xbf16>
    %2 = vector.shape_cast %1 : vector<1x1x4x1024xbf16> to vector<4x1024xbf16>
    %c0_3 = arith.constant 0 : index
    %c0_4 = arith.constant 0 : index
    %c0_5 = arith.constant 0 : index
    %c0_6 = arith.constant 0 : index
    %3 = vector.load %arg4[%c0_3, %c0_4, %c0_5, %c0_6] : memref<1x5x1024x256xbf16, #tpu.memory_space<vmem>>, vector<1x1x1024x256xbf16>
    %4 = vector.shape_cast %3 : vector<1x1x1024x256xbf16> to vector<1024x256xbf16>
    %cst_7 = arith.constant dense<0.000000e+00> : vector<4x256xf32>
    %5 = tpu.matmul %2, %4, %cst_7 {dimension_numbers = #tpu.dot_dimension_numbers<[1], [0], [0], [1], [0, 0, 1, 1], [], []>} : vector<4x1024xbf16>, vector<1024x256xbf16>, vector<4x256xf32> -> vector<4x256xf32>
    %6 = arith.addf %0, %5 : vector<4x256xf32>
    %c0_8 = arith.constant 0 : index
    %c0_9 = arith.constant 0 : index
    %c1 = arith.constant 1 : index
    %c0_10 = arith.constant 0 : index
    %7 = vector.load %arg3[%c0_8, %c0_9, %c1, %c0_10] : memref<1x1x8x1024xbf16, #tpu.memory_space<vmem>>, vector<1x1x4x1024xbf16>
    %8 = vector.shape_cast %7 : vector<1x1x4x1024xbf16> to vector<4x1024xbf16>
    %c0_11 = arith.constant 0 : index
    %c1_12 = arith.constant 1 : index
    %c0_13 = arith.constant 0 : index
    %c0_14 = arith.constant 0 : index
    %9 = vector.load %arg4[%c0_11, %c1_12, %c0_13, %c0_14] : memref<1x5x1024x256xbf16, #tpu.memory_space<vmem>>, vector<1x1x1024x256xbf16>
    %10 = vector.shape_cast %9 : vector<1x1x1024x256xbf16> to vector<1024x256xbf16>
    %cst_15 = arith.constant dense<0.000000e+00> : vector<4x256xf32>
    %11 = tpu.matmul %8, %10, %cst_15 {dimension_numbers = #tpu.dot_dimension_numbers<[1], [0], [0], [1], [0, 0, 1, 1], [], []>} : vector<4x1024xbf16>, vector<1024x256xbf16>, vector<4x256xf32> -> vector<4x256xf32>
    %12 = arith.addf %6, %11 : vector<4x256xf32>
    %c0_16 = arith.constant 0 : index
    %c0_17 = arith.constant 0 : index
    %c2 = arith.constant 2 : index
    %c0_18 = arith.constant 0 : index
    %13 = vector.load %arg3[%c0_16, %c0_17, %c2, %c0_18] : memref<1x1x8x1024xbf16, #tpu.memory_space<vmem>>, vector<1x1x4x1024xbf16>
    %14 = vector.shape_cast %13 : vector<1x1x4x1024xbf16> to vector<4x1024xbf16>
    %c0_19 = arith.constant 0 : index
    %c2_20 = arith.constant 2 : index
    %c0_21 = arith.constant 0 : index
    %c0_22 = arith.constant 0 : index
    %15 = vector.load %arg4[%c0_19, %c2_20, %c0_21, %c0_22] : memref<1x5x1024x256xbf16, #tpu.memory_space<vmem>>, vector<1x1x1024x256xbf16>
    %16 = vector.shape_cast %15 : vector<1x1x1024x256xbf16> to vector<1024x256xbf16>
    %cst_23 = arith.constant dense<0.000000e+00> : vector<4x256xf32>
    %17 = tpu.matmul %14, %16, %cst_23 {dimension_numbers = #tpu.dot_dimension_numbers<[1], [0], [0], [1], [0, 0, 1, 1], [], []>} : vector<4x1024xbf16>, vector<1024x256xbf16>, vector<4x256xf32> -> vector<4x256xf32>
    %18 = arith.addf %12, %17 : vector<4x256xf32>
    %c0_24 = arith.constant 0 : index
    %c0_25 = arith.constant 0 : index
    %c3 = arith.constant 3 : index
    %c0_26 = arith.constant 0 : index
    %19 = vector.load %arg3[%c0_24, %c0_25, %c3, %c0_26] : memref<1x1x8x1024xbf16, #tpu.memory_space<vmem>>, vector<1x1x4x1024xbf16>
    %20 = vector.shape_cast %19 : vector<1x1x4x1024xbf16> to vector<4x1024xbf16>
    %c0_27 = arith.constant 0 : index
    %c3_28 = arith.constant 3 : index
    %c0_29 = arith.constant 0 : index
    %c0_30 = arith.constant 0 : index
    %21 = vector.load %arg4[%c0_27, %c3_28, %c0_29, %c0_30] : memref<1x5x1024x256xbf16, #tpu.memory_space<vmem>>, vector<1x1x1024x256xbf16>
    %22 = vector.shape_cast %21 : vector<1x1x1024x256xbf16> to vector<1024x256xbf16>
    %cst_31 = arith.constant dense<0.000000e+00> : vector<4x256xf32>
    %23 = tpu.matmul %20, %22, %cst_31 {dimension_numbers = #tpu.dot_dimension_numbers<[1], [0], [0], [1], [0, 0, 1, 1], [], []>} : vector<4x1024xbf16>, vector<1024x256xbf16>, vector<4x256xf32> -> vector<4x256xf32>
    %24 = arith.addf %18, %23 : vector<4x256xf32>
    %c0_32 = arith.constant 0 : index
    %c0_33 = arith.constant 0 : index
    %c4 = arith.constant 4 : index
    %c0_34 = arith.constant 0 : index
    %25 = vector.load %arg3[%c0_32, %c0_33, %c4, %c0_34] : memref<1x1x8x1024xbf16, #tpu.memory_space<vmem>>, vector<1x1x4x1024xbf16>
    %26 = vector.shape_cast %25 : vector<1x1x4x1024xbf16> to vector<4x1024xbf16>
    %c0_35 = arith.constant 0 : index
    %c4_36 = arith.constant 4 : index
    %c0_37 = arith.constant 0 : index
    %c0_38 = arith.constant 0 : index
    %27 = vector.load %arg4[%c0_35, %c4_36, %c0_37, %c0_38] : memref<1x5x1024x256xbf16, #tpu.memory_space<vmem>>, vector<1x1x1024x256xbf16>
    %28 = vector.shape_cast %27 : vector<1x1x1024x256xbf16> to vector<1024x256xbf16>
    %cst_39 = arith.constant dense<0.000000e+00> : vector<4x256xf32>
    %29 = tpu.matmul %26, %28, %cst_39 {dimension_numbers = #tpu.dot_dimension_numbers<[1], [0], [0], [1], [0, 0, 1, 1], [], []>} : vector<4x1024xbf16>, vector<1024x256xbf16>, vector<4x256xf32> -> vector<4x256xf32>
    %30 = arith.addf %24, %29 : vector<4x256xf32>
    %c0_40 = arith.constant 0 : index
    %c0_41 = arith.constant 0 : index
    %31 = vector.load %arg5[%c0_40, %c0_41] : memref<1x256xf32, #tpu.memory_space<vmem>>, vector<1x256xf32>
    %32 = vector.broadcast %31 : vector<1x256xf32> to vector<4x256xf32>
    %33 = arith.addf %30, %32 : vector<4x256xf32>
    %cst_42 = arith.constant 0.000000e+00 : f32
    %34 = vector.broadcast %cst_42 : f32 to vector<4x256xf32>
    %35 = arith.cmpf oge, %33, %34 : vector<4x256xf32>
    %cst_43 = arith.constant 1.000000e-01 : f32
    %36 = vector.broadcast %cst_43 : f32 to vector<4x256xf32>
    %37 = arith.mulf %36, %33 : vector<4x256xf32>
    %38 = arith.select %35, %33, %37 : vector<4x256xi1>, vector<4x256xf32>
    %39 = arith.truncf %38 : vector<4x256xf32> to vector<4x256xbf16>
    %c0_44 = arith.constant 0 : index
    %c0_45 = arith.constant 0 : index
    %c0_46 = arith.constant 0 : index
    %40 = vector.load %arg6[%c0_44, %c0_45, %c0_46] : memref<1x4x256xbf16, #tpu.memory_space<vmem>>, vector<1x4x256xbf16>
    %41 = vector.shape_cast %40 : vector<1x4x256xbf16> to vector<4x256xbf16>
    %42 = vector.shape_cast %39 : vector<4x256xbf16> to vector<1x4x256xbf16>
    tpu.vector_store %arg6[%c0_44, %c0_45, %c0_46], %42 {strides = array<i32>} : memref<1x4x256xbf16, #tpu.memory_space<vmem>>, vector<1x4x256xbf16>,
    return
  }
  func.func @transform_0(%arg0: i32, %arg1: i32, %arg2: i32) -> (i32, i32, i32, i32) {
    %c0_i32 = arith.constant 0 : i32
    %c0_i32_0 = arith.constant 0 : i32
    %c0_i32_1 = arith.constant 0 : i32
    return %arg0, %arg2, %c0_i32, %c0_i32_0 : i32, i32, i32, i32
  }
  func.func @transform_1(%arg0: i32, %arg1: i32, %arg2: i32) -> (i32, i32, i32, i32) {
    %c0_i32 = arith.constant 0 : i32
    %c0_i32_0 = arith.constant 0 : i32
    %c0_i32_1 = arith.constant 0 : i32
    %c0_i32_2 = arith.constant 0 : i32
    return %arg1, %c0_i32, %c0_i32_0, %c0_i32_1 : i32, i32, i32, i32
  }
  func.func @transform_2(%arg0: i32, %arg1: i32, %arg2: i32) -> (i32, i32) {
    %c0_i32 = arith.constant 0 : i32
    %c0_i32_0 = arith.constant 0 : i32
    return %c0_i32, %arg1 : i32, i32
  }
  func.func @transform_3(%arg0: i32, %arg1: i32, %arg2: i32) -> (i32, i32, i32) {
    %c0_i32 = arith.constant 0 : i32
    return %arg0, %arg2, %arg1 : i32, i32, i32
  }
}

</mosaic_0001>

<bundles_post_ra>
// kernel: discriminator_s_forward.5
= control target key start
LH: loop header
LB: loop body
LE: loop exit
PB: predicated region body
PF: predicated region fallthrough
CT: control target
= control target key end

     0   :  { %s5832_s12 = smov 0   ;;  %s5834_s13 = smov 0   ;;  %s7583_s0 = inlined_call_operand.vmem [shape: bf16[2,1,266,64], index: 0, kind: input, shape index: {}]   ;;  %s7584_s1 = inlined_call_operand.vmem [shape: bf16[1,11,64,64], index: 1, kind: input, shape index: {}]   ;;  %s7585_s2 = inlined_call_operand.vmem [shape: f32[1,64], index: 2, kind: input, shape index: {}]   ;;  %s7586_s3 = inlined_call_operand.vmem [shape: bf16[2,256,64], index: 3, kind: output, shape index: {}]  }
   0x1   :  { %s5836_s14 = smov 0  }
   0x2 LB: > { %s32_s15 = sadd.s32 1, %s5806_s13  ;;  %p4534_p0 = scmp.ge.s32.totalorder %s5810_s14, 1  ;;  %s5810_s14 = sphi %s5836_s14, %s13_s14   ;;  %s5806_s13 = sphi %s5834_s13, %s7724_s13   ;;  %s5802_s12 = sphi %s5832_s12, %s7723_s12  }
   0x3   : > { %p34_p1 = scmp.ge.s32.totalorder %s32_s15, 2  ;;  %p184_p2 = scmp.lt.s32.totalorder %s5810_s14, 3 }
   0x5   : > { %s7726_s15 = smov (%p34_p1, %s32_s15), 0  ;;  %p185_p3 = pnand %p4534_p0, %p184_p2 }
   0x7   : > { %188 = sbr.rel (%p185_p3) target bundleno = 587 (0x24b), region = 32 }
   0xc   : > { %v5656_v0 = vld [vmem:[%s7584_s1 + $0x38] sm:$0xff]   ;;  %p227_p4 = scmp.lt.s32.totalorder %s5802_s12, 1  ;;  %v5657_v1 = vld [vmem:[%s7584_s1 + $0x30] sm:$0xff]   ;;  %v5658_v2 = vld [vmem:[%s7584_s1 + $0x28] sm:$0xff]   ;;  %vm548_vm0 = vcmask 523264   ;;  %vm988_vm2 = vcmask 1046528  }
   0xd   : > { %5183 = vmatprep.subr.bf16.mxu0 %v5656_v0  ;;  %5623 = vmatprep.subr.bf16.mxu1 %v5656_v0  ;;  %v5659_v3 = vld [vmem:[%s7584_s1 + $0x20] sm:$0xff]   ;;  %v5897_v21 = vld [vmem:[%s7584_s1 + $0x18] sm:$0xff]   ;;  %vm391_vm1 = vsmask.f32 7424  ;;  %v5672_v54 = vld [vmem:[%s7584_s1 + $0x10] sm:$0xff]   ;;  %vm1656_vm3 = vcmask 1045504  }
   0xe   : > { %s7728_s12 = smov (!%p227_p4, %s5802_s12), 1  ;;  %5184 = vmatpush3.bf16.msra.mxu0 %v5656_v0  ;;  %5627 = vmatpush3.bf16.msra.mxu1 %v5656_v0  ;;  %v5667_v31 = vld [vmem:[%s7584_s1 + $0x58] sm:$0xff]   ;;  %v5673_v0 = vld [vmem:[%s7584_s1 + $0x50] sm:$0xff]   ;;  %vm2324_vm4 = vcmask 1044480   ;;  %vm1300_vm5 = vsmask.f32 6400 }
   0xf   : > { %5185 = vmatprep.subr.bf16.mxu0 %v5657_v1  ;;  %5624 = vmatprep.subr.bf16.mxu1 %v5657_v1  ;;  %s5631_s22 = smul.u32 136, %s7728_s12  ;;  %vm1968_vm6 = vsmask.f32 5376  ;;  %vm2636_vm7 = vsmask.f32 4352  ;;  %vm4365_vm8 = vcmask 519168  }
  0x10   : > { %s4930_s20 = sshll.u32 %s7728_s12, 7 }
  0x11   : > { %s5868_s27 = scalar_lea.vmem %s7583_s0, %s5631_s22  ;;  %s7395_s22 = scalar_lea.vmem %s7586_s3, %s4930_s20 }
  0x12   : > { %5186 = vmatpush3.bf16.msra.mxu0 %v5657_v1  ;;  %5628 = vmatpush3.bf16.msra.mxu1 %v5657_v1  ;;  %v258_v4 = vld [vmem:[%s5868_s27] sm:$0xf]  ;;  %v5872_v5 = vld [vmem:[%s5868_s27 + $0x4] sm:$0xf]  ;;  %v260_v6 = vld [vmem:[%s5868_s27 + $0x8] sm:$0xf] }
  0x13   : > { %5187 = vmatprep.subr.bf16.mxu0 %v5658_v2  ;;  %5625 = vmatprep.subr.bf16.mxu1 %v5658_v2  ;;  %v261_v7 = vld [vmem:[%s5868_s27 + $0xc] sm:$0xf]  ;;  %v5877_v8 = vcombine.low %v258_v4, %v5872_v5  ;;  %v274_v9 = vld [vmem:[%s5868_s27 + $0x40] sm:$0xf]  ;;  %v275_v10 = vld [vmem:[%s5868_s27 + $0x44] sm:$0xf] }
  0x14   : > { %v5881_v11 = vcombine.low %v260_v6, %v261_v7  ;;  %v276_v12 = vld [vmem:[%s5868_s27 + $0x48] sm:$0xf]  ;;  %v277_v13 = vld [vmem:[%s5868_s27 + $0x4c] sm:$0xf]  ;;  %v5885_v14 = vcombine.low %v274_v9, %v275_v10  ;;  %v262_v15 = vld [vmem:[%s5868_s27 + $0x10] sm:$0xf] }
  0x15   : > { %v393_v16 = vshrl.u32 %v5877_v8, 16  ;;  %v395_v17 = vshll.u32 %v5877_v8, 16  ;;  %v5890_v18 = vcombine.low %v276_v12, %v277_v13  ;;  %v263_v19 = vld [vmem:[%s5868_s27 + $0x14] sm:$0xf]  ;;  %v278_v20 = vld [vmem:[%s5868_s27 + $0x50] sm:$0xf] }
  0x16   : > { %5188 = vmatpush3.bf16.msra.mxu0 %v5658_v2  ;;  %5629 = vmatpush3.bf16.msra.mxu1 %v5658_v2  ;;  %v5900_v22 = vshll.u32 %v5881_v11, 16  ;;  %v5903_v23 = vshrl.u32 %v5881_v11, 16  ;;  %v5906_v24 = vshll.u32 %v5885_v14, 16  ;;  %v5909_v25 = vshrl.u32 %v5885_v14, 16  ;;  %v279_v26 = vld [vmem:[%s5868_s27 + $0x54] sm:$0xf] }
  0x17   : > { %5189 = vmatprep.subr.bf16.mxu0 %v5659_v3  ;;  %5626 = vmatprep.subr.bf16.mxu1 %v5659_v3  ;;  %v397_v27 = vrot.slane %v395_v17, 1  ;;  %v5913_v28 = vshll.u32 %v5890_v18, 16  ;;  %v5916_v29 = vshrl.u32 %v5890_v18, 16  ;;  %v5918_v30 = vcombine.low %v262_v15, %v263_v19  ;;  %v264_v32 = vld [vmem:[%s5868_s27 + $0x18] sm:$0xf]  ;;  %v5994_v12 = vld [vmem:[%s7584_s1 + $0x48] sm:$0xff]  }
  0x18   : > { %v402_v33 = vrot.slane %v5900_v22, 1  ;;  %v7587_v34 = vrot.slane %v5906_v24, 1  ;;  %v5926_v35 = vcombine.low %v278_v20, %v279_v26  ;;  %v265_v36 = vld [vmem:[%s5868_s27 + $0x1c] sm:$0xf]  ;;  %v280_v41 = vld [vmem:[%s5868_s27 + $0x58] sm:$0xf] }
  0x19   : > { %v398_v37 = vor.u32 %v397_v27, %v393_v16  ;;  %v466_v38 = vrot.slane %v5913_v28, 1  ;;  %v5931_v39 = vshll.u32 %v5918_v30, 16  ;;  %v5933_v40 = vcombine.low %v264_v32, %v265_v36  ;;  %v281_v42 = vld [vmem:[%s5868_s27 + $0x5c] sm:$0xf]  ;;  %v266_v47 = vld [vmem:[%s5868_s27 + $0x20] sm:$0xf] }
  0x1a   : > { %5190 = vmatpush3.bf16.msra.mxu0 %v5659_v3  ;;  %5630 = vmatpush3.bf16.msra.mxu1 %v5659_v3  ;;  %v406_v43 = vor.u32 %v5903_v23, %v402_v33  ;;  %v462_v44 = vor.u32 %v5909_v25, %v7587_v34  ;;  %v5942_v45 = vshll.u32 %v5926_v35, 16  ;;  %v5945_v46 = vshrl.u32 %v5918_v30, 16  ;;  %v267_v48 = vld [vmem:[%s5868_s27 + $0x24] sm:$0xf]  ;;  %v282_v53 = vld [vmem:[%s5868_s27 + $0x60] sm:$0xf] }
  0x1b   : > { %v403_v49 = vsel %vm391_vm1, %v398_v37, %v402_v33  ;;  %v470_v50 = vor.u32 %v5916_v29, %v466_v38  ;;  %v410_v51 = vrot.slane %v5931_v39, 1  ;;  %5223 = vmatprep.subr.bf16.mxu1 %v5897_v21  ;;  %5263 = vmatprep.subr.bf16.mxu0 %v5667_v31  ;;  %v5954_v52 = vshll.u32 %v5933_v40, 16  ;;  %v283_v59 = vld [vmem:[%s5868_s27 + $0x64] sm:$0xf]  ;;  %v268_v1 = vld [vmem:[%s5868_s27 + $0x28] sm:$0xf] }
  0x1c   : > { %5191 = vmatprep.mubr.msk.bf16.mxu0 %vm548_vm0, %v403_v49  ;;  %v467_v55 = vsel %vm391_vm1, %v462_v44, %v466_v38  ;;  %v474_v56 = vrot.slane %v5942_v45, 1  ;;  %v5963_v57 = vcombine.low %v280_v41, %v281_v42  ;;  %v5966_v58 = vshrl.u32 %v5926_v35, 16  ;;  %v269_v2 = vld [vmem:[%s5868_s27 + $0x2c] sm:$0xf]  ;;  %v284_v9 = vld [vmem:[%s5868_s27 + $0x68] sm:$0xf] }
  0x1d   : > { %5207 = vmatprep.mubr.msk.bf16.mxu1 %vm548_vm0, %v467_v55  ;;  %v411_v60 = vsel %vm391_vm1, %v406_v43, %v410_v51  ;;  %v414_v61 = vor.u32 %v5945_v46, %v410_v51  ;;  %v418_v62 = vrot.slane %v5954_v52, 1  ;;  %v5973_v63 = vcombine.low %v266_v47, %v267_v48  ;;  %v285_v10 = vld [vmem:[%s5868_s27 + $0x6c] sm:$0xf]  ;;  %v270_v19 = vld [vmem:[%s5868_s27 + $0x30] sm:$0xf] }
  0x1e   : > { %5192 = vmatmul.mubr.msk.bf16.vlgmr.msra.gmra.mxu0 %vm548_vm0, %v411_v60  ;;  %v475_v3 = vsel %vm391_vm1, %v470_v50, %v474_v56  ;;  %v478_v4 = vor.u32 %v5966_v58, %v474_v56  ;;  %v5984_v6 = vshll.u32 %v5963_v57, 16  ;;  %v5987_v7 = vshrl.u32 %v5933_v40, 16  ;;  %v271_v20 = vld [vmem:[%s5868_s27 + $0x34] sm:$0xf]  ;;  %v286_v33 = vld [vmem:[%s5868_s27 + $0x70] sm:$0xf] }
  0x1f   : > { %5208 = vmatmul.mubr.msk.bf16.vlgmr.msra.gmra.mxu1 %vm548_vm0, %v475_v3  ;;  %5264 = vmatpush3.bf16.msra.mxu0 %v5667_v31  ;;  %v419_v13 = vsel %vm391_vm1, %v414_v61, %v418_v62  ;;  %v5999_v15 = vshll.u32 %v5973_v63, 16  ;;  %v6001_v16 = vcombine.low %v282_v53, %v283_v59  ;;  %v6004_v17 = vshrl.u32 %v5963_v57, 16  ;;  %v287_v36 = vld [vmem:[%s5868_s27 + $0x74] sm:$0xf]  ;;  %v5678_v42 = vld [vmem:[%s7584_s1 + $0x8] sm:$0xff]   ;;  %v5683_v56 = vld [vmem:[%s7584_s1] sm:$0xff]  }
  0x20   : > { %5224 = vmatpush3.bf16.msra.mxu1 %v5897_v21  ;;  %5195 = vmatprep.mubr.msk.bf16.mxu0 %vm548_vm0, %v419_v13  ;;  %v482_v26 = vrot.slane %v5984_v6, 1  ;;  %v422_v27 = vor.u32 %v5987_v7, %v418_v62  ;;  %v6012_v31 = vcombine.low %v268_v1, %v269_v2  ;;  %v6015_v32 = vshrl.u32 %v5973_v63, 16  ;;  %v272_v55 = vld [vmem:[%s5868_s27 + $0x38] sm:$0xf]  ;;  %v5684_v1 = vld [vmem:[%s7584_s1 + $0x40] sm:$0xff]  }
  0x21   : > { %v426_v37 = vrot.slane %v5999_v15, 1  ;;  %v6021_v38 = vshll.u32 %v6001_v16, 16  ;;  %5225 = vmatprep.subr.bf16.mxu1 %v5672_v54  ;;  %5265 = vmatprep.subr.bf16.mxu0 %v5673_v0  ;;  %v6023_v21 = vcombine.low %v284_v9, %v285_v10  ;;  %v6026_v41 = vshrl.u32 %v6001_v16, 16  ;;  %v288_v9 = vld [vmem:[%s5868_s27 + $0x78] sm:$0xf] }
  0x22   : > { %v483_v43 = vsel %vm391_vm1, %v478_v4, %v482_v26  ;;  %v486_v44 = vor.u32 %v6004_v17, %v482_v26  ;;  %v6034_v47 = vshll.u32 %v6012_v31, 16  ;;  %v6036_v48 = vcombine.low %v270_v19, %v271_v20  ;;  %v289_v10 = vld [vmem:[%s5868_s27 + $0x7c] sm:$0xf] }
  0x23   : > { %5211 = vmatprep.mubr.msk.bf16.mxu1 %vm548_vm0, %v483_v43  ;;  %v427_v49 = vsel %vm391_vm1, %v422_v27, %v426_v37  ;;  %v490_v50 = vrot.slane %v6021_v38, 1  ;;  %5266 = vmatpush3.bf16.msra.mxu0 %v5673_v0  ;;  %v430_v51 = vor.u32 %v6015_v32, %v426_v37  ;;  %v6043_v53 = vshll.u32 %v6023_v21, 16  ;;  %v273_v0 = vld [vmem:[%s5868_s27 + $0x3c] sm:$0xf] }
  0x24   : > { %5226 = vmatpush3.bf16.msra.mxu1 %v5672_v54  ;;  %v434_v59 = vrot.slane %v6034_v47, 1  ;;  %v6051_v60 = vshrl.u32 %v6012_v31, 16  ;;  %v6054_v61 = vshll.u32 %v6036_v48, 16  ;;  %v6056_v62 = vcombine.low %v286_v33, %v287_v36  ;;  %5267 = vmatprep.subr.bf16.mxu0 %v5994_v12  ;;  %v6087_v37 = vld [vmem:[%s5868_s27 + $0x80] ss:$0 sps:$4 sm:$0x11]  }
  0x25   : > { %v491_v2 = vsel %vm391_vm1, %v486_v44, %v490_v50  ;;  %v494_v54 = vor.u32 %v6026_v41, %v490_v50  ;;  %v498_v3 = vrot.slane %v6043_v53, 1  ;;  %v6067_v4 = vshrl.u32 %v6023_v21, 16  ;;  %5227 = vmatprep.subr.bf16.mxu1 %v5678_v42 }
  0x26   : > { %7602 = vst [vmem:[#allocation2_spill] sm:$0xff] %v6056_v62  ;;  %5196 = vmatmul.mubr.msk.bf16.gmra.mxu0 %vm548_vm0, %v427_v49  ;;  %v435_v13 = vsel %vm391_vm1, %v430_v51, %v434_v59  ;;  %v442_v19 = vrot.slane %v6054_v61, 1  ;;  %v6075_v20 = vshll.u32 %v6056_v62, 16  ;;  %v438_v27 = vor.u32 %v6051_v60, %v434_v59  ;;  %v975_v59 = vld [vmem:[%s5868_s27] sm:$0xe] }
  0x27   : > { %5212 = vmatmul.mubr.msk.bf16.gmra.mxu1 %vm548_vm0, %v491_v2  ;;  %5199 = vmatprep.mubr.msk.bf16.mxu0 %vm548_vm0, %v435_v13  ;;  %v499_v26 = vsel %vm391_vm1, %v494_v54, %v498_v3  ;;  %v6081_v33 = vcombine.low %v272_v55, %v273_v0  ;;  %v6084_v36 = vshrl.u32 %v6036_v48, 16  ;;  %v502_v43 = vor.u32 %v6067_v4, %v498_v3  ;;  %v5686_v0 = vld [vmem:[%s7584_s1 + $0x78] sm:$0xff]  }
  0x28   : > { %7603 = vst [vmem:[#allocation3_spill] sm:$0xff] %v6075_v20  ;;  %5215 = vmatprep.mubr.msk.bf16.mxu1 %vm548_vm0, %v499_v26  ;;  %v506_v44 = vrot.slane %v6075_v20, 1  ;;  %5228 = vmatpush3.bf16.msra.mxu1 %v5678_v42  ;;  %v6092_v49 = vcombine.low %v288_v9, %v289_v10  ;;  %v6095_v50 = vshrl.u32 %v6056_v62, 16  ;;  %v443_v54 = vsel %vm391_vm1, %v438_v27, %v442_v19 }
  0x29   : > { %5268 = vmatpush3.bf16.msra.mxu0 %v5994_v12  ;;  %v446_v51 = vor.u32 %v6084_v36, %v442_v19  ;;  %v6100_v55 = vshll.u32 %v6081_v33, 16  ;;  %5229 = vmatprep.subr.bf16.mxu1 %v5683_v56  ;;  %v5687_v12 = vld [vmem:[%s7584_s1 + $0x98] sm:$0xff]   ;;  %v6116_v9 = vshrl.u32 %v6081_v33, 16  ;;  %v520_v10 = vshll.u32 %v6087_v37, 16 }
  0x2a   : > { %7604 = vst [vmem:[#allocation4_spill] sm:$0xff] %v6092_v49  ;;  %v510_v42 = vor.u32 %v6095_v50, %v506_v44  ;;  %v6108_v2 = vshll.u32 %v6092_v49, 16  ;;  %5269 = vmatprep.subr.bf16.mxu0 %v5684_v1  ;;  %v507_v13 = vsel %vm391_vm1, %v502_v43, %v506_v44  ;;  %v6122_v34 = vshrl.u32 %v6092_v49, 16 }
  0x2b   : > { %v450_v3 = vrot.slane %v6100_v55, 1  ;;  %v6125_v20 = vcombine.low %v975_v59, %v5872_v5  ;;  %v522_v44 = vrot.slane %v520_v10, 1  ;;  %v7607_v59 = vrot.slane %v5906_v24, 1 }
  0x2c   : > { %7605 = vst [vmem:[#allocation5_spill] sm:$0xff] %v6108_v2  ;;  %v514_v26 = vrot.slane %v6108_v2, 1  ;;  %7606 = vst [vmem:[#allocation6_spill] sm:$0xff] %v6122_v34  ;;  %5230 = vmatpush3.bf16.msra.mxu1 %v5683_v56  ;;  %v7590_v10 = vrot.slane %v5881_v11, 2 }
  0x2d   : > { %v451_v19 = vsel %vm391_vm1, %v446_v51, %v450_v3  ;;  %5270 = vmatpush3.bf16.msra.mxu0 %v5684_v1  ;;  %5303 = vmatprep.subr.bf16.mxu1 %v5686_v0  ;;  %v454_v43 = vor.u32 %v6116_v9, %v450_v3  ;;  %v989_v51 = vrot.slane %v6125_v20, 1  ;;  %v990_v1 = vrot.slane %v5881_v11, 1 }
  0x2e   : > { %5200 = vmatmul.mubr.msk.bf16.gmra.mxu0 %vm548_vm0, %v443_v54  ;;  %v515_v27 = vsel %vm391_vm1, %v510_v42, %v514_v26  ;;  %5343 = vmatprep.subr.bf16.mxu0 %v5687_v12  ;;  %v518_v56 = vor.u32 %v6122_v34, %v514_v26  ;;  %v992_v3 = vrot.slane %v5918_v30, 1  ;;  %v1660_v26 = vrot.slane %v5918_v30, 2  ;;  %v5693_v34 = vld [vmem:[%s7584_s1 + $0x80] sm:$0xff]  }
  0x2f   : > { %5216 = vmatmul.mubr.msk.bf16.gmra.mxu1 %vm548_vm0, %v507_v13  ;;  %5203 = vmatprep.mubr.msk.bf16.mxu0 %vm548_vm0, %v451_v19  ;;  %v459_v42 = vsel %vm391_vm1, %v454_v43, %v7607_v59  ;;  %v991_v13 = vsel %vm988_vm2, %v989_v51, %v990_v1  ;;  %v1662_v19 = vrot.slane %v5933_v40, 2  ;;  %v1664_v51 = vrot.slane %v5973_v63, 2 }
  0x30   : > { %5219 = vmatprep.mubr.msk.bf16.mxu1 %vm548_vm0, %v515_v27  ;;  %v523_v54 = vsel %vm391_vm1, %v518_v56, %v522_v44  ;;  %v994_v27 = vrot.slane %v5933_v40, 1  ;;  %v993_v43 = vsel %vm988_vm2, %v990_v1, %v992_v3  ;;  %v6156_v44 = vsel %vm1656_vm3, %v7590_v10, %v1660_v26 }
  0x31   : > { %v6159_v56 = vsel %vm1656_vm3, %v1660_v26, %v1662_v19  ;;  %v1666_v59 = vrot.slane %v6012_v31, 2  ;;  %v996_v26 = vrot.slane %v5973_v63, 1 }
  0x32   : > { %v995_v1 = vsel %vm988_vm2, %v992_v3, %v994_v27  ;;  %v998_v3 = vrot.slane %v6012_v31, 1 }
  0x33   : > { %v6179_v10 = vsel %vm1656_vm3, %v1664_v51, %v1666_v59  ;;  %v997_v2 = vsel %vm988_vm2, %v994_v27, %v996_v26  ;;  %v1000_v27 = vrot.slane %v6036_v48, 1 }
  0x36   : > { %5204 = vmatmul.mubr.msk.bf16.gmra.mxu0 %vm548_vm0, %v459_v42  ;;  %v5689_v42 = vld [vmem:[%s7584_s1 + $0x90] sm:$0xff]  }
  0x37   : > { %5220 = vmatmul.mubr.msk.bf16.gmra.mxu1 %vm548_vm0, %v523_v54  ;;  %5271 = vmatprep.mubr.msk.bf16.mxu0 %vm548_vm0, %v991_v13  ;;  %v6172_v54 = vsel %vm1656_vm3, %v1662_v19, %v1664_v51  ;;  %v1668_v13 = vrot.slane %v6036_v48, 2  ;;  %v5691_v19 = vld [vmem:[%s7584_s1 + $0x88] sm:$0xff]  }
  0x38   : > { %5231 = vmatprep.mubr.msk.bf16.mxu1 %vm548_vm0, %v5877_v8  ;;  %v5688_v8 = vld [vmem:[%s7584_s1 + $0x70] sm:$0xff]  }
  0x3e   : > { %5272 = vmatmul.mubr.msk.bf16.vlgmr.msra.gmra.mxu0 %vm548_vm0, %v993_v43  ;;  %v6188_v43 = vsel %vm1656_vm3, %v1666_v59, %v1668_v13  ;;  %v999_v59 = vsel %vm988_vm2, %v996_v26, %v998_v3 }
  0x3f   : > { %5232 = vmatmul.mubr.msk.bf16.vlgmr.msra.gmra.mxu1 %vm548_vm0, %v5881_v11  ;;  %5344 = vmatpush3.bf16.msra.mxu0 %v5687_v12  ;;  %v7596_v12 = vrot.slane %v6081_v33, 2 }
  0x40   : > { %5304 = vmatpush3.bf16.msra.mxu1 %v5686_v0  ;;  %5235 = vmatprep.mubr.msk.bf16.mxu1 %vm548_vm0, %v5918_v30  ;;  %v5690_v0 = vld [vmem:[%s7584_s1 + $0x68] sm:$0xff]  }
  0x41   : > { %5275 = vmatprep.mubr.msk.bf16.mxu0 %vm548_vm0, %v995_v1  ;;  %5305 = vmatprep.subr.bf16.mxu1 %v5688_v8  ;;  %v6198_v51 = vsel %vm1656_vm3, %v1668_v13, %v7596_v12  ;;  %v5692_v1 = vld [vmem:[%s7584_s1 + $0x60] sm:$0xff]   ;;  %v1001_v13 = vsel %vm988_vm2, %v998_v3, %v1000_v27  ;;  %v1006_v3 = vrot.slane %v5890_v18, 1 }
  0x42   : > { %5345 = vmatprep.subr.bf16.mxu0 %v5689_v42 }
  0x43   : > { %5346 = vmatpush3.bf16.msra.mxu0 %v5689_v42  ;;  %v6224_v42 = vld [vmem:[%s7584_s1 + $0xd8] sm:$0xff]  }
  0x44   : > { %5306 = vmatpush3.bf16.msra.mxu1 %v5688_v8  ;;  %5347 = vmatprep.subr.bf16.mxu0 %v5691_v19  ;;  %v1002_v8 = vrot.slane %v6081_v33, 1 }
  0x45   : > { %5307 = vmatprep.subr.bf16.mxu1 %v5690_v0 }
  0x46   : > { %5276 = vmatmul.mubr.msk.bf16.gmra.mxu0 %vm548_vm0, %v997_v2  ;;  %v6219_v2 = vld [vmem:[%s7584_s1 + $0xb8] sm:$0xff]   ;;  %v1003_v26 = vsel %vm988_vm2, %v1000_v27, %v1002_v8  ;;  %v2330_v27 = vrot.slane %v5933_v40, 3 }
  0x47   : > { %5236 = vmatmul.mubr.msk.bf16.gmra.mxu1 %vm548_vm0, %v5933_v40  ;;  %5279 = vmatprep.mubr.msk.bf16.mxu0 %vm548_vm0, %v999_v59  ;;  %v2328_v59 = vrot.slane %v5918_v30, 3  ;;  %v1008_v30 = vrot.slane %v5926_v35, 1  ;;  %v1010_v40 = vrot.slane %v5963_v57, 1 }
  0x48   : > { %5239 = vmatprep.mubr.msk.bf16.mxu1 %vm548_vm0, %v5973_v63  ;;  %5308 = vmatpush3.bf16.msra.mxu1 %v5690_v0 }
  0x49   : > { %5348 = vmatpush3.bf16.msra.mxu0 %v5691_v19  ;;  %5309 = vmatprep.subr.bf16.mxu1 %v5692_v1  ;;  %v1004_v19 = vrot.slane %v5885_v14, 1 }
  0x4a   : > { %5349 = vmatprep.subr.bf16.mxu0 %v5693_v34 }
  0x4b   : > { %v1005_v0 = vsel %vm988_vm2, %v1002_v8, %v1004_v19  ;;  %v2332_v8 = vrot.slane %v5973_v63, 3  ;;  %v7597_v63 = vrot.slane %v6081_v33, 3 }
  0x4c   : > { %5310 = vmatpush3.bf16.msra.mxu1 %v5692_v1  ;;  %v1007_v1 = vsel %vm988_vm2, %v1004_v19, %v1006_v3  ;;  %v2334_v19 = vrot.slane %v6012_v31, 3 }
  0x4d   : > { %5350 = vmatpush3.bf16.msra.mxu0 %v5693_v34  ;;  %5383 = vmatprep.subr.bf16.mxu1 %v6219_v2  ;;  %v7595_v34 = vrot.slane %v5881_v11, 3 }
  0x4e   : > { %5280 = vmatmul.mubr.msk.bf16.gmra.mxu0 %vm548_vm0, %v1001_v13  ;;  %5423 = vmatprep.subr.bf16.mxu0 %v6224_v42 }
  0x4f   : > { %5240 = vmatmul.mubr.msk.bf16.gmra.mxu1 %vm548_vm0, %v6012_v31  ;;  %5283 = vmatprep.mubr.msk.bf16.mxu0 %vm548_vm0, %v1003_v26  ;;  %v6246_v13 = vsel %vm2324_vm4, %v7595_v34, %v2328_v59  ;;  %v6250_v26 = vsel %vm2324_vm4, %v2328_v59, %v2330_v27  ;;  %v2336_v59 = vrot.slane %v6036_v48, 3  ;;  %v6266_v34 = vsel %vm2324_vm4, %v2332_v8, %v2334_v19 }
  0x50   : > { %5243 = vmatprep.mubr.msk.bf16.mxu1 %vm548_vm0, %v6036_v48  ;;  %7608 = vst [vmem:[#allocation7_spill] sm:$0xff] %v6250_v26  ;;  %7610 = vst [vmem:[#allocation9_spill] sm:$0xff] %v6266_v34  ;;  %v1011_v26 = vsel %vm988_vm2, %v1008_v30, %v1010_v40  ;;  %v1012_v48 = vrot.slane %v6001_v16, 1  ;;  %v1317_v34 = vrot.slane %v5987_v7, 1 }
  0x51   : > { %v6270_v12 = vsel %vm2324_vm4, %v2334_v19, %v2336_v59  ;;  %v6277_v31 = vsel %vm2324_vm4, %v2336_v59, %v7597_v63  ;;  %v1302_v19 = vshrl.u32 %v6125_v20, 16  ;;  %v1643_v59 = vld [vmem:[%s5868_s27] sm:$0xc] }
  0x52   : > { %7611 = vst [vmem:[#allocation10_spill] sm:$0xff] %v6270_v12  ;;  %7612 = vst [vmem:[#allocation11_spill] sm:$0xff] %v6277_v31  ;;  %v1309_v31 = vrot.slane %v5903_v23, 1  ;;  %v1310_v12 = vrot.slane %v5900_v22, 2 }
  0x56   : > { %5284 = vmatmul.mubr.msk.bf16.gmra.mxu0 %vm548_vm0, %v1005_v0  ;;  %v6262_v0 = vsel %vm2324_vm4, %v2330_v27, %v2332_v8  ;;  %v1013_v27 = vsel %vm988_vm2, %v1010_v40, %v1012_v48  ;;  %v1018_v8 = vrot.slane %v6092_v49, 1  ;;  %v1305_v40 = vshll.u32 %v6125_v20, 16 }
  0x57   : > { %5244 = vmatmul.mubr.msk.bf16.gmra.mxu1 %vm548_vm0, %v6081_v33  ;;  %5287 = vmatprep.mubr.msk.bf16.mxu0 %vm548_vm0, %v1007_v1  ;;  %7609 = vst [vmem:[#allocation8_spill] sm:$0xff] %v6262_v0  ;;  %v1009_v1 = vsel %vm988_vm2, %v1006_v3, %v1008_v30  ;;  %v1014_v3 = vrot.slane %v6023_v21, 1  ;;  %v1020_v20 = vrot.slane %v6087_v37, 1  ;;  %v1318_v0 = vrot.slane %v5954_v52, 2 }
  0x58   : > { %5247 = vmatprep.mubr.msk.bf16.mxu1 %vm548_vm0, %v5885_v14  ;;  %v1307_v63 = vrot.slane %v1305_v40, 2  ;;  %v7613_v40 = vrot.slane %v5881_v11, 2 }
  0x59   : > { %v1015_v30 = vsel %vm988_vm2, %v1012_v48, %v1014_v3 }
  0x5e   : > { %5288 = vmatmul.mubr.msk.bf16.gmra.mxu0 %vm548_vm0, %v1009_v1 }
  0x5f   : > { %5248 = vmatmul.mubr.msk.bf16.gmra.mxu1 %vm548_vm0, %v5890_v18  ;;  %5291 = vmatprep.mubr.msk.bf16.mxu0 %vm548_vm0, %v1011_v26  ;;  %v1016_v26 = vrot.slane %v6056_v62, 1 }
  0x60   : > { %5251 = vmatprep.mubr.msk.bf16.mxu1 %vm548_vm0, %v5926_v35 }
  0x61   : > { %v1017_v1 = vsel %vm988_vm2, %v1014_v3, %v1016_v26  ;;  %v1019_v48 = vsel %vm988_vm2, %v1016_v26, %v1018_v8  ;;  %v1311_v26 = vor.u32 %v1310_v12, %v1309_v31 }
  0x66   : > { %5292 = vmatmul.mubr.msk.bf16.gmra.mxu0 %vm548_vm0, %v1013_v27  ;;  %v6303_v27 = vcombine.low %v1643_v59, %v5872_v5 }
  0x67   : > { %5252 = vmatmul.mubr.msk.bf16.gmra.mxu1 %vm548_vm0, %v5963_v57  ;;  %5295 = vmatprep.mubr.msk.bf16.mxu0 %vm548_vm0, %v1015_v30  ;;  %v1304_v30 = vrot.slane %v1302_v19, 1  ;;  %v1021_v19 = vsel %vm988_vm2, %v1018_v8, %v1020_v20  ;;  %v1321_v8 = vrot.slane %v6015_v32, 1 }
  0x68   : > { %5255 = vmatprep.mubr.msk.bf16.mxu1 %vm548_vm0, %v6001_v16  ;;  %v1657_v5 = vrot.slane %v6303_v27, 2 }
  0x69   : > { %v1308_v3 = vor.u32 %v1307_v63, %v1304_v30  ;;  %v1319_v63 = vor.u32 %v1318_v0, %v1317_v34  ;;  %v1322_v30 = vrot.slane %v5999_v15, 2  ;;  %v5698_v34 = vld [vmem:[%s7584_s1 + $0xd0] sm:$0xff]  }
  0x6a   : > { %v1659_v59 = vsel %vm1656_vm3, %v1657_v5, %v7613_v40  ;;  %v1325_v5 = vrot.slane %v6051_v60, 1  ;;  %v5699_v40 = vld [vmem:[%s7584_s1 + $0xa8] sm:$0xff]  }
  0x6b   : > { %v1312_v37 = vsel %vm1300_vm5, %v1308_v3, %v1311_v26  ;;  %v1326_v3 = vrot.slane %v6034_v47, 2  ;;  %v1323_v0 = vor.u32 %v1322_v30, %v1321_v8  ;;  %v6381_v8 = vld [vmem:[%s7584_s1 + $0x118] sm:$0xff]   ;;  %v1337_v30 = vrot.slane %v5909_v25, 1 }
  0x6e   : > { %5296 = vmatmul.mubr.msk.bf16.gmra.mxu0 %vm548_vm0, %v1017_v1  ;;  %v1313_v1 = vrot.slane %v5945_v46, 1 }
  0x6f   : > { %5256 = vmatmul.mubr.msk.bf16.gmra.mxu1 %vm548_vm0, %v6023_v21  ;;  %5299 = vmatprep.mubr.msk.bf16.mxu0 %vm548_vm0, %v1019_v48  ;;  %v1314_v48 = vrot.slane %v5931_v39, 2 }
  0x70   : > { %5259 = vmatprep.mubr.msk.bf16.mxu1 %vm548_vm0, %v6056_v62 }
  0x71   : > { %v1315_v12 = vor.u32 %v1314_v48, %v1313_v1  ;;  %v1334_v48 = vrot.slane %v6100_v55, 2 }
  0x73   : > { %v1316_v31 = vsel %vm1300_vm5, %v1311_v26, %v1315_v12  ;;  %v1320_v20 = vsel %vm1300_vm5, %v1315_v12, %v1319_v63  ;;  %v5700_v26 = vld [vmem:[%s7584_s1 + $0xc8] sm:$0xff]   ;;  %v5702_v12 = vld [vmem:[%s7584_s1 + $0xc0] sm:$0xff]  }
  0x76   : > { %5300 = vmatmul.mubr.msk.bf16.gmra.mxu0 %vm548_vm0, %v1021_v19  ;;  %v5697_v19 = vld [vmem:[%s7584_s1 + $0xb0] sm:$0xff]  }
  0x77   : > { %5260 = vmatmul.mubr.msk.bf16.gmra.mxu1 %vm548_vm0, %v6092_v49  ;;  %5351 = vmatprep.mubr.msk.bf16.mxu0 %vm548_vm0, %v1659_v59  ;;  %v1330_v59 = vrot.slane %v6054_v61, 2 }
  0x78   : > { %5311 = vmatprep.mubr.msk.bf16.mxu1 %vm548_vm0, %v1312_v37  ;;  %v5701_v37 = vld [vmem:[%s7584_s1 + $0xa0] sm:$0xff]  }
  0x7e   : > { %5352 = vmatmul.mubr.msk.bf16.vlgmr.msra.gmra.mxu0 %vm548_vm0, %v6156_v44  ;;  %v1327_v44 = vor.u32 %v1326_v3, %v1325_v5  ;;  %v1341_v3 = vrot.slane %v5916_v29, 1 }
  0x7f   : > { %5312 = vmatmul.mubr.msk.bf16.vlgmr.msra.gmra.mxu1 %vm548_vm0, %v1316_v31  ;;  %5424 = vmatpush3.bf16.msra.mxu0 %v6224_v42  ;;  %v1329_v42 = vrot.slane %v6084_v36, 1 }
  0x80   : > { %5384 = vmatpush3.bf16.msra.mxu1 %v6219_v2  ;;  %5315 = vmatprep.mubr.msk.bf16.mxu1 %vm548_vm0, %v1320_v20  ;;  %v1324_v2 = vsel %vm1300_vm5, %v1319_v63, %v1323_v0  ;;  %v1328_v1 = vsel %vm1300_vm5, %v1323_v0, %v1327_v44  ;;  %v1338_v20 = vrot.slane %v5906_v24, 2 }
  0x81   : > { %5355 = vmatprep.mubr.msk.bf16.mxu0 %vm548_vm0, %v6159_v56  ;;  %5385 = vmatprep.subr.bf16.mxu1 %v5697_v19  ;;  %v1333_v56 = vrot.slane %v6116_v9, 1  ;;  %v1331_v63 = vor.u32 %v1330_v59, %v1329_v42  ;;  %v1345_v59 = vrot.slane %v5966_v58, 1 }
  0x82   : > { %5425 = vmatprep.subr.bf16.mxu0 %v5698_v34  ;;  %v1339_v0 = vor.u32 %v1338_v20, %v1337_v30 }
  0x83   : > { %5426 = vmatpush3.bf16.msra.mxu0 %v5698_v34  ;;  %v1335_v31 = vor.u32 %v1334_v48, %v1333_v56  ;;  %v1672_v34 = vrot.slane %v5885_v14, 2  ;;  %v1349_v56 = vrot.slane %v6004_v17, 1  ;;  %v1350_v48 = vrot.slane %v5984_v6, 2 }
  0x84   : > { %5386 = vmatpush3.bf16.msra.mxu1 %v5697_v19  ;;  %5427 = vmatprep.subr.bf16.mxu0 %v5700_v26  ;;  %v1342_v19 = vrot.slane %v5913_v28, 2 }
  0x85   : > { %5387 = vmatprep.subr.bf16.mxu1 %v5699_v40  ;;  %v1336_v5 = vsel %vm1300_vm5, %v1331_v63, %v1335_v31 }
  0x86   : > { %5356 = vmatmul.mubr.msk.bf16.gmra.mxu0 %vm548_vm0, %v6172_v54  ;;  %v6376_v54 = vld [vmem:[%s7584_s1 + $0xf8] sm:$0xff]  }
  0x87   : > { %5316 = vmatmul.mubr.msk.bf16.gmra.mxu1 %vm548_vm0, %v1324_v2  ;;  %5359 = vmatprep.mubr.msk.bf16.mxu0 %vm548_vm0, %v6179_v10  ;;  %v1332_v10 = vsel %vm1300_vm5, %v1327_v44, %v1331_v63  ;;  %v1343_v44 = vor.u32 %v1342_v19, %v1341_v3  ;;  %v1678_v63 = vrot.slane %v5963_v57, 2  ;;  %v1354_v3 = vrot.slane %v6021_v38, 2 }
  0x88   : > { %5319 = vmatprep.mubr.msk.bf16.mxu1 %vm548_vm0, %v1328_v1  ;;  %5388 = vmatpush3.bf16.msra.mxu1 %v5699_v40  ;;  %v7614_v40 = vrot.slane %v6081_v33, 2 }
  0x89   : > { %5428 = vmatpush3.bf16.msra.mxu0 %v5700_v26  ;;  %5389 = vmatprep.subr.bf16.mxu1 %v5701_v37  ;;  %v1674_v26 = vrot.slane %v5890_v18, 2  ;;  %v1344_v1 = vsel %vm1300_vm5, %v1339_v0, %v1343_v44 }
  0x8a   : > { %5429 = vmatprep.subr.bf16.mxu0 %v5702_v12  ;;  %v1673_v2 = vsel %vm1656_vm3, %v7614_v40, %v1672_v34  ;;  %v1682_v40 = vrot.slane %v6023_v21, 2 }
  0x8b   : > { %v1675_v42 = vsel %vm1656_vm3, %v1672_v34, %v1674_v26  ;;  %v1357_v34 = vrot.slane %v6067_v4, 1 }
  0x8c   : > { %5390 = vmatpush3.bf16.msra.mxu1 %v5701_v37  ;;  %v1676_v37 = vrot.slane %v5926_v35, 2 }
  0x8d   : > { %5430 = vmatpush3.bf16.msra.mxu0 %v5702_v12  ;;  %5463 = vmatprep.subr.bf16.mxu1 %v6376_v54 }
  0x8e   : > { %5360 = vmatmul.mubr.msk.bf16.gmra.mxu0 %vm548_vm0, %v6188_v43  ;;  %5503 = vmatprep.subr.bf16.mxu0 %v6381_v8  ;;  %v1340_v43 = vsel %vm1300_vm5, %v1335_v31, %v1339_v0  ;;  %v1351_v31 = vor.u32 %v1350_v48, %v1349_v56  ;;  %v1679_v20 = vsel %vm1656_vm3, %v1676_v37, %v1678_v63  ;;  %v1358_v0 = vrot.slane %v6043_v53, 2  ;;  %v7616_v48 = vld [vmem:[#allocation6_spill] sm:$0xff] }
  0x8f   : > { %5320 = vmatmul.mubr.msk.bf16.gmra.mxu1 %vm548_vm0, %v1332_v10  ;;  %5363 = vmatprep.mubr.msk.bf16.mxu0 %vm548_vm0, %v6198_v51  ;;  %v1346_v51 = vrot.slane %v5942_v45, 2  ;;  %v1677_v10 = vsel %vm1656_vm3, %v1674_v26, %v1676_v37  ;;  %v1680_v26 = vrot.slane %v6001_v16, 2  ;;  %v1365_v37 = vrot.slane %v7616_v48, 1 }
  0x90   : > { %5323 = vmatprep.mubr.msk.bf16.mxu1 %vm548_vm0, %v1336_v5  ;;  %v1353_v5 = vrot.slane %v6026_v41, 1 }
  0x91   : > { %v1347_v12 = vor.u32 %v1346_v51, %v1345_v59  ;;  %v7615_v59 = vld [vmem:[#allocation3_spill] sm:$0xff]  ;;  %v1683_v56 = vsel %vm1656_vm3, %v1680_v26, %v1682_v40 }
  0x92   : > { %v1362_v51 = vrot.slane %v7615_v59, 2 }
  0x93   : > { %v1348_v30 = vsel %vm1300_vm5, %v1343_v44, %v1347_v12  ;;  %v1352_v19 = vsel %vm1300_vm5, %v1347_v12, %v1351_v31  ;;  %v1355_v44 = vor.u32 %v1354_v3, %v1353_v5  ;;  %v7617_v12 = vld [vmem:[#allocation5_spill] sm:$0xff]  ;;  %v1686_v5 = vrot.slane %v6092_v49, 2 }
  0x96   : > { %5364 = vmatmul.mubr.msk.bf16.gmra.mxu0 %vm548_vm0, %v1673_v2  ;;  %v1359_v2 = vor.u32 %v1358_v0, %v1357_v34  ;;  %v1970_v0 = vshrl.u32 %v6303_v27, 16 }
  0x97   : > { %5324 = vmatmul.mubr.msk.bf16.gmra.mxu1 %vm548_vm0, %v1340_v43  ;;  %5367 = vmatprep.mubr.msk.bf16.mxu0 %vm548_vm0, %v1675_v42  ;;  %v1681_v43 = vsel %vm1656_vm3, %v1678_v63, %v1680_v26  ;;  %v1361_v42 = vrot.slane %v6095_v50, 1  ;;  %v1973_v26 = vshll.u32 %v6303_v27, 16  ;;  %v1977_v27 = vrot.slane %v5903_v23, 2 }
  0x98   : > { %5327 = vmatprep.mubr.msk.bf16.mxu1 %vm548_vm0, %v1344_v1  ;;  %v1356_v1 = vsel %vm1300_vm5, %v1351_v31, %v1355_v44  ;;  %v1684_v31 = vrot.slane %v6056_v62, 2  ;;  %v6452_v62 = vld [vmem:[%s5868_s27 + $0x4] sm:$0xf] }
  0x99   : > { %v1363_v63 = vor.u32 %v1362_v51, %v1361_v42 }
  0x9a   : > { %v1687_v42 = vsel %vm1656_vm3, %v1684_v31, %v1686_v5 }
  0x9e   : > { %5368 = vmatmul.mubr.msk.bf16.gmra.mxu0 %vm548_vm0, %v1677_v10  ;;  %v1366_v10 = vrot.slane %v7617_v12, 2  ;;  %v1978_v12 = vrot.slane %v5900_v22, 3 }
  0x9f   : > { %5328 = vmatmul.mubr.msk.bf16.gmra.mxu1 %vm548_vm0, %v1348_v30  ;;  %5371 = vmatprep.mubr.msk.bf16.mxu0 %vm548_vm0, %v1679_v20  ;;  %v5703_v30 = vld [vmem:[%s5868_s27 + $0x80] ss:$0 sps:$4 sm:$0x33]   ;;  %v1360_v20 = vsel %vm1300_vm5, %v1355_v44, %v1359_v2  ;;  %v2311_v44 = vld [vmem:[%s5868_s27] sm:$0x8] }
  0xa0   : > { %5331 = vmatprep.mubr.msk.bf16.mxu1 %vm548_vm0, %v1352_v19  ;;  %v1367_v3 = vor.u32 %v1366_v10, %v1365_v37  ;;  %v1370_v19 = vshrl.u32 %v5703_v30, 16  ;;  %v1373_v34 = vshll.u32 %v5703_v30, 16  ;;  %v6455_v37 = vcombine.low %v2311_v44, %v6452_v62 }
  0xa1   : > { %v1972_v10 = vrot.slane %v1970_v0, 2 }
  0xa2   : > { %v1368_v51 = vsel %vm1300_vm5, %v1363_v63, %v1367_v3  ;;  %v1375_v49 = vrot.slane %v1373_v34, 2 }
  0xa6   : > { %5372 = vmatmul.mubr.msk.bf16.gmra.mxu0 %vm548_vm0, %v1681_v43  ;;  %v1364_v43 = vsel %vm1300_vm5, %v1359_v2, %v1363_v63  ;;  %v2325_v63 = vrot.slane %v6455_v37, 3 }
  0xa7   : > { %5332 = vmatmul.mubr.msk.bf16.gmra.mxu1 %vm548_vm0, %v1356_v1  ;;  %5375 = vmatprep.mubr.msk.bf16.mxu0 %vm548_vm0, %v1683_v56  ;;  %v1685_v1 = vsel %vm1656_vm3, %v1682_v40, %v1684_v31  ;;  %v1372_v56 = vrot.slane %v1370_v19, 1  ;;  %v1688_v40 = vrot.slane %v5703_v30, 2  ;;  %v1979_v19 = vor.u32 %v1978_v12, %v1977_v27  ;;  %v5707_v27 = vld [vmem:[%s7584_s1 + $0xf0] sm:$0xff]  }
  0xa8   : > { %5335 = vmatprep.mubr.msk.bf16.mxu1 %vm548_vm0, %v1360_v20  ;;  %v1975_v20 = vrot.slane %v1973_v26, 3  ;;  %v7618_v26 = vrot.slane %v5881_v11, 3  ;;  %v1982_v30 = vrot.slane %v5931_v39, 3 }
  0xa9   : > { %v1376_v2 = vor.u32 %v1375_v49, %v1372_v56  ;;  %v1689_v34 = vsel %vm1656_vm3, %v1686_v5, %v1688_v40  ;;  %v1985_v49 = vrot.slane %v5987_v7, 2  ;;  %v5708_v40 = vld [vmem:[%s7584_s1 + $0x110] sm:$0xff]  }
  0xaa   : > { %v1976_v31 = vor.u32 %v1975_v20, %v1972_v10  ;;  %v2327_v44 = vsel %vm2324_vm4, %v2325_v63, %v7618_v26  ;;  %v1993_v10 = vrot.slane %v6051_v60, 2  ;;  %v1994_v20 = vrot.slane %v6034_v47, 3  ;;  %v5710_v63 = vld [vmem:[%s7584_s1 + $0x108] sm:$0xff]  }
  0xab   : > { %v1377_v0 = vsel %vm1300_vm5, %v1367_v3, %v1376_v2  ;;  %v1989_v3 = vrot.slane %v6015_v32, 2  ;;  %v2001_v26 = vrot.slane %v6116_v9, 2 }
  0xae   : > { %5376 = vmatmul.mubr.msk.bf16.gmra.mxu0 %vm548_vm0, %v1685_v1  ;;  %v1980_v1 = vsel %vm1968_vm6, %v1976_v31, %v1979_v19  ;;  %v7619_v31 = vld [vmem:[#allocation7_spill] sm:$0xff] }
  0xaf   : > { %5336 = vmatmul.mubr.msk.bf16.gmra.mxu1 %vm548_vm0, %v1364_v43  ;;  %5379 = vmatprep.mubr.msk.bf16.mxu0 %vm548_vm0, %v1687_v42  ;;  %v1981_v43 = vrot.slane %v5945_v46, 2  ;;  %v1986_v42 = vrot.slane %v5954_v52, 3 }
  0xb0   : > { %5339 = vmatprep.mubr.msk.bf16.mxu1 %vm548_vm0, %v1368_v51  ;;  %v1990_v51 = vrot.slane %v5999_v15, 3 }
  0xb1   : > { %v1983_v11 = vor.u32 %v1982_v30, %v1981_v43  ;;  %v1987_v12 = vor.u32 %v1986_v42, %v1985_v49  ;;  %v5711_v43 = vld [vmem:[%s7584_s1 + $0xe0] sm:$0xff]   ;;  %v7620_v30 = vld [vmem:[#allocation8_spill] sm:$0xff]  ;;  %v7621_v49 = vld [vmem:[#allocation9_spill] sm:$0xff] }
  0xb2   : > { %v1991_v2 = vor.u32 %v1990_v51, %v1989_v3  ;;  %v2005_v51 = vrot.slane %v5909_v25, 2 }
  0xb3   : > { %v1984_v5 = vsel %vm1968_vm6, %v1979_v19, %v1983_v11  ;;  %v1988_v56 = vsel %vm1968_vm6, %v1983_v11, %v1987_v12  ;;  %v5709_v19 = vld [vmem:[%s7584_s1 + $0xe8] sm:$0xff]  }
  0xb6   : > { %5380 = vmatmul.mubr.msk.bf16.gmra.mxu0 %vm548_vm0, %v1689_v34  ;;  %v1998_v34 = vrot.slane %v6054_v61, 3 }
  0xb7   : > { %5340 = vmatmul.mubr.msk.bf16.gmra.mxu1 %vm548_vm0, %v1377_v0  ;;  %5431 = vmatprep.mubr.msk.bf16.mxu0 %vm548_vm0, %v2327_v44  ;;  %v2002_v44 = vrot.slane %v6100_v55, 3 }
  0xb8   : > { %5391 = vmatprep.mubr.msk.bf16.mxu1 %vm548_vm0, %v1980_v1  ;;  %v5712_v1 = vld [vmem:[%s7584_s1 + $0x100] sm:$0xff]  }
  0xb9   : > { %v2003_v11 = vor.u32 %v2002_v44, %v2001_v26  ;;  %v2013_v26 = vrot.slane %v5966_v58, 2  ;;  %v2014_v44 = vrot.slane %v5942_v45, 3 }
  0xbe   : > { %5432 = vmatmul.mubr.msk.bf16.vlgmr.msra.gmra.mxu0 %vm548_vm0, %v6246_v13  ;;  %v1995_v13 = vor.u32 %v1994_v20, %v1993_v10  ;;  %v2009_v20 = vrot.slane %v5916_v29, 2 }
  0xbf   : > { %5392 = vmatmul.mubr.msk.bf16.vlgmr.msra.gmra.mxu1 %vm548_vm0, %v1984_v5  ;;  %5504 = vmatpush3.bf16.msra.mxu0 %v6381_v8  ;;  %v1997_v8 = vrot.slane %v6084_v36, 2  ;;  %v6530_v5 = vld [vmem:[%s7584_s1 + $0x158] sm:$0xff]  }
  0xc0   : > { %5464 = vmatpush3.bf16.msra.mxu1 %v6376_v54  ;;  %5395 = vmatprep.mubr.msk.bf16.mxu1 %vm548_vm0, %v1988_v56  ;;  %v1992_v54 = vsel %vm1968_vm6, %v1987_v12, %v1991_v2  ;;  %v1996_v0 = vsel %vm1968_vm6, %v1991_v2, %v1995_v13  ;;  %v6525_v12 = vld [vmem:[%s7584_s1 + $0x138] sm:$0xff]   ;;  %v2006_v56 = vrot.slane %v5906_v24, 3  ;;  %v7623_v2 = vld [vmem:[#allocation11_spill] sm:$0xff] }
  0xc1   : > { %5435 = vmatprep.mubr.msk.bf16.mxu0 %vm548_vm0, %v7619_v31  ;;  %5465 = vmatprep.subr.bf16.mxu1 %v5707_v27  ;;  %v1999_v42 = vor.u32 %v1998_v34, %v1997_v8 }
  0xc2   : > { %5505 = vmatprep.subr.bf16.mxu0 %v5708_v40  ;;  %v2007_v31 = vor.u32 %v2006_v56, %v2005_v51  ;;  %v2021_v51 = vrot.slane %v6026_v41, 2  ;;  %v2022_v56 = vrot.slane %v6021_v38, 3 }
  0xc3   : > { %5506 = vmatpush3.bf16.msra.mxu0 %v5708_v40  ;;  %v2000_v3 = vsel %vm1968_vm6, %v1995_v13, %v1999_v42  ;;  %v2004_v10 = vsel %vm1968_vm6, %v1999_v42, %v2003_v11  ;;  %v7622_v40 = vld [vmem:[#allocation10_spill] sm:$0xff]  ;;  %v2342_v13 = vrot.slane %v5890_v18, 3  ;;  %v2344_v18 = vrot.slane %v5926_v35, 3 }
  0xc4   : > { %5466 = vmatpush3.bf16.msra.mxu1 %v5707_v27  ;;  %5507 = vmatprep.subr.bf16.mxu0 %v5710_v63  ;;  %v2010_v27 = vrot.slane %v5913_v28, 3  ;;  %v2008_v34 = vsel %vm1968_vm6, %v2003_v11, %v2007_v31  ;;  %v2025_v35 = vrot.slane %v6067_v4, 2 }
  0xc5   : > { %5467 = vmatprep.subr.bf16.mxu1 %v5709_v19  ;;  %v2345_v42 = vsel %vm2324_vm4, %v2342_v13, %v2344_v18 }
  0xc6   : > { %5436 = vmatmul.mubr.msk.bf16.gmra.mxu0 %vm548_vm0, %v7620_v30  ;;  %v2018_v30 = vrot.slane %v5984_v6, 3 }
  0xc7   : > { %5396 = vmatmul.mubr.msk.bf16.gmra.mxu1 %vm548_vm0, %v1992_v54  ;;  %5439 = vmatprep.mubr.msk.bf16.mxu0 %vm548_vm0, %v7621_v49  ;;  %v7624_v54 = vrot.slane %v6081_v33, 3  ;;  %v2015_v33 = vor.u32 %v2014_v44, %v2013_v26 }
  0xc8   : > { %5399 = vmatprep.mubr.msk.bf16.mxu1 %vm548_vm0, %v1996_v0  ;;  %5468 = vmatpush3.bf16.msra.mxu1 %v5709_v19  ;;  %v2011_v19 = vor.u32 %v2010_v27, %v2009_v20  ;;  %v2026_v20 = vrot.slane %v6043_v53, 3 }
  0xc9   : > { %5508 = vmatpush3.bf16.msra.mxu0 %v5710_v63  ;;  %5469 = vmatprep.subr.bf16.mxu1 %v5711_v43  ;;  %v2340_v63 = vrot.slane %v5885_v14, 3 }
  0xca   : > { %5509 = vmatprep.subr.bf16.mxu0 %v5712_v1  ;;  %v2012_v14 = vsel %vm1968_vm6, %v2007_v31, %v2011_v19  ;;  %v2016_v11 = vsel %vm1968_vm6, %v2011_v19, %v2015_v33  ;;  %v2350_v31 = vrot.slane %v6023_v21, 3  ;;  %v2027_v19 = vor.u32 %v2026_v20, %v2025_v35  ;;  %v7629_v35 = vld [vmem:[#allocation4_spill] sm:$0xff] }
  0xcb   : > { %v2341_v8 = vsel %vm2324_vm4, %v7624_v54, %v2340_v63  ;;  %v2343_v0 = vsel %vm2324_vm4, %v2340_v63, %v2342_v13  ;;  %v2023_v63 = vor.u32 %v2022_v56, %v2021_v51  ;;  %v2033_v21 = vrot.slane %v7616_v48, 2 }
  0xcc   : > { %5470 = vmatpush3.bf16.msra.mxu1 %v5711_v43  ;;  %v2017_v43 = vrot.slane %v6004_v17, 2  ;;  %v2354_v20 = vrot.slane %v7629_v35, 3  ;;  %v2645_v48 = vrot.slane %v5903_v23, 3 }
  0xcd   : > { %5510 = vmatpush3.bf16.msra.mxu0 %v5712_v1  ;;  %5543 = vmatprep.subr.bf16.mxu1 %v6525_v12  ;;  %v2346_v1 = vrot.slane %v5963_v57, 3 }
  0xce   : > { %5440 = vmatmul.mubr.msk.bf16.gmra.mxu0 %vm548_vm0, %v7622_v40  ;;  %5583 = vmatprep.subr.bf16.mxu0 %v6530_v5  ;;  %v2019_v49 = vor.u32 %v2018_v30, %v2017_v43  ;;  %v2348_v40 = vrot.slane %v6001_v16, 3  ;;  %v2030_v16 = vrot.slane %v7615_v59, 3  ;;  %v7625_v43 = vld [vmem:[#allocation5_spill] sm:$0xff] }
  0xcf   : > { %5400 = vmatmul.mubr.msk.bf16.gmra.mxu1 %vm548_vm0, %v2000_v3  ;;  %5443 = vmatprep.mubr.msk.bf16.mxu0 %vm548_vm0, %v7623_v2  ;;  %v2347_v3 = vsel %vm2324_vm4, %v2344_v18, %v2346_v1  ;;  %v2034_v30 = vrot.slane %v7625_v43, 3  ;;  %v5713_v18 = vld [vmem:[%s5868_s27 + $0x80] ss:$0 sps:$4 sm:$0x77]  }
  0xd0   : > { %5403 = vmatprep.mubr.msk.bf16.mxu1 %vm548_vm0, %v2004_v10  ;;  %v2020_v10 = vsel %vm1968_vm6, %v2015_v33, %v2019_v49  ;;  %v2024_v44 = vsel %vm1968_vm6, %v2019_v49, %v2023_v63 }
  0xd6   : > { %5444 = vmatmul.mubr.msk.bf16.gmra.mxu0 %vm548_vm0, %v2341_v8 }
  0xd7   : > { %5404 = vmatmul.mubr.msk.bf16.gmra.mxu1 %vm548_vm0, %v2008_v34  ;;  %5447 = vmatprep.mubr.msk.bf16.mxu0 %vm548_vm0, %v2343_v0  ;;  %v2349_v34 = vsel %vm2324_vm4, %v2346_v1, %v2348_v40  ;;  %v2029_v0 = vrot.slane %v6095_v50, 2 }
  0xd8   : > { %5407 = vmatprep.mubr.msk.bf16.mxu1 %vm548_vm0, %v2012_v14  ;;  %v2351_v14 = vsel %vm2324_vm4, %v2348_v40, %v2350_v31  ;;  %v2038_v40 = vshrl.u32 %v5713_v18, 16 }
  0xd9   : > { %v2031_v49 = vor.u32 %v2030_v16, %v2029_v0 }
  0xdb   : > { %v2032_v16 = vsel %vm1968_vm6, %v2027_v19, %v2031_v49 }
  0xde   : > { %v6572_v27 = vpop.f32.mrf.mxu0  ;;  %5448 = vmatmul.mubr.msk.bf16.gmra.mxu0 %vm548_vm0, %v2345_v42  ;;  %v2028_v42 = vsel %vm1968_vm6, %v2023_v63, %v2027_v19  ;;  %v2041_v63 = vshll.u32 %v5713_v18, 16  ;;  %v2356_v19 = vrot.slane %v5713_v18, 3 }
  0xdf   : > { %v6575_v57 = vpop.f32.mrf.mxu1  ;;  %5408 = vmatmul.mubr.msk.bf16.gmra.mxu1 %vm548_vm0, %v2016_v11  ;;  %5451 = vmatprep.mubr.msk.bf16.mxu0 %vm548_vm0, %v2347_v3  ;;  %v7628_v3 = vld [vmem:[#allocation2_spill] sm:$0xff] }
  0xe0   : > { %v6580_v2 = vpop.f32.mrf.mxu0  ;;  %5411 = vmatprep.mubr.msk.bf16.mxu1 %vm548_vm0, %v2020_v10  ;;  %v2352_v51 = vrot.slane %v7628_v3, 3  ;;  %v2035_v10 = vor.u32 %v2034_v30, %v2033_v21  ;;  %v2040_v3 = vrot.slane %v2038_v40, 2  ;;  %v2043_v35 = vrot.slane %v2041_v63, 3 }
  0xe1   : > { %v6584_v13 = vpop.f32.mrf.mxu1 }
  0xe2   : > { %v6586_v54 = vpop.f32.mrf.mxu0  ;;  %v2036_v21 = vsel %vm1968_vm6, %v2031_v49, %v2035_v10  ;;  %v2355_v30 = vsel %vm2324_vm4, %v2352_v51, %v2354_v20 }
  0xe3   : > { %v6588_v8 = vpop.f32.mrf.mxu1 }
  0xe4   : > { %v6593_v26 = vpop.f32.mrf.mxu0 }
  0xe5   : > { %v6600_v33 = vpop.f32.mrf.mxu1 }
  0xe6   : > { %7626 = vst [vmem:[#allocation7_spill] sm:$0xff] %v6600_v33  ;;  %v6603_v1 = vpop.f32.mrf.mxu0  ;;  %5452 = vmatmul.mubr.msk.bf16.gmra.mxu0 %vm548_vm0, %v2349_v34  ;;  %v2638_v34 = vshrl.u32 %v6455_v37, 16 }
  0xe7   : > { %v6606_v11 = vpop.f32.mrf.mxu1  ;;  %5412 = vmatmul.mubr.msk.bf16.gmra.mxu1 %vm548_vm0, %v2024_v44  ;;  %5455 = vmatprep.mubr.msk.bf16.mxu0 %vm548_vm0, %v2351_v14  ;;  %v2641_v44 = vshll.u32 %v6455_v37, 16  ;;  %v2353_v14 = vsel %vm2324_vm4, %v2350_v31, %v2352_v51  ;;  %v2044_v51 = vor.u32 %v2043_v35, %v2040_v3  ;;  %v2650_v3 = vrot.slane %v5931_v39, 4 }
  0xe8   : > { %7627 = vst [vmem:[#allocation8_spill] sm:$0xff] %v6606_v11  ;;  %v6611_v56 = vpop.f32.mrf.mxu0  ;;  %5415 = vmatprep.mubr.msk.bf16.mxu1 %vm548_vm0, %v2028_v42  ;;  %v2640_v43 = vrot.slane %v2638_v34, 3 }
  0xe9   : > { %v6615_v33 = vpop.f32.mrf.mxu1  ;;  %v2643_v37 = vrot.slane %v2641_v44, 4  ;;  %v2357_v44 = vsel %vm2324_vm4, %v2354_v20, %v2356_v19  ;;  %v2654_v20 = vrot.slane %v5954_v52, 4  ;;  %v5760_v19 = vld [vmem:[%s5868_s27 + $0x10] sm:$0xf] }
  0xea   : > { %7630 = vst [vmem:[#allocation9_spill] sm:$0xff] %v6615_v33  ;;  %v6619_v11 = vpop.f32.mrf.mxu0 }
  0xeb   : > { %v6621_v0 = vpop.f32.mrf.mxu1 }
  0xec   : > { %7631 = vst [vmem:[#allocation10_spill] sm:$0xff] %v6621_v0  ;;  %v6625_v42 = vpop.f32.mrf.mxu0  ;;  %v2646_v0 = vrot.slane %v5900_v22, 4  ;;  %v2644_v22 = vor.u32 %v2643_v37, %v2640_v43  ;;  %v5759_v37 = vld [vmem:[%s5868_s27 + $0xc] sm:$0xf] }
  0xed   : > { %v6629_v33 = vpop.f32.mrf.mxu1 }
  0xee   : > { %v6633_v59 = vpop.f32.mrf.mxu0  ;;  %5456 = vmatmul.mubr.msk.bf16.gmra.mxu0 %vm548_vm0, %v2353_v14  ;;  %v2647_v40 = vor.u32 %v2646_v0, %v2645_v48  ;;  %v2653_v0 = vrot.slane %v5987_v7, 3 }
  0xef   : > { %v6636_v31 = vpop.f32.mrf.mxu1  ;;  %5416 = vmatmul.mubr.msk.bf16.gmra.mxu1 %vm548_vm0, %v2032_v16  ;;  %5459 = vmatprep.mubr.msk.bf16.mxu0 %vm548_vm0, %v2355_v30  ;;  %v5758_v16 = vld [vmem:[%s5868_s27 + $0x8] sm:$0xf]  ;;  %v2045_v30 = vsel %vm1968_vm6, %v2035_v10, %v2044_v51  ;;  %v4786_v51 = vcombine.low %v5759_v37, %v5760_v19  ;;  %v2662_v37 = vrot.slane %v6034_v47, 4 }
  0xf0   : > { %v6640_v49 = vpop.f32.mrf.mxu0  ;;  %5419 = vmatprep.mubr.msk.bf16.mxu1 %vm548_vm0, %v2036_v21  ;;  %v4785_v14 = vcombine.low %v6452_v62, %v5758_v16  ;;  %v2649_v21 = vrot.slane %v5945_v46, 3  ;;  %v2648_v43 = vsel %vm2636_vm7, %v2644_v22, %v2647_v40  ;;  %v2655_v52 = vor.u32 %v2654_v20, %v2653_v0  ;;  %v5762_v0 = vld [vmem:[%s5868_s27 + $0x18] sm:$0xf] }
  0xf1   : > { %v6643_v23 = vpop.f32.mrf.mxu1  ;;  %v2658_v16 = vrot.slane %v5999_v15, 4 }
  0xf2   : > { %v6645_v63 = vpop.f32.mrf.mxu0  ;;  %v2651_v46 = vor.u32 %v2650_v3, %v2649_v21  ;;  %v5761_v3 = vld [vmem:[%s5868_s27 + $0x14] sm:$0xf] }
  0xf3   : > { %v6647_v34 = vpop.f32.mrf.mxu1  ;;  %v4787_v20 = vcombine.low %v5761_v3, %v5762_v0 }
  0xf4   : > { %v6652_v18 = vpop.f32.mrf.mxu0  ;;  %v2656_v21 = vsel %vm2636_vm7, %v2651_v46, %v2655_v52 }
  0xf5   : > { %v6657_v48 = vpop.f32.mrf.mxu1 }
  0xf6   : > { %v6662_v35 = vpop.f32.mrf.mxu0  ;;  %5460 = vmatmul.mubr.msk.bf16.gmra.mxu0 %vm548_vm0, %v2357_v44  ;;  %v2657_v44 = vrot.slane %v6015_v32, 3  ;;  %v5722_v32 = vld [vmem:[%s7584_s1 + $0x130] sm:$0xff]  }
  0xf7   : > { %v6665_v62 = vpop.f32.mrf.mxu1  ;;  %5420 = vmatmul.mubr.msk.bf16.gmra.mxu1 %vm548_vm0, %v2045_v30  ;;  %5511 = vmatprep.mubr.msk.bf16.mxu0 %vm548_vm0, %v4785_v14  ;;  %v2652_v30 = vsel %vm2636_vm7, %v2647_v40, %v2651_v46  ;;  %v5723_v40 = vld [vmem:[%s7584_s1 + $0x150] sm:$0xff]  }
  0xf8   : > { %7632 = vst [vmem:[#allocation11_spill] sm:$0xff] %v6665_v62  ;;  %v6669_v39 = vpop.f32.mrf.mxu0  ;;  %5471 = vmatprep.mubr.msk.bf16.mxu1 %vm548_vm0, %v2648_v43 }
  0xf9   : > { %v6672_v7 = vpop.f32.mrf.mxu1 }
  0xfa   : > { %7633 = vst [vmem:[#allocation2_spill] sm:$0xff] %v6672_v7  ;;  %v6674_v10 = vpop.f32.mrf.mxu0  ;;  %v2661_v7 = vrot.slane %v6051_v60, 3  ;;  %v2659_v60 = vor.u32 %v2658_v16, %v2657_v44  ;;  %v5763_v16 = vld [vmem:[%s5868_s27 + $0x1c] sm:$0xf] }
  0xfb   : > { %v6678_v22 = vpop.f32.mrf.mxu1 }
  0xfc   : > { %7634 = vst [vmem:[#allocation4_spill] sm:$0xff] %v6678_v22  ;;  %v6682_v14 = vpop.f32.mrf.mxu0 }
  0xfd   : > { %v6685_v43 = vpop.f32.mrf.mxu1 }
  0xfe   : > { %7635 = vst [vmem:[#allocation12_spill] sm:$0xff] %v6685_v43  ;;  %v5273_v15 = vpop.f32.mrf.mxu0  ;;  %5512 = vmatmul.mubr.msk.bf16.vlgmr.msra.gmra.mxu0 %vm548_vm0, %v4786_v51  ;;  %v5729_v51 = vld [vmem:[%s7584_s1 + $0x148] sm:$0xff]   ;;  %v2660_v43 = vsel %vm2636_vm7, %v2655_v52, %v2659_v60  ;;  %v2669_v52 = vrot.slane %v6116_v9, 3 }
  0xff   : > { %v5233_v19 = vpop.f32.mrf.mxu1  ;;  %5472 = vmatmul.mubr.msk.bf16.vlgmr.msra.gmra.mxu1 %vm548_vm0, %v2652_v30  ;;  %5584 = vmatpush3.bf16.msra.mxu0 %v6530_v5  ;;  %v6708_v30 = vor.u32 %v2662_v37, %v2661_v7  ;;  %v5728_v5 = vld [vmem:[%s7584_s1 + $0x128] sm:$0xff]  }
 0x100   : > { %v857_v47 = vadd.f32 %v5233_v19, %v6572_v27  ;;  %5544 = vmatpush3.bf16.msra.mxu1 %v6525_v12  ;;  %v1128_v46 = vpop.f32.mrf.mxu0  ;;  %5475 = vmatprep.mubr.msk.bf16.mxu1 %vm548_vm0, %v2656_v21  ;;  %v5764_v21 = vld [vmem:[%s5868_s27 + $0x20] sm:$0xf]  ;;  %v5766_v7 = vld [vmem:[%s5868_s27 + $0x28] sm:$0xf] }
 0x101   : > { %v848_v3 = vpop.f32.mrf.mxu1  ;;  %5515 = vmatprep.mubr.msk.bf16.mxu0 %vm548_vm0, %v4787_v20  ;;  %5545 = vmatprep.subr.bf16.mxu1 %v5722_v32  ;;  %v4788_v0 = vcombine.low %v5763_v16, %v5764_v21  ;;  %v5765_v20 = vld [vmem:[%s5868_s27 + $0x24] sm:$0xf]  ;;  %v2664_v16 = vsel %vm2636_vm7, %v2659_v60, %v6708_v30  ;;  %v2670_v21 = vrot.slane %v6100_v55, 4 }
 0x102   : > { %v6713_v12 = vadd.f32 %v5273_v15, %v857_v47  ;;  %v849_v27 = vadd.f32 %v848_v3, %v6580_v2  ;;  %v5274_v44 = vpop.f32.mrf.mxu0  ;;  %5585 = vmatprep.subr.bf16.mxu0 %v5723_v40  ;;  %v4789_v37 = vcombine.low %v5765_v20, %v5766_v7  ;;  %v2665_v47 = vrot.slane %v6084_v36, 3  ;;  %v5768_v20 = vld [vmem:[%s5868_s27 + $0x30] sm:$0xf] }
 0x103   : > { %v5234_v19 = vpop.f32.mrf.mxu1  ;;  %5586 = vmatpush3.bf16.msra.mxu0 %v5723_v40  ;;  %v2666_v2 = vrot.slane %v6054_v61, 4 }
 0x104   : > { %v6721_v22 = vadd.f32 %v1128_v46, %v849_v27  ;;  %v860_v62 = vadd.f32 %v5234_v19, %v6586_v54  ;;  %v1131_v15 = vpop.f32.mrf.mxu0  ;;  %5546 = vmatpush3.bf16.msra.mxu1 %v5722_v32  ;;  %5587 = vmatprep.subr.bf16.mxu0 %v5729_v51  ;;  %v5734_v54 = vld [vmem:[%s7584_s1 + $0x120] sm:$0xff]   ;;  %v2671_v27 = vor.u32 %v2670_v21, %v2669_v52  ;;  %v5767_v19 = vld [vmem:[%s5868_s27 + $0x2c] sm:$0xf] }
 0x105   : > { %v851_v3 = vpop.f32.mrf.mxu1  ;;  %5547 = vmatprep.subr.bf16.mxu1 %v5728_v5  ;;  %v5735_v32 = vld [vmem:[%s7584_s1 + $0x140] sm:$0xff]   ;;  %v4790_v7 = vcombine.low %v5767_v19, %v5768_v20 }
 0x106   : > { %v6733_v40 = vadd.f32 %v5274_v44, %v860_v62  ;;  %v852_v36 = vadd.f32 %v851_v3, %v6593_v26  ;;  %v5277_v61 = vpop.f32.mrf.mxu0  ;;  %5516 = vmatmul.mubr.msk.bf16.gmra.mxu0 %vm548_vm0, %v4788_v0  ;;  %v2667_v26 = vor.u32 %v2666_v2, %v2665_v47  ;;  %v2673_v47 = vrot.slane %v5909_v25, 3 }
 0x107   : > { %v5237_v60 = vpop.f32.mrf.mxu1  ;;  %5476 = vmatmul.mubr.msk.bf16.gmra.mxu1 %vm548_vm0, %v2660_v43  ;;  %5519 = vmatprep.mubr.msk.bf16.mxu0 %vm548_vm0, %v4789_v37  ;;  %v5769_v37 = vld [vmem:[%s5868_s27 + $0x34] sm:$0xf] }
 0x108   : > { %v6742_v55 = vadd.f32 %v1131_v15, %v852_v36  ;;  %v873_v9 = vadd.f32 %v5237_v60, %v6603_v1  ;;  %v1144_v62 = vpop.f32.mrf.mxu0  ;;  %5479 = vmatprep.mubr.msk.bf16.mxu1 %vm548_vm0, %v2664_v16  ;;  %5548 = vmatpush3.bf16.msra.mxu1 %v5728_v5  ;;  %v5770_v15 = vld [vmem:[%s5868_s27 + $0x38] sm:$0xf]  ;;  %v2674_v5 = vrot.slane %v5906_v24, 4  ;;  %v2672_v21 = vsel %vm2636_vm7, %v2667_v26, %v2671_v27 }
 0x109   : > { %v864_v46 = vpop.f32.mrf.mxu1  ;;  %5588 = vmatpush3.bf16.msra.mxu0 %v5729_v51  ;;  %5549 = vmatprep.subr.bf16.mxu1 %v5734_v54  ;;  %v4791_v3 = vcombine.low %v5769_v37, %v5770_v15  ;;  %v2677_v36 = vrot.slane %v5916_v29, 3 }
 0x10a   : > { %v6746_v44 = vadd.f32 %v5277_v61, %v873_v9  ;;  %v865_v43 = vadd.f32 %v864_v46, %v6611_v56  ;;  %v5278_v0 = vpop.f32.mrf.mxu0  ;;  %5589 = vmatprep.subr.bf16.mxu0 %v5735_v32  ;;  %v2668_v56 = vsel %vm2636_vm7, %v6708_v30, %v2667_v26  ;;  %v2678_v61 = vrot.slane %v5913_v28, 4  ;;  %v5771_v46 = vld [vmem:[%s5868_s27 + $0x40] sm:$0xf] }
 0x10b   : > { %v5238_v1 = vpop.f32.mrf.mxu1  ;;  %v2675_v30 = vor.u32 %v2674_v5, %v2673_v47  ;;  %v2681_v47 = vrot.slane %v5966_v58, 3  ;;  %v2682_v5 = vrot.slane %v5942_v45, 4 }
 0x10c   : > { %v6755_v2 = vadd.f32 %v1144_v62, %v865_v43  ;;  %v876_v51 = vadd.f32 %v5238_v1, %v6619_v11  ;;  %v1147_v16 = vpop.f32.mrf.mxu0  ;;  %5550 = vmatpush3.bf16.msra.mxu1 %v5734_v54  ;;  %v5772_v43 = vld [vmem:[%s5868_s27 + $0x3c] sm:$0xf]  ;;  %v5774_v1 = vld [vmem:[%s5868_s27 + $0x48] sm:$0xf] }
 0x10d   : > { %v867_v52 = vpop.f32.mrf.mxu1  ;;  %5590 = vmatpush3.bf16.msra.mxu0 %v5735_v32  ;;  %v2679_v32 = vor.u32 %v2678_v61, %v2677_v36  ;;  %v2676_v20 = vsel %vm2636_vm7, %v2671_v27, %v2675_v30 }
 0x10e   : > { %v6763_v25 = vadd.f32 %v5278_v0, %v876_v51  ;;  %v868_v24 = vadd.f32 %v867_v52, %v6625_v42  ;;  %v5281_v60 = vpop.f32.mrf.mxu0  ;;  %5520 = vmatmul.mubr.msk.bf16.gmra.mxu0 %vm548_vm0, %v4790_v7  ;;  %v4792_v0 = vcombine.low %v5772_v43, %v5771_v46  ;;  %v5773_v7 = vld [vmem:[%s5868_s27 + $0x44] sm:$0xf]  ;;  %v2690_v46 = vrot.slane %v6021_v38, 4 }
 0x10f   : > { %v5241_v11 = vpop.f32.mrf.mxu1  ;;  %5480 = vmatmul.mubr.msk.bf16.gmra.mxu1 %vm548_vm0, %v2668_v56  ;;  %5523 = vmatprep.mubr.msk.bf16.mxu0 %vm548_vm0, %v4791_v3  ;;  %v4793_v37 = vcombine.low %v5773_v7, %v5774_v1  ;;  %v2680_v51 = vsel %vm2636_vm7, %v2675_v30, %v2679_v32  ;;  %v2686_v56 = vrot.slane %v5984_v6, 4  ;;  %v5776_v30 = vld [vmem:[%s5868_s27 + $0x50] sm:$0xf]  ;;  %v2693_v1 = vrot.slane %v6067_v4, 3 }
 0x110   : > { %v6769_v29 = vadd.f32 %v1147_v16, %v868_v24  ;;  %v889_v28 = vadd.f32 %v5241_v11, %v6633_v59  ;;  %v1160_v54 = vpop.f32.mrf.mxu0  ;;  %5483 = vmatprep.mubr.msk.bf16.mxu1 %vm548_vm0, %v2672_v21  ;;  %v2685_v16 = vrot.slane %v6004_v17, 3  ;;  %v2683_v17 = vor.u32 %v2682_v5, %v2681_v47  ;;  %v5775_v11 = vld [vmem:[%s5868_s27 + $0x4c] sm:$0xf] }
 0x111   : > { %v880_v42 = vpop.f32.mrf.mxu1 }
 0x112   : > { %v6773_v9 = vadd.f32 %v5281_v60, %v889_v28  ;;  %v881_v62 = vadd.f32 %v880_v42, %v6640_v49  ;;  %v5282_v26 = vpop.f32.mrf.mxu0  ;;  %v2687_v36 = vor.u32 %v2686_v56, %v2685_v16  ;;  %v4794_v28 = vcombine.low %v5775_v11, %v5776_v30  ;;  %v5777_v42 = vld [vmem:[%s5868_s27 + $0x54] sm:$0xf]  ;;  %v5779_v56 = vld [vmem:[%s5868_s27 + $0x5c] sm:$0xf] }
 0x113   : > { %v5242_v19 = vpop.f32.mrf.mxu1 }
 0x114   : > { %v6781_v59 = vadd.f32 %v1160_v54, %v881_v62  ;;  %v892_v15 = vadd.f32 %v5242_v19, %v6645_v63  ;;  %v1163_v3 = vpop.f32.mrf.mxu0  ;;  %v5778_v62 = vld [vmem:[%s5868_s27 + $0x58] sm:$0xf]  ;;  %v2688_v7 = vsel %vm2636_vm7, %v2683_v17, %v2687_v36 }
 0x115   : > { %v883_v49 = vpop.f32.mrf.mxu1 }
 0x116   : > { %v6789_v27 = vadd.f32 %v5282_v26, %v892_v15  ;;  %v884_v52 = vadd.f32 %v883_v49, %v6652_v18  ;;  %v5285_v21 = vpop.f32.mrf.mxu0  ;;  %5524 = vmatmul.mubr.msk.bf16.gmra.mxu0 %vm548_vm0, %v4792_v0  ;;  %v4795_v26 = vcombine.low %v5777_v42, %v5778_v62 }
 0x117   : > { %v5245_v63 = vpop.f32.mrf.mxu1  ;;  %5484 = vmatmul.mubr.msk.bf16.gmra.mxu1 %vm548_vm0, %v2676_v20  ;;  %5527 = vmatprep.mubr.msk.bf16.mxu0 %vm548_vm0, %v4793_v37  ;;  %v2684_v20 = vsel %vm2636_vm7, %v2679_v32, %v2683_v17  ;;  %v2694_v37 = vrot.slane %v6043_v53, 4  ;;  %v5781_v17 = vld [vmem:[%s5868_s27 + $0x64] sm:$0xf] }
 0x118   : > { %v6795_v45 = vadd.f32 %v1163_v3, %v884_v52  ;;  %v905_v58 = vadd.f32 %v5245_v63, %v6662_v35  ;;  %v1176_v6 = vpop.f32.mrf.mxu0  ;;  %5487 = vmatprep.mubr.msk.bf16.mxu1 %vm548_vm0, %v2680_v51  ;;  %v2689_v35 = vrot.slane %v6026_v41, 3  ;;  %v5780_v52 = vld [vmem:[%s5868_s27 + $0x60] sm:$0xf]  ;;  %v3269_v63 = vld [vmem:[%s5868_s27 + $0x4] sm:$0xf] }
 0x119   : > { %v896_v18 = vpop.f32.mrf.mxu1  ;;  %v2695_v5 = vor.u32 %v2694_v37, %v2693_v1 }
 0x11a   : > { %v6799_v61 = vadd.f32 %v5285_v21, %v905_v58  ;;  %v897_v24 = vadd.f32 %v896_v18, %v6669_v39  ;;  %v5286_v60 = vpop.f32.mrf.mxu0  ;;  %v2691_v32 = vor.u32 %v2690_v46, %v2689_v35  ;;  %v4796_v21 = vcombine.low %v5779_v56, %v5780_v52  ;;  %v6835_v58 = vld [vmem:[%s5868_s27 + $0x8] sm:$0xf]  ;;  %v7637_v35 = vld [vmem:[#allocation6_spill] sm:$0xff]  ;;  %v7638_v46 = vld [vmem:[#allocation5_spill] sm:$0xff] }
 0x11b   : > { %v5246_v54 = vpop.f32.mrf.mxu1  ;;  %v5782_v18 = vld [vmem:[%s5868_s27 + $0x68] sm:$0xf]  ;;  %v3791_v56 = vld [vmem:[%s5868_s27 + $0x4] sm:$0xe] }
 0x11c   : > { %v6808_v43 = vadd.f32 %v1176_v6, %v897_v24  ;;  %v908_v0 = vadd.f32 %v5246_v54, %v6674_v10  ;;  %v1179_v19 = vpop.f32.mrf.mxu0  ;;  %v2692_v6 = vsel %vm2636_vm7, %v2687_v36, %v2691_v32  ;;  %v4797_v24 = vcombine.low %v5781_v17, %v5782_v18  ;;  %v7636_v54 = vld [vmem:[#allocation3_spill] sm:$0xff]  ;;  %v5784_v17 = vld [vmem:[%s5868_s27 + $0x70] sm:$0xf] }
 0x11d   : > { %v899_v39 = vpop.f32.mrf.mxu1  ;;  %v2698_v42 = vrot.slane %v7636_v54, 4  ;;  %v2701_v36 = vrot.slane %v7637_v35, 3 }
 0x11e   : > { %v6815_v15 = vadd.f32 %v5286_v60, %v908_v0  ;;  %v900_v41 = vadd.f32 %v899_v39, %v6682_v14  ;;  %v5289_v38 = vpop.f32.mrf.mxu0  ;;  %5528 = vmatmul.mubr.msk.bf16.gmra.mxu0 %vm548_vm0, %v4794_v28  ;;  %v6826_v14 = vld [vmem:[%s5868_s27 + $0x80] sm:$0xf]  ;;  %v2697_v28 = vrot.slane %v6095_v50, 3  ;;  %v2702_v0 = vrot.slane %v7638_v46, 4  ;;  %v7639_v39 = vld [vmem:[#allocation7_spill] sm:$0xff] }
 0x11f   : > { %v5249_v10 = vpop.f32.mrf.mxu1  ;;  %5488 = vmatmul.mubr.msk.bf16.gmra.mxu1 %vm548_vm0, %v2684_v20  ;;  %5531 = vmatprep.mubr.msk.bf16.mxu0 %vm548_vm0, %v4795_v26  ;;  %v4756_v60 = vcombine.low %v6826_v14, %v6826_v14  ;;  %v2696_v26 = vsel %vm2636_vm7, %v2691_v32, %v2695_v5  ;;  %v4874_v46 = vcombine.low %v3791_v56, %v6835_v58 }
 0x120   : > { %v6821_v4 = vadd.f32 %v1179_v19, %v900_v41  ;;  %v921_v53 = vadd.f32 %v5249_v10, %v6575_v57  ;;  %v1192_v3 = vpop.f32.mrf.mxu0  ;;  %5491 = vmatprep.mubr.msk.bf16.mxu1 %vm548_vm0, %v2688_v7  ;;  %v4829_v19 = vcombine.low %v3269_v63, %v6835_v58  ;;  %v5742_v58 = vld [vmem:[%s5868_s27 + $0x14] sm:$0xff]  }
 0x121   : > { %v912_v47 = vpop.f32.mrf.mxu1  ;;  %v2706_v1 = vshrl.u32 %v4756_v60, 16  ;;  %v2709_v37 = vshll.u32 %v4756_v60, 16  ;;  %v5785_v60 = vld [vmem:[%s5868_s27 + $0x74] sm:$0xf] }
 0x122   : > { %v6828_v49 = vadd.f32 %v5289_v38, %v921_v53  ;;  %v913_v51 = vadd.f32 %v912_v47, %v6584_v13  ;;  %v5290_v16 = vpop.f32.mrf.mxu0  ;;  %v7640_v38 = vld [vmem:[#allocation8_spill] sm:$0xff]  ;;  %v2699_v53 = vor.u32 %v2698_v42, %v2697_v28  ;;  %v2703_v47 = vor.u32 %v2702_v0, %v2701_v36 }
 0x123   : > { %v5250_v57 = vpop.f32.mrf.mxu1  ;;  %v2708_v54 = vrot.slane %v2706_v1, 3  ;;  %v2711_v28 = vrot.slane %v2709_v37, 4 }
 0x124   : > { %v6842_v11 = vadd.f32 %v1192_v3, %v913_v51  ;;  %v924_v13 = vadd.f32 %v5250_v57, %v6588_v8  ;;  %v1195_v30 = vpop.f32.mrf.mxu0  ;;  %v6862_v51 = vld [vmem:[%s5868_s27 + $0xc] sm:$0xff]   ;;  %v2700_v36 = vsel %vm2636_vm7, %v2695_v5, %v2699_v53 }
 0x125   : > { %v915_v62 = vpop.f32.mrf.mxu1  ;;  %v2712_v5 = vor.u32 %v2711_v28, %v2708_v54 }
 0x126   : > { %v6851_v20 = vadd.f32 %v5290_v16, %v924_v13  ;;  %v916_v7 = vadd.f32 %v915_v62, %v7639_v39  ;;  %v5293_v8 = vpop.f32.mrf.mxu0  ;;  %5532 = vmatmul.mubr.msk.bf16.gmra.mxu0 %vm548_vm0, %v4796_v21  ;;  %v3397_v16 = vshll.u32 %v4829_v19, 16  ;;  %v7641_v21 = vld [vmem:[#allocation9_spill] sm:$0xff]  ;;  %v7642_v62 = vld [vmem:[#allocation10_spill] sm:$0xff]  ;;  %v2704_v39 = vsel %vm2636_vm7, %v2699_v53, %v2703_v47 }
 0x127   : > { %v5253_v50 = vpop.f32.mrf.mxu1  ;;  %5492 = vmatmul.mubr.msk.bf16.gmra.mxu1 %vm548_vm0, %v2692_v6  ;;  %5535 = vmatprep.mubr.msk.bf16.mxu0 %vm548_vm0, %v4797_v24  ;;  %v5783_v6 = vld [vmem:[%s5868_s27 + $0x6c] sm:$0xf]  ;;  %v5786_v13 = vld [vmem:[%s5868_s27 + $0x78] sm:$0xf] }
 0x128   : > { %v6857_v41 = vadd.f32 %v1195_v30, %v916_v7  ;;  %v937_v10 = vadd.f32 %v5253_v50, %v7640_v38  ;;  %v1208_v32 = vpop.f32.mrf.mxu0  ;;  %5495 = vmatprep.mubr.msk.bf16.mxu1 %vm548_vm0, %v2696_v26  ;;  %v4798_v18 = vcombine.low %v5783_v6, %v5784_v17  ;;  %v4799_v30 = vcombine.low %v5785_v60, %v5786_v13 }
 0x129   : > { %v928_v3 = vpop.f32.mrf.mxu1  ;;  %v3395_v7 = vshrl.u32 %v4829_v19, 16  ;;  %v3402_v50 = vshll.u32 %v6862_v51, 16  ;;  %v3406_v60 = vshrl.u32 %v6862_v51, 16  ;;  %v3410_v13 = vshll.u32 %v5742_v58, 16 }
 0x12a   : > { %v6865_v52 = vadd.f32 %v5293_v8, %v937_v10  ;;  %v929_v63 = vadd.f32 %v928_v3, %v7641_v21  ;;  %v5294_v57 = vpop.f32.mrf.mxu0  ;;  %v3399_v8 = vrot.slane %v3397_v16, 1  ;;  %v3805_v3 = vrot.slane %v6862_v51, 1 }
 0x12b   : > { %v5254_v24 = vpop.f32.mrf.mxu1  ;;  %v3404_v21 = vrot.slane %v3402_v50, 1 }
 0x12c   : > { %v6872_v42 = vadd.f32 %v1208_v32, %v929_v63  ;;  %v940_v26 = vadd.f32 %v5254_v24, %v7642_v62  ;;  %v1211_v35 = vpop.f32.mrf.mxu0  ;;  %v3400_v56 = vor.u32 %v3399_v8, %v3395_v7  ;;  %v6892_v63 = vld [vmem:[%s5868_s27 + $0x1c] sm:$0xff]   ;;  %v2713_v62 = vsel %vm2636_vm7, %v2703_v47, %v2712_v5  ;;  %v5744_v8 = vld [vmem:[%s5868_s27 + $0x24] sm:$0xff]  }
 0x12d   : > { %v931_v0 = vpop.f32.mrf.mxu1  ;;  %v3408_v47 = vor.u32 %v3406_v60, %v3404_v21  ;;  %v3807_v7 = vrot.slane %v5742_v58, 1  ;;  %v7645_v60 = vld [vmem:[#allocation4_spill] sm:$0xff] }
 0x12e   : > { %v6879_v38 = vadd.f32 %v5294_v57, %v940_v26  ;;  %v932_v1 = vadd.f32 %v931_v0, %v6629_v33  ;;  %v5297_v37 = vpop.f32.mrf.mxu0  ;;  %5536 = vmatmul.mubr.msk.bf16.gmra.mxu0 %vm548_vm0, %v4798_v18  ;;  %v3804_v33 = vrot.slane %v4874_v46, 1  ;;  %v5787_v18 = vld [vmem:[%s5868_s27 + $0x7c] sm:$0xf] }
 0x12f   : > { %v5257_v10 = vpop.f32.mrf.mxu1  ;;  %5496 = vmatmul.mubr.msk.bf16.gmra.mxu1 %vm548_vm0, %v2700_v36  ;;  %5539 = vmatprep.mubr.msk.bf16.mxu0 %vm548_vm0, %v4799_v30  ;;  %v4800_v24 = vcombine.low %v5787_v18, %v6826_v14  ;;  %v3414_v36 = vshrl.u32 %v5742_v58, 16  ;;  %v3418_v14 = vshll.u32 %v6892_v63, 16  ;;  %v3808_v18 = vsel %vm988_vm2, %v3805_v3, %v3807_v7 }
 0x130   : > { %v6886_v19 = vadd.f32 %v1211_v35, %v932_v1  ;;  %v953_v32 = vadd.f32 %v5257_v10, %v6636_v31  ;;  %v1224_v53 = vpop.f32.mrf.mxu0  ;;  %5499 = vmatprep.mubr.msk.bf16.mxu1 %vm548_vm0, %v2704_v39  ;;  %v3806_v26 = vsel %vm988_vm2, %v3804_v33, %v3805_v3  ;;  %v3412_v39 = vrot.slane %v3410_v13, 1  ;;  %v7643_v1 = vld [vmem:[#allocation11_spill] sm:$0xff]  ;;  %v7646_v3 = vld [vmem:[#allocation12_spill] sm:$0xff] }
 0x131   : > { %v944_v16 = vpop.f32.mrf.mxu1  ;;  %v6920_v33 = vld [vmem:[%s5868_s27 + $0x2c] sm:$0xff]  }
 0x132   : > { %v6894_v57 = vadd.f32 %v5297_v37, %v953_v32  ;;  %v945_v6 = vadd.f32 %v944_v16, %v6643_v23  ;;  %v5298_v17 = vpop.f32.mrf.mxu0  ;;  %v3405_v23 = vsel %vm391_vm1, %v3400_v56, %v3404_v21  ;;  %v3416_v32 = vor.u32 %v3414_v36, %v3412_v39  ;;  %v7644_v56 = vld [vmem:[#allocation2_spill] sm:$0xff] }
 0x133   : > { %v5258_v31 = vpop.f32.mrf.mxu1  ;;  %v3434_v36 = vshll.u32 %v6920_v33, 16 }
 0x134   : > { %v6900_v30 = vadd.f32 %v1224_v53, %v945_v6  ;;  %v956_v54 = vadd.f32 %v5258_v31, %v6647_v34  ;;  %v1227_v28 = vpop.f32.mrf.mxu0  ;;  %v3420_v53 = vrot.slane %v3418_v14, 1 }
 0x135   : > { %v947_v35 = vpop.f32.mrf.mxu1 }
 0x136   : > { %v6907_v46 = vadd.f32 %v5298_v17, %v956_v54  ;;  %v948_v51 = vadd.f32 %v947_v35, %v6657_v48  ;;  %v5301_v0 = vpop.f32.mrf.mxu0  ;;  %5540 = vmatmul.mubr.msk.bf16.gmra.mxu0 %vm548_vm0, %v4800_v24  ;;  %v3809_v48 = vrot.slane %v6892_v63, 1  ;;  %v3413_v17 = vsel %vm391_vm1, %v3408_v47, %v3412_v39  ;;  %v5746_v39 = vld [vmem:[%s5868_s27 + $0x34] sm:$0xff]  }
 0x137   : > { %v5261_v34 = vpop.f32.mrf.mxu1  ;;  %5500 = vmatmul.mubr.msk.bf16.gmra.mxu1 %vm548_vm0, %v2713_v62  ;;  %5591 = vmatprep.mubr.msk.bf16.mxu0 %vm548_vm0, %v3806_v26  ;;  %v3426_v24 = vshll.u32 %v5744_v8, 16  ;;  %v3421_v35 = vsel %vm391_vm1, %v3416_v32, %v3420_v53  ;;  %v3811_v47 = vrot.slane %v5744_v8, 1 }
 0x138   : > { %v6914_v50 = vadd.f32 %v1227_v28, %v948_v51  ;;  %v969_v37 = vadd.f32 %v5261_v34, %v7643_v1  ;;  %v1240_v10 = vpop.f32.mrf.mxu0  ;;  %5551 = vmatprep.mubr.msk.bf16.mxu1 %vm548_vm0, %v3405_v23  ;;  %v3422_v28 = vshrl.u32 %v6892_v63, 16  ;;  %v3810_v62 = vsel %vm988_vm2, %v3807_v7, %v3809_v48 }
 0x139   : > { %v960_v5 = vpop.f32.mrf.mxu1  ;;  %v3430_v23 = vshrl.u32 %v5744_v8, 16  ;;  %v3428_v63 = vrot.slane %v3426_v24, 1  ;;  %v3812_v24 = vsel %vm988_vm2, %v3809_v48, %v3811_v47 }
 0x13a   : > { %v6922_v16 = vadd.f32 %v5301_v0, %v969_v37  ;;  %v961_v21 = vadd.f32 %v960_v5, %v7644_v56  ;;  %v5302_v58 = vpop.f32.mrf.mxu0  ;;  %v3813_v5 = vrot.slane %v6920_v33, 1 }
 0x13b   : > { %v5262_v6 = vpop.f32.mrf.mxu1  ;;  %v3432_v56 = vor.u32 %v3430_v23, %v3428_v63 }
 0x13c   : > { %v6927_v31 = vadd.f32 %v1240_v10, %v961_v21  ;;  %v972_v13 = vadd.f32 %v5262_v6, %v7645_v60  ;;  %v1243_v54 = vpop.f32.mrf.mxu0  ;;  %v3424_v10 = vor.u32 %v3422_v28, %v3420_v53  ;;  %v3436_v21 = vrot.slane %v3434_v36, 1 }
 0x13d   : > { %v963_v26 = vpop.f32.mrf.mxu1  ;;  %v3442_v53 = vshll.u32 %v5746_v39, 16 }
 0x13e   : > { %v6934_v14 = vadd.f32 %v5302_v58, %v972_v13  ;;  %v964_v51 = vadd.f32 %v963_v26, %v7646_v3  ;;  %v5353_v0 = vpop.f32.mrf.mxu0  ;;  %5592 = vmatmul.mubr.msk.bf16.vlgmr.msra.gmra.mxu0 %vm548_vm0, %v3808_v18  ;;  %v6947_v58 = vld [vmem:[%s5868_s27 + $0x3c] sm:$0xff]   ;;  %v3429_v28 = vsel %vm391_vm1, %v3424_v10, %v3428_v63 }
 0x13f   : > { %v5313_v34 = vpop.f32.mrf.mxu1  ;;  %5552 = vmatmul.mubr.msk.bf16.vlgmr.msra.gmra.mxu1 %vm548_vm0, %v3413_v17  ;;  %5595 = vmatprep.mubr.msk.bf16.mxu0 %vm548_vm0, %v3810_v62  ;;  %v3814_v62 = vsel %vm988_vm2, %v3811_v47, %v3813_v5  ;;  %v3450_v23 = vshll.u32 %v6947_v58, 16 }
 0x140   : > { %v6941_v7 = vadd.f32 %v1243_v54, %v964_v51  ;;  %v1613_v1 = vadd.f32 %v5313_v34, %v6713_v12  ;;  %v1796_v37 = vpop.f32.mrf.mxu0  ;;  %5555 = vmatprep.mubr.msk.bf16.mxu1 %vm548_vm0, %v3421_v35  ;;  %v3438_v12 = vshrl.u32 %v6920_v33, 16  ;;  %v3446_v35 = vshrl.u32 %v5746_v39, 16  ;;  %v5748_v34 = vld [vmem:[%s5868_s27 + $0x44] sm:$0xff]  }
 0x141   : > { %v1484_v32 = vpop.f32.mrf.mxu1  ;;  %v3444_v51 = vrot.slane %v3442_v53, 1 }
 0x142   : > { %v6949_v6 = vadd.f32 %v5353_v0, %v1613_v1  ;;  %v1611_v8 = vadd.f32 %v1484_v32, %v6721_v22  ;;  %v5354_v17 = vpop.f32.mrf.mxu0  ;;  %v3437_v22 = vsel %vm391_vm1, %v3432_v56, %v3436_v21  ;;  %v3440_v3 = vor.u32 %v3438_v12, %v3436_v21  ;;  %v6974_v56 = vld [vmem:[%s5868_s27 + $0x4c] sm:$0xff]  }
 0x143   : > { %v5314_v18 = vpop.f32.mrf.mxu1  ;;  %v3815_v0 = vrot.slane %v5746_v39, 1  ;;  %v3448_v10 = vor.u32 %v3446_v35, %v3444_v51  ;;  %v3452_v32 = vrot.slane %v3450_v23, 1 }
 0x144   : > { %v6954_v60 = vadd.f32 %v1796_v37, %v1611_v8  ;;  %v1614_v13 = vadd.f32 %v5314_v18, %v6733_v40  ;;  %v1799_v54 = vpop.f32.mrf.mxu0  ;;  %v3445_v18 = vsel %vm391_vm1, %v3440_v3, %v3444_v51 }
 0x145   : > { %v1487_v26 = vpop.f32.mrf.mxu1 }
 0x146   : > { %v6961_v48 = vadd.f32 %v5354_v17, %v1614_v13  ;;  %v1612_v33 = vadd.f32 %v1487_v26, %v6742_v55  ;;  %v5357_v36 = vpop.f32.mrf.mxu0  ;;  %5596 = vmatmul.mubr.msk.bf16.gmra.mxu0 %vm548_vm0, %v3812_v24  ;;  %v3817_v55 = vrot.slane %v6947_v58, 1  ;;  %v3458_v24 = vshll.u32 %v5748_v34, 16 }
 0x147   : > { %v5317_v40 = vpop.f32.mrf.mxu1  ;;  %5556 = vmatmul.mubr.msk.bf16.gmra.mxu1 %vm548_vm0, %v3429_v28  ;;  %5599 = vmatprep.mubr.msk.bf16.mxu0 %vm548_vm0, %v3814_v62  ;;  %v3462_v26 = vshrl.u32 %v5748_v34, 16 }
 0x148   : > { %v6968_v63 = vadd.f32 %v1799_v54, %v1612_v33  ;;  %v1617_v47 = vadd.f32 %v5317_v40, %v6746_v44  ;;  %v1812_v1 = vpop.f32.mrf.mxu0  ;;  %5559 = vmatprep.mubr.msk.bf16.mxu1 %vm548_vm0, %v3437_v22  ;;  %v3816_v44 = vsel %vm988_vm2, %v3813_v5, %v3815_v0  ;;  %v3454_v54 = vshrl.u32 %v6947_v58, 16 }
 0x149   : > { %v1500_v37 = vpop.f32.mrf.mxu1  ;;  %v3818_v28 = vsel %vm988_vm2, %v3815_v0, %v3817_v55  ;;  %v3466_v22 = vshll.u32 %v6974_v56, 16  ;;  %v3460_v58 = vrot.slane %v3458_v24, 1  ;;  %v3819_v33 = vrot.slane %v5748_v34, 1 }
 0x14a   : > { %v6976_v21 = vadd.f32 %v5357_v36, %v1617_v47  ;;  %v1615_v8 = vadd.f32 %v1500_v37, %v6755_v2  ;;  %v5358_v39 = vpop.f32.mrf.mxu0  ;;  %v3453_v2 = vsel %vm391_vm1, %v3448_v10, %v3452_v32  ;;  %v5750_v36 = vld [vmem:[%s5868_s27 + $0x54] sm:$0xff]   ;;  %v3456_v0 = vor.u32 %v3454_v54, %v3452_v32  ;;  %v7001_v10 = vld [vmem:[%s5868_s27 + $0x5c] sm:$0xff]  }
 0x14b   : > { %v5318_v17 = vpop.f32.mrf.mxu1  ;;  %v3468_v37 = vrot.slane %v3466_v22, 1  ;;  %v3474_v32 = vshll.u32 %v5750_v36, 16 }
 0x14c   : > { %v6981_v12 = vadd.f32 %v1812_v1, %v1615_v8  ;;  %v1618_v53 = vadd.f32 %v5318_v17, %v6763_v25  ;;  %v1815_v13 = vpop.f32.mrf.mxu0  ;;  %v3464_v1 = vor.u32 %v3462_v26, %v3460_v58 }
 0x14d   : > { %v1503_v62 = vpop.f32.mrf.mxu1 }
 0x14e   : > { %v6988_v35 = vadd.f32 %v5358_v39, %v1618_v53  ;;  %v1616_v5 = vadd.f32 %v1503_v62, %v6769_v29  ;;  %v5361_v23 = vpop.f32.mrf.mxu0  ;;  %5600 = vmatmul.mubr.msk.bf16.gmra.mxu0 %vm548_vm0, %v3816_v44  ;;  %v3821_v29 = vrot.slane %v6974_v56, 1  ;;  %v3478_v62 = vshrl.u32 %v5750_v36, 16 }
 0x14f   : > { %v5321_v25 = vpop.f32.mrf.mxu1  ;;  %5560 = vmatmul.mubr.msk.bf16.gmra.mxu1 %vm548_vm0, %v3445_v18  ;;  %5603 = vmatprep.mubr.msk.bf16.mxu0 %vm548_vm0, %v3818_v28  ;;  %v3820_v18 = vsel %vm988_vm2, %v3817_v55, %v3819_v33 }
 0x150   : > { %v6995_v40 = vadd.f32 %v1815_v13, %v1616_v5  ;;  %v1621_v3 = vadd.f32 %v5321_v25, %v6773_v9  ;;  %v1828_v51 = vpop.f32.mrf.mxu0  ;;  %5563 = vmatprep.mubr.msk.bf16.mxu1 %vm548_vm0, %v3453_v2  ;;  %v3470_v9 = vshrl.u32 %v6974_v56, 16  ;;  %v3461_v13 = vsel %vm391_vm1, %v3456_v0, %v3460_v58  ;;  %v5752_v25 = vld [vmem:[%s5868_s27 + $0x64] sm:$0xff]  }
 0x151   : > { %v1516_v47 = vpop.f32.mrf.mxu1  ;;  %v3822_v54 = vsel %vm988_vm2, %v3819_v33, %v3821_v29  ;;  %v3482_v2 = vshll.u32 %v7001_v10, 16  ;;  %v3476_v5 = vrot.slane %v3474_v32, 1 }
 0x152   : > { %v7003_v8 = vadd.f32 %v5361_v23, %v1621_v3  ;;  %v1619_v34 = vadd.f32 %v1516_v47, %v6781_v59  ;;  %v5362_v39 = vpop.f32.mrf.mxu0  ;;  %v3469_v59 = vsel %vm391_vm1, %v3464_v1, %v3468_v37  ;;  %v3472_v22 = vor.u32 %v3470_v9, %v3468_v37  ;;  %v7028_v1 = vld [vmem:[%s5868_s27 + $0x6c] sm:$0xff]  }
 0x153   : > { %v5322_v17 = vpop.f32.mrf.mxu1  ;;  %v3823_v23 = vrot.slane %v5750_v36, 1  ;;  %v3480_v0 = vor.u32 %v3478_v62, %v3476_v5  ;;  %v3484_v47 = vrot.slane %v3482_v2, 1 }
 0x154   : > { %v7008_v44 = vadd.f32 %v1828_v51, %v1619_v34  ;;  %v1622_v24 = vadd.f32 %v5322_v17, %v6789_v27  ;;  %v1831_v53 = vpop.f32.mrf.mxu0  ;;  %v3477_v17 = vsel %vm391_vm1, %v3472_v22, %v3476_v5 }
 0x155   : > { %v1519_v28 = vpop.f32.mrf.mxu1 }
 0x156   : > { %v7015_v55 = vadd.f32 %v5362_v39, %v1622_v24  ;;  %v1620_v56 = vadd.f32 %v1519_v28, %v6795_v45  ;;  %v5365_v26 = vpop.f32.mrf.mxu0  ;;  %5604 = vmatmul.mubr.msk.bf16.gmra.mxu0 %vm548_vm0, %v3820_v18  ;;  %v3825_v45 = vrot.slane %v7001_v10, 1  ;;  %v3490_v18 = vshll.u32 %v5752_v25, 16 }
 0x157   : > { %v5325_v27 = vpop.f32.mrf.mxu1  ;;  %5564 = vmatmul.mubr.msk.bf16.gmra.mxu1 %vm548_vm0, %v3461_v13  ;;  %5607 = vmatprep.mubr.msk.bf16.mxu0 %vm548_vm0, %v3822_v54  ;;  %v3494_v28 = vshrl.u32 %v5752_v25, 16 }
 0x158   : > { %v7022_v58 = vadd.f32 %v1831_v53, %v1620_v56  ;;  %v1625_v33 = vadd.f32 %v5325_v27, %v6799_v61  ;;  %v1844_v3 = vpop.f32.mrf.mxu0  ;;  %5567 = vmatprep.mubr.msk.bf16.mxu1 %vm548_vm0, %v3469_v59  ;;  %v3824_v61 = vsel %vm988_vm2, %v3821_v29, %v3823_v23  ;;  %v3486_v53 = vshrl.u32 %v7001_v10, 16 }
 0x159   : > { %v1532_v51 = vpop.f32.mrf.mxu1  ;;  %v3826_v13 = vsel %vm988_vm2, %v3823_v23, %v3825_v45  ;;  %v3498_v59 = vshll.u32 %v7028_v1, 16  ;;  %v3492_v10 = vrot.slane %v3490_v18, 1  ;;  %v3827_v56 = vrot.slane %v5752_v25, 1 }
 0x15a   : > { %v7030_v37 = vadd.f32 %v5365_v26, %v1625_v33  ;;  %v1623_v34 = vadd.f32 %v1532_v51, %v6808_v43  ;;  %v5366_v36 = vpop.f32.mrf.mxu0  ;;  %v3485_v43 = vsel %vm391_vm1, %v3480_v0, %v3484_v47  ;;  %v5754_v26 = vld [vmem:[%s5868_s27 + $0x74] sm:$0xff]   ;;  %v3488_v23 = vor.u32 %v3486_v53, %v3484_v47  ;;  %v7055_v0 = vld [vmem:[%s5868_s27 + $0x7c] sm:$0xff]  }
 0x15b   : > { %v5326_v39 = vpop.f32.mrf.mxu1  ;;  %v3500_v51 = vrot.slane %v3498_v59, 1  ;;  %v3506_v47 = vshll.u32 %v5754_v26, 16 }
 0x15c   : > { %v7035_v9 = vadd.f32 %v1844_v3, %v1623_v34  ;;  %v1626_v32 = vadd.f32 %v5326_v39, %v6815_v15  ;;  %v1847_v24 = vpop.f32.mrf.mxu0  ;;  %v3496_v3 = vor.u32 %v3494_v28, %v3492_v10 }
 0x15d   : > { %v1535_v54 = vpop.f32.mrf.mxu1 }
 0x15e   : > { %v7042_v62 = vadd.f32 %v5366_v36, %v1626_v32  ;;  %v1624_v29 = vadd.f32 %v1535_v54, %v6821_v4  ;;  %v5369_v2 = vpop.f32.mrf.mxu0  ;;  %5608 = vmatmul.mubr.msk.bf16.gmra.mxu0 %vm548_vm0, %v3824_v61  ;;  %v3829_v4 = vrot.slane %v7028_v1, 1  ;;  %v3501_v54 = vsel %vm391_vm1, %v3496_v3, %v3500_v51 }
 0x15f   : > { %v5329_v15 = vpop.f32.mrf.mxu1  ;;  %5568 = vmatmul.mubr.msk.bf16.gmra.mxu1 %vm548_vm0, %v3477_v17  ;;  %5611 = vmatprep.mubr.msk.bf16.mxu0 %vm548_vm0, %v3826_v13  ;;  %v3828_v17 = vsel %vm988_vm2, %v3825_v45, %v3827_v56 }
 0x160   : > { %v7049_v27 = vadd.f32 %v1847_v24, %v1624_v29  ;;  %v1629_v22 = vadd.f32 %v5329_v15, %v6828_v49  ;;  %v1860_v5 = vpop.f32.mrf.mxu0  ;;  %5571 = vmatprep.mubr.msk.bf16.mxu1 %vm548_vm0, %v3485_v43  ;;  %v3502_v49 = vshrl.u32 %v7028_v1, 16  ;;  %v3493_v24 = vsel %vm391_vm1, %v3488_v23, %v3492_v10 }
 0x161   : > { %v1548_v33 = vpop.f32.mrf.mxu1  ;;  %v3830_v53 = vsel %vm988_vm2, %v3827_v56, %v3829_v4  ;;  %v3514_v43 = vshll.u32 %v7055_v0, 16  ;;  %v3508_v29 = vrot.slane %v3506_v47, 1 }
 0x162   : > { %v7057_v34 = vadd.f32 %v5369_v2, %v1629_v22  ;;  %v1627_v25 = vadd.f32 %v1548_v33, %v6842_v11  ;;  %v5370_v36 = vpop.f32.mrf.mxu0  ;;  %v3510_v11 = vshrl.u32 %v5754_v26, 16  ;;  %v3504_v59 = vor.u32 %v3502_v49, %v3500_v51  ;;  %v5756_v22 = vld [vmem:[%s5868_s27 + $0x84] ss:$0 sps:$4 sm:$0x11]  }
 0x163   : > { %v5330_v39 = vpop.f32.mrf.mxu1  ;;  %v3831_v2 = vrot.slane %v5754_v26, 1  ;;  %v3516_v33 = vrot.slane %v3514_v43, 1 }
 0x164   : > { %v7062_v61 = vadd.f32 %v1860_v5, %v1627_v25  ;;  %v1630_v18 = vadd.f32 %v5330_v39, %v6851_v20  ;;  %v1863_v32 = vpop.f32.mrf.mxu0  ;;  %v3512_v23 = vor.u32 %v3510_v11, %v3508_v29  ;;  %v3509_v26 = vsel %vm391_vm1, %v3504_v59, %v3508_v29 }
 0x165   : > { %v1551_v13 = vpop.f32.mrf.mxu1  ;;  %v3832_v39 = vsel %vm988_vm2, %v3829_v4, %v3831_v2 }
 0x166   : > { %v7069_v45 = vadd.f32 %v5370_v36, %v1630_v18  ;;  %v1628_v1 = vadd.f32 %v1551_v13, %v6857_v41  ;;  %v5373_v28 = vpop.f32.mrf.mxu0  ;;  %5612 = vmatmul.mubr.msk.bf16.gmra.mxu0 %vm548_vm0, %v3828_v17  ;;  %v3833_v41 = vrot.slane %v7055_v0, 1 }
 0x167   : > { %v5333_v20 = vpop.f32.mrf.mxu1  ;;  %5572 = vmatmul.mubr.msk.bf16.gmra.mxu1 %vm548_vm0, %v3493_v24  ;;  %5615 = vmatprep.mubr.msk.bf16.mxu0 %vm548_vm0, %v3830_v53  ;;  %v3517_v53 = vsel %vm391_vm1, %v3512_v23, %v3516_v33 }
 0x168   : > { %v7075_v15 = vadd.f32 %v1863_v32, %v1628_v1  ;;  %v1633_v10 = vadd.f32 %v5333_v20, %v6865_v52  ;;  %v1876_v56 = vpop.f32.mrf.mxu0  ;;  %5575 = vmatprep.mubr.msk.bf16.mxu1 %vm548_vm0, %v3501_v54  ;;  %v3518_v52 = vshrl.u32 %v7055_v0, 16  ;;  %v3834_v18 = vsel %vm988_vm2, %v3831_v2, %v3833_v41 }
 0x169   : > { %v1564_v5 = vpop.f32.mrf.mxu1  ;;  %v3522_v32 = vshll.u32 %v5756_v22, 16 }
 0x16a   : > { %v7081_v3 = vadd.f32 %v5373_v28, %v1633_v10  ;;  %v1631_v51 = vadd.f32 %v1564_v5, %v6872_v42  ;;  %v5374_v25 = vpop.f32.mrf.mxu0  ;;  %v3520_v1 = vor.u32 %v3518_v52, %v3516_v33 }
 0x16b   : > { %v5334_v36 = vpop.f32.mrf.mxu1  ;;  %v3524_v28 = vrot.slane %v3522_v32, 1 }
 0x16c   : > { %v7087_v17 = vadd.f32 %v1876_v56, %v1631_v51  ;;  %v1634_v49 = vadd.f32 %v5334_v36, %v6879_v38  ;;  %v1879_v47 = vpop.f32.mrf.mxu0  ;;  %v3835_v38 = vrot.slane %v5756_v22, 1 }
 0x16d   : > { %v1567_v24 = vpop.f32.mrf.mxu1 }
 0x16e   : > { %v7092_v42 = vadd.f32 %v5374_v25, %v1634_v49  ;;  %v1632_v13 = vadd.f32 %v1567_v24, %v6886_v19  ;;  %v5377_v54 = vpop.f32.mrf.mxu0  ;;  %5616 = vmatmul.mubr.msk.bf16.gmra.mxu0 %vm548_vm0, %v3832_v39  ;;  %v3836_v10 = vsel %vm988_vm2, %v3833_v41, %v3835_v38 }
 0x16f   : > { %v5337_v4 = vpop.f32.mrf.mxu1  ;;  %5576 = vmatmul.mubr.msk.bf16.gmra.mxu1 %vm548_vm0, %v3509_v26  ;;  %5619 = vmatprep.mubr.msk.bf16.mxu0 %vm548_vm0, %v3834_v18 }
 0x170   : > { %v7098_v0 = vadd.f32 %v1879_v47, %v1632_v13  ;;  %v1637_v11 = vadd.f32 %v5337_v4, %v6894_v57  ;;  %v1892_v43 = vpop.f32.mrf.mxu0  ;;  %5579 = vmatprep.mubr.msk.bf16.mxu1 %vm548_vm0, %v3517_v53  ;;  %v3525_v57 = vsel %vm391_vm1, %v3520_v1, %v3524_v28 }
 0x171   : > { %v1580_v20 = vpop.f32.mrf.mxu1 }
 0x172   : > { %v7102_v19 = vadd.f32 %v5377_v54, %v1637_v11  ;;  %v1635_v59 = vadd.f32 %v1580_v20, %v6900_v30  ;;  %v5378_v29 = vpop.f32.mrf.mxu0 }
 0x173   : > { %v5338_v2 = vpop.f32.mrf.mxu1 }
 0x174   : > { %v7106_v56 = vadd.f32 %v1892_v43, %v1635_v59  ;;  %v1638_v22 = vadd.f32 %v5338_v2, %v6907_v46  ;;  %v1895_v5 = vpop.f32.mrf.mxu0 }
 0x175   : > { %v1583_v23 = vpop.f32.mrf.mxu1 }
 0x176   : > { %v7110_v33 = vadd.f32 %v5378_v29, %v1638_v22  ;;  %v1636_v51 = vadd.f32 %v1583_v23, %v6914_v50  ;;  %v5381_v25 = vpop.f32.mrf.mxu0  ;;  %5620 = vmatmul.mubr.msk.bf16.gmra.mxu0 %vm548_vm0, %v3836_v10 }
 0x177   : > { %v5341_v30 = vpop.f32.mrf.mxu1  ;;  %5580 = vmatmul.mubr.msk.bf16.gmra.mxu1 %vm548_vm0, %v3525_v57 }
 0x178   : > { %v7115_v36 = vadd.f32 %v1895_v5, %v1636_v51  ;;  %v1641_v41 = vadd.f32 %v5341_v30, %v6922_v16  ;;  %v1908_v26 = vpop.f32.mrf.mxu0 }
 0x179   : > { %v1596_v46 = vpop.f32.mrf.mxu1 }
 0x17a   : > { %v7118_v39 = vadd.f32 %v5381_v25, %v1641_v41  ;;  %v1639_v52 = vadd.f32 %v1596_v46, %v6927_v31  ;;  %v5382_v49 = vpop.f32.mrf.mxu0 }
 0x17b   : > { %v5342_v47 = vpop.f32.mrf.mxu1 }
 0x17c   : > { %v7121_v18 = vadd.f32 %v1908_v26, %v1639_v52  ;;  %v1642_v50 = vadd.f32 %v5342_v47, %v6934_v14  ;;  %v1911_v32 = vpop.f32.mrf.mxu0 }
 0x17d   : > { %v1599_v24 = vpop.f32.mrf.mxu1 }
 0x17e   : > { %v7124_v53 = vadd.f32 %v5382_v49, %v1642_v50  ;;  %v1640_v13 = vadd.f32 %v1599_v24, %v6941_v7  ;;  %v5433_v54 = vpop.f32.mrf.mxu0 }
 0x17f   : > { %v5393_v16 = vpop.f32.mrf.mxu1 }
 0x180   : > { %v7127_v4 = vadd.f32 %v1911_v32, %v1640_v13  ;;  %v2281_v38 = vadd.f32 %v5393_v16, %v6949_v6  ;;  %v2464_v11 = vpop.f32.mrf.mxu0 }
 0x181   : > { %v2152_v31 = vpop.f32.mrf.mxu1 }
 0x182   : > { %v7130_v43 = vadd.f32 %v5433_v54, %v2281_v38  ;;  %v2279_v1 = vadd.f32 %v2152_v31, %v6954_v60  ;;  %v5434_v28 = vpop.f32.mrf.mxu0 }
 0x183   : > { %v5394_v14 = vpop.f32.mrf.mxu1 }
 0x184   : > { %v7133_v20 = vadd.f32 %v2464_v11, %v2279_v1  ;;  %v2282_v59 = vadd.f32 %v5394_v14, %v6961_v48  ;;  %v2467_v29 = vpop.f32.mrf.mxu0 }
 0x185   : > { %v2155_v7 = vpop.f32.mrf.mxu1 }
 0x186   : > { %v7136_v2 = vadd.f32 %v5434_v28, %v2282_v59  ;;  %v2280_v10 = vadd.f32 %v2155_v7, %v6968_v63  ;;  %v5437_v22 = vpop.f32.mrf.mxu0 }
 0x187   : > { %v5397_v6 = vpop.f32.mrf.mxu1 }
 0x188   : > { %v7139_v5 = vadd.f32 %v2467_v29, %v2280_v10  ;;  %v2285_v57 = vadd.f32 %v5397_v6, %v6976_v21  ;;  %v2480_v23 = vpop.f32.mrf.mxu0 }
 0x189   : > { %v2168_v60 = vpop.f32.mrf.mxu1 }
 0x18a   : > { %v7142_v51 = vadd.f32 %v5437_v22, %v2285_v57  ;;  %v2283_v25 = vadd.f32 %v2168_v60, %v6981_v12  ;;  %v5438_v30 = vpop.f32.mrf.mxu0 }
 0x18b   : > { %v5398_v48 = vpop.f32.mrf.mxu1 }
 0x18c   : > { %v7145_v41 = vadd.f32 %v2480_v23, %v2283_v25  ;;  %v2286_v26 = vadd.f32 %v5398_v48, %v6988_v35  ;;  %v2483_v46 = vpop.f32.mrf.mxu0 }
 0x18d   : > { %v2171_v63 = vpop.f32.mrf.mxu1 }
 0x18e   : > { %v7148_v52 = vadd.f32 %v5438_v30, %v2286_v26  ;;  %v2284_v49 = vadd.f32 %v2171_v63, %v6995_v40  ;;  %v5441_v47 = vpop.f32.mrf.mxu0 }
 0x18f   : > { %v5401_v21 = vpop.f32.mrf.mxu1 }
 0x190   : > { %v7151_v50 = vadd.f32 %v2483_v46, %v2284_v49  ;;  %v2289_v32 = vadd.f32 %v5401_v21, %v7003_v8  ;;  %v2496_v24 = vpop.f32.mrf.mxu0 }
 0x191   : > { %v2184_v12 = vpop.f32.mrf.mxu1 }
 0x192   : > { %v7154_v13 = vadd.f32 %v5441_v47, %v2289_v32  ;;  %v2287_v54 = vadd.f32 %v2184_v12, %v7008_v44  ;;  %v5442_v16 = vpop.f32.mrf.mxu0 }
 0x193   : > { %v5402_v35 = vpop.f32.mrf.mxu1 }
 0x194   : > { %v7157_v38 = vadd.f32 %v2496_v24, %v2287_v54  ;;  %v2290_v11 = vadd.f32 %v5402_v35, %v7015_v55  ;;  %v2499_v31 = vpop.f32.mrf.mxu0 }
 0x195   : > { %v2187_v40 = vpop.f32.mrf.mxu1 }
 0x196   : > { %v7160_v1 = vadd.f32 %v5442_v16, %v2290_v11  ;;  %v2288_v28 = vadd.f32 %v2187_v40, %v7022_v58  ;;  %v5445_v14 = vpop.f32.mrf.mxu0 }
 0x197   : > { %v5405_v8 = vpop.f32.mrf.mxu1 }
 0x198   : > { %v7163_v59 = vadd.f32 %v2499_v31, %v2288_v28  ;;  %v2293_v29 = vadd.f32 %v5405_v8, %v7030_v37  ;;  %v2512_v7 = vpop.f32.mrf.mxu0 }
 0x199   : > { %v2200_v44 = vpop.f32.mrf.mxu1 }
 0x19a   : > { %v7166_v10 = vadd.f32 %v5445_v14, %v2293_v29  ;;  %v2291_v22 = vadd.f32 %v2200_v44, %v7035_v9  ;;  %v5446_v6 = vpop.f32.mrf.mxu0 }
 0x19b   : > { %v5406_v55 = vpop.f32.mrf.mxu1 }
 0x19c   : > { %v7169_v57 = vadd.f32 %v2512_v7, %v2291_v22  ;;  %v2294_v23 = vadd.f32 %v5406_v55, %v7042_v62  ;;  %v2515_v60 = vpop.f32.mrf.mxu0 }
 0x19d   : > { %v2203_v58 = vpop.f32.mrf.mxu1 }
 0x19e   : > { %v7172_v25 = vadd.f32 %v5446_v6, %v2294_v23  ;;  %v2292_v30 = vadd.f32 %v2203_v58, %v7049_v27  ;;  %v5449_v48 = vpop.f32.mrf.mxu0 }
 0x19f   : > { %v5409_v37 = vpop.f32.mrf.mxu1 }
 0x1a0   : > { %v7175_v26 = vadd.f32 %v2515_v60, %v2292_v30  ;;  %v2297_v46 = vadd.f32 %v5409_v37, %v7057_v34  ;;  %v2528_v63 = vpop.f32.mrf.mxu0 }
 0x1a1   : > { %v2216_v9 = vpop.f32.mrf.mxu1 }
 0x1a2   : > { %v7178_v49 = vadd.f32 %v5449_v48, %v2297_v46  ;;  %v2295_v47 = vadd.f32 %v2216_v9, %v7062_v61  ;;  %v5450_v21 = vpop.f32.mrf.mxu0 }
 0x1a3   : > { %v5410_v62 = vpop.f32.mrf.mxu1 }
 0x1a4   : > { %v7181_v32 = vadd.f32 %v2528_v63, %v2295_v47  ;;  %v2298_v24 = vadd.f32 %v5410_v62, %v7069_v45  ;;  %v2531_v12 = vpop.f32.mrf.mxu0 }
 0x1a5   : > { %v2219_v27 = vpop.f32.mrf.mxu1 }
 0x1a6   : > { %v7184_v54 = vadd.f32 %v5450_v21, %v2298_v24  ;;  %v2296_v16 = vadd.f32 %v2219_v27, %v7075_v15  ;;  %v5453_v35 = vpop.f32.mrf.mxu0 }
 0x1a7   : > { %v5413_v34 = vpop.f32.mrf.mxu1 }
 0x1a8   : > { %7647 = vst [vmem:[#allocation3_spill] sm:$0xff] %v7184_v54  ;;  %v7187_v11 = vadd.f32 %v2531_v12, %v2296_v16  ;;  %v2301_v31 = vadd.f32 %v5413_v34, %v7081_v3  ;;  %v2544_v40 = vpop.f32.mrf.mxu0 }
 0x1a9   : > { %v2232_v61 = vpop.f32.mrf.mxu1 }
 0x1aa   : > { %7648 = vst [vmem:[#allocation6_spill] sm:$0xff] %v7187_v11  ;;  %v7190_v28 = vadd.f32 %v5453_v35, %v2301_v31  ;;  %v2299_v14 = vadd.f32 %v2232_v61, %v7087_v17  ;;  %v5454_v8 = vpop.f32.mrf.mxu0 }
 0x1ab   : > { %v5414_v45 = vpop.f32.mrf.mxu1 }
 0x1ac   : > { %7649 = vst [vmem:[#allocation5_spill] sm:$0xff] %v7190_v28  ;;  %v7193_v29 = vadd.f32 %v2544_v40, %v2299_v14  ;;  %v2302_v7 = vadd.f32 %v5414_v45, %v7092_v42  ;;  %v2547_v44 = vpop.f32.mrf.mxu0 }
 0x1ad   : > { %v2235_v15 = vpop.f32.mrf.mxu1 }
 0x1ae   : > { %7650 = vst [vmem:[#allocation7_spill] sm:$0xff] %v7193_v29  ;;  %v7196_v22 = vadd.f32 %v5454_v8, %v2302_v7  ;;  %v2300_v6 = vadd.f32 %v2235_v15, %v7098_v0  ;;  %v5457_v55 = vpop.f32.mrf.mxu0 }
 0x1af   : > { %v5417_v3 = vpop.f32.mrf.mxu1 }
 0x1b0   : > { %7651 = vst [vmem:[#allocation8_spill] sm:$0xff] %v7196_v22  ;;  %v7199_v23 = vadd.f32 %v2547_v44, %v2300_v6  ;;  %v2305_v60 = vadd.f32 %v5417_v3, %v7102_v19  ;;  %v2560_v58 = vpop.f32.mrf.mxu0 }
 0x1b1   : > { %v2248_v17 = vpop.f32.mrf.mxu1 }
 0x1b2   : > { %7652 = vst [vmem:[#allocation9_spill] sm:$0xff] %v7199_v23  ;;  %v7202_v30 = vadd.f32 %v5457_v55, %v2305_v60  ;;  %v2303_v48 = vadd.f32 %v2248_v17, %v7106_v56  ;;  %v5458_v37 = vpop.f32.mrf.mxu0 }
 0x1b3   : > { %v5418_v42 = vpop.f32.mrf.mxu1 }
 0x1b4   : > { %7653 = vst [vmem:[#allocation10_spill] sm:$0xff] %v7202_v30  ;;  %v7205_v46 = vadd.f32 %v2560_v58, %v2303_v48  ;;  %v2306_v63 = vadd.f32 %v5418_v42, %v7110_v33  ;;  %v2563_v9 = vpop.f32.mrf.mxu0 }
 0x1b5   : > { %v2251_v0 = vpop.f32.mrf.mxu1 }
 0x1b6   : > { %7654 = vst [vmem:[#allocation11_spill] sm:$0xff] %v7205_v46  ;;  %v7208_v47 = vadd.f32 %v5458_v37, %v2306_v63  ;;  %v2304_v21 = vadd.f32 %v2251_v0, %v7115_v36  ;;  %v5461_v62 = vpop.f32.mrf.mxu0 }
 0x1b7   : > { %v5421_v19 = vpop.f32.mrf.mxu1 }
 0x1b8   : > { %7655 = vst [vmem:[#allocation2_spill] sm:$0xff] %v7208_v47  ;;  %v7211_v24 = vadd.f32 %v2563_v9, %v2304_v21  ;;  %v2309_v12 = vadd.f32 %v5421_v19, %v7118_v39  ;;  %v2576_v27 = vpop.f32.mrf.mxu0 }
 0x1b9   : > { %v2264_v56 = vpop.f32.mrf.mxu1 }
 0x1ba   : > { %7656 = vst [vmem:[#allocation4_spill] sm:$0xff] %v7211_v24  ;;  %v7214_v16 = vadd.f32 %v5461_v62, %v2309_v12  ;;  %v2307_v35 = vadd.f32 %v2264_v56, %v7121_v18  ;;  %v5462_v34 = vpop.f32.mrf.mxu0 }
 0x1bb   : > { %v5422_v33 = vpop.f32.mrf.mxu1 }
 0x1bc   : > { %7657 = vst [vmem:[#allocation12_spill] sm:$0xff] %v7214_v16  ;;  %v7217_v31 = vadd.f32 %v2576_v27, %v2307_v35  ;;  %v2310_v40 = vadd.f32 %v5422_v33, %v7124_v53  ;;  %v2579_v61 = vpop.f32.mrf.mxu0 }
 0x1bd   : > { %v2267_v36 = vpop.f32.mrf.mxu1 }
 0x1be   : > { %7658 = vst [vmem:[#allocation13_spill] sm:$0xff] %v7217_v31  ;;  %v7220_v14 = vadd.f32 %v5462_v34, %v2310_v40  ;;  %v2308_v8 = vadd.f32 %v2267_v36, %v7127_v4  ;;  %v7223_v45 = vpop.f32.mrf.mxu0 }
 0x1bf   : > { %v5473_v39 = vpop.f32.mrf.mxu1 }
 0x1c0   : > { %7659 = vst [vmem:[#allocation14_spill] sm:$0xff] %v7220_v14  ;;  %v7225_v7 = vadd.f32 %v2579_v61, %v2308_v8  ;;  %v7227_v44 = vpop.f32.mrf.mxu0 }
 0x1c1   : > { %v2820_v18 = vpop.f32.mrf.mxu1 }
 0x1c2   : > { %7660 = vst [vmem:[#allocation15_spill] sm:$0xff] %v7225_v7  ;;  %v7229_v15 = vpop.f32.mrf.mxu0 }
 0x1c3   : > { %v5474_v6 = vpop.f32.mrf.mxu1 }
 0x1c4   : > { %v7231_v55 = vpop.f32.mrf.mxu0 }
 0x1c5   : > { %v2823_v53 = vpop.f32.mrf.mxu1 }
 0x1c6   : > { %v7233_v3 = vpop.f32.mrf.mxu0 }
 0x1c7   : > { %v5477_v60 = vpop.f32.mrf.mxu1 }
 0x1c8   : > { %v7235_v58 = vpop.f32.mrf.mxu0 }
 0x1c9   : > { %v2836_v4 = vpop.f32.mrf.mxu1 }
 0x1ca   : > { %v7237_v17 = vpop.f32.mrf.mxu0 }
 0x1cb   : > { %v5478_v48 = vpop.f32.mrf.mxu1 }
 0x1cc   : > { %v7239_v37 = vpop.f32.mrf.mxu0 }
 0x1cd   : > { %v2839_v42 = vpop.f32.mrf.mxu1 }
 0x1ce   : > { %v7241_v63 = vpop.f32.mrf.mxu0 }
 0x1cf   : > { %v5481_v9 = vpop.f32.mrf.mxu1 }
 0x1d0   : > { %v7243_v0 = vpop.f32.mrf.mxu0 }
 0x1d1   : > { %v2852_v21 = vpop.f32.mrf.mxu1 }
 0x1d2   : > { %v7245_v62 = vpop.f32.mrf.mxu0 }
 0x1d3   : > { %v5482_v19 = vpop.f32.mrf.mxu1 }
 0x1d4   : > { %v7247_v12 = vpop.f32.mrf.mxu0 }
 0x1d5   : > { %v7249_v27 = vpop.f32.mrf.mxu1 }
 0x1d6   : > { %v7251_v56 = vpop.f32.mrf.mxu0 }
 0x1d7   : > { %v5485_v35 = vpop.f32.mrf.mxu1 }
 0x1d8   : > { %v7253_v34 = vpop.f32.mrf.mxu0 }
 0x1d9   : > { %v2868_v33 = vpop.f32.mrf.mxu1 }
 0x1da   : > { %v7255_v40 = vpop.f32.mrf.mxu0 }
 0x1db   : > { %v5486_v61 = vpop.f32.mrf.mxu1 }
 0x1dc   : > { %v7257_v36 = vpop.f32.mrf.mxu0 }
 0x1dd   : > { %v7259_v8 = vpop.f32.mrf.mxu1 }
 0x1de   : > { %v7261_v7 = vpop.f32.mrf.mxu0 }
 0x1df   : > { %v7263_v14 = vpop.f32.mrf.mxu1 }
 0x1e0   : > { %v7265_v31 = vpop.f32.mrf.mxu0 }
 0x1e1   : > { %7661 = vst [vmem:[#allocation16_spill] sm:$0xff] %v7265_v31  ;;  %v7267_v16 = vpop.f32.mrf.mxu1 }
 0x1e2   : > { %v7269_v24 = vpop.f32.mrf.mxu0 }
 0x1e3   : > { %7662 = vst [vmem:[#allocation17_spill] sm:$0xff] %v7269_v24  ;;  %v7271_v47 = vpop.f32.mrf.mxu1 }
 0x1e4   : > { %7663 = vst [vmem:[#allocation18_spill] sm:$0xff] %v7271_v47  ;;  %v7273_v46 = vpop.f32.mrf.mxu0 }
 0x1e5   : > { %7664 = vst [vmem:[#allocation19_spill] sm:$0xff] %v7273_v46  ;;  %v7275_v30 = vpop.f32.mrf.mxu1 }
 0x1e6   : > { %7665 = vst [vmem:[#allocation20_spill] sm:$0xff] %v7275_v30  ;;  %v7277_v23 = vpop.f32.mrf.mxu0 }
 0x1e7   : > { %7666 = vst [vmem:[#allocation21_spill] sm:$0xff] %v7277_v23  ;;  %v7279_v22 = vpop.f32.mrf.mxu1 }
 0x1e8   : > { %7667 = vst [vmem:[#allocation22_spill] sm:$0xff] %v7279_v22  ;;  %v7281_v29 = vpop.f32.mrf.mxu0 }
 0x1e9   : > { %7668 = vst [vmem:[#allocation23_spill] sm:$0xff] %v7281_v29  ;;  %v7283_v28 = vpop.f32.mrf.mxu1 }
 0x1ea   : > { %7669 = vst [vmem:[#allocation24_spill] sm:$0xff] %v7283_v28  ;;  %v7285_v11 = vpop.f32.mrf.mxu0 }
 0x1eb   : > { %7670 = vst [vmem:[#allocation25_spill] sm:$0xff] %v7285_v11  ;;  %v7287_v31 = vpop.f32.mrf.mxu1 }
 0x1ec   : > { %7671 = vst [vmem:[#allocation26_spill] sm:$0xff] %v7287_v31  ;;  %v7289_v54 = vpop.f32.mrf.mxu0 }
 0x1ed   : > { %7672 = vst [vmem:[#allocation27_spill] sm:$0xff] %v7289_v54  ;;  %v7291_v24 = vpop.f32.mrf.mxu1 }
 0x1ee   : > { %7673 = vst [vmem:[#allocation28_spill] sm:$0xff] %v7291_v24  ;;  %v7293_v47 = vpop.f32.mrf.mxu0 }
 0x1ef   : > { %7674 = vst [vmem:[#allocation29_spill] sm:$0xff] %v7293_v47  ;;  %v7295_v46 = vpop.f32.mrf.mxu1 }
 0x1f0   : > { %7675 = vst [vmem:[#allocation30_spill] sm:$0xff] %v7295_v46  ;;  %v7297_v30 = vpop.f32.mrf.mxu0 }
 0x1f1   : > { %7676 = vst [vmem:[#allocation31_spill] sm:$0xff] %v7297_v30  ;;  %v7299_v23 = vpop.f32.mrf.mxu1  ;;  %v2949_v30 = vadd.f32 %v5473_v39, %v7130_v43  ;;  %v2954_v39 = vadd.f32 %v5478_v48, %v7148_v52 }
 0x1f2   : > { %7677 = vst [vmem:[#allocation32_spill] sm:$0xff] %v7299_v23  ;;  %v7301_v22 = vpop.f32.mrf.mxu0  ;;  %v2947_v23 = vadd.f32 %v2820_v18, %v7133_v20 }
 0x1f3   : > { %7678 = vst [vmem:[#allocation33_spill] sm:$0xff] %v7301_v22  ;;  %v7303_v29 = vpop.f32.mrf.mxu1  ;;  %v2950_v22 = vadd.f32 %v5474_v6, %v7136_v2  ;;  %v3239_v43 = vadd.f32 %v7223_v45, %v2949_v30  ;;  %v2952_v2 = vadd.f32 %v2839_v42, %v7151_v50  ;;  %v2956_v50 = vadd.f32 %v7249_v27, %v7163_v59 }
 0x1f4   : > { %7679 = vst [vmem:[#allocation34_spill] sm:$0xff] %v7303_v29  ;;  %v7305_v28 = vpop.f32.mrf.mxu0  ;;  %v3237_v20 = vadd.f32 %v7227_v44, %v2947_v23  ;;  %v2958_v23 = vadd.f32 %v5482_v19, %v7160_v1  ;;  %v3244_v1 = vadd.f32 %v7237_v17, %v2954_v39  ;;  %v2963_v27 = vadd.f32 %v7267_v16, %v7181_v32 }
 0x1f5   : > { %7680 = vst [vmem:[#allocation35_spill] sm:$0xff] %v7305_v28  ;;  %v7307_v11 = vpop.f32.mrf.mxu1  ;;  %v2948_v28 = vadd.f32 %v2823_v53, %v7139_v5  ;;  %v3240_v5 = vadd.f32 %v7229_v15, %v2950_v22  ;;  %v2961_v22 = vadd.f32 %v5485_v35, %v7166_v10  ;;  %v7371_v42 = vadd.f32 %v7247_v12, %v2956_v50  ;;  %v7689_v50 = vld [vmem:[#allocation20_spill] sm:$0xff] }
 0x1f6   : > { %7681 = vst [vmem:[#allocation36_spill] sm:$0xff] %v7307_v11  ;;  %v7309_v31 = vpop.f32.mrf.mxu0 }
 0x1f7   : > { %7682 = vst [vmem:[#allocation37_spill] sm:$0xff] %v7309_v31  ;;  %v7311_v54 = vpop.f32.mrf.mxu1  ;;  %v2953_v31 = vadd.f32 %v5477_v60, %v7142_v51  ;;  %v3238_v6 = vadd.f32 %v7231_v55, %v2948_v28  ;;  %v2957_v51 = vadd.f32 %v5481_v9, %v7154_v13  ;;  %v2959_v28 = vadd.f32 %v2868_v33, %v7169_v57 }
 0x1f8   : > { %7683 = vst [vmem:[#allocation38_spill] sm:$0xff] %v7311_v54  ;;  %v7313_v24 = vpop.f32.mrf.mxu0  ;;  %v2951_v54 = vadd.f32 %v2836_v4, %v7145_v41  ;;  %v2955_v41 = vadd.f32 %v2852_v21, %v7157_v38  ;;  %v2962_v13 = vadd.f32 %v5486_v61, %v7172_v25  ;;  %v7350_v38 = vld [vmem:[%s7585_s2] ss:$0 sm:$0xff]  ;;  %v2960_v25 = vadd.f32 %v7259_v8, %v7175_v26 }
 0x1f9   : > { %7684 = vst [vmem:[#allocation39_spill] sm:$0xff] %v7313_v24  ;;  %v7315_v47 = vpop.f32.mrf.mxu1  ;;  %v3243_v60 = vadd.f32 %v7233_v3, %v2953_v31  ;;  %v7354_v31 = vadd.f32 %v7239_v37, %v2952_v2  ;;  %v7357_v10 = vadd.f32 %v7241_v63, %v2957_v51  ;;  %v2965_v55 = vadd.f32 %v7263_v14, %v7178_v49 }
 0x1fa   : > { %v7319_v46 = vpop.f32.mrf.mxu0  ;;  %v3241_v30 = vadd.f32 %v7235_v58, %v2951_v54  ;;  %v7360_v57 = vadd.f32 %v7243_v0, %v2955_v41  ;;  %v7367_v58 = vadd.f32 %v7245_v62, %v2958_v23  ;;  %v7374_v63 = vadd.f32 %v7251_v56, %v2961_v22 }
 0x1fb   : > { %v7323_v29 = vpop.f32.mrf.mxu1  ;;  %v7377_v26 = vadd.f32 %v7253_v34, %v2959_v28  ;;  %v7380_v49 = vadd.f32 %v7255_v40, %v2962_v13  ;;  %v7385_v19 = vadd.f32 %v7257_v36, %v2960_v25  ;;  %v7388_v12 = vadd.f32 %v7261_v7, %v2965_v55  ;;  %v7685_v36 = vld [vmem:[#allocation3_spill] sm:$0xff]  ;;  %v7686_v7 = vld [vmem:[#allocation18_spill] sm:$0xff]  ;;  %v7690_v25 = vld [vmem:[#allocation17_spill] sm:$0xff] }
 0x1fc   : > { %v7327_v11 = vpop.f32.mrf.mxu0  ;;  %v2966_v8 = vadd.f32 %v7686_v7, %v7685_v36 }
 0x1fd   : > { %v7329_v24 = vpop.f32.mrf.mxu1 }
 0x1fe   : > { %v5593_v18 = vpop.f32.mrf.mxu0  ;;  %v7412_v55 = vadd.f32 %v7690_v25, %v2966_v8  ;;  %v7699_v25 = vld [vmem:[#allocation9_spill] sm:$0xff] }
 0x1ff   : > { %v5553_v53 = vpop.f32.mrf.mxu1 }
 0x200   : > { %v3761_v45 = vadd.f32 %v5553_v53, %v3239_v43  ;;  %v3943_v52 = vpop.f32.mrf.mxu0 }
 0x201   : > { %v3632_v54 = vpop.f32.mrf.mxu1 }
 0x202   : > { %v4072_v44 = vadd.f32 %v5593_v18, %v3761_v45  ;;  %v3759_v15 = vadd.f32 %v3632_v54, %v3237_v20  ;;  %v5594_v59 = vpop.f32.mrf.mxu0 }
 0x203   : > { %v5554_v3 = vpop.f32.mrf.mxu1 }
 0x204   : > { %v4111_v4 = vadd.f32 %v7350_v38, %v4072_v44  ;;  %v4070_v17 = vadd.f32 %v3943_v52, %v3759_v15  ;;  %v3762_v48 = vadd.f32 %v5554_v3, %v3240_v5  ;;  %v3946_v37 = vpop.f32.mrf.mxu0  ;;  %v7688_v52 = vld [vmem:[#allocation6_spill] sm:$0xff] }
 0x205   : > { %v3635_v14 = vpop.f32.mrf.mxu1 }
 0x206   : > { %vm4143_vm9 = vcmp.ge.f32.partialorder %v4111_v4, 0.0  ;;  %v4175_v9 = vmul.f32 0.1, %v4111_v4  ;;  %v4109_v0 = vadd.f32 %v7350_v38, %v4070_v17  ;;  %v4073_v21 = vadd.f32 %v5594_v59, %v3762_v48  ;;  %v5597_v62 = vpop.f32.mrf.mxu0 }
 0x207   : > { %v3760_v56 = vadd.f32 %v3635_v14, %v3238_v6  ;;  %v5557_v35 = vpop.f32.mrf.mxu1  ;;  %v7687_v6 = vld [vmem:[#allocation16_spill] sm:$0xff] }
 0x208   : > { %v4207_v34 = vsel %vm4143_vm9, %v4111_v4, %v4175_v9  ;;  %vm4141_vm10 = vcmp.ge.f32.partialorder %v4109_v0, 0.0  ;;  %v4173_v33 = vmul.f32 0.1, %v4109_v0  ;;  %v4112_v40 = vadd.f32 %v7350_v38, %v4073_v21  ;;  %v3959_v61 = vpop.f32.mrf.mxu0 }
 0x209   : > { %v4933_v43 = vpack.c.bf16 %v4207_v34, %v4207_v34  ;;  %v4071_v20 = vadd.f32 %v3946_v37, %v3760_v56  ;;  %v3765_v32 = vadd.f32 %v5557_v35, %v3243_v60  ;;  %v3648_v16 = vpop.f32.mrf.mxu1  ;;  %v7401_v51 = vadd.f32 %v7687_v6, %v2963_v27  ;;  %v7691_v37 = vld [vmem:[#allocation5_spill] sm:$0xff]  ;;  %v7693_v34 = vld [vmem:[#allocation19_spill] sm:$0xff] }
 0x20a   : > { %v4205_v39 = vsel %vm4141_vm10, %v4109_v0, %v4173_v33  ;;  %vm4144_vm11 = vcmp.ge.f32.partialorder %v4112_v40, 0.0  ;;  %v4176_v2 = vmul.f32 0.1, %v4112_v40  ;;  %v3763_v18 = vadd.f32 %v3648_v16, %v3241_v30  ;;  %v5598_v5 = vpop.f32.mrf.mxu0 }
 0x20b   : > { %4368 = vst.msk [vmem:[%s7395_s22 + $0x8] sm:$0xf] %vm4365_vm8, %v4933_v43  ;;  %v4931_v41 = vpack.c.bf16 %v4205_v39, %v4205_v39  ;;  %v4110_v53 = vadd.f32 %v7350_v38, %v4071_v20  ;;  %v4076_v23 = vadd.f32 %v5597_v62, %v3765_v32  ;;  %v5558_v45 = vpop.f32.mrf.mxu1  ;;  %v2964_v60 = vadd.f32 %v7689_v50, %v7688_v52 }
 0x20c   : > { %v4208_v22 = vsel %vm4144_vm11, %v4112_v40, %v4176_v2  ;;  %v4074_v28 = vadd.f32 %v3959_v61, %v3763_v18  ;;  %v3766_v13 = vadd.f32 %v5558_v45, %v3244_v1  ;;  %v3962_v54 = vpop.f32.mrf.mxu0  ;;  %v7692_v1 = vld [vmem:[#allocation22_spill] sm:$0xff] }
 0x20d   : > { %4366 = vst.msk [vmem:[%s7395_s22] sm:$0xf] %vm4365_vm8, %v4931_v41  ;;  %v4934_v30 = vpack.c.bf16 %v4208_v22, %v4208_v22  ;;  %vm4142_vm12 = vcmp.ge.f32.partialorder %v4110_v53, 0.0  ;;  %v4174_v44 = vmul.f32 0.1, %v4110_v53  ;;  %v4115_v15 = vadd.f32 %v7350_v38, %v4076_v23  ;;  %v3651_v59 = vpop.f32.mrf.mxu1  ;;  %v7696_v41 = vld [vmem:[#allocation24_spill] sm:$0xff] }
 0x20e   : > { %v4113_v3 = vadd.f32 %v7350_v38, %v4074_v28  ;;  %v4077_v4 = vadd.f32 %v5598_v5, %v3766_v13  ;;  %v3764_v17 = vadd.f32 %v3651_v59, %v7354_v31  ;;  %v5601_v48 = vpop.f32.mrf.mxu0  ;;  %v2969_v14 = vadd.f32 %v7692_v1, %v7691_v37  ;;  %v7694_v5 = vld [vmem:[#allocation21_spill] sm:$0xff]  ;;  %v7697_v28 = vld [vmem:[#allocation8_spill] sm:$0xff]  ;;  %v7698_v13 = vld [vmem:[#allocation26_spill] sm:$0xff] }
 0x20f   : > { %4369 = vst.msk [vmem:[%s7395_s22 + $0xc] sm:$0xf] %vm4365_vm8, %v4934_v30  ;;  %v4206_v9 = vsel %vm4142_vm12, %v4110_v53, %v4174_v44  ;;  %vm4147_vm13 = vcmp.ge.f32.partialorder %v4115_v15, 0.0  ;;  %v4179_v0 = vmul.f32 0.1, %v4115_v15  ;;  %v5561_v21 = vpop.f32.mrf.mxu1  ;;  %v7422_v33 = vadd.f32 %v7693_v34, %v2964_v60 }
 0x210   : > { %v4932_v62 = vpack.c.bf16 %v4206_v9, %v4206_v9  ;;  %vm4145_vm14 = vcmp.ge.f32.partialorder %v4113_v3, 0.0  ;;  %v4177_v27 = vmul.f32 0.1, %v4113_v3  ;;  %v4116_v56 = vadd.f32 %v7350_v38, %v4077_v4  ;;  %v3975_v35 = vpop.f32.mrf.mxu0 }
 0x211   : > { %v4211_v31 = vsel %vm4147_vm13, %v4115_v15, %v4179_v0  ;;  %v4075_v40 = vadd.f32 %v3962_v54, %v3764_v17  ;;  %v3769_v61 = vadd.f32 %v5561_v21, %v7357_v10  ;;  %v3664_v36 = vpop.f32.mrf.mxu1  ;;  %v7430_v6 = vadd.f32 %v7694_v5, %v2969_v14  ;;  %v7695_v10 = vld [vmem:[#allocation7_spill] sm:$0xff] }
 0x212   : > { %4367 = vst.msk [vmem:[%s7395_s22 + $0x4] sm:$0xf] %vm4365_vm8, %v4932_v62  ;;  %v4937_v7 = vpack.c.bf16 %v4211_v31, %v4211_v31  ;;  %v4209_v8 = vsel %vm4145_vm14, %v4113_v3, %v4177_v27  ;;  %vm4148_vm15 = vcmp.ge.f32.partialorder %v4116_v56, 0.0  ;;  %v4180_v43 = vmul.f32 0.1, %v4116_v56  ;;  %v5602_v20 = vpop.f32.mrf.mxu0  ;;  %v7700_v3 = vld [vmem:[#allocation28_spill] sm:$0xff] }
 0x213   : > { %v4935_v32 = vpack.c.bf16 %v4209_v8, %v4209_v8  ;;  %v4114_v16 = vadd.f32 %v7350_v38, %v4075_v40  ;;  %v4080_v39 = vadd.f32 %v5601_v48, %v3769_v61  ;;  %v3767_v2 = vadd.f32 %v3664_v36, %v7360_v57  ;;  %v5562_v18 = vpop.f32.mrf.mxu1  ;;  %v7701_v21 = vld [vmem:[#allocation23_spill] sm:$0xff]  ;;  %v7702_v62 = vld [vmem:[#allocation10_spill] sm:$0xff] }
 0x214   : > { %v2967_v53 = vadd.f32 %v7696_v41, %v7695_v10  ;;  %4372 = vst.msk [vmem:[%s7395_s22 + $0x18] sm:$0xf] %vm4365_vm8, %v4937_v7  ;;  %v4212_v23 = vsel %vm4148_vm15, %v4116_v56, %v4180_v43  ;;  %v3770_v45 = vadd.f32 %v5562_v18, %v7367_v58  ;;  %v3978_v52 = vpop.f32.mrf.mxu0  ;;  %v2970_v54 = vadd.f32 %v7698_v13, %v7697_v28  ;;  %v7703_v27 = vld [vmem:[#allocation30_spill] sm:$0xff]  ;;  %v7707_v13 = vld [vmem:[#allocation11_spill] sm:$0xff] }
 0x215   : > { %4370 = vst.msk [vmem:[%s7395_s22 + $0x10] sm:$0xf] %vm4365_vm8, %v4935_v32  ;;  %v4938_v50 = vpack.c.bf16 %v4212_v23, %v4212_v23  ;;  %vm4146_vm0 = vcmp.ge.f32.partialorder %v4114_v16, 0.0  ;;  %v4178_v60 = vmul.f32 0.1, %v4114_v16  ;;  %v4119_v57 = vadd.f32 %v7350_v38, %v4080_v39  ;;  %v3667_v22 = vpop.f32.mrf.mxu1 }
 0x216   : > { %v4078_v30 = vadd.f32 %v3975_v35, %v3767_v2  ;;  %v4081_v44 = vadd.f32 %v5602_v20, %v3770_v45  ;;  %v3768_v15 = vadd.f32 %v3667_v22, %v7371_v42  ;;  %v5605_v59 = vpop.f32.mrf.mxu0  ;;  %v2968_v58 = vadd.f32 %v7700_v3, %v7699_v25  ;;  %v7705_v2 = vld [vmem:[#allocation27_spill] sm:$0xff]  ;;  %v7706_v22 = vld [vmem:[#allocation29_spill] sm:$0xff] }
 0x217   : > { %4373 = vst.msk [vmem:[%s7395_s22 + $0x1c] sm:$0xf] %vm4365_vm8, %v4938_v50  ;;  %v4210_v4 = vsel %vm4146_vm0, %v4114_v16, %v4178_v60  ;;  %vm4151_vm1 = vcmp.ge.f32.partialorder %v4119_v57, 0.0  ;;  %v4183_v17 = vmul.f32 0.1, %v4119_v57  ;;  %v5565_v48 = vpop.f32.mrf.mxu1  ;;  %v7450_v42 = vadd.f32 %v7701_v21, %v2967_v53  ;;  %v7704_v16 = vld [vmem:[#allocation25_spill] sm:$0xff] }
 0x218   : > { %v4936_v37 = vpack.c.bf16 %v4210_v4, %v4210_v4  ;;  %v4117_v1 = vadd.f32 %v7350_v38, %v4078_v30  ;;  %v4120_v14 = vadd.f32 %v7350_v38, %v4081_v44  ;;  %v4079_v9 = vadd.f32 %v3978_v52, %v3768_v15  ;;  %v3991_v0 = vpop.f32.mrf.mxu0  ;;  %v7709_v4 = vld [vmem:[#allocation2_spill] sm:$0xff] }
 0x219   : > { %v2973_v56 = vadd.f32 %v7703_v27, %v7702_v62  ;;  %v4215_v35 = vsel %vm4151_vm1, %v4119_v57, %v4183_v17  ;;  %v3773_v34 = vadd.f32 %v5565_v48, %v7374_v63  ;;  %v3680_v31 = vpop.f32.mrf.mxu1  ;;  %v7460_v39 = vadd.f32 %v7704_v16, %v2970_v54  ;;  %v7708_v54 = vld [vmem:[#allocation32_spill] sm:$0xff]  ;;  %v7710_v17 = vld [vmem:[#allocation34_spill] sm:$0xff] }
 0x21a   : > { %4371 = vst.msk [vmem:[%s7395_s22 + $0x14] sm:$0xf] %vm4365_vm8, %v4936_v37  ;;  %v4941_v40 = vpack.c.bf16 %v4215_v35, %v4215_v35  ;;  %vm4149_vm2 = vcmp.ge.f32.partialorder %v4117_v1, 0.0  ;;  %v4181_v61 = vmul.f32 0.1, %v4117_v1  ;;  %vm4152_vm3 = vcmp.ge.f32.partialorder %v4120_v14, 0.0  ;;  %v5606_v36 = vpop.f32.mrf.mxu0 }
 0x21b   : > { %v4184_v7 = vmul.f32 0.1, %v4120_v14  ;;  %v4118_v8 = vadd.f32 %v7350_v38, %v4079_v9  ;;  %v4084_v43 = vadd.f32 %v5605_v59, %v3773_v34  ;;  %v3771_v20 = vadd.f32 %v3680_v31, %v7377_v26  ;;  %v5566_v32 = vpop.f32.mrf.mxu1 }
 0x21c   : > { %v7463_v63 = vadd.f32 %v7705_v2, %v2968_v58  ;;  %4376 = vst.msk [vmem:[%s7395_s22 + $0x28] sm:$0xf] %vm4365_vm8, %v4941_v40  ;;  %v4213_v18 = vsel %vm4149_vm2, %v4117_v1, %v4181_v61  ;;  %v3774_v5 = vadd.f32 %v5566_v32, %v7380_v49  ;;  %v3994_v10 = vpop.f32.mrf.mxu0  ;;  %v7470_v28 = vadd.f32 %v7706_v22, %v2973_v56 }
 0x21d   : > { %v4939_v41 = vpack.c.bf16 %v4213_v18, %v4213_v18  ;;  %v4216_v53 = vsel %vm4152_vm3, %v4120_v14, %v4184_v7  ;;  %vm4150_vm4 = vcmp.ge.f32.partialorder %v4118_v8, 0.0  ;;  %v4182_v23 = vmul.f32 0.1, %v4118_v8  ;;  %v3683_v26 = vpop.f32.mrf.mxu1 }
 0x21e   : > { %v4942_v45 = vpack.c.bf16 %v4216_v53, %v4216_v53  ;;  %v4123_v52 = vadd.f32 %v7350_v38, %v4084_v43  ;;  %v4082_v50 = vadd.f32 %v3991_v0, %v3771_v20  ;;  %v4085_v60 = vadd.f32 %v5606_v36, %v3774_v5  ;;  %v5609_v57 = vpop.f32.mrf.mxu0  ;;  %v7711_v5 = vld [vmem:[#allocation4_spill] sm:$0xff]  ;;  %v7714_v53 = vld [vmem:[#allocation38_spill] sm:$0xff] }
 0x21f   : > { %v2971_v30 = vadd.f32 %v7708_v54, %v7707_v13  ;;  %4374 = vst.msk [vmem:[%s7395_s22 + $0x20] sm:$0xf] %vm4365_vm8, %v4939_v41  ;;  %v4214_v49 = vsel %vm4150_vm4, %v4118_v8, %v4182_v23  ;;  %v3772_v44 = vadd.f32 %v3683_v26, %v7385_v19  ;;  %v5569_v15 = vpop.f32.mrf.mxu1  ;;  %v2974_v48 = vadd.f32 %v7710_v17, %v7709_v4 }
 0x220   : > { %4377 = vst.msk [vmem:[%s7395_s22 + $0x2c] sm:$0xf] %vm4365_vm8, %v4942_v45  ;;  %v4940_v59 = vpack.c.bf16 %v4214_v49, %v4214_v49  ;;  %vm4155_vm5 = vcmp.ge.f32.partialorder %v4123_v52, 0.0  ;;  %v4187_v25 = vmul.f32 0.1, %v4123_v52  ;;  %v4121_v3 = vadd.f32 %v7350_v38, %v4082_v50  ;;  %v4007_v58 = vpop.f32.mrf.mxu0 }
 0x221   : > { %v4124_v37 = vadd.f32 %v7350_v38, %v4085_v60  ;;  %v4083_v1 = vadd.f32 %v3994_v10, %v3772_v44  ;;  %v3777_v14 = vadd.f32 %v5569_v15, %v7388_v12  ;;  %v3696_v9 = vpop.f32.mrf.mxu1  ;;  %v7712_v10 = vld [vmem:[#allocation36_spill] sm:$0xff]  ;;  %v7715_v15 = vld [vmem:[#allocation31_spill] sm:$0xff] }
 0x222   : > { %4375 = vst.msk [vmem:[%s7395_s22 + $0x24] sm:$0xf] %vm4365_vm8, %v4940_v59  ;;  %v4219_v19 = vsel %vm4155_vm5, %v4123_v52, %v4187_v25  ;;  %vm4153_vm6 = vcmp.ge.f32.partialorder %v4121_v3, 0.0  ;;  %v4185_v0 = vmul.f32 0.1, %v4121_v3  ;;  %v3775_v21 = vadd.f32 %v3696_v9, %v7401_v51  ;;  %v5610_v62 = vpop.f32.mrf.mxu0  ;;  %v7716_v25 = vld [vmem:[#allocation33_spill] sm:$0xff] }
 0x223   : > { %v4945_v27 = vpack.c.bf16 %v4219_v19, %v4219_v19  ;;  %vm4156_vm7 = vcmp.ge.f32.partialorder %v4124_v37, 0.0  ;;  %v4188_v56 = vmul.f32 0.1, %v4124_v37  ;;  %v4122_v35 = vadd.f32 %v7350_v38, %v4083_v1  ;;  %v5570_v34 = vpop.f32.mrf.mxu1 }
 0x224   : > { %v4217_v31 = vsel %vm4153_vm6, %v4121_v3, %v4185_v0  ;;  %v4088_v40 = vadd.f32 %v5609_v57, %v3777_v14  ;;  %v4086_v61 = vadd.f32 %v4007_v58, %v3775_v21  ;;  %v3778_v12 = vadd.f32 %v5570_v34, %v7412_v55  ;;  %v4010_v36 = vpop.f32.mrf.mxu0  ;;  %v7713_v55 = vld [vmem:[#allocation12_spill] sm:$0xff]  ;;  %v7717_v0 = vld [vmem:[#allocation35_spill] sm:$0xff] }
 0x225   : > { %4380 = vst.msk [vmem:[%s7395_s22 + $0x38] sm:$0xf] %vm4365_vm8, %v4945_v27  ;;  %v4943_v7 = vpack.c.bf16 %v4217_v31, %v4217_v31  ;;  %v4220_v8 = vsel %vm4156_vm7, %v4124_v37, %v4188_v56  ;;  %vm4154_vm9 = vcmp.ge.f32.partialorder %v4122_v35, 0.0  ;;  %v4186_v51 = vmul.f32 0.1, %v4122_v35  ;;  %v3699_v43 = vpop.f32.mrf.mxu1 }
 0x226   : > { %v4946_v20 = vpack.c.bf16 %v4220_v8, %v4220_v8  ;;  %v4127_v32 = vadd.f32 %v7350_v38, %v4088_v40  ;;  %v4125_v16 = vadd.f32 %v7350_v38, %v4086_v61  ;;  %v4089_v2 = vadd.f32 %v5610_v62, %v3778_v12  ;;  %v5613_v18 = vpop.f32.mrf.mxu0  ;;  %v7718_v62 = vld [vmem:[#allocation37_spill] sm:$0xff] }
 0x227   : > { %v2972_v41 = vadd.f32 %v7712_v10, %v7711_v5  ;;  %v2977_v23 = vadd.f32 %v7714_v53, %v7713_v55  ;;  %4378 = vst.msk [vmem:[%s7395_s22 + $0x30] sm:$0xf] %vm4365_vm8, %v4943_v7  ;;  %v4218_v26 = vsel %vm4154_vm9, %v4122_v35, %v4186_v51  ;;  %v3776_v45 = vadd.f32 %v3699_v43, %v7422_v33  ;;  %v5573_v52 = vpop.f32.mrf.mxu1  ;;  %v7719_v12 = vld [vmem:[#allocation13_spill] sm:$0xff] }
 0x228   : > { %4381 = vst.msk [vmem:[%s7395_s22 + $0x3c] sm:$0xf] %vm4365_vm8, %v4946_v20  ;;  %v4944_v50 = vpack.c.bf16 %v4218_v26, %v4218_v26  ;;  %vm4159_vm10 = vcmp.ge.f32.partialorder %v4127_v32, 0.0  ;;  %v4191_v60 = vmul.f32 0.1, %v4127_v32  ;;  %vm4157_vm11 = vcmp.ge.f32.partialorder %v4125_v16, 0.0  ;;  %v4023_v57 = vpop.f32.mrf.mxu0 }
 0x229   : > { %v4189_v22 = vmul.f32 0.1, %v4125_v16  ;;  %v4128_v13 = vadd.f32 %v7350_v38, %v4089_v2  ;;  %v4087_v54 = vadd.f32 %v4010_v36, %v3776_v45  ;;  %v3781_v49 = vadd.f32 %v5573_v52, %v7430_v6  ;;  %v3712_v44 = vpop.f32.mrf.mxu1 }
 0x22a   : > { %v3261_v59 = vadd.f32 %v7715_v15, %v2971_v30  ;;  %v7506_v3 = vadd.f32 %v7716_v25, %v2974_v48  ;;  %4379 = vst.msk [vmem:[%s7395_s22 + $0x34] sm:$0xf] %vm4365_vm8, %v4944_v50  ;;  %v4223_v33 = vsel %vm4159_vm10, %v4127_v32, %v4191_v60  ;;  %v3779_v58 = vadd.f32 %v3712_v44, %v7450_v42  ;;  %v5614_v4 = vpop.f32.mrf.mxu0 }
 0x22b   : > { %v4949_v17 = vpack.c.bf16 %v4223_v33, %v4223_v33  ;;  %v4221_v37 = vsel %vm4157_vm11, %v4125_v16, %v4189_v22  ;;  %vm4160_vm12 = vcmp.ge.f32.partialorder %v4128_v13, 0.0  ;;  %v4192_v1 = vmul.f32 0.1, %v4128_v13  ;;  %v5574_v14 = vpop.f32.mrf.mxu1 }
 0x22c   : > { %v4947_v6 = vpack.c.bf16 %v4221_v37, %v4221_v37  ;;  %v4126_v9 = vadd.f32 %v7350_v38, %v4087_v54  ;;  %v4092_v30 = vadd.f32 %v5613_v18, %v3781_v49  ;;  %v4090_v19 = vadd.f32 %v4023_v57, %v3779_v58  ;;  %v4026_v48 = vpop.f32.mrf.mxu0  ;;  %v7721_v49 = vld [vmem:[#allocation15_spill] sm:$0xff] }
 0x22d   : > { %v3262_v21 = vadd.f32 %v7717_v0, %v2972_v41  ;;  %v7514_v27 = vadd.f32 %v7718_v62, %v2977_v23  ;;  %4384 = vst.msk [vmem:[%s7395_s22 + $0x48] sm:$0xf] %vm4365_vm8, %v4949_v17  ;;  %v4224_v42 = vsel %vm4160_vm12, %v4128_v13, %v4192_v1  ;;  %v3782_v56 = vadd.f32 %v5574_v14, %v7460_v39  ;;  %v3715_v35 = vpop.f32.mrf.mxu1  ;;  %v7720_v13 = vld [vmem:[#allocation14_spill] sm:$0xff]  ;;  %v7722_v14 = vld [vmem:[#allocation39_spill] sm:$0xff] }
 0x22e   : > { %4382 = vst.msk [vmem:[%s7395_s22 + $0x40] sm:$0xf] %vm4365_vm8, %v4947_v6  ;;  %v4950_v34 = vpack.c.bf16 %v4224_v42, %v4224_v42  ;;  %vm4158_vm13 = vcmp.ge.f32.partialorder %v4126_v9, 0.0  ;;  %v4190_v31 = vmul.f32 0.1, %v4126_v9  ;;  %v4131_v40 = vadd.f32 %v7350_v38, %v4092_v30  ;;  %v5617_v61 = vpop.f32.mrf.mxu0 }
 0x22f   : > { %v2975_v36 = vadd.f32 %v7315_v47, %v7719_v12  ;;  %v4129_v7 = vadd.f32 %v7350_v38, %v4090_v19  ;;  %v4093_v8 = vadd.f32 %v5614_v4, %v3782_v56  ;;  %v3780_v51 = vadd.f32 %v3715_v35, %v7463_v63  ;;  %v5577_v43 = vpop.f32.mrf.mxu1 }
 0x230   : > { %4385 = vst.msk [vmem:[%s7395_s22 + $0x4c] sm:$0xf] %vm4365_vm8, %v4950_v34  ;;  %v4222_v39 = vsel %vm4158_vm13, %v4126_v9, %v4190_v31  ;;  %vm4163_vm14 = vcmp.ge.f32.partialorder %v4131_v40, 0.0  ;;  %v4195_v20 = vmul.f32 0.1, %v4131_v40  ;;  %v3785_v32 = vadd.f32 %v5577_v43, %v7470_v28  ;;  %v4039_v16 = vpop.f32.mrf.mxu0 }
 0x231   : > { %v4948_v2 = vpack.c.bf16 %v4222_v39, %v4222_v39  ;;  %vm4161_vm15 = vcmp.ge.f32.partialorder %v4129_v7, 0.0  ;;  %v4193_v18 = vmul.f32 0.1, %v4129_v7  ;;  %v4132_v47 = vadd.f32 %v7350_v38, %v4093_v8  ;;  %v3728_v5 = vpop.f32.mrf.mxu1 }
 0x232   : > { %v4227_v10 = vsel %vm4163_vm14, %v4131_v40, %v4195_v20  ;;  %v4091_v41 = vadd.f32 %v4026_v48, %v3780_v51  ;;  %v4096_v55 = vadd.f32 %v5617_v61, %v3785_v32  ;;  %v3783_v63 = vadd.f32 %v3728_v5, %v3261_v59  ;;  %v5618_v53 = vpop.f32.mrf.mxu0 }
 0x233   : > { %4383 = vst.msk [vmem:[%s7395_s22 + $0x44] sm:$0xf] %vm4365_vm8, %v4948_v2  ;;  %v4953_v23 = vpack.c.bf16 %v4227_v10, %v4227_v10  ;;  %v4225_v26 = vsel %vm4161_vm15, %v4129_v7, %v4193_v18  ;;  %vm4164_vm0 = vcmp.ge.f32.partialorder %v4132_v47, 0.0  ;;  %v4196_v28 = vmul.f32 0.1, %v4132_v47  ;;  %v5578_v45 = vpop.f32.mrf.mxu1 }
 0x234   : > { %v4951_v52 = vpack.c.bf16 %v4225_v26, %v4225_v26  ;;  %v4130_v50 = vadd.f32 %v7350_v38, %v4091_v41  ;;  %v4135_v60 = vadd.f32 %v7350_v38, %v4096_v55  ;;  %v4094_v57 = vadd.f32 %v4039_v16, %v3783_v63  ;;  %v4042_v22 = vpop.f32.mrf.mxu0 }
 0x235   : > { %v2978_v54 = vadd.f32 %v7323_v29, %v7720_v13  ;;  %v2976_v44 = vadd.f32 %v7329_v24, %v7721_v49  ;;  %4388 = vst.msk [vmem:[%s7395_s22 + $0x58] sm:$0xf] %vm4365_vm8, %v4953_v23  ;;  %v4228_v15 = vsel %vm4164_vm0, %v4132_v47, %v4196_v28  ;;  %v3786_v59 = vadd.f32 %v5578_v45, %v7506_v3  ;;  %v3731_v25 = vpop.f32.mrf.mxu1 }
 0x236   : > { %4386 = vst.msk [vmem:[%s7395_s22 + $0x50] sm:$0xf] %vm4365_vm8, %v4951_v52  ;;  %v4954_v33 = vpack.c.bf16 %v4228_v15, %v4228_v15  ;;  %vm4162_vm1 = vcmp.ge.f32.partialorder %v4130_v50, 0.0  ;;  %v4194_v58 = vmul.f32 0.1, %v4130_v50  ;;  %vm4167_vm2 = vcmp.ge.f32.partialorder %v4135_v60, 0.0  ;;  %v5621_v4 = vpop.f32.mrf.mxu0 }
 0x237   : > { %v4199_v17 = vmul.f32 0.1, %v4135_v60  ;;  %v4133_v29 = vadd.f32 %v7350_v38, %v4094_v57  ;;  %v4097_v37 = vadd.f32 %v5618_v53, %v3786_v59  ;;  %v3784_v1 = vadd.f32 %v3731_v25, %v3262_v21  ;;  %v5581_v24 = vpop.f32.mrf.mxu1 }
 0x238   : > { %v3265_v6 = vadd.f32 %v7722_v14, %v2975_v36  ;;  %4389 = vst.msk [vmem:[%s7395_s22 + $0x5c] sm:$0xf] %vm4365_vm8, %v4954_v33  ;;  %v4226_v3 = vsel %vm4162_vm1, %v4130_v50, %v4194_v58  ;;  %v3789_v9 = vadd.f32 %v5581_v24, %v7514_v27  ;;  %v4055_v30 = vpop.f32.mrf.mxu0  ;;  %v3268_v34 = vadd.f32 %v7319_v46, %v2978_v54 }
 0x239   : > { %v4952_v19 = vpack.c.bf16 %v4226_v3, %v4226_v3  ;;  %v4231_v48 = vsel %vm4167_vm2, %v4135_v60, %v4199_v17  ;;  %vm4165_vm3 = vcmp.ge.f32.partialorder %v4133_v29, 0.0  ;;  %v4197_v0 = vmul.f32 0.1, %v4133_v29  ;;  %v3744_v62 = vpop.f32.mrf.mxu1 }
 0x23a   : > { %v4957_v42 = vpack.c.bf16 %v4231_v48, %v4231_v48  ;;  %v4136_v56 = vadd.f32 %v7350_v38, %v4097_v37  ;;  %v4095_v21 = vadd.f32 %v4042_v22, %v3784_v1  ;;  %v4100_v35 = vadd.f32 %v5621_v4, %v3789_v9  ;;  %v5622_v12 = vpop.f32.mrf.mxu0 }
 0x23b   : > { %v3266_v31 = vadd.f32 %v7327_v11, %v2976_v44  ;;  %4387 = vst.msk [vmem:[%s7395_s22 + $0x54] sm:$0xf] %vm4365_vm8, %v4952_v19  ;;  %v4229_v27 = vsel %vm4165_vm3, %v4133_v29, %v4197_v0  ;;  %v3787_v40 = vadd.f32 %v3744_v62, %v3265_v6  ;;  %v5582_v61 = vpop.f32.mrf.mxu1 }
 0x23c   : > { %4392 = vst.msk [vmem:[%s7395_s22 + $0x68] sm:$0xf] %vm4365_vm8, %v4957_v42  ;;  %v4955_v36 = vpack.c.bf16 %v4229_v27, %v4229_v27  ;;  %vm4168_vm4 = vcmp.ge.f32.partialorder %v4136_v56, 0.0  ;;  %v4200_v7 = vmul.f32 0.1, %v4136_v56  ;;  %v4134_v8 = vadd.f32 %v7350_v38, %v4095_v21  ;;  %v4058_v47 = vpop.f32.mrf.mxu0 }
 0x23d   : > { %v4139_v51 = vadd.f32 %v7350_v38, %v4100_v35  ;;  %v4098_v43 = vadd.f32 %v4055_v30, %v3787_v40  ;;  %v3790_v46 = vadd.f32 %v5582_v61, %v3268_v34  ;;  %v3747_v39 = vpop.f32.mrf.mxu1 }
 0x23e   : > { %4390 = vst.msk [vmem:[%s7395_s22 + $0x60] sm:$0xf] %vm4365_vm8, %v4955_v36  ;;  %v4232_v11 = vsel %vm4168_vm4, %v4136_v56, %v4200_v7  ;;  %vm4166_vm5 = vcmp.ge.f32.partialorder %v4134_v8, 0.0  ;;  %v4198_v20 = vmul.f32 0.1, %v4134_v8  ;;  %v3788_v32 = vadd.f32 %v3747_v39, %v3266_v31 }
 0x23f   : > { %v4958_v16 = vpack.c.bf16 %v4232_v11, %v4232_v11  ;;  %vm4171_vm6 = vcmp.ge.f32.partialorder %v4139_v51, 0.0  ;;  %v4203_v2 = vmul.f32 0.1, %v4139_v51  ;;  %v4137_v18 = vadd.f32 %v7350_v38, %v4098_v43 }
 0x240   : > { %v4230_v5 = vsel %vm4166_vm5, %v4134_v8, %v4198_v20  ;;  %v4101_v10 = vadd.f32 %v5622_v12, %v3790_v46  ;;  %v4099_v41 = vadd.f32 %v4058_v47, %v3788_v32 }
 0x241   : > { %4393 = vst.msk [vmem:[%s7395_s22 + $0x6c] sm:$0xf] %vm4365_vm8, %v4958_v16  ;;  %v4956_v55 = vpack.c.bf16 %v4230_v5, %v4230_v5  ;;  %v4235_v63 = vsel %vm4171_vm6, %v4139_v51, %v4203_v2  ;;  %vm4169_vm7 = vcmp.ge.f32.partialorder %v4137_v18, 0.0  ;;  %v4201_v53 = vmul.f32 0.1, %v4137_v18 }
 0x242   : > { %v4961_v23 = vpack.c.bf16 %v4235_v63, %v4235_v63  ;;  %v4140_v26 = vadd.f32 %v7350_v38, %v4101_v10  ;;  %v4138_v28 = vadd.f32 %v7350_v38, %v4099_v41 }
 0x243   : > { %4391 = vst.msk [vmem:[%s7395_s22 + $0x64] sm:$0xf] %vm4365_vm8, %v4956_v55  ;;  %v4233_v45 = vsel %vm4169_vm7, %v4137_v18, %v4201_v53 }
 0x244   : > { %4396 = vst.msk [vmem:[%s7395_s22 + $0x78] sm:$0xf] %vm4365_vm8, %v4961_v23  ;;  %v4959_v52 = vpack.c.bf16 %v4233_v45, %v4233_v45  ;;  %vm4172_vm9 = vcmp.ge.f32.partialorder %v4140_v26, 0.0  ;;  %v4204_v50 = vmul.f32 0.1, %v4140_v26  ;;  %vm4170_vm10 = vcmp.ge.f32.partialorder %v4138_v28, 0.0 }
 0x245   : > { %v4202_v60 = vmul.f32 0.1, %v4138_v28 }
 0x246   : > { %4394 = vst.msk [vmem:[%s7395_s22 + $0x70] sm:$0xf] %vm4365_vm8, %v4959_v52  ;;  %v4236_v57 = vsel %vm4172_vm9, %v4140_v26, %v4204_v50 }
 0x247   : > { %v4962_v22 = vpack.c.bf16 %v4236_v57, %v4236_v57  ;;  %v4234_v13 = vsel %vm4170_vm10, %v4138_v28, %v4202_v60 }
 0x248   : > { %v4960_v54 = vpack.c.bf16 %v4234_v13, %v4234_v13 }
 0x249   : > { %4397 = vst.msk [vmem:[%s7395_s22 + $0x7c] sm:$0xf] %vm4365_vm8, %v4962_v22 }
 0x24a   : > { %4395 = vst.msk [vmem:[%s7395_s22 + $0x74] sm:$0xf] %vm4365_vm8, %v4960_v54 }
 0x24b PF: > { %s13_s14 = sadd.s32 1, %s5810_s14   ;;  %s7723_s12 = smov %s5806_s13 }
 0x24c   : > { %p10_p5 = scmp.ge.s32.totalorder %s13_s14, 4   ;;  %s7724_s13 = smov %s7726_s15 }
 0x24e   :  { %12 = sbr.rel (!%p10_p5) target bundleno = 2 (0x2), region = 78 }

// kernel: discriminator_s_forward.6
= control target key start
LH: loop header
LB: loop body
LE: loop exit
PB: predicated region body
PF: predicated region fallthrough
CT: control target
= control target key end

     0   :  { %s3398_s12 = smov 0   ;;  %s3400_s13 = smov 0   ;;  %s3984_s0 = inlined_call_operand.vmem [shape: bf16[2,1,74,256], index: 0, kind: input, shape index: {}]   ;;  %s3985_s1 = inlined_call_operand.vmem [shape: bf16[2,11,128,128], index: 1, kind: input, shape index: {}]   ;;  %s3986_s2 = inlined_call_operand.vmem [shape: f32[1,256], index: 2, kind: input, shape index: {}]   ;;  %s3987_s3 = inlined_call_operand.vmem [shape: bf16[2,64,256], index: 3, kind: output, shape index: {}]  }
   0x1   :  { %s3402_s14 = smov 0   ;;  %s3404_s15 = smov 0  }
   0x2   :  { %s3406_s16 = smov 0   ;;  %s3408_s17 = smov 0  }
   0x3   :  { %s3410_s18 = smov 0  }
   0x4 LB: > { %s28_s19 = sadd.s32 1, %s3368_s16  ;;  %s32_s20 = sadd.s32 1, %s3372_s17  ;;  %s3376_s18 = sphi %s3410_s18, %s13_s18   ;;  %s3372_s17 = sphi %s3408_s17, %s4022_s17   ;;  %s3368_s16 = sphi %s3406_s16, %s4021_s16   ;;  %s3364_s15 = sphi %s3404_s15, %s4020_s15   ;;  %s3360_s14 = sphi %s3402_s14, %s4019_s14   ;;  %s3356_s13 = sphi %s3400_s13, %s4018_s13   ;;  %s3352_s12 = sphi %s3398_s12, %s4017_s12  }
   0x5   : > { %p30_p0 = scmp.ge.s32.totalorder %s28_s19, 2  ;;  %s2416_s21 = sadd.s32 4294967295, %s3376_s18  }
   0x6   : > { %p50_p1 = scmp.ne.s32.totalorder %s3356_s13, %s3352_s12  ;;  %p51_p2 = scmp.eq.s32.totalorder %s3376_s18, 0 }
   0x7   : > { %s4024_s19 = smov (%p30_p0, %s28_s19), 0  ;;  %s4026_s20 = smov (!%p30_p0, %s32_s20), %s3372_s17 }
   0x8   : > { %p34_p3 = scmp.ge.s32.totalorder %s4026_s20, 2  ;;  %p136_p4 = scmp.eq.s32.totalorder %s2416_s21, 3 }
   0x9   : > { %s39_s22 = ssub.s32 %s3368_s16, %s4024_s19  ;;  %p52_p5 = por %p51_p2, %p50_p1 }
   0xa   : > { %s4028_s20 = smov (%p34_p3, %s4026_s20), 0  ;;  %p3446_p6 = por %p136_p4, %p50_p1 }
   0xb   : > { %s36_s24 = ssub.s32 %s3372_s17, %s4028_s20  ;;  %s43_s26 = sadd.s32 1, %s3356_s13 }
   0xc   : > { %s40_s25 = sor.u32 %s39_s22, %s36_s24  ;;  %p2419_p8 = scmp.ge.s32.totalorder %s3376_s18, 4 }
   0xd   : > { %p41_p7 = scmp.eq.s32.totalorder %s40_s25, 0 }
   0xe   : > { %158 = sbr.rel (%p2419_p8) target bundleno = 32 (0x20), region = 16 }
   0xf   : > { %s3454_s27 = scalar_select %p41_p7, %s3356_s13, %s43_s26  }
  0x13   : > { %161 = sbr.rel (!%p52_p5) target bundleno = 32 (0x20), region = 20  ;;  %s163_s28 = sand.u32 (%p52_p5), 1, %s3356_s13  }
  0x14   : > { %s3151_s29 = smul.u32 (%p52_p5), 20, %s3372_s17 }
  0x15   : > { %s3150_s30 = smul.u32 (%p52_p5), 40, %s163_s28 }
  0x16   : > { %s169_s4 = sadd.s32 (%p52_p5), %s3368_s16, %s3151_s29 }
  0x17   : > { %s2420_s5 = sshll.u32 (%p52_p5), %s169_s4, 2  ;;  %s165_s9 = scalar_lea.vmem (%p52_p5), [#allocation2], %s3150_s30 }
  0x18   : > { %s171_s8 = scalar_lea.vmem %s3984_s0, %s2420_s5 }
  0x19   : > { %v188_v0 = vld [vmem:[%s171_s8] sm:$0xf]  ;;  %v190_v1 = vld [vmem:[%s171_s8 + $0x8] sm:$0xf]  ;;  %v192_v2 = vld [vmem:[%s171_s8 + $0x10] sm:$0xf] }
  0x1a   : > { %189 = vst [vmem:[%s165_s9] sm:$0xf] %v188_v0  ;;  %191 = vst [vmem:[%s165_s9 + $0x4] sm:$0xf] %v190_v1  ;;  %v194_v3 = vld [vmem:[%s171_s8 + $0x18] sm:$0xf] }
  0x1b   : > { %193 = vst [vmem:[%s165_s9 + $0x8] sm:$0xf] %v192_v2  ;;  %v196_v4 = vld [vmem:[%s171_s8 + $0x20] sm:$0xf]  ;;  %v198_v5 = vld [vmem:[%s171_s8 + $0x28] sm:$0xf] }
  0x1c   : > { %195 = vst [vmem:[%s165_s9 + $0xc] sm:$0xf] %v194_v3  ;;  %197 = vst [vmem:[%s165_s9 + $0x10] sm:$0xf] %v196_v4  ;;  %v200_v6 = vld [vmem:[%s171_s8 + $0x30] sm:$0xf] }
  0x1d   : > { %199 = vst [vmem:[%s165_s9 + $0x14] sm:$0xf] %v198_v5  ;;  %v202_v7 = vld [vmem:[%s171_s8 + $0x38] sm:$0xf]  ;;  %v204_v8 = vld [vmem:[%s171_s8 + $0x40] sm:$0xf] }
  0x1e   : > { %201 = vst [vmem:[%s165_s9 + $0x18] sm:$0xf] %v200_v6  ;;  %203 = vst [vmem:[%s165_s9 + $0x1c] sm:$0xf] %v202_v7  ;;  %v206_v9 = vld [vmem:[%s171_s8 + $0x48] sm:$0xf] }
  0x1f   : > { %205 = vst [vmem:[%s165_s9 + $0x20] sm:$0xf] %v204_v8  ;;  %207 = vst [vmem:[%s165_s9 + $0x24] sm:$0xf] %v206_v9 }
  0x20 PF: > { %p2421_p9 = scmp.ge.s32.totalorder %s3376_s18, 1  ;;  %p264_p10 = scmp.lt.s32.totalorder %s3376_s18, 5 }
  0x22   : > { %p265_p11 = pnand %p2421_p9, %p264_p10 }
  0x24   : > { %268 = sbr.rel (%p265_p11) target bundleno = 461 (0x1cd), region = 69 }
  0x29   : > { %p301_p12 = scmp.lt.s32.totalorder %s3360_s14, 1  ;;  %s271_s10 = sand.u32 1, %s3352_s12   ;;  %vm376_vm0 = vsmask.f32 7424  ;;  %vm1000_vm1 = vcmask 1045504   ;;  %vm668_vm3 = vcmask 1046528  }
  0x2a   : > { %s3152_s11 = smul.u32 40, %s271_s10  ;;  %vm1156_vm2 = vsmask.f32 5376  ;;  %vm824_vm4 = vsmask.f32 6400  ;;  %vm1332_vm5 = vcmask 1044480  }
  0x2b   : > { %s3470_s21 = scalar_select %p301_p12, %s3360_s14, 1  ;;  %vm1488_vm6 = vsmask.f32 4352 }
  0x2c   : > { %s3473_s24 = scalar_lea.vmem [#allocation2], %s3152_s11  ;;  %s2422_s5 = sshll.u32 %s271_s10, 5 }
  0x2d   : > { %s3153_s22 = smul.u32 704, %s3470_s21  ;;  %v311_v10 = vld [vmem:[%s3473_s24] sm:$0xf]  ;;  %v3477_v11 = vld [vmem:[%s3473_s24 + $0x4] sm:$0xf]  ;;  %s308_s4 = scalar_lea.vmem %s3986_s2, %s3470_s21 }
  0x2e   : > { %v313_v12 = vld [vmem:[%s3473_s24 + $0x8] sm:$0xf]  ;;  %v3481_v13 = vld [vmem:[%s3473_s24 + $0xc] sm:$0xf]  ;;  %v2440_v14 = vcombine.low %v311_v10, %v3477_v11  ;;  %v3506_v31 = vld [vmem:[%s3473_s24 + $0x10] sm:$0xf] }
  0x2f   : > { %s3487_s28 = scalar_lea.vmem %s3985_s1, %s3153_s22  ;;  %v3490_v15 = vcombine.low %v313_v12, %v3481_v13  ;;  %v3509_v32 = vld [vmem:[%s3473_s24 + $0x14] sm:$0xf]  ;;  %v3518_v36 = vld [vmem:[%s3473_s24 + $0x18] sm:$0xf]  ;;  %v318_v37 = vld [vmem:[%s3473_s24 + $0x1c] sm:$0xf]  ;;  %v2628_v8 = vcombine.low %v3481_v13, %v3506_v31 }
  0x30   : > { %v3210_v16 = vld [vmem:[%s3487_s28 + $0x78] sm:$0xff]   ;;  %v378_v17 = vshrl.u32 %v2440_v14, 16  ;;  %2910 = vmatprep.mubr.bf16.mxu1 %v2440_v14  ;;  %v380_v19 = vshll.u32 %v2440_v14, 16  ;;  %v3212_v20 = vld [vmem:[%s3487_s28 + $0x70] sm:$0xff]   ;;  %v3214_v24 = vld [vmem:[%s3487_s28 + $0x68] sm:$0xff]   ;;  %v3515_v35 = vcombine.low %v3506_v31, %v3509_v32  ;;  %v3527_v41 = vcombine.low %v3518_v36, %v318_v37  ;;  %s300_s12 = scalar_lea.vmem [#allocation3], %s2422_s5 }
  0x31   : > { %v3211_v18 = vld [vmem:[%s3487_s28 + $0x38] sm:$0xff]   ;;  %2870 = vmatprep.subr.bf16.mxu0 %v3210_v16  ;;  %v3496_v21 = vshll.u32 %v3490_v15, 16  ;;  %v3213_v22 = vld [vmem:[%s3487_s28 + $0x30] sm:$0xff]   ;;  %v3215_v26 = vld [vmem:[%s3487_s28 + $0x28] sm:$0xff]   ;;  %v3531_v43 = vshrl.u32 %v3490_v15, 16  ;;  %v1002_v47 = vrot.slane %v3490_v15, 2 }
  0x32   : > { %2894 = vmatprep.subr.bf16.mxu1 %v3211_v18  ;;  %2871 = vmatpush3.bf16.msra.mxu0 %v3210_v16  ;;  %v382_v23 = vrot.slane %v380_v19, 1  ;;  %v3216_v29 = vld [vmem:[%s3487_s28 + $0x60] sm:$0xff]   ;;  %v3218_v33 = vld [vmem:[%s3487_s28 + $0x58] sm:$0xff]   ;;  %v3220_v38 = vld [vmem:[%s3487_s28 + $0x50] sm:$0xff]   ;;  %v3524_v40 = vshll.u32 %v3515_v35, 16  ;;  %v3535_v45 = vshrl.u32 %v3515_v35, 16 }
  0x33   : > { %2895 = vmatpush3.bf16.msra.mxu1 %v3211_v18  ;;  %2872 = vmatprep.subr.bf16.mxu0 %v3212_v20  ;;  %v387_v25 = vrot.slane %v3496_v21, 1  ;;  %v3217_v30 = vld [vmem:[%s3487_s28 + $0x20] sm:$0xff]   ;;  %v3219_v34 = vld [vmem:[%s3487_s28 + $0x18] sm:$0xff]   ;;  %v3221_v39 = vld [vmem:[%s3487_s28 + $0x10] sm:$0xff]   ;;  %v3540_v48 = vshll.u32 %v3527_v41, 16  ;;  %v3543_v49 = vshrl.u32 %v3527_v41, 16 }
  0x34   : > { %2896 = vmatprep.subr.bf16.mxu1 %v3213_v22  ;;  %v383_v27 = vor.u32 %v382_v23, %v378_v17  ;;  %v3222_v42 = vld [vmem:[%s3487_s28 + $0x48] sm:$0xff]   ;;  %v395_v46 = vrot.slane %v3524_v40, 1  ;;  %v3224_v50 = vld [vmem:[%s3487_s28 + $0x40] sm:$0xff]   ;;  %v1004_v51 = vrot.slane %v3515_v35, 2  ;;  %v1165_v53 = vrot.slane %v3531_v43, 2  ;;  %v3229_v58 = vld [vmem:[%s3487_s28 + $0xb8] sm:$0xff]  }
  0x35   : > { %v3223_v44 = vld [vmem:[%s3487_s28 + $0x8] sm:$0xff]   ;;  %v3225_v52 = vld [vmem:[%s3487_s28] sm:$0xff]   ;;  %v1166_v55 = vrot.slane %v3496_v21, 3  ;;  %v391_v57 = vor.u32 %v3531_v43, %v387_v25  ;;  %v403_v59 = vrot.slane %v3540_v48, 1  ;;  %v3230_v60 = vld [vmem:[%s3487_s28 + $0xf8] sm:$0xff]   ;;  %v1169_v62 = vrot.slane %v3535_v45, 2 }
  0x36   : > { %2873 = vmatpush3.bf16.msra.mxu0 %v3212_v20  ;;  %v388_v28 = vsel %vm376_vm0, %v383_v27, %v387_v25  ;;  %v3550_v54 = vld [vmem:[%s3473_s24 + $0x20] ss:$0 sps:$4 sm:$0x11]   ;;  %v3556_v56 = vsel %vm1000_vm1, %v1002_v47, %v1004_v51  ;;  %v399_v61 = vor.u32 %v3535_v45, %v395_v46  ;;  %v670_v63 = vrot.slane %v3490_v15, 1  ;;  %v3231_v5 = vld [vmem:[%s3487_s28 + $0xb0] sm:$0xff]   ;;  %s2703_s6 = sshll.u32 (%p3446_p6), %s3364_s15, 4 }
  0x37   : > { %2897 = vmatpush3.bf16.msra.mxu1 %v3213_v22  ;;  %2874 = vmatprep.subr.bf16.mxu0 %v3214_v24  ;;  %v833_v0 = vrot.slane %v3531_v43, 1  ;;  %v396_v1 = vsel %vm376_vm0, %v391_v57, %v395_v46  ;;  %v409_v2 = vshll.u32 %v3550_v54, 16  ;;  %v3568_v3 = vor.u32 %v1166_v55, %v1165_v53  ;;  %v647_v6 = vld [vmem:[%s3473_s24] sm:$0xe]  ;;  %v3232_v9 = vld [vmem:[%s3487_s28 + $0xf0] sm:$0xff]   ;;  %v3238_v53 = vld [vmem:[%s3487_s28 + $0xd8] sm:$0xff]   ;;  %s2244_s7 = sadd.s32 (%p3446_p6), %s3360_s14, %s2703_s6 }
  0x38   : > { %2898 = vmatprep.subr.bf16.mxu1 %v3215_v26  ;;  %2886 = vmatprep.mubr.bf16.mxu0 %v388_v28  ;;  %v1170_v4 = vrot.slane %v3524_v40, 3  ;;  %v1006_v7 = vrot.slane %v3527_v41, 2  ;;  %v404_v10 = vsel %vm376_vm0, %v399_v61, %v403_v59  ;;  %v2477_v12 = vcombine.low %v647_v6, %v3477_v11  ;;  %v3233_v22 = vld [vmem:[%s3487_s28 + $0xa8] sm:$0xff]   ;;  %v3236_v46 = vld [vmem:[%s3487_s28 + $0xe0] sm:$0xff]   ;;  %v3242_v61 = vld [vmem:[%s3487_s28 + $0xd0] sm:$0xff]   ;;  %s2704_s8 = sshll.u32 (%p3446_p6), %s2244_s7, 2 }
  0x39   : > { %v1173_v16 = vrot.slane %v3543_v49, 2  ;;  %v407_v17 = vor.u32 %v3543_v49, %v403_v59  ;;  %v834_v18 = vrot.slane %v3496_v21, 2  ;;  %v1174_v20 = vrot.slane %v3540_v48, 3  ;;  %v3234_v28 = vld [vmem:[%s3487_s28 + $0xe8] sm:$0xff]   ;;  %v3241_v59 = vld [vmem:[%s3487_s28 + $0x90] sm:$0xff]   ;;  %s2246_s11 = scalar_lea.vmem (%p3446_p6), %s3987_s3, %s2704_s8 }
  0x3a   : > { %2875 = vmatpush3.bf16.msra.mxu0 %v3214_v24  ;;  %v1171_v14 = vor.u32 %v1170_v4, %v1169_v62  ;;  %v3585_v19 = vsel %vm1000_vm1, %v1004_v51, %v1006_v7  ;;  %v411_v23 = vrot.slane %v409_v2, 1  ;;  %v826_v24 = vshrl.u32 %v2477_v12, 16  ;;  %v3237_v51 = vld [vmem:[%s3487_s28 + $0x98] sm:$0xff]   ;;  %v3243_v2 = vld [vmem:[%s3487_s28 + $0x88] sm:$0xff]  }
  0x3b   : > { %2899 = vmatpush3.bf16.msra.mxu1 %v3215_v26  ;;  %2876 = vmatprep.subr.bf16.mxu0 %v3216_v29  ;;  %v829_v25 = vshll.u32 %v2477_v12, 16  ;;  %v3594_v27 = vor.u32 %v1174_v20, %v1173_v16  ;;  %v1334_v55 = vrot.slane %v3490_v15, 3  ;;  %v1497_v57 = vrot.slane %v3531_v43, 3  ;;  %v3244_v6 = vld [vmem:[%s3487_s28 + $0xc8] sm:$0xff]   ;;  %v3245_v16 = vld [vmem:[%s3487_s28 + $0x80] sm:$0xff]  }
  0x3c   : > { %2900 = vmatprep.subr.bf16.mxu1 %v3217_v30  ;;  %v3592_v26 = vsel %vm1156_vm2, %v3568_v3, %v1171_v14  ;;  %v412_v37 = vsel %vm376_vm0, %v407_v17, %v411_v23  ;;  %v838_v17 = vrot.slane %v3524_v40, 2  ;;  %v672_v23 = vrot.slane %v3515_v35, 1 }
  0x3e   : > { %2877 = vmatpush3.bf16.msra.mxu0 %v3216_v29  ;;  %v669_v29 = vrot.slane %v2477_v12, 1  ;;  %v3643_v12 = vld [vmem:[%s3473_s24 + $0x20] ss:$0 sps:$4 sm:$0x33]  }
  0x3f   : > { %2901 = vmatpush3.bf16.msra.mxu1 %v3217_v30  ;;  %2878 = vmatprep.subr.bf16.mxu0 %v3218_v33  ;;  %v828_v30 = vrot.slane %v826_v24, 1  ;;  %v3248_v24 = vld [vmem:[%s3487_s28 + $0x138] sm:$0xff]  }
  0x40   : > { %2902 = vmatprep.subr.bf16.mxu1 %v3219_v34 }
  0x42   : > { %2879 = vmatpush3.bf16.msra.mxu0 %v3218_v33  ;;  %v831_v33 = vrot.slane %v829_v25, 2  ;;  %v842_v25 = vrot.slane %v3540_v48, 2 }
  0x43   : > { %2903 = vmatpush3.bf16.msra.mxu1 %v3219_v34  ;;  %2880 = vmatprep.subr.bf16.mxu0 %v3220_v38  ;;  %v3600_v34 = vsel %vm1156_vm2, %v1171_v14, %v3594_v27  ;;  %v1506_v14 = vrot.slane %v3540_v48, 4  ;;  %v673_v48 = vsel %vm668_vm3, %v670_v63, %v672_v23 }
  0x44   : > { %2904 = vmatprep.subr.bf16.mxu1 %v3221_v39 }
  0x46   : > { %2881 = vmatpush3.bf16.msra.mxu0 %v3220_v38  ;;  %v832_v38 = vor.u32 %v831_v33, %v828_v30  ;;  %v849_v30 = vshll.u32 %v3643_v12, 16  ;;  %v3249_v33 = vld [vmem:[%s3487_s28 + $0x178] sm:$0xff]  }
  0x47   : > { %2905 = vmatpush3.bf16.msra.mxu1 %v3221_v39  ;;  %2882 = vmatprep.subr.bf16.mxu0 %v3222_v42  ;;  %v3603_v39 = vor.u32 %v834_v18, %v833_v0  ;;  %v1501_v0 = vrot.slane %v3535_v45, 3  ;;  %v979_v18 = vld [vmem:[%s3473_s24] sm:$0xc] }
  0x48   : > { %2906 = vmatprep.subr.bf16.mxu1 %v3223_v44 }
  0x4a   : > { %2883 = vmatpush3.bf16.msra.mxu0 %v3222_v42  ;;  %v3235_v42 = vld [vmem:[%s3487_s28 + $0xa0] sm:$0xff]  }
  0x4b   : > { %2907 = vmatpush3.bf16.msra.mxu1 %v3223_v44  ;;  %2884 = vmatprep.subr.bf16.mxu0 %v3224_v50  ;;  %v2629_v44 = vcombine.low %v3509_v32, %v3518_v36 }
  0x4c   : > { %2908 = vmatprep.subr.bf16.mxu1 %v3225_v52 }
  0x4e   : > { %2885 = vmatpush3.bf16.msra.mxu0 %v3224_v50  ;;  %v671_v50 = vsel %vm668_vm3, %v669_v29, %v670_v63  ;;  %v846_v29 = vshrl.u32 %v3643_v12, 16 }
  0x4f   : > { %2909 = vmatpush3.bf16.msra.mxu1 %v3225_v52  ;;  %2918 = vmatprep.subr.bf16.mxu0 %v3229_v58  ;;  %v836_v52 = vsel %vm824_vm4, %v832_v38, %v3603_v39 }
  0x50   : > { %2942 = vmatprep.subr.bf16.mxu1 %v3230_v60 }
  0x51   : > { %2887 = vmatmul.mubr.bf16.vlgmr.msra.gmra.mxu0 %v396_v1  ;;  %v1338_v1 = vrot.slane %v3527_v41, 3 }
  0x52   : > { %2911 = vmatmul.mubr.bf16.vlgmr.msra.gmra.mxu1 %v3490_v15  ;;  %2919 = vmatpush3.bf16.msra.mxu0 %v3229_v58  ;;  %v1498_v58 = vrot.slane %v3496_v21, 4  ;;  %v1502_v21 = vrot.slane %v3524_v40, 4  ;;  %v3277_v15 = vld [vmem:[%s3487_s28 + $0x190] sm:$0xff]  }
  0x53   : > { %2943 = vmatpush3.bf16.msra.mxu1 %v3230_v60  ;;  %2920 = vmatprep.subr.bf16.mxu0 %v3231_v5  ;;  %v1336_v60 = vrot.slane %v3515_v35, 3 }
  0x54   : > { %2944 = vmatprep.subr.bf16.mxu1 %v3232_v9  ;;  %2890 = vmatprep.mubr.bf16.mxu0 %v404_v10  ;;  %v3623_v62 = vor.u32 %v1498_v58, %v1497_v57  ;;  %v1503_v4 = vor.u32 %v1502_v21, %v1501_v0  ;;  %v837_v10 = vrot.slane %v3535_v45, 1  ;;  %v841_v45 = vrot.slane %v3543_v49, 1 }
  0x55   : > { %2914 = vmatprep.mubr.bf16.mxu1 %v3515_v35  ;;  %v3629_v43 = vsel %vm1332_vm5, %v1334_v55, %v1336_v60  ;;  %v674_v35 = vrot.slane %v3527_v41, 1  ;;  %v676_v57 = vrot.slane %v3550_v54, 1 }
  0x56   : > { %2921 = vmatpush3.bf16.msra.mxu0 %v3231_v5  ;;  %v1505_v5 = vrot.slane %v3543_v49, 3  ;;  %v839_v40 = vor.u32 %v838_v17, %v837_v10  ;;  %v843_v49 = vor.u32 %v842_v25, %v841_v45  ;;  %v3675_v0 = vsel %vm1488_vm6, %v3623_v62, %v1503_v4  ;;  %v3255_v10 = vld [vmem:[%s3487_s28 + $0x120] sm:$0xff]   ;;  %v3257_v17 = vld [vmem:[%s3487_s28 + $0x118] sm:$0xff]  }
  0x57   : > { %2945 = vmatpush3.bf16.msra.mxu1 %v3232_v9  ;;  %2922 = vmatprep.subr.bf16.mxu0 %v3233_v22  ;;  %v3639_v9 = vsel %vm1332_vm5, %v1336_v60, %v1338_v1  ;;  %v3253_v60 = vld [vmem:[%s3487_s28 + $0x168] sm:$0xff]  }
  0x58   : > { %2946 = vmatprep.subr.bf16.mxu1 %v3234_v28  ;;  %v3649_v20 = vor.u32 %v1506_v14, %v1505_v5  ;;  %v844_v63 = vsel %vm824_vm4, %v839_v40, %v843_v49  ;;  %v3256_v14 = vld [vmem:[%s3487_s28 + $0x160] sm:$0xff]  }
  0x59   : > { %2891 = vmatmul.mubr.bf16.gmra.mxu0 %v412_v37  ;;  %v3250_v37 = vld [vmem:[%s3487_s28 + $0x130] sm:$0xff]   ;;  %v3697_v45 = vld [vmem:[%s3473_s24 + $0x20] ss:$0 sps:$4 sm:$0x77]   ;;  %v1311_v25 = vld [vmem:[%s3473_s24] sm:$0x8] }
  0x5a   : > { %2923 = vmatpush3.bf16.msra.mxu0 %v3233_v22  ;;  %2915 = vmatmul.mubr.bf16.gmra.mxu1 %v3527_v41  ;;  %v3246_v22 = vld [vmem:[%s3487_s28 + $0xc0] sm:$0xff]   ;;  %v3679_v54 = vsel %vm1488_vm6, %v1503_v4, %v3649_v20 }
  0x5b   : > { %2947 = vmatpush3.bf16.msra.mxu1 %v3234_v28  ;;  %2924 = vmatprep.subr.bf16.mxu0 %v3235_v42  ;;  %v2527_v28 = vcombine.low %v979_v18, %v3477_v11  ;;  %v3258_v18 = vld [vmem:[%s3487_s28 + $0x158] sm:$0xff]  }
  0x5c   : > { %2948 = vmatprep.subr.bf16.mxu1 %v3236_v46  ;;  %2934 = vmatprep.mubr.bf16.mxu0 %v671_v50  ;;  %v848_v50 = vrot.slane %v846_v29, 1  ;;  %v2577_v29 = vcombine.low %v1311_v25, %v3477_v11  ;;  %v3269_v11 = vld [vmem:[%s3487_s28 + $0x1f0] sm:$0xff]   ;;  %v1340_v25 = vrot.slane %v3697_v45, 3 }
  0x5d   : > { %2958 = vmatprep.mubr.bf16.mxu1 %v836_v52  ;;  %v1158_v38 = vshrl.u32 %v2527_v28, 16  ;;  %v3251_v52 = vld [vmem:[%s3487_s28 + $0x170] sm:$0xff]   ;;  %v1001_v21 = vrot.slane %v2527_v28, 2 }
  0x5e   : > { %2925 = vmatpush3.bf16.msra.mxu0 %v3235_v42  ;;  %v1161_v42 = vshll.u32 %v2527_v28, 16  ;;  %v3264_v28 = vld [vmem:[%s3487_s28 + $0x140] sm:$0xff]  }
  0x5f   : > { %2949 = vmatpush3.bf16.msra.mxu1 %v3236_v46  ;;  %2926 = vmatprep.subr.bf16.mxu0 %v3237_v51  ;;  %v840_v46 = vsel %vm824_vm4, %v3603_v39, %v839_v40  ;;  %v1160_v58 = vrot.slane %v1158_v38, 2  ;;  %v3252_v39 = vld [vmem:[%s3487_s28 + $0x128] sm:$0xff]   ;;  %v1003_v4 = vsel %vm1000_vm1, %v1001_v21, %v1002_v47  ;;  %v3259_v47 = vld [vmem:[%s3487_s28 + $0x110] sm:$0xff]   ;;  %v3266_v40 = vld [vmem:[%s3487_s28 + $0x1b8] sm:$0xff]  }
  0x60   : > { %2950 = vmatprep.subr.bf16.mxu1 %v3238_v53 }
  0x62   : > { %2927 = vmatpush3.bf16.msra.mxu0 %v3237_v51  ;;  %v851_v51 = vrot.slane %v849_v30, 2  ;;  %v1178_v30 = vshrl.u32 %v3697_v45, 16 }
  0x63   : > { %2951 = vmatpush3.bf16.msra.mxu1 %v3238_v53  ;;  %2928 = vmatprep.subr.bf16.mxu0 %v3241_v59  ;;  %v675_v53 = vsel %vm668_vm3, %v672_v23, %v674_v35  ;;  %v3262_v23 = vld [vmem:[%s3487_s28 + $0x148] sm:$0xff]  }
  0x64   : > { %2952 = vmatprep.subr.bf16.mxu1 %v3242_v61  ;;  %v1180_v38 = vrot.slane %v1178_v30, 2  ;;  %v3288_v30 = vld [vmem:[%s3487_s28 + $0x228] sm:$0xff]  }
  0x66   : > { %2929 = vmatpush3.bf16.msra.mxu0 %v3241_v59  ;;  %v1163_v59 = vrot.slane %v1161_v42, 3 }
  0x67   : > { %2953 = vmatpush3.bf16.msra.mxu1 %v3242_v61  ;;  %2930 = vmatprep.subr.bf16.mxu0 %v3243_v2  ;;  %v852_v61 = vor.u32 %v851_v51, %v848_v50 }
  0x68   : > { %2954 = vmatprep.subr.bf16.mxu1 %v3244_v6  ;;  %v1164_v5 = vor.u32 %v1163_v59, %v1160_v58  ;;  %v3273_v58 = vld [vmem:[%s3487_s28 + $0x1a0] sm:$0xff]   ;;  %v3275_v59 = vld [vmem:[%s3487_s28 + $0x198] sm:$0xff]  }
  0x6a   : > { %2931 = vmatpush3.bf16.msra.mxu0 %v3243_v2  ;;  %v677_v2 = vsel %vm668_vm3, %v674_v35, %v676_v57  ;;  %v3267_v35 = vld [vmem:[%s3487_s28 + $0x1f8] sm:$0xff]   ;;  %v3271_v57 = vld [vmem:[%s3487_s28 + $0x1e8] sm:$0xff]  }
  0x6b   : > { %2955 = vmatpush3.bf16.msra.mxu1 %v3244_v6  ;;  %2932 = vmatprep.subr.bf16.mxu0 %v3245_v16  ;;  %v853_v6 = vsel %vm824_vm4, %v843_v49, %v852_v61  ;;  %v1493_v49 = vshll.u32 %v2577_v29, 16  ;;  %v3281_v61 = vld [vmem:[%s3487_s28 + $0x180] sm:$0xff]  }
  0x6c   : > { %2956 = vmatprep.subr.bf16.mxu1 %v3246_v22 }
  0x6d   : > { %v1495_v51 = vrot.slane %v1493_v49, 4  ;;  %v3319_v49 = vld [vmem:[%s3473_s24 + $0x4] sm:$0xf] }
  0x6e   : > { %2933 = vmatpush3.bf16.msra.mxu0 %v3245_v16  ;;  %v1168_v16 = vsel %vm1156_vm2, %v1164_v5, %v3568_v3  ;;  %v3261_v3 = vld [vmem:[%s3487_s28 + $0x108] sm:$0xff]  }
  0x6f   : > { %2957 = vmatpush3.bf16.msra.mxu1 %v3246_v22  ;;  %2966 = vmatprep.subr.bf16.mxu0 %v3248_v24  ;;  %v3260_v22 = vld [vmem:[%s3487_s28 + $0x150] sm:$0xff]  }
  0x70   : > { %2990 = vmatprep.subr.bf16.mxu1 %v3249_v33  ;;  %v3742_v5 = vld [vmem:[%s3473_s24 + $0x8] sm:$0xf] }
  0x71   : > { %2935 = vmatmul.mubr.bf16.vlgmr.msra.gmra.mxu0 %v673_v48  ;;  %v1490_v48 = vshrl.u32 %v2577_v29, 16 }
  0x72   : > { %2959 = vmatmul.mubr.bf16.vlgmr.msra.gmra.mxu1 %v840_v46  ;;  %2967 = vmatpush3.bf16.msra.mxu0 %v3248_v24  ;;  %v3263_v24 = vld [vmem:[%s3487_s28 + $0x100] sm:$0xff]   ;;  %v1008_v46 = vrot.slane %v3643_v12, 2 }
  0x73   : > { %2991 = vmatpush3.bf16.msra.mxu1 %v3249_v33  ;;  %2968 = vmatprep.subr.bf16.mxu0 %v3250_v37  ;;  %v1181_v33 = vshll.u32 %v3697_v45, 16  ;;  %v1492_v50 = vrot.slane %v1490_v48, 3  ;;  %v3291_v48 = vld [vmem:[%s3487_s28 + $0x220] sm:$0xff]  }
  0x74   : > { %2992 = vmatprep.subr.bf16.mxu1 %v3251_v52  ;;  %2938 = vmatprep.mubr.bf16.mxu0 %v675_v53 }
  0x75   : > { %2962 = vmatprep.mubr.bf16.mxu1 %v844_v63  ;;  %v1183_v42 = vrot.slane %v1181_v33, 3  ;;  %v1496_v12 = vor.u32 %v1495_v51, %v1492_v50  ;;  %v3777_v50 = vld [vmem:[%s3473_s24 + $0x14] sm:$0xff]   ;;  %v3298_v51 = vld [vmem:[%s3487_s28 + $0x248] sm:$0xff]  }
  0x76   : > { %2969 = vmatpush3.bf16.msra.mxu0 %v3250_v37  ;;  %v3268_v37 = vld [vmem:[%s3487_s28 + $0x1b0] sm:$0xff]  }
  0x77   : > { %2993 = vmatpush3.bf16.msra.mxu1 %v3251_v52  ;;  %2970 = vmatprep.subr.bf16.mxu0 %v3252_v39  ;;  %v3270_v52 = vld [vmem:[%s3487_s28 + $0x1a8] sm:$0xff]   ;;  %v1184_v53 = vor.u32 %v1183_v42, %v1180_v38  ;;  %v3295_v42 = vld [vmem:[%s3487_s28 + $0x210] sm:$0xff]  }
  0x78   : > { %2994 = vmatprep.subr.bf16.mxu1 %v3253_v60  ;;  %v3320_v38 = vld [vmem:[%s3473_s24 + $0x8] sm:$0xf] }
  0x79   : > { %2939 = vmatmul.mubr.bf16.gmra.mxu0 %v677_v2  ;;  %v1185_v63 = vsel %vm1156_vm2, %v3594_v27, %v1184_v53  ;;  %v3276_v27 = vld [vmem:[%s3487_s28 + $0x1d8] sm:$0xff]   ;;  %v1789_v2 = vld [vmem:[%s3473_s24 + $0x4] sm:$0xf] }
  0x7a   : > { %2971 = vmatpush3.bf16.msra.mxu0 %v3252_v39  ;;  %2963 = vmatmul.mubr.bf16.gmra.mxu1 %v853_v6  ;;  %v3280_v39 = vld [vmem:[%s3487_s28 + $0x1c8] sm:$0xff]   ;;  %v3282_v6 = vld [vmem:[%s3487_s28 + $0x1c0] sm:$0xff]  }
  0x7b   : > { %2995 = vmatpush3.bf16.msra.mxu1 %v3253_v60  ;;  %2972 = vmatprep.subr.bf16.mxu0 %v3255_v10  ;;  %v3735_v60 = vld [vmem:[%s3473_s24 + $0x20] sm:$0xf] }
  0x7c   : > { %2996 = vmatprep.subr.bf16.mxu1 %v3256_v14  ;;  %2982 = vmatprep.mubr.bf16.mxu0 %v1003_v4  ;;  %v2602_v21 = vcombine.low %v3735_v60, %v3735_v60  ;;  %v3299_v53 = vld [vmem:[%s3487_s28 + $0x200] sm:$0xff]  }
  0x7d   : > { %3006 = vmatprep.mubr.bf16.mxu1 %v1168_v16 }
  0x7e   : > { %2973 = vmatpush3.bf16.msra.mxu0 %v3255_v10  ;;  %v2655_v10 = vcombine.low %v1789_v2, %v3742_v5  ;;  %v1510_v4 = vshrl.u32 %v2602_v21, 16  ;;  %v1513_v16 = vshll.u32 %v2602_v21, 16 }
  0x7f   : > { %2997 = vmatpush3.bf16.msra.mxu1 %v3256_v14  ;;  %2974 = vmatprep.subr.bf16.mxu0 %v3257_v17  ;;  %v3284_v14 = vld [vmem:[%s3487_s28 + $0x238] sm:$0xff]  }
  0x80   : > { %2998 = vmatprep.subr.bf16.mxu1 %v3258_v18 }
  0x82   : > { %2975 = vmatpush3.bf16.msra.mxu0 %v3257_v17  ;;  %v3285_v17 = vld [vmem:[%s3487_s28 + $0x278] sm:$0xff]  }
  0x83   : > { %2999 = vmatpush3.bf16.msra.mxu1 %v3258_v18  ;;  %2976 = vmatprep.subr.bf16.mxu0 %v3259_v47  ;;  %v3749_v18 = vld [vmem:[%s3473_s24 + $0xc] sm:$0xff]  }
  0x84   : > { %3000 = vmatprep.subr.bf16.mxu1 %v3260_v22 }
  0x86   : > { %2977 = vmatpush3.bf16.msra.mxu0 %v3259_v47  ;;  %v1841_v47 = vshll.u32 %v2655_v10, 16 }
  0x87   : > { %3001 = vmatpush3.bf16.msra.mxu1 %v3260_v22  ;;  %2978 = vmatprep.subr.bf16.mxu0 %v3261_v3  ;;  %v3286_v22 = vld [vmem:[%s3487_s28 + $0x230] sm:$0xff]  }
  0x88   : > { %3002 = vmatprep.subr.bf16.mxu1 %v3262_v23 }
  0x8a   : > { %2979 = vmatpush3.bf16.msra.mxu0 %v3261_v3  ;;  %v1512_v3 = vrot.slane %v1510_v4, 3  ;;  %v3321_v4 = vld [vmem:[%s3473_s24 + $0x1c] sm:$0xf] }
  0x8b   : > { %3003 = vmatpush3.bf16.msra.mxu1 %v3262_v23  ;;  %2980 = vmatprep.subr.bf16.mxu0 %v3263_v24  ;;  %v1515_v23 = vrot.slane %v1513_v16, 4  ;;  %v2630_v13 = vcombine.low %v3321_v4, %v3735_v60  ;;  %v3315_v60 = vld [vmem:[%s3487_s28 + $0x290] sm:$0xff]  }
  0x8c   : > { %3004 = vmatprep.subr.bf16.mxu1 %v3264_v28 }
  0x8d   : > { %v1516_v33 = vor.u32 %v1515_v23, %v1512_v3 }
  0x8e   : > { %2981 = vmatpush3.bf16.msra.mxu0 %v3263_v24  ;;  %v3287_v24 = vld [vmem:[%s3487_s28 + $0x270] sm:$0xff]  }
  0x8f   : > { %3005 = vmatpush3.bf16.msra.mxu1 %v3264_v28  ;;  %3014 = vmatprep.subr.bf16.mxu0 %v3266_v40  ;;  %v1839_v28 = vshrl.u32 %v2655_v10, 16 }
  0x90   : > { %3038 = vmatprep.subr.bf16.mxu1 %v3267_v35 }
  0x91   : > { %2983 = vmatmul.mubr.bf16.vlgmr.msra.gmra.mxu0 %v3556_v56  ;;  %v1333_v56 = vrot.slane %v2577_v29, 3  ;;  %v1846_v29 = vshll.u32 %v3749_v18, 16 }
  0x92   : > { %3007 = vmatmul.mubr.bf16.vlgmr.msra.gmra.mxu1 %v3592_v26  ;;  %3015 = vmatpush3.bf16.msra.mxu0 %v3266_v40  ;;  %v1009_v26 = vsel %vm1000_vm1, %v1006_v7, %v1008_v46  ;;  %v1500_v7 = vsel %vm1488_vm6, %v1496_v12, %v3623_v62  ;;  %v3279_v62 = vld [vmem:[%s3487_s28 + $0x188] sm:$0xff]   ;;  %v1843_v40 = vrot.slane %v1841_v47, 1  ;;  %v1858_v12 = vshrl.u32 %v3777_v50, 16  ;;  %v3313_v47 = vld [vmem:[%s3487_s28 + $0x2a0] sm:$0xff]  }
  0x93   : > { %3039 = vmatpush3.bf16.msra.mxu1 %v3267_v35  ;;  %3016 = vmatprep.subr.bf16.mxu0 %v3268_v37  ;;  %v1848_v35 = vrot.slane %v1846_v29, 1  ;;  %v3297_v46 = vld [vmem:[%s3487_s28 + $0x208] sm:$0xff]  }
  0x94   : > { %3040 = vmatprep.subr.bf16.mxu1 %v3269_v11  ;;  %2986 = vmatprep.mubr.bf16.mxu0 %v3585_v19  ;;  %v3274_v19 = vld [vmem:[%s3487_s28 + $0x1e0] sm:$0xff]   ;;  %v1844_v45 = vor.u32 %v1843_v40, %v1839_v28 }
  0x95   : > { %3010 = vmatprep.mubr.bf16.mxu1 %v3600_v34  ;;  %v1335_v34 = vsel %vm1332_vm5, %v1333_v56, %v1334_v55  ;;  %v3278_v55 = vld [vmem:[%s3487_s28 + $0x1d0] sm:$0xff]   ;;  %v1854_v56 = vshll.u32 %v3777_v50, 16 }
  0x96   : > { %3017 = vmatpush3.bf16.msra.mxu0 %v3268_v37  ;;  %v1517_v37 = vsel %vm1488_vm6, %v3649_v20, %v1516_v33  ;;  %v1849_v41 = vsel %vm376_vm0, %v1844_v45, %v1848_v35  ;;  %v3294_v20 = vld [vmem:[%s3487_s28 + $0x258] sm:$0xff]  }
  0x97   : > { %3041 = vmatpush3.bf16.msra.mxu1 %v3269_v11  ;;  %3018 = vmatprep.subr.bf16.mxu0 %v3270_v52  ;;  %v3296_v11 = vld [vmem:[%s3487_s28 + $0x250] sm:$0xff]  }
  0x98   : > { %3042 = vmatprep.subr.bf16.mxu1 %v3271_v57 }
  0x99   : > { %2987 = vmatmul.mubr.bf16.gmra.mxu0 %v1009_v26  ;;  %v3300_v26 = vld [vmem:[%s3487_s28 + $0x240] sm:$0xff]  }
  0x9a   : > { %3019 = vmatpush3.bf16.msra.mxu0 %v3270_v52  ;;  %3011 = vmatmul.mubr.bf16.gmra.mxu1 %v1185_v63  ;;  %v3781_v52 = vld [vmem:[%s3473_s24 + $0x1c] sm:$0xff]  }
  0x9b   : > { %3043 = vmatpush3.bf16.msra.mxu1 %v3271_v57  ;;  %3020 = vmatprep.subr.bf16.mxu0 %v3273_v58  ;;  %v1850_v57 = vshrl.u32 %v3749_v18, 16  ;;  %v1862_v63 = vshll.u32 %v3781_v52, 16  ;;  %v2025_v16 = vrot.slane %v3781_v52, 1 }
  0x9c   : > { %3044 = vmatprep.subr.bf16.mxu1 %v3274_v19  ;;  %3030 = vmatprep.mubr.bf16.mxu0 %v1335_v34  ;;  %v3306_v34 = vld [vmem:[%s3487_s28 + $0x2b8] sm:$0xff]  }
  0x9d   : > { %3054 = vmatprep.mubr.bf16.mxu1 %v1500_v7  ;;  %v3791_v7 = vld [vmem:[%s3473_s24 + $0x24] ss:$0 sps:$4 sm:$0x11]  }
  0x9e   : > { %3021 = vmatpush3.bf16.msra.mxu0 %v3273_v58  ;;  %v1852_v58 = vor.u32 %v1850_v57, %v1848_v35  ;;  %v2027_v3 = vrot.slane %v3791_v7, 1 }
  0x9f   : > { %3045 = vmatpush3.bf16.msra.mxu1 %v3274_v19  ;;  %3022 = vmatprep.subr.bf16.mxu0 %v3275_v59  ;;  %v1856_v19 = vrot.slane %v1854_v56, 1 }
  0xa0   : > { %3046 = vmatprep.subr.bf16.mxu1 %v3276_v27 }
  0xa2   : > { %3023 = vmatpush3.bf16.msra.mxu0 %v3275_v59  ;;  %v1860_v59 = vor.u32 %v1858_v12, %v1856_v19 }
  0xa3   : > { %3047 = vmatpush3.bf16.msra.mxu1 %v3276_v27  ;;  %3024 = vmatprep.subr.bf16.mxu0 %v3277_v15  ;;  %v1864_v27 = vrot.slane %v1862_v63, 1 }
  0xa4   : > { %3048 = vmatprep.subr.bf16.mxu1 %v3278_v55 }
  0xa5   : > { %v1865_v2 = vsel %vm376_vm0, %v1860_v59, %v1864_v27 }
  0xa6   : > { %3025 = vmatpush3.bf16.msra.mxu0 %v3277_v15  ;;  %v1999_v15 = vld [vmem:[%s3473_s24 + $0x4] sm:$0xe] }
  0xa7   : > { %3049 = vmatpush3.bf16.msra.mxu1 %v3278_v55  ;;  %3026 = vmatprep.subr.bf16.mxu0 %v3279_v62  ;;  %v1857_v55 = vsel %vm376_vm0, %v1852_v58, %v1856_v19  ;;  %v2684_v21 = vcombine.low %v1999_v15, %v3742_v5  ;;  %v2023_v5 = vrot.slane %v3777_v50, 1 }
  0xa8   : > { %3050 = vmatprep.subr.bf16.mxu1 %v3280_v39 }
  0xa9   : > { %v2020_v31 = vrot.slane %v2684_v21, 1  ;;  %v2026_v36 = vsel %vm668_vm3, %v2023_v5, %v2025_v16 }
  0xaa   : > { %3027 = vmatpush3.bf16.msra.mxu0 %v3279_v62  ;;  %v3307_v62 = vld [vmem:[%s3487_s28 + $0x2b0] sm:$0xff]  }
  0xab   : > { %3051 = vmatpush3.bf16.msra.mxu1 %v3280_v39  ;;  %3028 = vmatprep.subr.bf16.mxu0 %v3281_v61  ;;  %v1866_v39 = vshrl.u32 %v3781_v52, 16 }
  0xac   : > { %3052 = vmatprep.subr.bf16.mxu1 %v3282_v6 }
  0xad   : > { %v1868_v10 = vor.u32 %v1866_v39, %v1864_v27 }
  0xae   : > { %3029 = vmatpush3.bf16.msra.mxu0 %v3281_v61  ;;  %v1870_v61 = vshll.u32 %v3791_v7, 16 }
  0xaf   : > { %3053 = vmatpush3.bf16.msra.mxu1 %v3282_v6  ;;  %3062 = vmatprep.subr.bf16.mxu0 %v3284_v14  ;;  %v3310_v6 = vld [vmem:[%s3487_s28 + $0x2a8] sm:$0xff]  }
  0xb0   : > { %3086 = vmatprep.subr.bf16.mxu1 %v3285_v17 }
  0xb1   : > { %3031 = vmatmul.mubr.bf16.vlgmr.msra.gmra.mxu0 %v3629_v43  ;;  %v3289_v43 = vld [vmem:[%s3487_s28 + $0x268] sm:$0xff]  }
  0xb2   : > { %3055 = vmatmul.mubr.bf16.vlgmr.msra.gmra.mxu1 %v3675_v0  ;;  %3063 = vmatpush3.bf16.msra.mxu0 %v3284_v14  ;;  %v1341_v0 = vsel %vm1332_vm5, %v1338_v1, %v1340_v25  ;;  %v3293_v1 = vld [vmem:[%s3487_s28 + $0x218] sm:$0xff]   ;;  %v1872_v14 = vrot.slane %v1870_v61, 1 }
  0xb3   : > { %3087 = vmatpush3.bf16.msra.mxu1 %v3285_v17  ;;  %3064 = vmatprep.subr.bf16.mxu0 %v3286_v22 }
  0xb4   : > { %3088 = vmatprep.subr.bf16.mxu1 %v3287_v24  ;;  %3034 = vmatprep.mubr.bf16.mxu0 %v3639_v9  ;;  %v3292_v9 = vld [vmem:[%s3487_s28 + $0x260] sm:$0xff]   ;;  %v1873_v17 = vsel %vm376_vm0, %v1868_v10, %v1872_v14 }
  0xb5   : > { %3058 = vmatprep.mubr.bf16.mxu1 %v3679_v54  ;;  %v2627_v54 = vcombine.low %v3319_v49, %v3320_v38 }
  0xb6   : > { %3065 = vmatpush3.bf16.msra.mxu0 %v3286_v22  ;;  %v3317_v22 = vld [vmem:[%s3487_s28 + $0x280] sm:$0xff]  }
  0xb7   : > { %3089 = vmatpush3.bf16.msra.mxu1 %v3287_v24  ;;  %3066 = vmatprep.subr.bf16.mxu0 %v3288_v30  ;;  %v2028_v24 = vsel %vm668_vm3, %v2025_v16, %v2027_v3 }
  0xb8   : > { %3090 = vmatprep.subr.bf16.mxu1 %v3289_v43 }
  0xb9   : > { %3035 = vmatmul.mubr.bf16.gmra.mxu0 %v1341_v0 }
  0xba   : > { %3067 = vmatpush3.bf16.msra.mxu0 %v3288_v30  ;;  %3059 = vmatmul.mubr.bf16.gmra.mxu1 %v1517_v37 }
  0xbb   : > { %3091 = vmatpush3.bf16.msra.mxu1 %v3289_v43  ;;  %3068 = vmatprep.subr.bf16.mxu0 %v3291_v48 }
  0xbc   : > { %3092 = vmatprep.subr.bf16.mxu1 %v3292_v9  ;;  %3078 = vmatprep.mubr.bf16.mxu0 %v2627_v54 }
  0xbd   : > { %3102 = vmatprep.mubr.bf16.mxu1 %v1849_v41 }
  0xbe   : > { %3069 = vmatpush3.bf16.msra.mxu0 %v3291_v48 }
  0xbf   : > { %3093 = vmatpush3.bf16.msra.mxu1 %v3292_v9  ;;  %3070 = vmatprep.subr.bf16.mxu0 %v3293_v1 }
  0xc0   : > { %3094 = vmatprep.subr.bf16.mxu1 %v3294_v20 }
  0xc2   : > { %3071 = vmatpush3.bf16.msra.mxu0 %v3293_v1 }
  0xc3   : > { %3095 = vmatpush3.bf16.msra.mxu1 %v3294_v20  ;;  %3072 = vmatprep.subr.bf16.mxu0 %v3295_v42 }
  0xc4   : > { %3096 = vmatprep.subr.bf16.mxu1 %v3296_v11 }
  0xc6   : > { %3073 = vmatpush3.bf16.msra.mxu0 %v3295_v42 }
  0xc7   : > { %3097 = vmatpush3.bf16.msra.mxu1 %v3296_v11  ;;  %3074 = vmatprep.subr.bf16.mxu0 %v3297_v46 }
  0xc8   : > { %3098 = vmatprep.subr.bf16.mxu1 %v3298_v51 }
  0xca   : > { %3075 = vmatpush3.bf16.msra.mxu0 %v3297_v46 }
  0xcb   : > { %3099 = vmatpush3.bf16.msra.mxu1 %v3298_v51  ;;  %3076 = vmatprep.subr.bf16.mxu0 %v3299_v53 }
  0xcc   : > { %3100 = vmatprep.subr.bf16.mxu1 %v3300_v26 }
  0xce   : > { %3077 = vmatpush3.bf16.msra.mxu0 %v3299_v53 }
  0xcf   : > { %3101 = vmatpush3.bf16.msra.mxu1 %v3300_v26  ;;  %3110 = vmatprep.subr.bf16.mxu0 %v3306_v34 }
  0xd0   : > { %3134 = vmatprep.subr.bf16.mxu1 %v3306_v34 }
  0xd1   : > { %3079 = vmatmul.mubr.bf16.vlgmr.msra.gmra.mxu0 %v2628_v8  ;;  %v2021_v8 = vrot.slane %v3749_v18, 1  ;;  %v3316_v18 = vld [vmem:[%s3487_s28 + $0x288] sm:$0xff]  }
  0xd2   : > { %3103 = vmatmul.mubr.bf16.vlgmr.msra.gmra.mxu1 %v1857_v55  ;;  %3111 = vmatpush3.bf16.msra.mxu0 %v3306_v34 }
  0xd3   : > { %3142 = vmatpush3.bf16.msra.mxu1 %v3306_v34  ;;  %3112 = vmatprep.subr.bf16.mxu0 %v3307_v62  ;;  %v2022_v32 = vsel %vm668_vm3, %v2020_v31, %v2021_v8  ;;  %v2024_v23 = vsel %vm668_vm3, %v2021_v8, %v2023_v5 }
  0xd4   : > { %3135 = vmatprep.subr.bf16.mxu1 %v3307_v62  ;;  %3082 = vmatprep.mubr.bf16.mxu0 %v2629_v44  ;;  %v3314_v44 = vld [vmem:[%s3487_s28 + $0x298] sm:$0xff]  }
  0xd5   : > { %3106 = vmatprep.mubr.bf16.mxu1 %v1865_v2 }
  0xd6   : > { %3113 = vmatpush3.bf16.msra.mxu0 %v3307_v62 }
  0xd7   : > { %3143 = vmatpush3.bf16.msra.mxu1 %v3307_v62  ;;  %3114 = vmatprep.subr.bf16.mxu0 %v3310_v6 }
  0xd8   : > { %3136 = vmatprep.subr.bf16.mxu1 %v3310_v6 }
  0xd9   : > { %3083 = vmatmul.mubr.bf16.gmra.mxu0 %v2630_v13 }
  0xda   : > { %3115 = vmatpush3.bf16.msra.mxu0 %v3310_v6  ;;  %3107 = vmatmul.mubr.bf16.gmra.mxu1 %v1873_v17 }
  0xdb   : > { %3144 = vmatpush3.bf16.msra.mxu1 %v3310_v6  ;;  %3116 = vmatprep.subr.bf16.mxu0 %v3313_v47 }
  0xdc   : > { %3137 = vmatprep.subr.bf16.mxu1 %v3313_v47  ;;  %3126 = vmatprep.mubr.bf16.mxu0 %v2022_v32 }
  0xdd   : > { %3130 = vmatprep.mubr.bf16.mxu1 %v2026_v36 }
  0xde   : > { %3117 = vmatpush3.bf16.msra.mxu0 %v3313_v47 }
  0xdf   : > { %3145 = vmatpush3.bf16.msra.mxu1 %v3313_v47  ;;  %3118 = vmatprep.subr.bf16.mxu0 %v3314_v44 }
  0xe0   : > { %3138 = vmatprep.subr.bf16.mxu1 %v3314_v44 }
  0xe2   : > { %3119 = vmatpush3.bf16.msra.mxu0 %v3314_v44 }
  0xe3   : > { %3146 = vmatpush3.bf16.msra.mxu1 %v3314_v44  ;;  %3120 = vmatprep.subr.bf16.mxu0 %v3315_v60 }
  0xe4   : > { %3139 = vmatprep.subr.bf16.mxu1 %v3315_v60 }
  0xe6   : > { %3121 = vmatpush3.bf16.msra.mxu0 %v3315_v60 }
  0xe7   : > { %3147 = vmatpush3.bf16.msra.mxu1 %v3315_v60  ;;  %3122 = vmatprep.subr.bf16.mxu0 %v3316_v18 }
  0xe8   : > { %3140 = vmatprep.subr.bf16.mxu1 %v3316_v18 }
  0xea   : > { %3123 = vmatpush3.bf16.msra.mxu0 %v3316_v18 }
  0xeb   : > { %3148 = vmatpush3.bf16.msra.mxu1 %v3316_v18  ;;  %3124 = vmatprep.subr.bf16.mxu0 %v3317_v22 }
  0xec   : > { %3141 = vmatprep.subr.bf16.mxu1 %v3317_v22 }
  0xee   : > { %3125 = vmatpush3.bf16.msra.mxu0 %v3317_v22 }
  0xef   : > { %3149 = vmatpush3.bf16.msra.mxu1 %v3317_v22 }
  0xf1   : > { %3127 = vmatmul.mubr.bf16.vlgmr.msra.gmra.mxu0 %v2024_v23 }
  0xf2   : > { %3131 = vmatmul.mubr.bf16.vlgmr.msra.gmra.mxu1 %v2028_v24 }
 0x111   : > { %v2888_v25 = vpop.f32.mrf.mxu0 }
 0x112   : > { %v2912_v28 = vpop.f32.mrf.mxu1 }
 0x113   : > { %v3823_v40 = vadd.f32 %v2912_v28, %v2888_v25  ;;  %v499_v29 = vpop.f32.mrf.mxu0 }
 0x114   : > { %v616_v30 = vpop.f32.mrf.mxu1 }
 0x115   : > { %v3825_v33 = vadd.f32 %v616_v30, %v499_v29  ;;  %v3827_v43 = vpop.f32.mrf.mxu0 }
 0x116   : > { %v3831_v35 = vpop.f32.mrf.mxu1 }
 0x117   : > { %v3829_v0 = vpop.f32.mrf.mxu0 }
 0x118   : > { %v3833_v48 = vpop.f32.mrf.mxu1 }
 0x119   : > { %v2892_v45 = vpop.f32.mrf.mxu0 }
 0x11a   : > { %v2916_v49 = vpop.f32.mrf.mxu1 }
 0x11b   : > { %v515_v37 = vpop.f32.mrf.mxu0 }
 0x11c   : > { %v632_v54 = vpop.f32.mrf.mxu1 }
 0x11d   : > { %v3835_v9 = vpop.f32.mrf.mxu0 }
 0x11e   : > { %v2917_v1 = vpop.f32.mrf.mxu1 }
 0x11f   : > { %v3837_v38 = vpop.f32.mrf.mxu0 }
 0x120   : > { %v3839_v42 = vpop.f32.mrf.mxu1 }
 0x131   : > { %v2936_v41 = vpop.f32.mrf.mxu0 }
 0x132   : > { %v2960_v46 = vpop.f32.mrf.mxu1 }
 0x133   : > { %v764_v20 = vpop.f32.mrf.mxu0 }
 0x134   : > { %v3843_v51 = vpop.f32.mrf.mxu1 }
 0x135   : > { %v2937_v11 = vpop.f32.mrf.mxu0 }
 0x136   : > { %v3845_v53 = vpop.f32.mrf.mxu1 }
 0x137   : > { %v3841_v50 = vpop.f32.mrf.mxu0 }
 0x138   : > { %v3847_v56 = vpop.f32.mrf.mxu1 }
 0x139   : > { %v2940_v52 = vpop.f32.mrf.mxu0 }
 0x13a   : > { %v2964_v26 = vpop.f32.mrf.mxu1 }
 0x13b   : > { %v780_v57 = vpop.f32.mrf.mxu0 }
 0x13c   : > { %v956_v63 = vpop.f32.mrf.mxu1 }
 0x13d   : > { %v2941_v12 = vpop.f32.mrf.mxu0 }
 0x13e   : > { %v3851_v34 = vpop.f32.mrf.mxu1 }
 0x13f   : > { %v3849_v58 = vpop.f32.mrf.mxu0 }
 0x140   : > { %v3853_v59 = vpop.f32.mrf.mxu1 }
 0x151   : > { %v2984_v19 = vpop.f32.mrf.mxu0 }
 0x152   : > { %v3855_v27 = vpop.f32.mrf.mxu1 }
 0x153   : > { %v1096_v7 = vpop.f32.mrf.mxu0 }
 0x154   : > { %v3859_v55 = vpop.f32.mrf.mxu1 }
 0x155   : > { %v3857_v15 = vpop.f32.mrf.mxu0 }
 0x156   : > { %v3863_v39 = vpop.f32.mrf.mxu1 }
 0x157   : > { %v3861_v62 = vpop.f32.mrf.mxu0 }
 0x158   : > { %v3865_v21 = vpop.f32.mrf.mxu1 }
 0x159   : > { %v2988_v61 = vpop.f32.mrf.mxu0  ;;  %3989 = vst [vmem:[#allocation4_spill] sm:$0xff] %v3865_v21 }
 0x15a   : > { %v3012_v6 = vpop.f32.mrf.mxu1 }
 0x15b   : > { %v1112_v2 = vpop.f32.mrf.mxu0 }
 0x15c   : > { %v1288_v14 = vpop.f32.mrf.mxu1 }
 0x15d   : > { %v2989_v10 = vpop.f32.mrf.mxu0 }
 0x15e   : > { %v3869_v13 = vpop.f32.mrf.mxu1 }
 0x15f   : > { %v3867_v4 = vpop.f32.mrf.mxu0 }
 0x160   : > { %v3871_v8 = vpop.f32.mrf.mxu1 }
 0x161   : > { %3990 = vst [vmem:[#allocation5_spill] sm:$0xff] %v3871_v8  ;;  %v797_v8 = vadd.f32 %v2936_v41, %v3823_v40 }
 0x171   : > { %v3032_v31 = vpop.f32.mrf.mxu0 }
 0x172   : > { %v3873_v16 = vpop.f32.mrf.mxu1 }
 0x173   : > { %v1428_v5 = vpop.f32.mrf.mxu0  ;;  %3991 = vst [vmem:[#allocation6_spill] sm:$0xff] %v3873_v16 }
 0x174   : > { %v3877_v47 = vpop.f32.mrf.mxu1 }
 0x175   : > { %v3875_v17 = vpop.f32.mrf.mxu0  ;;  %3993 = vst [vmem:[#allocation8_spill] sm:$0xff] %v3877_v47  ;;  %v633_v47 = vadd.f32 %v632_v54, %v515_v37  ;;  %v620_v37 = vadd.f32 %v3833_v48, %v3829_v0 }
 0x176   : > { %3992 = vst [vmem:[#allocation7_spill] sm:$0xff] %v3875_v17  ;;  %v3881_v36 = vpop.f32.mrf.mxu1 }
 0x177   : > { %v3879_v32 = vpop.f32.mrf.mxu0  ;;  %3995 = vst [vmem:[#allocation10_spill] sm:$0xff] %v3881_v36  ;;  %v641_v36 = vadd.f32 %v2916_v49, %v2892_v45  ;;  %v799_v17 = vadd.f32 %v780_v57, %v633_v47 }
 0x178   : > { %3994 = vst [vmem:[#allocation9_spill] sm:$0xff] %v3879_v32  ;;  %v3883_v60 = vpop.f32.mrf.mxu1 }
 0x179   : > { %v3036_v44 = vpop.f32.mrf.mxu0  ;;  %3996 = vst [vmem:[#allocation11_spill] sm:$0xff] %v3883_v60  ;;  %v801_v21 = vadd.f32 %v2940_v52, %v641_v36  ;;  %v4007_v36 = vld [vmem:[#allocation5_spill] sm:$0xff] }
 0x17a   : > { %v3060_v18 = vpop.f32.mrf.mxu1 }
 0x17b   : > { %v1444_v22 = vpop.f32.mrf.mxu0  ;;  %v977_v45 = vadd.f32 %v2964_v26, %v801_v21 }
 0x17c   : > { %v3885_v3 = vpop.f32.mrf.mxu1 }
 0x17d   : > { %3997 = vst [vmem:[#allocation12_spill] sm:$0xff] %v3885_v3  ;;  %v3037_v23 = vpop.f32.mrf.mxu0 }
 0x17e   : > { %v3887_v24 = vpop.f32.mrf.mxu1 }
 0x17f   : > { %3998 = vst [vmem:[#allocation13_spill] sm:$0xff] %v3887_v24  ;;  %v3889_v25 = vpop.f32.mrf.mxu0  ;;  %v628_v24 = vadd.f32 %v3831_v35, %v3827_v43  ;;  %v975_v43 = vadd.f32 %v956_v63, %v799_v17  ;;  %v1133_v35 = vadd.f32 %v2988_v61, %v977_v45 }
 0x180   : > { %3999 = vst [vmem:[#allocation14_spill] sm:$0xff] %v3889_v25  ;;  %v3891_v29 = vpop.f32.mrf.mxu1  ;;  %v795_v25 = vadd.f32 %v764_v20, %v3825_v33  ;;  %v636_v33 = vadd.f32 %v3839_v42, %v3837_v38 }
 0x181   : > { %4000 = vst [vmem:[#allocation15_spill] sm:$0xff] %v3891_v29  ;;  %v644_v29 = vadd.f32 %v2917_v1, %v3835_v9  ;;  %v798_v16 = vadd.f32 %v2937_v11, %v628_v24  ;;  %v796_v1 = vadd.f32 %v3841_v50, %v620_v37  ;;  %v1131_v0 = vadd.f32 %v1112_v2, %v975_v43 }
 0x182   : > { %v971_v54 = vadd.f32 %v3843_v51, %v795_v25  ;;  %v1309_v42 = vadd.f32 %v3012_v6, %v1133_v35 }
 0x183   : > { %v802_v40 = vadd.f32 %v2941_v12, %v644_v29  ;;  %v974_v9 = vadd.f32 %v3845_v53, %v798_v16  ;;  %v972_v53 = vadd.f32 %v3847_v56, %v796_v1  ;;  %v4003_v56 = vld [vmem:[#allocation6_spill] sm:$0xff]  ;;  %v4005_v16 = vld [vmem:[#allocation4_spill] sm:$0xff]  ;;  %v4010_v29 = vld [vmem:[#allocation9_spill] sm:$0xff] }
 0x184   : > { %v1127_v20 = vadd.f32 %v1096_v7, %v971_v54 }
 0x185   : > { %v978_v52 = vadd.f32 %v3851_v34, %v802_v40  ;;  %v1130_v57 = vadd.f32 %v3857_v15, %v974_v9  ;;  %v1128_v61 = vadd.f32 %v3861_v62, %v972_v53 }
 0x186   : > { %v1303_v50 = vadd.f32 %v3859_v55, %v1127_v20  ;;  %v4013_v37 = vld [vmem:[#allocation13_spill] sm:$0xff] }
 0x187   : > { %v1134_v26 = vadd.f32 %v2989_v10, %v978_v52  ;;  %v1306_v34 = vadd.f32 %v3863_v39, %v1130_v57  ;;  %v4004_v10 = vld [vmem:[#allocation7_spill] sm:$0xff]  ;;  %v1304_v17 = vadd.f32 %v4005_v16, %v1128_v61  ;;  %v4006_v39 = vld [vmem:[#allocation8_spill] sm:$0xff]  ;;  %v2693_v52 = vld [vmem:[%s308_s4] ss:$0 sm:$0xff] }
 0x189   : > { %v1310_v2 = vadd.f32 %v3869_v13, %v1134_v26  ;;  %v4016_v26 = vld [vmem:[#allocation15_spill] sm:$0xff] }
 0x191   : > { %v3080_v28 = vpop.f32.mrf.mxu0 }
 0x192   : > { %v3893_v30 = vpop.f32.mrf.mxu1 }
 0x193   : > { %4001 = vst [vmem:[#allocation16_spill] sm:$0xff] %v3893_v30  ;;  %v3895_v32 = vpop.f32.mrf.mxu0  ;;  %v973_v30 = vadd.f32 %v2960_v46, %v797_v8  ;;  %v800_v46 = vadd.f32 %v3849_v58, %v636_v33  ;;  %v1465_v58 = vadd.f32 %v3036_v44, %v1309_v42 }
 0x194   : > { %4002 = vst [vmem:[#allocation17_spill] sm:$0xff] %v3895_v32  ;;  %v3898_v60 = vpop.f32.mrf.mxu1 }
 0x195   : > { %v3900_v3 = vpop.f32.mrf.mxu0  ;;  %v1129_v41 = vadd.f32 %v2984_v19, %v973_v30  ;;  %v976_v63 = vadd.f32 %v3853_v59, %v800_v46  ;;  %v1307_v19 = vadd.f32 %v1288_v14, %v1131_v0  ;;  %v1641_v59 = vadd.f32 %v3060_v18, %v1465_v58  ;;  %v4012_v18 = vld [vmem:[#allocation14_spill] sm:$0xff]  ;;  %v4015_v0 = vld [vmem:[#allocation11_spill] sm:$0xff] }
 0x196   : > { %v3906_v32 = vpop.f32.mrf.mxu1  ;;  %v1466_v14 = vadd.f32 %v3037_v23, %v1310_v2  ;;  %v1460_v30 = vadd.f32 %v4010_v29, %v1304_v17 }
 0x197   : > { %v3908_v49 = vpop.f32.mrf.mxu0  ;;  %v1305_v51 = vadd.f32 %v3855_v27, %v1129_v41  ;;  %v1459_v27 = vadd.f32 %v1428_v5, %v1303_v50  ;;  %v1132_v15 = vadd.f32 %v3867_v4, %v976_v63  ;;  %v1463_v6 = vadd.f32 %v1444_v22, %v1307_v19  ;;  %v4008_v4 = vld [vmem:[#allocation12_spill] sm:$0xff]  ;;  %v4009_v22 = vld [vmem:[#allocation10_spill] sm:$0xff] }
 0x198   : > { %v3917_v11 = vpop.f32.mrf.mxu1 }
 0x199   : > { %v3084_v48 = vpop.f32.mrf.mxu0  ;;  %v1461_v12 = vadd.f32 %v3032_v31, %v1305_v51  ;;  %v1462_v31 = vadd.f32 %v4004_v10, %v1306_v34  ;;  %v1635_v47 = vadd.f32 %v4006_v39, %v1459_v27  ;;  %v1308_v44 = vadd.f32 %v4007_v36, %v1132_v15 }
 0x19a   : > { %v3108_v38 = vpop.f32.mrf.mxu1  ;;  %v1639_v24 = vadd.f32 %v4008_v4, %v1463_v6  ;;  %v1787_v13 = vadd.f32 %v3084_v48, %v1641_v59  ;;  %v4014_v33 = vld [vmem:[#allocation16_spill] sm:$0xff]  ;;  %v1636_v48 = vadd.f32 %v4015_v0, %v1460_v30 }
 0x19b   : > { %v1766_v7 = vpop.f32.mrf.mxu0  ;;  %v1637_v55 = vadd.f32 %v4003_v56, %v1461_v12  ;;  %v1638_v25 = vadd.f32 %v4009_v22, %v1462_v31  ;;  %v4011_v45 = vld [vmem:[#allocation17_spill] sm:$0xff]  ;;  %v1464_v23 = vadd.f32 %v4012_v18, %v1308_v44 }
 0x19c   : > { %v1976_v21 = vpop.f32.mrf.mxu1  ;;  %v1781_v40 = vadd.f32 %v4011_v45, %v1635_v47  ;;  %v1785_v54 = vadd.f32 %v1766_v7, %v1639_v24  ;;  %v1997_v1 = vadd.f32 %v3108_v38, %v1787_v13 }
 0x19d   : > { %v3085_v8 = vpop.f32.mrf.mxu0  ;;  %v1783_v62 = vadd.f32 %v3080_v28, %v1637_v55  ;;  %v1642_v28 = vadd.f32 %v4013_v37, %v1466_v14  ;;  %v1784_v35 = vadd.f32 %v3900_v3, %v1638_v25  ;;  %v1640_v53 = vadd.f32 %v4016_v26, %v1464_v23 }
 0x19e   : > { %v3109_v5 = vpop.f32.mrf.mxu1  ;;  %v1991_v51 = vadd.f32 %v3898_v60, %v1781_v40  ;;  %v1995_v50 = vadd.f32 %v1976_v21, %v1785_v54  ;;  %v1782_v3 = vadd.f32 %v3908_v49, %v1636_v48 }
 0x19f   : > { %v1769_v41 = vpop.f32.mrf.mxu0  ;;  %v1993_v43 = vadd.f32 %v4014_v33, %v1783_v62  ;;  %v1788_v20 = vadd.f32 %v3085_v8, %v1642_v28  ;;  %v1994_v19 = vadd.f32 %v3906_v32, %v1784_v35 }
 0x1a0   : > { %v1979_v9 = vpop.f32.mrf.mxu1  ;;  %v1786_v34 = vadd.f32 %v1769_v41, %v1640_v53  ;;  %v1992_v32 = vadd.f32 %v3917_v11, %v1782_v3 }
 0x1a1   : > { %v1998_v61 = vadd.f32 %v3109_v5, %v1788_v20 }
 0x1a2   : > { %v1996_v14 = vadd.f32 %v1979_v9, %v1786_v34 }
 0x1b1   : > { %v3128_v46 = vpop.f32.mrf.mxu0 }
 0x1b2   : > { %v2148_v57 = vadd.f32 %v3128_v46, %v1993_v43  ;;  %v3132_v42 = vpop.f32.mrf.mxu1 }
 0x1b3   : > { %v2152_v12 = vadd.f32 %v3132_v42, %v1997_v1  ;;  %v2115_v63 = vpop.f32.mrf.mxu0 }
 0x1b4   : > { %v2163_v58 = vadd.f32 %v2693_v52, %v2148_v57  ;;  %v2146_v38 = vadd.f32 %v2115_v63, %v1991_v51  ;;  %v2131_v7 = vpop.f32.mrf.mxu1 }
 0x1b5   : > { %v2167_v27 = vadd.f32 %v2693_v52, %v2152_v12  ;;  %v2150_v15 = vadd.f32 %v2131_v7, %v1995_v50  ;;  %v3129_v60 = vpop.f32.mrf.mxu0 }
 0x1b6   : > { %v2179_v2 = vmul.f32 0.1, %v2163_v58  ;;  %v2149_v6 = vadd.f32 %v3129_v60, %v1994_v19  ;;  %v3133_v56 = vpop.f32.mrf.mxu1  ;;  %vm2171_vm7 = vcmp.ge.f32.partialorder %v2163_v58, 0.0  ;;  %v2161_v21 = vadd.f32 %v2693_v52, %v2146_v38 }
 0x1b7   : > { %v2153_v55 = vadd.f32 %v3133_v56, %v1998_v61  ;;  %v2118_v10 = vpop.f32.mrf.mxu0  ;;  %v2183_v31 = vmul.f32 0.1, %v2167_v27  ;;  %vm2175_vm8 = vcmp.ge.f32.partialorder %v2167_v27, 0.0  ;;  %v2165_v8 = vadd.f32 %v2693_v52, %v2150_v15 }
 0x1b8   : > { %v2164_v49 = vadd.f32 %v2693_v52, %v2149_v6  ;;  %v2134_v59 = vpop.f32.mrf.mxu1  ;;  %v2187_v17 = vsel %vm2171_vm7, %v2163_v58, %v2179_v2  ;;  %v2147_v47 = vadd.f32 %v2118_v10, %v1992_v32  ;;  %vm2169_vm10 = vcmp.ge.f32.partialorder %v2161_v21, 0.0 }
 0x1b9   : > { %v2168_v16 = vadd.f32 %v2693_v52, %v2153_v55  ;;  %v2151_v5 = vadd.f32 %v2134_v59, %v1996_v14  ;;  %v2191_v36 = vsel %vm2175_vm8, %v2167_v27, %v2183_v31  ;;  %v2177_v44 = vmul.f32 0.1, %v2161_v21 }
 0x1ba   : > { %vm2172_vm9 = vcmp.ge.f32.partialorder %v2164_v49, 0.0  ;;  %v2180_v39 = vmul.f32 0.1, %v2164_v49  ;;  %v2162_v4 = vadd.f32 %v2693_v52, %v2147_v47  ;;  %v2181_v24 = vmul.f32 0.1, %v2165_v8 }
 0x1bb   : > { %vm2176_vm11 = vcmp.ge.f32.partialorder %v2168_v16, 0.0  ;;  %v2184_v62 = vmul.f32 0.1, %v2168_v16  ;;  %v2166_v25 = vadd.f32 %v2693_v52, %v2151_v5  ;;  %vm2173_vm12 = vcmp.ge.f32.partialorder %v2165_v8, 0.0 }
 0x1bc   : > { %v2188_v11 = vsel %vm2172_vm9, %v2164_v49, %v2180_v39  ;;  %vm2170_vm13 = vcmp.ge.f32.partialorder %v2162_v4, 0.0  ;;  %v2178_v30 = vmul.f32 0.1, %v2162_v4  ;;  %v2185_v40 = vsel %vm2169_vm10, %v2161_v21, %v2177_v44 }
 0x1bd   : > { %v2723_v13 = vpack.c.bf16 %v2188_v11, %v2187_v17  ;;  %v2192_v22 = vsel %vm2176_vm11, %v2168_v16, %v2184_v62  ;;  %vm2174_vm14 = vcmp.ge.f32.partialorder %v2166_v25, 0.0  ;;  %v2182_v45 = vmul.f32 0.1, %v2166_v25 }
 0x1be   : > { %v2733_v29 = vpack.c.bf16 %v2192_v22, %v2191_v36  ;;  %v2186_v18 = vsel %vm2170_vm13, %v2162_v4, %v2178_v30  ;;  %v2189_v23 = vsel %vm2173_vm12, %v2165_v8, %v2181_v24  ;;  %2239 = sbr.rel (!%p3446_p6) target bundleno = 461 (0x1cd), region = 77 }
 0x1bf   : > { %2735 = vst [vmem:[%s300_s12 + $0x8] sm:$0xff] %v2723_v13   ;;  %v2718_v37 = vpack.c.bf16 %v2186_v18, %v2185_v40  ;;  %v2190_v28 = vsel %vm2174_vm14, %v2166_v25, %v2182_v45 }
 0x1c0   : > { %2737 = vst [vmem:[%s300_s12 + $0x18] sm:$0xff] %v2733_v29   ;;  %v2728_v54 = vpack.c.bf16 %v2190_v28, %v2189_v23 }
 0x1c1   : > { %2719 = vst [vmem:[%s300_s12] sm:$0xff] %v2718_v37  }
 0x1c2   : > { %2736 = vst [vmem:[%s300_s12 + $0x10] sm:$0xff] %v2728_v54  }
 0x1c6   : > { %v2267_v43 = vld [vmem:[%s300_s12 + $0x8] sm:$0xf]  ;;  %v2269_v35 = vld [vmem:[%s300_s12 + $0xc] sm:$0xf] }
 0x1c7   : > { %v2275_v20 = vld [vmem:[%s300_s12 + $0x18] sm:$0xf]  ;;  %v2277_v46 = vld [vmem:[%s300_s12 + $0x1c] sm:$0xf]  ;;  %2268 = vst [vmem:[%s2246_s11 + $0x10] sm:$0xf] %v2267_v43 }
 0x1c8   : > { %v2263_v41 = vld [vmem:[%s300_s12] sm:$0xf]  ;;  %v2265_v33 = vld [vmem:[%s300_s12 + $0x4] sm:$0xf]  ;;  %2270 = vst [vmem:[%s2246_s11 + $0x18] sm:$0xf] %v2269_v35 }
 0x1c9   : > { %v2271_v9 = vld [vmem:[%s300_s12 + $0x10] sm:$0xf]  ;;  %v2273_v1 = vld [vmem:[%s300_s12 + $0x14] sm:$0xf]  ;;  %2264 = vst [vmem:[%s2246_s11] sm:$0xf] %v2263_v41 }
 0x1ca   : > { %2266 = vst [vmem:[%s2246_s11 + $0x8] sm:$0xf] %v2265_v33  ;;  %2272 = vst [vmem:[%s2246_s11 + $0x20] sm:$0xf] %v2271_v9 }
 0x1cb   : > { %2274 = vst [vmem:[%s2246_s11 + $0x28] sm:$0xf] %v2273_v1  ;;  %2276 = vst [vmem:[%s2246_s11 + $0x30] sm:$0xf] %v2275_v20 }
 0x1cc   : > { %2278 = vst [vmem:[%s2246_s11 + $0x38] sm:$0xf] %v2277_v46 }
 0x1cd PF: > { %s13_s18 = sadd.s32 1, %s3376_s18   ;;  %s4017_s12 = smov %s3356_s13 }
 0x1ce   : > { %p10_p13 = scmp.ge.s32.totalorder %s13_s18, 6   ;;  %s4018_s13 = smov %s3454_s27 }
 0x1cf   : > { %s4019_s14 = smov %s3368_s16  ;;  %s4020_s15 = smov %s3372_s17 }
 0x1d0   : > { %s4021_s16 = smov %s4024_s19  ;;  %s4022_s17 = smov %s4028_s20 }
 0x1d1   :  { %12 = sbr.rel (!%p10_p13) target bundleno = 4 (0x4), region = 165 }

// kernel: discriminator_s_forward.7
= control target key start
LH: loop header
LB: loop body
LE: loop exit
PB: predicated region body
PF: predicated region fallthrough
CT: control target
= control target key end

     0   :  { %s2652_s12 = smov 0   ;;  %s2654_s13 = smov 0   ;;  %s3013_s0 = inlined_call_operand.vmem [shape: bf16[2,1,26,1024], index: 0, kind: input, shape index: {}]   ;;  %s3014_s1 = inlined_call_operand.vmem [shape: bf16[8,11,128,128], index: 1, kind: input, shape index: {}]   ;;  %s3015_s2 = inlined_call_operand.vmem [shape: f32[1,1024], index: 2, kind: input, shape index: {}]   ;;  %s3016_s3 = inlined_call_operand.vmem [shape: bf16[2,16,1024], index: 3, kind: output, shape index: {}]  }
   0x1   :  { %s2656_s14 = smov 0   ;;  %s2658_s15 = smov 0  }
   0x2   :  { %s2660_s16 = smov 0   ;;  %s2662_s17 = smov 0  }
   0x3   :  { %s2664_s18 = smov 0  }
   0x4 LB: > { %s28_s19 = sadd.s32 1, %s2620_s16  ;;  %s32_s20 = sadd.s32 1, %s2624_s17  ;;  %s2628_s18 = sphi %s2664_s18, %s13_s18   ;;  %s2624_s17 = sphi %s2662_s17, %s3023_s17   ;;  %s2620_s16 = sphi %s2660_s16, %s3022_s16   ;;  %s2616_s15 = sphi %s2658_s15, %s3021_s15   ;;  %s2612_s14 = sphi %s2656_s14, %s3020_s14   ;;  %s2608_s13 = sphi %s2654_s13, %s3019_s13   ;;  %s2604_s12 = sphi %s2652_s12, %s3018_s12  }
   0x5   : > { %p30_p0 = scmp.ge.s32.totalorder %s28_s19, 8  ;;  %s1810_s21 = sadd.s32 4294967295, %s2628_s18  }
   0x6   : > { %p50_p1 = scmp.ne.s32.totalorder %s2608_s13, %s2604_s12  ;;  %p51_p2 = scmp.eq.s32.totalorder %s2628_s18, 0 }
   0x7   : > { %s3025_s19 = smov (%p30_p0, %s28_s19), 0  ;;  %s3027_s20 = smov (!%p30_p0, %s32_s20), %s2624_s17 }
   0x8   : > { %p34_p3 = scmp.ge.s32.totalorder %s3027_s20, 2  ;;  %p136_p4 = scmp.eq.s32.totalorder %s1810_s21, 15 }
   0x9   : > { %s39_s22 = ssub.s32 %s2620_s16, %s3025_s19  ;;  %p52_p5 = por %p51_p2, %p50_p1 }
   0xa   : > { %s3029_s20 = smov (%p34_p3, %s3027_s20), 0  ;;  %p2700_p6 = por %p136_p4, %p50_p1 }
   0xb   : > { %s36_s24 = ssub.s32 %s2624_s17, %s3029_s20  ;;  %s43_s26 = sadd.s32 1, %s2608_s13 }
   0xc   : > { %s40_s25 = sor.u32 %s39_s22, %s36_s24  ;;  %p1813_p8 = scmp.ge.s32.totalorder %s2628_s18, 16 }
   0xd   : > { %p41_p7 = scmp.eq.s32.totalorder %s40_s25, 0 }
   0xe   : > { %158 = sbr.rel (%p1813_p8) target bundleno = 29 (0x1d), region = 16 }
   0xf   : > { %s2708_s27 = scalar_select %p41_p7, %s2608_s13, %s43_s26  }
  0x13   : > { %161 = sbr.rel (!%p52_p5) target bundleno = 29 (0x1d), region = 20  ;;  %s163_s28 = sand.u32 (%p52_p5), 1, %s2608_s13  }
  0x14   : > { %s1815_s29 = sshll.u32 (%p52_p5), %s2624_s17, 5  ;;  %s1814_s30 = sshll.u32 (%p52_p5), %s163_s28, 4 }
  0x15   : > { %s169_s4 = sadd.s32 (%p52_p5), %s2620_s16, %s1815_s29  ;;  %s165_s9 = scalar_lea.vmem (%p52_p5), [#allocation2], %s1814_s30 }
  0x16   : > { %s1816_s5 = sshll.u32 (%p52_p5), %s169_s4, 2 }
  0x17   : > { %s171_s8 = scalar_lea.vmem (%p52_p5), %s3013_s0, %s1816_s5 }
  0x18   : > { %v188_v0 = vld [vmem:[%s171_s8] sm:$0xf] }
  0x19   : > { %v190_v1 = vld [vmem:[%s171_s8 + $0x20] sm:$0xf]  ;;  %189 = vst [vmem:[%s165_s9] sm:$0xf] %v188_v0 }
  0x1a   : > { %v192_v2 = vld [vmem:[%s171_s8 + $0x40] sm:$0xf]  ;;  %191 = vst [vmem:[%s165_s9 + $0x4] sm:$0xf] %v190_v1 }
  0x1b   : > { %193 = vst [vmem:[%s165_s9 + $0x8] sm:$0xf] %v192_v2  ;;  %v194_v3 = vld [vmem:[%s171_s8 + $0x60] sm:$0xf] }
  0x1c   : > { %195 = vst [vmem:[%s165_s9 + $0xc] sm:$0xf] %v194_v3 }
  0x1d PF: > { %p1817_p9 = scmp.ge.s32.totalorder %s2628_s18, 1  ;;  %p240_p10 = scmp.lt.s32.totalorder %s2628_s18, 17 }
  0x1f   : > { %p241_p11 = pnand %p1817_p9, %p240_p10 }
  0x20   : > { %p277_p12 = scmp.lt.s32.totalorder (!%p241_p11), %s2612_s14, 7  ;;  %s247_s10 = sand.u32 (!%p241_p11), 1, %s2604_s12  }
  0x21   : > { %244 = sbr.rel (%p241_p11) target bundleno = 450 (0x1c2), region = 69  ;;  %s1818_s11 = sshll.u32 (!%p241_p11), %s247_s10, 4 }
  0x22   : > { %s2733_s24 = scalar_lea.vmem (!%p241_p11), [#allocation2], %s1818_s11  ;;  %s1819_s5 = sshll.u32 (!%p241_p11), %s247_s10, 3 }
  0x23   : > { %s276_s6 = scalar_lea.vmem (!%p241_p11), [#allocation3], %s1819_s5 }
  0x26   : > { %v2630_v4 = vmov 0.0   ;;  %s2726_s21 = scalar_select %p277_p12, %s2612_s14, 7  ;;  %vm2631_vm0 = vmmov 0   ;;  %v287_v11 = vld [vmem:[%s2733_s24] sm:$0xf]  ;;  %vm545_vm2 = vcmask 1046528  }
  0x27   : > { %2195 = vmatprep.subr.bf16.mxu0 %v2630_v4  ;;  %2215 = vmatprep.subr.bf16.mxu1 %v2630_v4  ;;  %v2752_v12 = vld [vmem:[%s2733_s24 + $0x4] sm:$0xf]  ;;  %v2763_v18 = vld [vmem:[%s2733_s24 + $0x8] ss:$0 sps:$4 sm:$0x11]   ;;  %vm793_vm4 = vcmask 1045504  }
  0x28   : > { %2211 = vmatprep.mubr.msk.bf16.mxu0 %vm2631_vm0, %v2630_v4  ;;  %2231 = vmatprep.mubr.msk.bf16.mxu1 %vm2631_vm0, %v2630_v4  ;;  %s2415_s22 = smul.u32 704, %s2726_s21  ;;  %v1837_v16 = vcombine.low %v287_v11, %v2752_v12  ;;  %v340_v23 = vshll.u32 %v2763_v18, 16  ;;  %vm331_vm1 = vsmask.f32 7424  ;;  %v524_v38 = vld [vmem:[%s2733_s24] sm:$0xe]  ;;  %s284_s4 = scalar_lea.vmem %s3015_s2, %s2726_s21 }
  0x29   : > { %v1871_v41 = vcombine.low %v524_v38, %v2752_v12  ;;  %v2803_v42 = vld [vmem:[%s2733_s24 + $0x8] ss:$0 sps:$4 sm:$0x33]   ;;  %v547_v59 = vrot.slane %v2763_v18, 1  ;;  %vm662_vm3 = vsmask.f32 6400 }
  0x2a   : > { %s2738_s28 = scalar_lea.vmem %s3014_s1, %s2415_s22  ;;  %v335_v20 = vshll.u32 %v1837_v16, 16  ;;  %v333_v22 = vshrl.u32 %v1837_v16, 16  ;;  %v342_v29 = vrot.slane %v340_v23, 1  ;;  %v672_v49 = vshrl.u32 %v2803_v42, 16  ;;  %s2085_s7 = sshll.u32 (%p2700_p6), %s2616_s15, 4 }
  0x2b   : > { %v2474_v5 = vld [vmem:[%s2738_s28 + $0x78] sm:$0xff]   ;;  %v2476_v7 = vld [vmem:[%s2738_s28 + $0x70] sm:$0xff]   ;;  %v2478_v9 = vld [vmem:[%s2738_s28 + $0x68] sm:$0xff]   ;;  %v664_v46 = vshrl.u32 %v1871_v41, 16  ;;  %v667_v47 = vshll.u32 %v1871_v41, 16  ;;  %v675_v50 = vshll.u32 %v2803_v42, 16  ;;  %s1662_s8 = sadd.s32 (%p2700_p6), %s2612_s14, %s2085_s7 }
  0x2c   : > { %v2475_v6 = vld [vmem:[%s2738_s28 + $0x38] sm:$0xff]   ;;  %2196 = vmatpush3.bf16.msra.mxu0 %v2474_v5  ;;  %v2477_v8 = vld [vmem:[%s2738_s28 + $0x30] sm:$0xff]   ;;  %v2479_v10 = vld [vmem:[%s2738_s28 + $0x28] sm:$0xff]   ;;  %v337_v25 = vrot.slane %v335_v20, 1  ;;  %v674_v55 = vrot.slane %v672_v49, 1  ;;  %v546_v57 = vrot.slane %v1871_v41, 1 }
  0x2d   : > { %2216 = vmatpush3.bf16.msra.mxu1 %v2475_v6  ;;  %2197 = vmatprep.subr.bf16.mxu0 %v2630_v4  ;;  %v2480_v13 = vld [vmem:[%s2738_s28 + $0x60] sm:$0xff]   ;;  %v2482_v15 = vld [vmem:[%s2738_s28 + $0x58] sm:$0xff]   ;;  %v2484_v19 = vld [vmem:[%s2738_s28 + $0x50] sm:$0xff]   ;;  %v666_v53 = vrot.slane %v664_v46, 1  ;;  %v669_v54 = vrot.slane %v667_v47, 2  ;;  %v677_v56 = vrot.slane %v675_v50, 2 }
  0x2e   : > { %2217 = vmatprep.subr.bf16.mxu1 %v2630_v4  ;;  %v2481_v14 = vld [vmem:[%s2738_s28 + $0x20] sm:$0xff]   ;;  %v2483_v17 = vld [vmem:[%s2738_s28 + $0x18] sm:$0xff]   ;;  %v2485_v21 = vld [vmem:[%s2738_s28 + $0x10] sm:$0xff]   ;;  %v338_v28 = vor.u32 %v337_v25, %v333_v22  ;;  %v548_v63 = vsel %vm545_vm2, %v546_v57, %v547_v59  ;;  %vm910_vm5 = vsmask.f32 5376  ;;  %vm1041_vm6 = vcmask 1044480  }
  0x2f   : > { %v2486_v24 = vld [vmem:[%s2738_s28 + $0x48] sm:$0xff]   ;;  %v2488_v27 = vld [vmem:[%s2738_s28 + $0x40] sm:$0xff]   ;;  %v2492_v32 = vld [vmem:[%s2738_s28 + $0xb8] sm:$0xff]   ;;  %v670_v61 = vor.u32 %v669_v54, %v666_v53  ;;  %v678_v62 = vor.u32 %v677_v56, %v674_v55  ;;  %vm1158_vm7 = vsmask.f32 4352  ;;  %s2086_s9 = sshll.u32 (%p2700_p6), %s1662_s8, 2 }
  0x30   : > { %2198 = vmatpush3.bf16.msra.mxu0 %v2476_v7  ;;  %v2487_v26 = vld [vmem:[%s2738_s28 + $0x8] sm:$0xff]   ;;  %v2489_v30 = vld [vmem:[%s2738_s28] sm:$0xff]   ;;  %v343_v31 = vsel %vm331_vm1, %v338_v28, %v342_v29  ;;  %v2493_v33 = vld [vmem:[%s2738_s28 + $0xf8] sm:$0xff]   ;;  %s1664_s10 = scalar_lea.vmem (%p2700_p6), %s3016_s3, %s2086_s9 }
  0x31   : > { %2218 = vmatpush3.bf16.msra.mxu1 %v2477_v8  ;;  %2199 = vmatprep.subr.bf16.mxu0 %v2630_v4  ;;  %v2494_v34 = vld [vmem:[%s2738_s28 + $0xb0] sm:$0xff]   ;;  %v2496_v36 = vld [vmem:[%s2738_s28 + $0xa8] sm:$0xff]   ;;  %v2498_v39 = vld [vmem:[%s2738_s28 + $0xa0] sm:$0xff]   ;;  %v679_v1 = vsel %vm662_vm3, %v670_v61, %v678_v62 }
  0x32   : > { %2219 = vmatprep.subr.bf16.mxu1 %v2630_v4  ;;  %v2495_v35 = vld [vmem:[%s2738_s28 + $0xf0] sm:$0xff]   ;;  %v2497_v37 = vld [vmem:[%s2738_s28 + $0xe8] sm:$0xff]   ;;  %v2499_v40 = vld [vmem:[%s2738_s28 + $0xe0] sm:$0xff]  }
  0x33   : > { %v2500_v43 = vld [vmem:[%s2738_s28 + $0x98] sm:$0xff]   ;;  %v2502_v45 = vld [vmem:[%s2738_s28 + $0x90] sm:$0xff]   ;;  %v2504_v51 = vld [vmem:[%s2738_s28 + $0x88] sm:$0xff]  }
  0x34   : > { %2200 = vmatpush3.bf16.msra.mxu0 %v2478_v9  ;;  %v2501_v44 = vld [vmem:[%s2738_s28 + $0xd8] sm:$0xff]   ;;  %v2503_v48 = vld [vmem:[%s2738_s28 + $0xd0] sm:$0xff]   ;;  %v2505_v52 = vld [vmem:[%s2738_s28 + $0xc8] sm:$0xff]  }
  0x35   : > { %2220 = vmatpush3.bf16.msra.mxu1 %v2479_v10  ;;  %2201 = vmatprep.subr.bf16.mxu0 %v2630_v4  ;;  %v2506_v58 = vld [vmem:[%s2738_s28 + $0x80] sm:$0xff]   ;;  %v2509_v0 = vld [vmem:[%s2738_s28 + $0x138] sm:$0xff]   ;;  %v2512_v3 = vld [vmem:[%s2738_s28 + $0x130] sm:$0xff]  }
  0x36   : > { %2221 = vmatprep.subr.bf16.mxu1 %v2630_v4  ;;  %v2507_v60 = vld [vmem:[%s2738_s28 + $0xc0] sm:$0xff]   ;;  %v2511_v2 = vld [vmem:[%s2738_s28 + $0x178] sm:$0xff]   ;;  %v2513_v5 = vld [vmem:[%s2738_s28 + $0x170] sm:$0xff]  }
  0x37   : > { %v2514_v6 = vld [vmem:[%s2738_s28 + $0x128] sm:$0xff]   ;;  %v772_v8 = vld [vmem:[%s2733_s24] sm:$0xc]  ;;  %v2536_v46 = vld [vmem:[%s2738_s28 + $0x198] sm:$0xff]  }
  0x38   : > { %2202 = vmatpush3.bf16.msra.mxu0 %v2480_v13  ;;  %v2515_v7 = vld [vmem:[%s2738_s28 + $0x168] sm:$0xff]   ;;  %v2516_v9 = vld [vmem:[%s2738_s28 + $0x120] sm:$0xff]   ;;  %v1921_v11 = vcombine.low %v772_v8, %v2752_v12  ;;  %v2521_v18 = vld [vmem:[%s2738_s28 + $0x150] sm:$0xff]  }
  0x39   : > { %2222 = vmatpush3.bf16.msra.mxu1 %v2481_v14  ;;  %2203 = vmatprep.subr.bf16.mxu0 %v2630_v4  ;;  %v2517_v10 = vld [vmem:[%s2738_s28 + $0x160] sm:$0xff]   ;;  %v2848_v13 = vld [vmem:[%s2733_s24 + $0x8] ss:$0 sps:$4 sm:$0x77]   ;;  %v2530_v38 = vld [vmem:[%s2738_s28 + $0x1b0] sm:$0xff]  }
  0x3a   : > { %2223 = vmatprep.subr.bf16.mxu1 %v2630_v4  ;;  %v2518_v14 = vld [vmem:[%s2738_s28 + $0x118] sm:$0xff]   ;;  %v920_v20 = vshrl.u32 %v2848_v13, 16  ;;  %v2522_v22 = vld [vmem:[%s2738_s28 + $0x108] sm:$0xff]   ;;  %v794_v28 = vrot.slane %v1921_v11, 2  ;;  %v2524_v29 = vld [vmem:[%s2738_s28 + $0x100] sm:$0xff]  }
  0x3b   : > { %v2533_v41 = vld [vmem:[%s2738_s28 + $0x1e8] sm:$0xff]   ;;  %v2537_v47 = vld [vmem:[%s2738_s28 + $0x1d8] sm:$0xff]   ;;  %v2538_v50 = vld [vmem:[%s2738_s28 + $0x190] sm:$0xff]  }
  0x3c   : > { %2204 = vmatpush3.bf16.msra.mxu0 %v2482_v15  ;;  %v2519_v15 = vld [vmem:[%s2738_s28 + $0x158] sm:$0xff]   ;;  %v2540_v56 = vld [vmem:[%s2738_s28 + $0x188] sm:$0xff]   ;;  %v2542_v62 = vld [vmem:[%s2738_s28 + $0x180] sm:$0xff]  }
  0x3d   : > { %2224 = vmatpush3.bf16.msra.mxu1 %v2483_v17  ;;  %2205 = vmatprep.subr.bf16.mxu0 %v2630_v4  ;;  %v912_v17 = vshrl.u32 %v1921_v11, 16  ;;  %v2541_v57 = vld [vmem:[%s2738_s28 + $0x1c8] sm:$0xff]   ;;  %v2547_v8 = vld [vmem:[%s2738_s28 + $0x278] sm:$0xff]  }
  0x3e   : > { %2225 = vmatprep.subr.bf16.mxu1 %v2630_v4 }
  0x3f   : > { %v914_v23 = vrot.slane %v912_v17, 2  ;;  %v2935_v17 = vld [vmem:[%s2733_s24 + $0x8] sm:$0xf] }
  0x40   : > { %2206 = vmatpush3.bf16.msra.mxu0 %v2484_v19  ;;  %v915_v19 = vshll.u32 %v1921_v11, 16  ;;  %v2550_v11 = vld [vmem:[%s2738_s28 + $0x228] sm:$0xff]  }
  0x41   : > { %2226 = vmatpush3.bf16.msra.mxu1 %v2485_v21  ;;  %2207 = vmatprep.subr.bf16.mxu0 %v2630_v4  ;;  %v923_v21 = vshll.u32 %v2848_v13, 16 }
  0x42   : > { %2227 = vmatprep.subr.bf16.mxu1 %v2630_v4  ;;  %v917_v25 = vrot.slane %v915_v19, 3  ;;  %v2555_v19 = vld [vmem:[%s2738_s28 + $0x258] sm:$0xff]  }
  0x44   : > { %2208 = vmatpush3.bf16.msra.mxu0 %v2486_v24  ;;  %v2523_v24 = vld [vmem:[%s2738_s28 + $0x148] sm:$0xff]  }
  0x45   : > { %2228 = vmatpush3.bf16.msra.mxu1 %v2487_v26  ;;  %2209 = vmatprep.subr.bf16.mxu0 %v2630_v4  ;;  %v922_v26 = vrot.slane %v920_v20, 2 }
  0x46   : > { %2229 = vmatprep.subr.bf16.mxu1 %v2630_v4 }
  0x48   : > { %2210 = vmatpush3.bf16.msra.mxu0 %v2488_v27  ;;  %v925_v27 = vrot.slane %v923_v21, 3  ;;  %v2556_v21 = vld [vmem:[%s2738_s28 + $0x210] sm:$0xff]  }
  0x49   : > { %2230 = vmatpush3.bf16.msra.mxu1 %v2489_v30  ;;  %2235 = vmatprep.subr.bf16.mxu0 %v2630_v4  ;;  %v795_v30 = vrot.slane %v2803_v42, 2  ;;  %v2534_v42 = vld [vmem:[%s2738_s28 + $0x1a0] sm:$0xff]  }
  0x4a   : > { %2255 = vmatprep.subr.bf16.mxu1 %v2630_v4 }
  0x4b   : > { %2212 = vmatmul.mubr.bf16.vlgmr.msra.gmra.mxu0 %v343_v31  ;;  %v2525_v31 = vld [vmem:[%s2738_s28 + $0x140] sm:$0xff]  }
  0x4c   : > { %2232 = vmatmul.mubr.bf16.vlgmr.msra.gmra.mxu1 %v1837_v16  ;;  %2236 = vmatpush3.bf16.msra.mxu0 %v2492_v32  ;;  %v2520_v16 = vld [vmem:[%s2738_s28 + $0x110] sm:$0xff]   ;;  %v918_v32 = vor.u32 %v917_v25, %v914_v23  ;;  %v2565_v23 = vld [vmem:[%s2733_s24 + $0xc] ss:$0 sps:$4 sm:$0x11]  }
  0x4d   : > { %2256 = vmatpush3.bf16.msra.mxu1 %v2493_v33  ;;  %2237 = vmatprep.subr.bf16.mxu0 %v2630_v4  ;;  %v926_v33 = vor.u32 %v925_v27, %v922_v26  ;;  %v2558_v25 = vld [vmem:[%s2738_s28 + $0x208] sm:$0xff]  }
  0x4e   : > { %2257 = vmatprep.subr.bf16.mxu1 %v2630_v4  ;;  %2251 = vmatprep.mubr.msk.bf16.mxu0 %vm2631_vm0, %v2630_v4  ;;  %v2559_v26 = vld [vmem:[%s2738_s28 + $0x248] sm:$0xff]  }
  0x4f   : > { %2271 = vmatprep.mubr.msk.bf16.mxu1 %vm2631_vm0, %v2630_v4 }
  0x50   : > { %2238 = vmatpush3.bf16.msra.mxu0 %v2494_v34  ;;  %v796_v34 = vsel %vm793_vm4, %v794_v28, %v795_v30  ;;  %v2560_v30 = vld [vmem:[%s2738_s28 + $0x200] sm:$0xff]  }
  0x51   : > { %2258 = vmatpush3.bf16.msra.mxu1 %v2495_v35  ;;  %2239 = vmatprep.subr.bf16.mxu0 %v2630_v4  ;;  %v2527_v35 = vld [vmem:[%s2738_s28 + $0x1b8] sm:$0xff]  }
  0x52   : > { %2259 = vmatprep.subr.bf16.mxu1 %v2630_v4 }
  0x54   : > { %2240 = vmatpush3.bf16.msra.mxu0 %v2496_v36  ;;  %v927_v36 = vsel %vm910_vm5, %v918_v32, %v926_v33 }
  0x55   : > { %2260 = vmatpush3.bf16.msra.mxu1 %v2497_v37  ;;  %2241 = vmatprep.subr.bf16.mxu0 %v2630_v4  ;;  %v2529_v37 = vld [vmem:[%s2738_s28 + $0x1f8] sm:$0xff]  }
  0x56   : > { %2261 = vmatprep.subr.bf16.mxu1 %v2630_v4 }
  0x58   : > { %2242 = vmatpush3.bf16.msra.mxu0 %v2498_v39  ;;  %v2531_v39 = vld [vmem:[%s2738_s28 + $0x1f0] sm:$0xff]  }
  0x59   : > { %2262 = vmatpush3.bf16.msra.mxu1 %v2499_v40  ;;  %2243 = vmatprep.subr.bf16.mxu0 %v2630_v4  ;;  %v2532_v40 = vld [vmem:[%s2738_s28 + $0x1a8] sm:$0xff]  }
  0x5a   : > { %2263 = vmatprep.subr.bf16.mxu1 %v2630_v4 }
  0x5c   : > { %2244 = vmatpush3.bf16.msra.mxu0 %v2500_v43  ;;  %v2535_v43 = vld [vmem:[%s2738_s28 + $0x1e0] sm:$0xff]  }
  0x5d   : > { %2264 = vmatpush3.bf16.msra.mxu1 %v2501_v44  ;;  %2245 = vmatprep.subr.bf16.mxu0 %v2630_v4  ;;  %v1020_v44 = vld [vmem:[%s2733_s24] sm:$0x8] }
  0x5e   : > { %2265 = vmatprep.subr.bf16.mxu1 %v2630_v4 }
  0x60   : > { %2246 = vmatpush3.bf16.msra.mxu0 %v2502_v45  ;;  %v2891_v45 = vld [vmem:[%s2733_s24 + $0x8] sm:$0xf] }
  0x61   : > { %2266 = vmatpush3.bf16.msra.mxu1 %v2503_v48  ;;  %2247 = vmatprep.subr.bf16.mxu0 %v2630_v4  ;;  %v1971_v48 = vcombine.low %v1020_v44, %v2752_v12  ;;  %v1996_v49 = vcombine.low %v2891_v45, %v2891_v45  ;;  %v2572_v44 = vld [vmem:[%s2738_s28 + $0x280] sm:$0xff]  }
  0x62   : > { %2267 = vmatprep.subr.bf16.mxu1 %v2630_v4 }
  0x63   : > { %v1163_v53 = vshll.u32 %v1971_v48, 16  ;;  %v1168_v54 = vshrl.u32 %v1996_v49, 16  ;;  %v1171_v55 = vshll.u32 %v1996_v49, 16 }
  0x64   : > { %2248 = vmatpush3.bf16.msra.mxu0 %v2504_v51  ;;  %v2539_v51 = vld [vmem:[%s2738_s28 + $0x1d0] sm:$0xff]  }
  0x65   : > { %2268 = vmatpush3.bf16.msra.mxu1 %v2505_v52  ;;  %2249 = vmatprep.subr.bf16.mxu0 %v2630_v4  ;;  %v1160_v52 = vshrl.u32 %v1971_v48, 16  ;;  %v1165_v59 = vrot.slane %v1163_v53, 4  ;;  %v1173_v61 = vrot.slane %v1171_v55, 4 }
  0x66   : > { %2269 = vmatprep.subr.bf16.mxu1 %v2630_v4 }
  0x68   : > { %2250 = vmatpush3.bf16.msra.mxu0 %v2506_v58  ;;  %v1162_v58 = vrot.slane %v1160_v52, 3 }
  0x69   : > { %2270 = vmatpush3.bf16.msra.mxu1 %v2507_v60  ;;  %2275 = vmatprep.subr.bf16.mxu0 %v2630_v4  ;;  %v1170_v60 = vrot.slane %v1168_v54, 3 }
  0x6a   : > { %2295 = vmatprep.subr.bf16.mxu1 %v2630_v4 }
  0x6b   : > { %2252 = vmatmul.mubr.bf16.vlgmr.msra.gmra.mxu0 %v548_v63  ;;  %v1042_v63 = vrot.slane %v1971_v48, 3 }
  0x6c   : > { %2276 = vmatpush3.bf16.msra.mxu0 %v2509_v0  ;;  %2272 = vmatmul.mubr.bf16.vlgmr.msra.gmra.mxu1 %v679_v1  ;;  %v1043_v0 = vrot.slane %v2848_v13, 3  ;;  %v2543_v1 = vld [vmem:[%s2738_s28 + $0x1c0] sm:$0xff]   ;;  %v2551_v13 = vld [vmem:[%s2738_s28 + $0x268] sm:$0xff]  }
  0x6d   : > { %2296 = vmatpush3.bf16.msra.mxu1 %v2511_v2  ;;  %2277 = vmatprep.subr.bf16.mxu0 %v2630_v4  ;;  %v1166_v2 = vor.u32 %v1165_v59, %v1162_v58 }
  0x6e   : > { %2297 = vmatprep.subr.bf16.mxu1 %v2630_v4  ;;  %2291 = vmatprep.mubr.msk.bf16.mxu0 %vm2631_vm0, %v2630_v4 }
  0x6f   : > { %2311 = vmatprep.mubr.msk.bf16.mxu1 %vm2631_vm0, %v2630_v4 }
  0x70   : > { %2278 = vmatpush3.bf16.msra.mxu0 %v2512_v3  ;;  %v1174_v3 = vor.u32 %v1173_v61, %v1170_v60 }
  0x71   : > { %2298 = vmatpush3.bf16.msra.mxu1 %v2513_v5  ;;  %2279 = vmatprep.subr.bf16.mxu0 %v2630_v4  ;;  %v1044_v5 = vsel %vm1041_vm6, %v1042_v63, %v1043_v0 }
  0x72   : > { %2299 = vmatprep.subr.bf16.mxu1 %v2630_v4 }
  0x74   : > { %2280 = vmatpush3.bf16.msra.mxu0 %v2514_v6  ;;  %v2545_v6 = vld [vmem:[%s2738_s28 + $0x238] sm:$0xff]  }
  0x75   : > { %2300 = vmatpush3.bf16.msra.mxu1 %v2515_v7  ;;  %2281 = vmatprep.subr.bf16.mxu0 %v2630_v4  ;;  %v1175_v7 = vsel %vm1158_vm7, %v1166_v2, %v1174_v3 }
  0x76   : > { %2301 = vmatprep.subr.bf16.mxu1 %v2630_v4 }
  0x78   : > { %2282 = vmatpush3.bf16.msra.mxu0 %v2516_v9  ;;  %v2548_v9 = vld [vmem:[%s2738_s28 + $0x230] sm:$0xff]  }
  0x79   : > { %2302 = vmatpush3.bf16.msra.mxu1 %v2517_v10  ;;  %2283 = vmatprep.subr.bf16.mxu0 %v2630_v4  ;;  %v2549_v10 = vld [vmem:[%s2738_s28 + $0x270] sm:$0xff]  }
  0x7a   : > { %2303 = vmatprep.subr.bf16.mxu1 %v2630_v4 }
  0x7c   : > { %2284 = vmatpush3.bf16.msra.mxu0 %v2518_v14  ;;  %v2552_v14 = vld [vmem:[%s2738_s28 + $0x220] sm:$0xff]  }
  0x7d   : > { %2304 = vmatpush3.bf16.msra.mxu1 %v2519_v15  ;;  %2285 = vmatprep.subr.bf16.mxu0 %v2630_v4  ;;  %v2553_v15 = vld [vmem:[%s2738_s28 + $0x260] sm:$0xff]  }
  0x7e   : > { %2305 = vmatprep.subr.bf16.mxu1 %v2630_v4 }
  0x80   : > { %2286 = vmatpush3.bf16.msra.mxu0 %v2520_v16  ;;  %v1378_v16 = vld [vmem:[%s2733_s24 + $0x4] sm:$0xf] }
  0x81   : > { %2306 = vmatpush3.bf16.msra.mxu1 %v2521_v18  ;;  %2287 = vmatprep.subr.bf16.mxu0 %v2630_v4  ;;  %v2554_v18 = vld [vmem:[%s2738_s28 + $0x218] sm:$0xff]   ;;  %v2046_v20 = vcombine.low %v1378_v16, %v2935_v17 }
  0x82   : > { %2307 = vmatprep.subr.bf16.mxu1 %v2630_v4 }
  0x83   : > { %v1407_v27 = vshrl.u32 %v2046_v20, 16 }
  0x84   : > { %2288 = vmatpush3.bf16.msra.mxu0 %v2522_v22  ;;  %v2557_v22 = vld [vmem:[%s2738_s28 + $0x250] sm:$0xff]  }
  0x85   : > { %2308 = vmatpush3.bf16.msra.mxu1 %v2523_v24  ;;  %2289 = vmatprep.subr.bf16.mxu0 %v2630_v4  ;;  %v1409_v24 = vshll.u32 %v2046_v20, 16 }
  0x86   : > { %2309 = vmatprep.subr.bf16.mxu1 %v2630_v4 }
  0x87   : > { %v1411_v28 = vrot.slane %v1409_v24, 1 }
  0x88   : > { %2290 = vmatpush3.bf16.msra.mxu0 %v2524_v29  ;;  %v1414_v29 = vshll.u32 %v2565_v23, 16 }
  0x89   : > { %2310 = vmatpush3.bf16.msra.mxu1 %v2525_v31  ;;  %2315 = vmatprep.subr.bf16.mxu0 %v2630_v4  ;;  %v2561_v31 = vld [vmem:[%s2738_s28 + $0x240] sm:$0xff]   ;;  %v1412_v32 = vor.u32 %v1411_v28, %v1407_v27 }
  0x8a   : > { %2335 = vmatprep.subr.bf16.mxu1 %v2630_v4  ;;  %v1416_v33 = vrot.slane %v1414_v29, 1 }
  0x8b   : > { %2292 = vmatmul.mubr.bf16.vlgmr.msra.gmra.mxu0 %v796_v34  ;;  %v2021_v34 = vcombine.low %v2752_v12, %v2891_v45  ;;  %v2567_v12 = vld [vmem:[%s2738_s28 + $0x2a8] sm:$0xff]  }
  0x8c   : > { %2316 = vmatpush3.bf16.msra.mxu0 %v2527_v35  ;;  %2312 = vmatmul.mubr.bf16.vlgmr.msra.gmra.mxu1 %v927_v36  ;;  %v2563_v35 = vld [vmem:[%s2738_s28 + $0x2b8] sm:$0xff]   ;;  %v1417_v36 = vsel %vm331_vm1, %v1412_v32, %v1416_v33 }
  0x8d   : > { %2336 = vmatpush3.bf16.msra.mxu1 %v2529_v37  ;;  %2317 = vmatprep.subr.bf16.mxu0 %v2630_v4  ;;  %v2566_v37 = vld [vmem:[%s2738_s28 + $0x2b0] sm:$0xff]  }
  0x8e   : > { %2337 = vmatprep.subr.bf16.mxu1 %v2630_v4  ;;  %2331 = vmatprep.mubr.msk.bf16.mxu0 %vm2631_vm0, %v2630_v4 }
  0x8f   : > { %2351 = vmatprep.mubr.msk.bf16.mxu1 %vm2631_vm0, %v2630_v4 }
  0x90   : > { %2318 = vmatpush3.bf16.msra.mxu0 %v2530_v38  ;;  %v2568_v38 = vld [vmem:[%s2738_s28 + $0x2a0] sm:$0xff]  }
  0x91   : > { %2338 = vmatpush3.bf16.msra.mxu1 %v2531_v39  ;;  %2319 = vmatprep.subr.bf16.mxu0 %v2630_v4  ;;  %v2569_v39 = vld [vmem:[%s2738_s28 + $0x298] sm:$0xff]  }
  0x92   : > { %2339 = vmatprep.subr.bf16.mxu1 %v2630_v4 }
  0x94   : > { %2320 = vmatpush3.bf16.msra.mxu0 %v2532_v40  ;;  %v2570_v40 = vld [vmem:[%s2738_s28 + $0x290] sm:$0xff]  }
  0x95   : > { %2340 = vmatpush3.bf16.msra.mxu1 %v2533_v41  ;;  %2321 = vmatprep.subr.bf16.mxu0 %v2630_v4  ;;  %v1510_v41 = vld [vmem:[%s2733_s24 + $0x4] sm:$0xe] }
  0x96   : > { %2341 = vmatprep.subr.bf16.mxu1 %v2630_v4 }
  0x98   : > { %2322 = vmatpush3.bf16.msra.mxu0 %v2534_v42  ;;  %v2571_v42 = vld [vmem:[%s2738_s28 + $0x288] sm:$0xff]  }
  0x99   : > { %2342 = vmatpush3.bf16.msra.mxu1 %v2535_v43  ;;  %2323 = vmatprep.subr.bf16.mxu0 %v2630_v4  ;;  %v2072_v43 = vcombine.low %v1510_v41, %v2935_v17 }
  0x9a   : > { %2343 = vmatprep.subr.bf16.mxu1 %v2630_v4 }
  0x9b   : > { %v1531_v45 = vrot.slane %v2072_v43, 1 }
  0x9c   : > { %2324 = vmatpush3.bf16.msra.mxu0 %v2536_v46  ;;  %v1532_v46 = vrot.slane %v2565_v23, 1 }
  0x9d   : > { %2344 = vmatpush3.bf16.msra.mxu1 %v2537_v47  ;;  %2325 = vmatprep.subr.bf16.mxu0 %v2630_v4 }
  0x9e   : > { %2345 = vmatprep.subr.bf16.mxu1 %v2630_v4  ;;  %v1533_v47 = vsel %vm545_vm2, %v1531_v45, %v1532_v46 }
  0xa0   : > { %2326 = vmatpush3.bf16.msra.mxu0 %v2538_v50 }
  0xa1   : > { %2346 = vmatpush3.bf16.msra.mxu1 %v2539_v51  ;;  %2327 = vmatprep.subr.bf16.mxu0 %v2630_v4 }
  0xa2   : > { %2347 = vmatprep.subr.bf16.mxu1 %v2630_v4 }
  0xa4   : > { %2328 = vmatpush3.bf16.msra.mxu0 %v2540_v56 }
  0xa5   : > { %2348 = vmatpush3.bf16.msra.mxu1 %v2541_v57  ;;  %2329 = vmatprep.subr.bf16.mxu0 %v2630_v4 }
  0xa6   : > { %2349 = vmatprep.subr.bf16.mxu1 %v2630_v4 }
  0xa8   : > { %2330 = vmatpush3.bf16.msra.mxu0 %v2542_v62 }
  0xa9   : > { %2350 = vmatpush3.bf16.msra.mxu1 %v2543_v1  ;;  %2355 = vmatprep.subr.bf16.mxu0 %v2630_v4 }
  0xaa   : > { %2375 = vmatprep.subr.bf16.mxu1 %v2630_v4 }
  0xab   : > { %2332 = vmatmul.mubr.bf16.vlgmr.msra.gmra.mxu0 %v1044_v5 }
  0xac   : > { %2356 = vmatpush3.bf16.msra.mxu0 %v2545_v6  ;;  %2352 = vmatmul.mubr.bf16.vlgmr.msra.gmra.mxu1 %v1175_v7 }
  0xad   : > { %2376 = vmatpush3.bf16.msra.mxu1 %v2547_v8  ;;  %2357 = vmatprep.subr.bf16.mxu0 %v2630_v4 }
  0xae   : > { %2377 = vmatprep.subr.bf16.mxu1 %v2630_v4  ;;  %2371 = vmatprep.mubr.msk.bf16.mxu0 %vm2631_vm0, %v2630_v4 }
  0xaf   : > { %2391 = vmatprep.mubr.msk.bf16.mxu1 %vm2631_vm0, %v2630_v4 }
  0xb0   : > { %2358 = vmatpush3.bf16.msra.mxu0 %v2548_v9 }
  0xb1   : > { %2378 = vmatpush3.bf16.msra.mxu1 %v2549_v10  ;;  %2359 = vmatprep.subr.bf16.mxu0 %v2630_v4 }
  0xb2   : > { %2379 = vmatprep.subr.bf16.mxu1 %v2630_v4 }
  0xb4   : > { %2360 = vmatpush3.bf16.msra.mxu0 %v2550_v11 }
  0xb5   : > { %2380 = vmatpush3.bf16.msra.mxu1 %v2551_v13  ;;  %2361 = vmatprep.subr.bf16.mxu0 %v2630_v4 }
  0xb6   : > { %2381 = vmatprep.subr.bf16.mxu1 %v2630_v4 }
  0xb8   : > { %2362 = vmatpush3.bf16.msra.mxu0 %v2552_v14 }
  0xb9   : > { %2382 = vmatpush3.bf16.msra.mxu1 %v2553_v15  ;;  %2363 = vmatprep.subr.bf16.mxu0 %v2630_v4 }
  0xba   : > { %2383 = vmatprep.subr.bf16.mxu1 %v2630_v4 }
  0xbc   : > { %2364 = vmatpush3.bf16.msra.mxu0 %v2554_v18 }
  0xbd   : > { %2384 = vmatpush3.bf16.msra.mxu1 %v2555_v19  ;;  %2365 = vmatprep.subr.bf16.mxu0 %v2630_v4 }
  0xbe   : > { %2385 = vmatprep.subr.bf16.mxu1 %v2630_v4 }
  0xc0   : > { %2366 = vmatpush3.bf16.msra.mxu0 %v2556_v21 }
  0xc1   : > { %2386 = vmatpush3.bf16.msra.mxu1 %v2557_v22  ;;  %2367 = vmatprep.subr.bf16.mxu0 %v2630_v4 }
  0xc2   : > { %2387 = vmatprep.subr.bf16.mxu1 %v2630_v4 }
  0xc4   : > { %2368 = vmatpush3.bf16.msra.mxu0 %v2558_v25 }
  0xc5   : > { %2388 = vmatpush3.bf16.msra.mxu1 %v2559_v26  ;;  %2369 = vmatprep.subr.bf16.mxu0 %v2630_v4 }
  0xc6   : > { %2389 = vmatprep.subr.bf16.mxu1 %v2630_v4 }
  0xc8   : > { %2370 = vmatpush3.bf16.msra.mxu0 %v2560_v30 }
  0xc9   : > { %2390 = vmatpush3.bf16.msra.mxu1 %v2561_v31  ;;  %2395 = vmatprep.subr.bf16.mxu0 %v2630_v4 }
  0xcb   : > { %2372 = vmatmul.mubr.bf16.vlgmr.msra.gmra.mxu0 %v2021_v34 }
  0xcc   : > { %2396 = vmatpush3.bf16.msra.mxu0 %v2563_v35  ;;  %2392 = vmatmul.mubr.bf16.vlgmr.msra.gmra.mxu1 %v1417_v36 }
  0xcd   : > { %2397 = vmatprep.subr.bf16.mxu0 %v2630_v4  ;;  %2411 = vmatprep.mubr.msk.bf16.mxu0 %vm2631_vm0, %v2630_v4 }
  0xd0   : > { %2398 = vmatpush3.bf16.msra.mxu0 %v2566_v37 }
  0xd1   : > { %2399 = vmatprep.subr.bf16.mxu0 %v2630_v4 }
  0xd4   : > { %2400 = vmatpush3.bf16.msra.mxu0 %v2567_v12 }
  0xd5   : > { %2401 = vmatprep.subr.bf16.mxu0 %v2630_v4 }
  0xd8   : > { %2402 = vmatpush3.bf16.msra.mxu0 %v2568_v38 }
  0xd9   : > { %2403 = vmatprep.subr.bf16.mxu0 %v2630_v4 }
  0xdc   : > { %2404 = vmatpush3.bf16.msra.mxu0 %v2569_v39 }
  0xdd   : > { %2405 = vmatprep.subr.bf16.mxu0 %v2630_v4 }
  0xe0   : > { %2406 = vmatpush3.bf16.msra.mxu0 %v2570_v40 }
  0xe1   : > { %2407 = vmatprep.subr.bf16.mxu0 %v2630_v4 }
  0xe4   : > { %2408 = vmatpush3.bf16.msra.mxu0 %v2571_v42  ;;  %v2081_v42 = vld [vmem:[%s284_s4] ss:$0 sm:$0xff] }
  0xe5   : > { %2409 = vmatprep.subr.bf16.mxu0 %v2630_v4 }
  0xe8   : > { %2410 = vmatpush3.bf16.msra.mxu0 %v2572_v44 }
  0xeb   : > { %2412 = vmatmul.mubr.bf16.vlgmr.msra.gmra.mxu0 %v1533_v47 }
 0x10b   : > { %v427_v48 = vpop.f32.mrf.mxu0 }
 0x10c   : > { %v517_v49 = vpop.f32.mrf.mxu1 }
 0x10d   : > { %v518_v50 = vadd.f32 %v517_v49, %v427_v48  ;;  %v2213_v51 = vpop.f32.mrf.mxu0 }
 0x10e   : > { %v2233_v52 = vpop.f32.mrf.mxu1 }
 0x10f   : > { %v430_v53 = vpop.f32.mrf.mxu0 }
 0x110   : > { %v520_v54 = vpop.f32.mrf.mxu1 }
 0x111   : > { %v521_v55 = vadd.f32 %v520_v54, %v430_v53  ;;  %v2214_v56 = vpop.f32.mrf.mxu0 }
 0x112   : > { %v2234_v57 = vpop.f32.mrf.mxu1 }
 0x12b   : > { %v632_v58 = vpop.f32.mrf.mxu0 }
 0x12c   : > { %v639_v59 = vadd.f32 %v632_v58, %v518_v50  ;;  %v763_v60 = vpop.f32.mrf.mxu1 }
 0x12d   : > { %v2253_v61 = vpop.f32.mrf.mxu0 }
 0x12e   : > { %v770_v62 = vadd.f32 %v763_v60, %v639_v59  ;;  %v2273_v4 = vpop.f32.mrf.mxu1 }
 0x12f   : > { %v635_v63 = vpop.f32.mrf.mxu0 }
 0x130   : > { %v640_v0 = vadd.f32 %v635_v63, %v521_v55  ;;  %v766_v1 = vpop.f32.mrf.mxu1 }
 0x131   : > { %v2254_v2 = vpop.f32.mrf.mxu0 }
 0x132   : > { %v771_v3 = vadd.f32 %v766_v1, %v640_v0  ;;  %v2274_v5 = vpop.f32.mrf.mxu1 }
 0x14b   : > { %v880_v6 = vpop.f32.mrf.mxu0 }
 0x14c   : > { %v887_v7 = vadd.f32 %v880_v6, %v770_v62  ;;  %v1011_v8 = vpop.f32.mrf.mxu1 }
 0x14d   : > { %v2293_v9 = vpop.f32.mrf.mxu0 }
 0x14e   : > { %v1018_v10 = vadd.f32 %v1011_v8, %v887_v7  ;;  %v2313_v11 = vpop.f32.mrf.mxu1 }
 0x14f   : > { %v883_v13 = vpop.f32.mrf.mxu0 }
 0x150   : > { %v888_v14 = vadd.f32 %v883_v13, %v771_v3  ;;  %v1014_v15 = vpop.f32.mrf.mxu1 }
 0x151   : > { %v2294_v16 = vpop.f32.mrf.mxu0 }
 0x152   : > { %v1019_v17 = vadd.f32 %v1014_v15, %v888_v14  ;;  %v2314_v18 = vpop.f32.mrf.mxu1 }
 0x16b   : > { %v1128_v19 = vpop.f32.mrf.mxu0 }
 0x16c   : > { %v1259_v20 = vpop.f32.mrf.mxu1  ;;  %v1135_v35 = vadd.f32 %v1128_v19, %v1018_v10 }
 0x16d   : > { %v2333_v21 = vpop.f32.mrf.mxu0 }
 0x16e   : > { %v2353_v22 = vpop.f32.mrf.mxu1  ;;  %v1266_v36 = vadd.f32 %v1259_v20, %v1135_v35 }
 0x16f   : > { %v1131_v23 = vpop.f32.mrf.mxu0 }
 0x170   : > { %v1262_v24 = vpop.f32.mrf.mxu1  ;;  %v1136_v37 = vadd.f32 %v1131_v23, %v1019_v17 }
 0x171   : > { %v2334_v25 = vpop.f32.mrf.mxu0 }
 0x172   : > { %v2354_v26 = vpop.f32.mrf.mxu1  ;;  %v1267_v38 = vadd.f32 %v1262_v24, %v1136_v37 }
 0x18b   : > { %v1369_v27 = vpop.f32.mrf.mxu0 }
 0x18c   : > { %v1501_v28 = vpop.f32.mrf.mxu1  ;;  %v1376_v12 = vadd.f32 %v1369_v27, %v1266_v36 }
 0x18d   : > { %v2373_v29 = vpop.f32.mrf.mxu0 }
 0x18e   : > { %v2393_v30 = vpop.f32.mrf.mxu1  ;;  %v1508_v39 = vadd.f32 %v1501_v28, %v1376_v12 }
 0x18f   : > { %v1372_v31 = vpop.f32.mrf.mxu0 }
 0x190   : > { %v1504_v32 = vpop.f32.mrf.mxu1  ;;  %v1377_v40 = vadd.f32 %v1372_v31, %v1267_v38 }
 0x191   : > { %v2374_v33 = vpop.f32.mrf.mxu0 }
 0x192   : > { %v2394_v34 = vpop.f32.mrf.mxu1  ;;  %v1509_v45 = vadd.f32 %v1504_v32, %v1377_v40 }
 0x1ab   : > { %v1617_v41 = vpop.f32.mrf.mxu0 }
 0x1ac   : > { %v1624_v43 = vadd.f32 %v1617_v41, %v1508_v39 }
 0x1ad   : > { %v2413_v44 = vpop.f32.mrf.mxu0 }
 0x1ae   : > { %v1633_v46 = vadd.f32 %v2081_v42, %v1624_v43 }
 0x1af   : > { %v1620_v47 = vpop.f32.mrf.mxu0 }
 0x1b0   : > { %v1625_v48 = vadd.f32 %v1620_v47, %v1509_v45  ;;  %v1637_v50 = vmul.f32 0.1, %v1633_v46  ;;  %vm1635_vm8 = vcmp.ge.f32.partialorder %v1633_v46, 0.0 }
 0x1b1   : > { %v2414_v49 = vpop.f32.mrf.mxu0 }
 0x1b2   : > { %v1634_v51 = vadd.f32 %v2081_v42, %v1625_v48  ;;  %v1639_v53 = vsel %vm1635_vm8, %v1633_v46, %v1637_v50 }
 0x1b4   : > { %vm1636_vm9 = vcmp.ge.f32.partialorder %v1634_v51, 0.0  ;;  %v1638_v52 = vmul.f32 0.1, %v1634_v51 }
 0x1b5   : > { %1657 = sbr.rel (!%p2700_p6) target bundleno = 450 (0x1c2), region = 77 }
 0x1b6   : > { %v1640_v54 = vsel %vm1636_vm9, %v1634_v51, %v1638_v52 }
 0x1b7   : > { %v2094_v55 = vpack.c.bf16 %v1640_v54, %v1639_v53 }
 0x1b9   : > { %2095 = vst [vmem:[%s276_s6] sm:$0xff] %v2094_v55  }
 0x1c0   : > { %v1681_v56 = vld [vmem:[%s276_s6] sm:$0xf]  ;;  %v1683_v57 = vld [vmem:[%s276_s6 + $0x4] sm:$0xf] }
 0x1c1   : > { %1682 = vst [vmem:[%s1664_s10] sm:$0xf] %v1681_v56  ;;  %1684 = vst [vmem:[%s1664_s10 + $0x20] sm:$0xf] %v1683_v57 }
 0x1c2 PF: > { %s13_s18 = sadd.s32 1, %s2628_s18   ;;  %s3018_s12 = smov %s2608_s13 }
 0x1c3   : > { %p10_p13 = scmp.ge.s32.totalorder %s13_s18, 18   ;;  %s3019_s13 = smov %s2708_s27 }
 0x1c4   : > { %s3020_s14 = smov %s2620_s16  ;;  %s3021_s15 = smov %s2624_s17 }
 0x1c5   : > { %s3022_s16 = smov %s3025_s19  ;;  %s3023_s17 = smov %s3029_s20 }
 0x1c6   :  { %12 = sbr.rel (!%p10_p13) target bundleno = 4 (0x4), region = 165 }

// kernel: discriminator_s_forward.8
= control target key start
LH: loop header
LB: loop body
LE: loop exit
PB: predicated region body
PF: predicated region fallthrough
CT: control target
= control target key end

     0   :  { %s6546_s12 = smov 0   ;;  %s6548_s13 = smov 0   ;;  %s7114_s0 = inlined_call_operand.vmem [shape: bf16[2,1,14,4096], index: 0, kind: input, shape index: {}]   ;;  %s7115_s1 = inlined_call_operand.vmem [shape: bf16[8,11,512,128], index: 1, kind: input, shape index: {}]   ;;  %s7116_s2 = inlined_call_operand.vmem [shape: f32[1,1024], index: 2, kind: input, shape index: {}]   ;;  %s7117_s3 = inlined_call_operand.vmem [shape: bf16[2,4,1024], index: 3, kind: output, shape index: {}]  }
   0x1   :  { %s6550_s14 = smov 0   ;;  %s6552_s15 = smov 0  }
   0x2   :  { %s6554_s16 = smov 0   ;;  %s6556_s17 = smov 0  }
   0x3   :  { %s6558_s18 = smov 0  }
   0x4 LB: > { %s28_s19 = sadd.s32 1, %s6516_s16  ;;  %s32_s20 = sadd.s32 1, %s6520_s17  ;;  %s6524_s18 = sphi %s6558_s18, %s13_s18   ;;  %s6520_s17 = sphi %s6556_s17, %s7123_s17   ;;  %s6516_s16 = sphi %s6554_s16, %s7122_s16   ;;  %s6512_s15 = sphi %s6552_s15, %s7121_s15   ;;  %s6508_s14 = sphi %s6550_s14, %s7120_s14   ;;  %s6504_s13 = sphi %s6548_s13, %s7119_s13   ;;  %s6500_s12 = sphi %s6546_s12, %s7118_s12  }
   0x5   : > { %p30_p0 = scmp.ge.s32.totalorder %s28_s19, 8  ;;  %p50_p1 = scmp.ne.s32.totalorder %s6504_s13, %s6500_s12 }
   0x6   : > { %p51_p2 = scmp.eq.s32.totalorder %s6524_s18, 0  ;;  %s43_s24 = sadd.s32 1, %s6504_s13 }
   0x7   : > { %s7125_s19 = smov (%p30_p0, %s28_s19), 0  ;;  %s7127_s20 = smov (!%p30_p0, %s32_s20), %s6520_s17 }
   0x8   : > { %p52_p3 = por %p51_p2, %p50_p1  ;;  %p34_p4 = scmp.ge.s32.totalorder %s7127_s20, 2 }
   0x9   : > { %s39_s21 = ssub.s32 %s6516_s16, %s7125_s19  ;;  %p4484_p6 = scmp.ge.s32.totalorder %s6524_s18, 16 }
   0xa   : > { %s7129_s20 = smov (%p34_p4, %s7127_s20), 0 }
   0xb   : > { %s36_s22 = ssub.s32 %s6520_s17, %s7129_s20  ;;  %158 = sbr.rel (%p4484_p6) target bundleno = 25 (0x19), region = 16 }
   0xc   : > { %s40_s23 = sor.u32 %s39_s21, %s36_s22 }
   0xd   : > { %p41_p5 = scmp.eq.s32.totalorder %s40_s23, 0 }
   0xf   : > { %s6597_s25 = scalar_select %p41_p5, %s6504_s13, %s43_s24  }
  0x10   : > { %161 = sbr.rel (!%p52_p3) target bundleno = 25 (0x19), region = 20  ;;  %s163_s26 = sand.u32 (%p52_p3), 1, %s6504_s13  }
  0x11   : > { %s4486_s27 = sshll.u32 (%p52_p3), %s6516_s16, 2  ;;  %s4485_s28 = sshll.u32 (%p52_p3), %s163_s26, 5 }
  0x12   : > { %s4487_s29 = sshll.u32 (%p52_p3), %s6520_s17, 6  ;;  %s165_s8 = scalar_lea.vmem (%p52_p3), [#allocation2], %s4485_s28 }
  0x13   : > { %s170_s30 = sadd.s32 (%p52_p3), %s4487_s29, %s4486_s27 }
  0x14   : > { %s4488_s4 = sshll.u32 (%p52_p3), %s170_s30, 2 }
  0x15   : > { %s172_s7 = scalar_lea.vmem %s7114_s0, %s4488_s4 }
  0x16   : > { %v185_v0 = vld [vmem:[%s172_s7] sm:$0xff]  ;;  %v187_v1 = vld [vmem:[%s172_s7 + $0x8] sm:$0xff] }
  0x17   : > { %v189_v2 = vld [vmem:[%s172_s7 + $0x80] sm:$0xff]  ;;  %186 = vst [vmem:[%s165_s8] sm:$0xff] %v185_v0  ;;  %188 = vst [vmem:[%s165_s8 + $0x8] sm:$0xff] %v187_v1  ;;  %v191_v3 = vld [vmem:[%s172_s7 + $0x88] sm:$0xff] }
  0x18   : > { %190 = vst [vmem:[%s165_s8 + $0x10] sm:$0xff] %v189_v2  ;;  %192 = vst [vmem:[%s165_s8 + $0x18] sm:$0xff] %v191_v3 }
  0x19 PF: > { %p4489_p7 = scmp.ge.s32.totalorder %s6524_s18, 1  ;;  %p211_p8 = scmp.lt.s32.totalorder %s6524_s18, 17 }
  0x1b   : > { %p212_p9 = pnand %p4489_p7, %p211_p8 }
  0x1c   : > { %p257_p10 = scmp.lt.s32.totalorder (!%p212_p9), %s6508_s14, 7  ;;  %s218_s9 = sand.u32 (!%p212_p9), 1, %s6500_s12  }
  0x1d   : > { %215 = sbr.rel (%p212_p9) target bundleno = 614 (0x266), region = 51  ;;  %s4490_s10 = sshll.u32 (!%p212_p9), %s218_s9, 5 }
  0x1e   : > { %s6614_s21 = scalar_lea.vmem (!%p212_p9), [#allocation2], %s4490_s10  ;;  %p265_p11 = scmp.lt.s32.totalorder (!%p212_p9), %s6512_s15, 1 }
  0x22   : > { %s7131_s14 = smov (!%p257_p10, %s6508_s14), 7  ;;  %v344_v4 = vld [vmem:[%s6614_s21] sm:$0x77]  ;;  %v345_v5 = vld [vmem:[%s6614_s21 + $0x8] sm:$0x77]  ;;  %s7133_s15 = smov (!%p265_p11, %s6512_s15), 1 }
  0x23   : > { %s6017_s11 = smul.u32 2816, %s7131_s14  ;;  %v4559_v6 = vcombine.high %v344_v4, %v344_v4  ;;  %v4561_v9 = vcombine.high %v345_v5, %v345_v5  ;;  %v4558_v36 = vcombine.low %v344_v4, %v344_v4  ;;  %v4560_v38 = vcombine.low %v345_v5, %v345_v5  ;;  %v6653_v53 = vld [vmem:[%s6614_s21] sm:$0x33]  ;;  %v6657_v55 = vld [vmem:[%s6614_s21 + $0x8] sm:$0x33]  ;;  %s264_s27 = scalar_lea.vmem %s7116_s2, %s7131_s14 }
  0x24   : > { %v4595_v62 = vcombine.high %v6653_v53, %v6653_v53  ;;  %v4597_v0 = vcombine.high %v6657_v55, %v6657_v55  ;;  %s4492_s28 = sshll.u32 %s7133_s15, 3 }
  0x25   : > { %s6621_s24 = scalar_lea.vmem %s7115_s1, %s6017_s11  ;;  %v429_v8 = vshrl.u32 %v4559_v6, 16  ;;  %v431_v11 = vshll.u32 %v4559_v6, 16  ;;  %v443_v13 = vshrl.u32 %v4561_v9, 16  ;;  %v445_v17 = vshll.u32 %v4561_v9, 16  ;;  %s274_s29 = sadd.s32 %s4492_s28, %s7131_s14 }
  0x26   : > { %v6074_v7 = vld [vmem:[%s6621_s24 + $0x178] sm:$0xff]   ;;  %v6078_v16 = vld [vmem:[%s6621_s24 + $0x170] sm:$0xff]   ;;  %v6082_v23 = vld [vmem:[%s6621_s24 + $0x168] sm:$0xff]   ;;  %v424_v42 = vshll.u32 %v4558_v36, 16  ;;  %v438_v44 = vshll.u32 %v4560_v38, 16  ;;  %v422_v46 = vshrl.u32 %v4558_v36, 16 }
  0x27   : > { %v6075_v10 = vld [vmem:[%s6621_s24 + $0x1f8] sm:$0xff]   ;;  %5533 = vmatprep.subr.bf16.mxu0 %v6074_v7  ;;  %v433_v15 = vrot.slane %v431_v11, 1  ;;  %v6079_v18 = vld [vmem:[%s6621_s24 + $0x1f0] sm:$0xff]   ;;  %v447_v21 = vrot.slane %v445_v17, 1  ;;  %v6083_v25 = vld [vmem:[%s6621_s24 + $0x1e8] sm:$0xff]   ;;  %v436_v48 = vshrl.u32 %v4560_v38, 16 }
  0x28   : > { %v6076_v12 = vld [vmem:[%s6621_s24 + $0x138] sm:$0xff]   ;;  %5555 = vmatprep.subr.bf16.mxu1 %v6075_v10  ;;  %v6080_v20 = vld [vmem:[%s6621_s24 + $0x130] sm:$0xff]   ;;  %v6084_v26 = vld [vmem:[%s6621_s24 + $0x128] sm:$0xff]   ;;  %v426_v50 = vrot.slane %v424_v42, 1  ;;  %v440_v52 = vrot.slane %v438_v44, 1  ;;  %s4493_s30 = sshll.u32 %s274_s29, 1 }
  0x29   : > { %v6077_v14 = vld [vmem:[%s6621_s24 + $0x1b8] sm:$0xff]   ;;  %5534 = vmatpush3.bf16.msra.mxu0 %v6076_v12  ;;  %v434_v19 = vor.u32 %v433_v15, %v429_v8  ;;  %v6081_v22 = vld [vmem:[%s6621_s24 + $0x1b0] sm:$0xff]   ;;  %v448_v24 = vor.u32 %v447_v21, %v443_v13  ;;  %v6085_v27 = vld [vmem:[%s6621_s24 + $0x1a8] sm:$0xff]   ;;  %s276_s6 = scalar_lea.vmem %s7117_s3, %s4493_s30 }
  0x2a   : > { %5556 = vmatpush3.bf16.msra.mxu1 %v6077_v14  ;;  %5535 = vmatprep.subr.bf16.mxu0 %v6078_v16  ;;  %v6086_v28 = vld [vmem:[%s6621_s24 + $0x160] sm:$0xff]   ;;  %v6090_v32 = vld [vmem:[%s6621_s24 + $0x158] sm:$0xff]   ;;  %v6094_v37 = vld [vmem:[%s6621_s24 + $0x150] sm:$0xff]   ;;  %v427_v58 = vor.u32 %v426_v50, %v422_v46  ;;  %v441_v59 = vor.u32 %v440_v52, %v436_v48 }
  0x2b   : > { %5557 = vmatprep.subr.bf16.mxu1 %v6079_v18  ;;  %677 = vmatprep.mubr.bf16.mxu0 %v434_v19  ;;  %v6087_v29 = vld [vmem:[%s6621_s24 + $0x1e0] sm:$0xff]   ;;  %v6091_v33 = vld [vmem:[%s6621_s24 + $0x1d8] sm:$0xff]   ;;  %v6095_v39 = vld [vmem:[%s6621_s24 + $0x1d0] sm:$0xff]  }
  0x2c   : > { %717 = vmatprep.mubr.bf16.mxu1 %v448_v24  ;;  %v6088_v30 = vld [vmem:[%s6621_s24 + $0x120] sm:$0xff]   ;;  %v6092_v34 = vld [vmem:[%s6621_s24 + $0x118] sm:$0xff]   ;;  %v6096_v40 = vld [vmem:[%s6621_s24 + $0x110] sm:$0xff]  }
  0x2d   : > { %5536 = vmatpush3.bf16.msra.mxu0 %v6080_v20  ;;  %v6089_v31 = vld [vmem:[%s6621_s24 + $0x1a0] sm:$0xff]   ;;  %v6093_v35 = vld [vmem:[%s6621_s24 + $0x198] sm:$0xff]   ;;  %v6097_v41 = vld [vmem:[%s6621_s24 + $0x190] sm:$0xff]  }
  0x2e   : > { %5558 = vmatpush3.bf16.msra.mxu1 %v6081_v22  ;;  %5537 = vmatprep.subr.bf16.mxu0 %v6082_v23  ;;  %v6098_v43 = vld [vmem:[%s6621_s24 + $0x148] sm:$0xff]   ;;  %v6102_v51 = vld [vmem:[%s6621_s24 + $0x140] sm:$0xff]   ;;  %v6110_v60 = vld [vmem:[%s6621_s24 + $0x78] sm:$0xff]  }
  0x2f   : > { %5559 = vmatprep.subr.bf16.mxu1 %v6083_v25  ;;  %v6099_v45 = vld [vmem:[%s6621_s24 + $0x1c8] sm:$0xff]   ;;  %v6103_v54 = vld [vmem:[%s6621_s24 + $0x1c0] sm:$0xff]   ;;  %v6111_v61 = vld [vmem:[%s6621_s24 + $0xf8] sm:$0xff]  }
  0x30   : > { %v6100_v47 = vld [vmem:[%s6621_s24 + $0x108] sm:$0xff]   ;;  %v6104_v56 = vld [vmem:[%s6621_s24 + $0x100] sm:$0xff]   ;;  %v6112_v63 = vld [vmem:[%s6621_s24 + $0x38] sm:$0xff]  }
  0x31   : > { %5538 = vmatpush3.bf16.msra.mxu0 %v6084_v26  ;;  %v6101_v49 = vld [vmem:[%s6621_s24 + $0x188] sm:$0xff]   ;;  %v6105_v57 = vld [vmem:[%s6621_s24 + $0x180] sm:$0xff]   ;;  %v6113_v1 = vld [vmem:[%s6621_s24 + $0xb8] sm:$0xff]  }
  0x32   : > { %5560 = vmatpush3.bf16.msra.mxu1 %v6085_v27  ;;  %5539 = vmatprep.subr.bf16.mxu0 %v6086_v28  ;;  %v6114_v2 = vld [vmem:[%s6621_s24 + $0x70] sm:$0xff]   ;;  %v6118_v6 = vld [vmem:[%s6621_s24 + $0x68] sm:$0xff]   ;;  %v6122_v10 = vld [vmem:[%s6621_s24 + $0x60] sm:$0xff]  }
  0x33   : > { %5561 = vmatprep.subr.bf16.mxu1 %v6087_v29  ;;  %v6115_v3 = vld [vmem:[%s6621_s24 + $0xf0] sm:$0xff]   ;;  %v6119_v7 = vld [vmem:[%s6621_s24 + $0xe8] sm:$0xff]   ;;  %v6123_v11 = vld [vmem:[%s6621_s24 + $0xe0] sm:$0xff]  }
  0x34   : > { %v6116_v4 = vld [vmem:[%s6621_s24 + $0x30] sm:$0xff]   ;;  %v6120_v8 = vld [vmem:[%s6621_s24 + $0x28] sm:$0xff]   ;;  %v6124_v12 = vld [vmem:[%s6621_s24 + $0x20] sm:$0xff]  }
  0x35   : > { %5540 = vmatpush3.bf16.msra.mxu0 %v6088_v30  ;;  %v6117_v5 = vld [vmem:[%s6621_s24 + $0xb0] sm:$0xff]   ;;  %v6121_v9 = vld [vmem:[%s6621_s24 + $0xa8] sm:$0xff]   ;;  %v6125_v13 = vld [vmem:[%s6621_s24 + $0xa0] sm:$0xff]  }
  0x36   : > { %5562 = vmatpush3.bf16.msra.mxu1 %v6089_v31  ;;  %5541 = vmatprep.subr.bf16.mxu0 %v6090_v32  ;;  %v6126_v14 = vld [vmem:[%s6621_s24 + $0x58] sm:$0xff]   ;;  %v6130_v18 = vld [vmem:[%s6621_s24 + $0x50] sm:$0xff]   ;;  %v6134_v22 = vld [vmem:[%s6621_s24 + $0x48] sm:$0xff]  }
  0x37   : > { %5563 = vmatprep.subr.bf16.mxu1 %v6091_v33  ;;  %v6127_v15 = vld [vmem:[%s6621_s24 + $0xd8] sm:$0xff]   ;;  %v6131_v19 = vld [vmem:[%s6621_s24 + $0xd0] sm:$0xff]   ;;  %v6691_v23 = vld [vmem:[%s6614_s21] sm:$0x66] }
  0x38   : > { %v6128_v16 = vld [vmem:[%s6621_s24 + $0x18] sm:$0xff]   ;;  %v6132_v20 = vld [vmem:[%s6621_s24 + $0x10] sm:$0xff]   ;;  %v6135_v24 = vld [vmem:[%s6621_s24 + $0xc8] sm:$0xff]   ;;  %v4695_v30 = vcombine.high %v6691_v23, %v6691_v23 }
  0x39   : > { %5542 = vmatpush3.bf16.msra.mxu0 %v6092_v34  ;;  %v6129_v17 = vld [vmem:[%s6621_s24 + $0x98] sm:$0xff]   ;;  %v6133_v21 = vld [vmem:[%s6621_s24 + $0x90] sm:$0xff]   ;;  %v6695_v25 = vld [vmem:[%s6614_s21 + $0x8] sm:$0x66]  ;;  %v4594_v34 = vcombine.low %v6653_v53, %v6653_v53 }
  0x3a   : > { %5564 = vmatpush3.bf16.msra.mxu1 %v6093_v35  ;;  %5543 = vmatprep.subr.bf16.mxu0 %v6094_v37  ;;  %v6136_v26 = vld [vmem:[%s6621_s24 + $0x8] sm:$0xff]   ;;  %v6138_v28 = vld [vmem:[%s6621_s24 + $0x40] sm:$0xff]   ;;  %v4697_v32 = vcombine.high %v6695_v25, %v6695_v25  ;;  %v4596_v35 = vcombine.low %v6657_v55, %v6657_v55  ;;  %v6146_v36 = vld [vmem:[%s6621_s24 + $0x278] sm:$0xff]   ;;  %v1089_v38 = vrot.slane %v4695_v30, 1 }
  0x3b   : > { %5565 = vmatprep.subr.bf16.mxu1 %v6095_v39  ;;  %v6137_v27 = vld [vmem:[%s6621_s24 + $0x88] sm:$0xff]   ;;  %v6139_v29 = vld [vmem:[%s6621_s24 + $0xc0] sm:$0xff]   ;;  %v6147_v37 = vld [vmem:[%s6621_s24 + $0x2f8] sm:$0xff]  }
  0x3c   : > { %v6140_v31 = vld [vmem:[%s6621_s24] sm:$0xff]   ;;  %v6148_v39 = vld [vmem:[%s6621_s24 + $0x238] sm:$0xff]   ;;  %v6150_v42 = vld [vmem:[%s6621_s24 + $0x270] sm:$0xff]  }
  0x3d   : > { %5544 = vmatpush3.bf16.msra.mxu0 %v6096_v40  ;;  %v6141_v33 = vld [vmem:[%s6621_s24 + $0x80] sm:$0xff]   ;;  %v1091_v40 = vrot.slane %v4697_v32, 1  ;;  %v6152_v44 = vld [vmem:[%s6621_s24 + $0x230] sm:$0xff]   ;;  %v6154_v46 = vld [vmem:[%s6621_s24 + $0x268] sm:$0xff]  }
  0x3e   : > { %5566 = vmatpush3.bf16.msra.mxu1 %v6097_v41  ;;  %5545 = vmatprep.subr.bf16.mxu0 %v6098_v43  ;;  %v6149_v41 = vld [vmem:[%s6621_s24 + $0x2b8] sm:$0xff]   ;;  %v6151_v43 = vld [vmem:[%s6621_s24 + $0x2f0] sm:$0xff]   ;;  %v6156_v48 = vld [vmem:[%s6621_s24 + $0x228] sm:$0xff]  }
  0x3f   : > { %5567 = vmatprep.subr.bf16.mxu1 %v6099_v45  ;;  %v6153_v45 = vld [vmem:[%s6621_s24 + $0x2b0] sm:$0xff]   ;;  %v6158_v50 = vld [vmem:[%s6621_s24 + $0x260] sm:$0xff]   ;;  %v6162_v55 = vld [vmem:[%s6621_s24 + $0x258] sm:$0xff]  }
  0x40   : > { %v6160_v52 = vld [vmem:[%s6621_s24 + $0x220] sm:$0xff]   ;;  %v6188_v30 = vld [vmem:[%s6621_s24 + $0x330] sm:$0xff]   ;;  %v6190_v32 = vld [vmem:[%s6621_s24 + $0x368] sm:$0xff]  }
  0x41   : > { %5546 = vmatpush3.bf16.msra.mxu0 %v6100_v47  ;;  %v6155_v47 = vld [vmem:[%s6621_s24 + $0x2e8] sm:$0xff]   ;;  %v6727_v53 = vld [vmem:[%s6614_s21] sm:$0xee] }
  0x42   : > { %5568 = vmatpush3.bf16.msra.mxu1 %v6101_v49  ;;  %5547 = vmatprep.subr.bf16.mxu0 %v6102_v51  ;;  %v6157_v49 = vld [vmem:[%s6621_s24 + $0x2a8] sm:$0xff]   ;;  %v6159_v51 = vld [vmem:[%s6621_s24 + $0x2e0] sm:$0xff]  }
  0x43   : > { %5569 = vmatprep.subr.bf16.mxu1 %v6103_v54  ;;  %v6161_v54 = vld [vmem:[%s6621_s24 + $0x2a0] sm:$0xff]  }
  0x45   : > { %5548 = vmatpush3.bf16.msra.mxu0 %v6104_v56  ;;  %v6732_v56 = vld [vmem:[%s6614_s21 + $0x8] sm:$0xee] }
  0x46   : > { %5570 = vmatpush3.bf16.msra.mxu1 %v6105_v57  ;;  %5577 = vmatprep.subr.bf16.mxu0 %v6110_v60  ;;  %v6163_v57 = vld [vmem:[%s6621_s24 + $0x2d8] sm:$0xff]   ;;  %v4795_v60 = vcombine.high %v6727_v53, %v6727_v53 }
  0x47   : > { %5599 = vmatprep.subr.bf16.mxu1 %v6111_v61  ;;  %v6166_v61 = vld [vmem:[%s6621_s24 + $0x250] sm:$0xff]  }
  0x48   : > { %678 = vmatmul.mubr.bf16.vlgmr.msra.gmra.mxu0 %v427_v58  ;;  %v6164_v58 = vld [vmem:[%s6621_s24 + $0x218] sm:$0xff]  }
  0x49   : > { %718 = vmatmul.mubr.bf16.vlgmr.msra.gmra.mxu1 %v441_v59  ;;  %5578 = vmatpush3.bf16.msra.mxu0 %v6112_v63  ;;  %v6165_v59 = vld [vmem:[%s6621_s24 + $0x298] sm:$0xff]   ;;  %v4797_v63 = vcombine.high %v6732_v56, %v6732_v56 }
  0x4a   : > { %5600 = vmatpush3.bf16.msra.mxu1 %v6113_v1  ;;  %963 = vmatprep.mubr.bf16.mxu0 %v4595_v62  ;;  %v6167_v62 = vld [vmem:[%s6621_s24 + $0x2d0] sm:$0xff]  }
  0x4b   : > { %5579 = vmatprep.subr.bf16.mxu0 %v6114_v2  ;;  %1003 = vmatprep.mubr.bf16.mxu1 %v4597_v0  ;;  %v6168_v0 = vld [vmem:[%s6621_s24 + $0x210] sm:$0xff]   ;;  %v1455_v2 = vshrl.u32 %v4795_v60, 16 }
  0x4c   : > { %5601 = vmatprep.subr.bf16.mxu1 %v6115_v3  ;;  %v6169_v1 = vld [vmem:[%s6621_s24 + $0x290] sm:$0xff]   ;;  %v6170_v3 = vld [vmem:[%s6621_s24 + $0x248] sm:$0xff]  }
  0x4d   : > { %5580 = vmatpush3.bf16.msra.mxu0 %v6116_v4  ;;  %v1458_v4 = vshll.u32 %v4795_v60, 16 }
  0x4e   : > { %5602 = vmatpush3.bf16.msra.mxu1 %v6117_v5  ;;  %5581 = vmatprep.subr.bf16.mxu0 %v6118_v6  ;;  %v6171_v5 = vld [vmem:[%s6621_s24 + $0x2c8] sm:$0xff]   ;;  %v1471_v6 = vshrl.u32 %v4797_v63, 16 }
  0x4f   : > { %5603 = vmatprep.subr.bf16.mxu1 %v6119_v7  ;;  %v6172_v7 = vld [vmem:[%s6621_s24 + $0x208] sm:$0xff]  }
  0x51   : > { %5582 = vmatpush3.bf16.msra.mxu0 %v6120_v8  ;;  %v1474_v8 = vshll.u32 %v4797_v63, 16  ;;  %v6211_v63 = vld [vmem:[%s6621_s24 + $0x3c0] sm:$0xff]  }
  0x52   : > { %5604 = vmatpush3.bf16.msra.mxu1 %v6121_v9  ;;  %5583 = vmatprep.subr.bf16.mxu0 %v6122_v10  ;;  %v6173_v9 = vld [vmem:[%s6621_s24 + $0x288] sm:$0xff]   ;;  %v4694_v10 = vcombine.low %v6691_v23, %v6691_v23  ;;  %v6183_v23 = vld [vmem:[%s6621_s24 + $0x3f8] sm:$0xff]  }
  0x53   : > { %5605 = vmatprep.subr.bf16.mxu1 %v6123_v11  ;;  %v1457_v11 = vrot.slane %v1455_v2, 1 }
  0x55   : > { %5584 = vmatpush3.bf16.msra.mxu0 %v6124_v12  ;;  %v6174_v12 = vld [vmem:[%s6621_s24 + $0x240] sm:$0xff]  }
  0x56   : > { %5606 = vmatpush3.bf16.msra.mxu1 %v6125_v13  ;;  %5585 = vmatprep.subr.bf16.mxu0 %v6126_v14  ;;  %v4696_v13 = vcombine.low %v6695_v25, %v6695_v25  ;;  %v1460_v14 = vrot.slane %v1458_v4, 2  ;;  %v6184_v25 = vld [vmem:[%s6621_s24 + $0x338] sm:$0xff]  }
  0x57   : > { %5607 = vmatprep.subr.bf16.mxu1 %v6127_v15  ;;  %v6175_v15 = vld [vmem:[%s6621_s24 + $0x2c0] sm:$0xff]   ;;  %v6218_v4 = vld [vmem:[%s6621_s24 + $0x478] sm:$0xff]  }
  0x59   : > { %5586 = vmatpush3.bf16.msra.mxu0 %v6128_v16  ;;  %v1473_v16 = vrot.slane %v1471_v6, 1  ;;  %v6220_v6 = vld [vmem:[%s6621_s24 + $0x438] sm:$0xff]  }
  0x5a   : > { %5608 = vmatpush3.bf16.msra.mxu1 %v6129_v17  ;;  %5587 = vmatprep.subr.bf16.mxu0 %v6130_v18  ;;  %v6176_v17 = vld [vmem:[%s6621_s24 + $0x200] sm:$0xff]   ;;  %v1476_v18 = vrot.slane %v1474_v8, 2  ;;  %v6222_v8 = vld [vmem:[%s6621_s24 + $0x470] sm:$0xff]  }
  0x5b   : > { %5609 = vmatprep.subr.bf16.mxu1 %v6131_v19  ;;  %v6177_v19 = vld [vmem:[%s6621_s24 + $0x280] sm:$0xff]  }
  0x5d   : > { %5588 = vmatpush3.bf16.msra.mxu0 %v6132_v20  ;;  %v1088_v20 = vrot.slane %v4694_v10, 1  ;;  %v6224_v10 = vld [vmem:[%s6621_s24 + $0x430] sm:$0xff]  }
  0x5e   : > { %5610 = vmatpush3.bf16.msra.mxu1 %v6133_v21  ;;  %5589 = vmatprep.subr.bf16.mxu0 %v6134_v22  ;;  %v1090_v21 = vrot.slane %v4696_v13, 1  ;;  %v6182_v22 = vld [vmem:[%s6621_s24 + $0x378] sm:$0xff]   ;;  %v6227_v13 = vld [vmem:[%s6621_s24 + $0x4e8] sm:$0xff]  }
  0x5f   : > { %5611 = vmatprep.subr.bf16.mxu1 %v6135_v24  ;;  %v1461_v24 = vor.u32 %v1460_v14, %v1457_v11  ;;  %v6225_v11 = vld [vmem:[%s6621_s24 + $0x4b0] sm:$0xff]   ;;  %v6228_v14 = vld [vmem:[%s6621_s24 + $0x428] sm:$0xff]  }
  0x61   : > { %5590 = vmatpush3.bf16.msra.mxu0 %v6136_v26  ;;  %v1477_v26 = vor.u32 %v1476_v18, %v1473_v16  ;;  %v6230_v16 = vld [vmem:[%s6621_s24 + $0x460] sm:$0xff]  }
  0x62   : > { %5612 = vmatpush3.bf16.msra.mxu1 %v6137_v27  ;;  %5591 = vmatprep.subr.bf16.mxu0 %v6138_v28  ;;  %v6185_v27 = vld [vmem:[%s6621_s24 + $0x3b8] sm:$0xff]   ;;  %v6186_v28 = vld [vmem:[%s6621_s24 + $0x370] sm:$0xff]   ;;  %v6232_v18 = vld [vmem:[%s6621_s24 + $0x420] sm:$0xff]  }
  0x63   : > { %5613 = vmatprep.subr.bf16.mxu1 %v6139_v29  ;;  %v6187_v29 = vld [vmem:[%s6621_s24 + $0x3f0] sm:$0xff]  }
  0x65   : > { %5592 = vmatpush3.bf16.msra.mxu0 %v6140_v31  ;;  %v6189_v31 = vld [vmem:[%s6621_s24 + $0x3b0] sm:$0xff]  }
  0x66   : > { %5614 = vmatpush3.bf16.msra.mxu1 %v6141_v33  ;;  %5621 = vmatprep.subr.bf16.mxu0 %v6146_v36  ;;  %v6191_v33 = vld [vmem:[%s6621_s24 + $0x3e8] sm:$0xff]   ;;  %v6194_v36 = vld [vmem:[%s6621_s24 + $0x360] sm:$0xff]  }
  0x67   : > { %5643 = vmatprep.subr.bf16.mxu1 %v6147_v37  ;;  %v6195_v37 = vld [vmem:[%s6621_s24 + $0x3e0] sm:$0xff]  }
  0x68   : > { %964 = vmatmul.mubr.bf16.vlgmr.msra.gmra.mxu0 %v4594_v34  ;;  %v6192_v34 = vld [vmem:[%s6621_s24 + $0x328] sm:$0xff]  }
  0x69   : > { %1004 = vmatmul.mubr.bf16.vlgmr.msra.gmra.mxu1 %v4596_v35  ;;  %5622 = vmatpush3.bf16.msra.mxu0 %v6148_v39  ;;  %v6193_v35 = vld [vmem:[%s6621_s24 + $0x3a8] sm:$0xff]   ;;  %v6197_v39 = vld [vmem:[%s6621_s24 + $0x3a0] sm:$0xff]  }
  0x6a   : > { %5644 = vmatpush3.bf16.msra.mxu1 %v6149_v41  ;;  %1320 = vmatprep.mubr.bf16.mxu0 %v1089_v38  ;;  %v6196_v38 = vld [vmem:[%s6621_s24 + $0x320] sm:$0xff]   ;;  %v6199_v41 = vld [vmem:[%s6621_s24 + $0x3d8] sm:$0xff]  }
  0x6b   : > { %5623 = vmatprep.subr.bf16.mxu0 %v6150_v42  ;;  %1360 = vmatprep.mubr.bf16.mxu1 %v1091_v40  ;;  %v6198_v40 = vld [vmem:[%s6621_s24 + $0x358] sm:$0xff]   ;;  %v4794_v42 = vcombine.low %v6727_v53, %v6727_v53  ;;  %v6206_v53 = vld [vmem:[%s6621_s24 + $0x348] sm:$0xff]  }
  0x6c   : > { %5645 = vmatprep.subr.bf16.mxu1 %v6151_v43  ;;  %v6200_v43 = vld [vmem:[%s6621_s24 + $0x318] sm:$0xff]  }
  0x6d   : > { %5624 = vmatpush3.bf16.msra.mxu0 %v6152_v44  ;;  %v6201_v44 = vld [vmem:[%s6621_s24 + $0x398] sm:$0xff]  }
  0x6e   : > { %5646 = vmatpush3.bf16.msra.mxu1 %v6153_v45  ;;  %5625 = vmatprep.subr.bf16.mxu0 %v6154_v46  ;;  %v4796_v45 = vcombine.low %v6732_v56, %v6732_v56  ;;  %v6202_v46 = vld [vmem:[%s6621_s24 + $0x350] sm:$0xff]  }
  0x6f   : > { %5647 = vmatprep.subr.bf16.mxu1 %v6155_v47  ;;  %v6203_v47 = vld [vmem:[%s6621_s24 + $0x3d0] sm:$0xff]  }
  0x71   : > { %5626 = vmatpush3.bf16.msra.mxu0 %v6156_v48  ;;  %v1447_v48 = vshrl.u32 %v4794_v42, 16 }
  0x72   : > { %5648 = vmatpush3.bf16.msra.mxu1 %v6157_v49  ;;  %5627 = vmatprep.subr.bf16.mxu0 %v6158_v50  ;;  %v6204_v49 = vld [vmem:[%s6621_s24 + $0x310] sm:$0xff]   ;;  %v1450_v50 = vshll.u32 %v4794_v42, 16  ;;  %v6254_v42 = vld [vmem:[%s6621_s24 + $0x578] sm:$0xff]  }
  0x73   : > { %5649 = vmatprep.subr.bf16.mxu1 %v6159_v51  ;;  %v6205_v51 = vld [vmem:[%s6621_s24 + $0x390] sm:$0xff]   ;;  %v1449_v56 = vrot.slane %v1447_v48, 1  ;;  %v6256_v48 = vld [vmem:[%s6621_s24 + $0x538] sm:$0xff]  }
  0x75   : > { %5628 = vmatpush3.bf16.msra.mxu0 %v6160_v52  ;;  %v1463_v52 = vshrl.u32 %v4796_v45, 16 }
  0x76   : > { %5650 = vmatpush3.bf16.msra.mxu1 %v6161_v54  ;;  %5629 = vmatprep.subr.bf16.mxu0 %v6162_v55  ;;  %v1466_v54 = vshll.u32 %v4796_v45, 16  ;;  %v6207_v55 = vld [vmem:[%s6621_s24 + $0x3c8] sm:$0xff]  }
  0x77   : > { %5651 = vmatprep.subr.bf16.mxu1 %v6163_v57  ;;  %v6208_v57 = vld [vmem:[%s6621_s24 + $0x308] sm:$0xff]   ;;  %v1465_v60 = vrot.slane %v1463_v52, 1  ;;  %v6260_v52 = vld [vmem:[%s6621_s24 + $0x530] sm:$0xff]  }
  0x79   : > { %5630 = vmatpush3.bf16.msra.mxu0 %v6164_v58  ;;  %v1452_v58 = vrot.slane %v1450_v50, 2  ;;  %v6258_v50 = vld [vmem:[%s6621_s24 + $0x570] sm:$0xff]  }
  0x7a   : > { %5652 = vmatpush3.bf16.msra.mxu1 %v6165_v59  ;;  %5631 = vmatprep.subr.bf16.mxu0 %v6166_v61  ;;  %v6209_v59 = vld [vmem:[%s6621_s24 + $0x388] sm:$0xff]   ;;  %v6210_v61 = vld [vmem:[%s6621_s24 + $0x340] sm:$0xff]  }
  0x7b   : > { %5653 = vmatprep.subr.bf16.mxu1 %v6167_v62  ;;  %v1468_v62 = vrot.slane %v1466_v54, 2  ;;  %v1453_v2 = vor.u32 %v1452_v58, %v1449_v56  ;;  %v6262_v54 = vld [vmem:[%s6621_s24 + $0x568] sm:$0xff]   ;;  %v6266_v58 = vld [vmem:[%s6621_s24 + $0x560] sm:$0xff]  }
  0x7c   : > { %v6264_v56 = vld [vmem:[%s6621_s24 + $0x528] sm:$0xff]  }
  0x7d   : > { %5632 = vmatpush3.bf16.msra.mxu0 %v6168_v0  ;;  %v6212_v0 = vld [vmem:[%s6621_s24 + $0x300] sm:$0xff]  }
  0x7e   : > { %5654 = vmatpush3.bf16.msra.mxu1 %v6169_v1  ;;  %5633 = vmatprep.subr.bf16.mxu0 %v6170_v3  ;;  %v6213_v1 = vld [vmem:[%s6621_s24 + $0x380] sm:$0xff]   ;;  %v1469_v3 = vor.u32 %v1468_v62, %v1465_v60  ;;  %v6270_v62 = vld [vmem:[%s6621_s24 + $0x558] sm:$0xff]  }
  0x7f   : > { %5655 = vmatprep.subr.bf16.mxu1 %v6171_v5  ;;  %v6219_v5 = vld [vmem:[%s6621_s24 + $0x4f8] sm:$0xff]   ;;  %v6268_v60 = vld [vmem:[%s6621_s24 + $0x520] sm:$0xff]  }
  0x81   : > { %5634 = vmatpush3.bf16.msra.mxu0 %v6172_v7  ;;  %v6221_v7 = vld [vmem:[%s6621_s24 + $0x4b8] sm:$0xff]  }
  0x82   : > { %5656 = vmatpush3.bf16.msra.mxu1 %v6173_v9  ;;  %5635 = vmatprep.subr.bf16.mxu0 %v6174_v12  ;;  %v6223_v9 = vld [vmem:[%s6621_s24 + $0x4f0] sm:$0xff]   ;;  %v6226_v12 = vld [vmem:[%s6621_s24 + $0x468] sm:$0xff]  }
  0x83   : > { %5657 = vmatprep.subr.bf16.mxu1 %v6175_v15  ;;  %v6229_v15 = vld [vmem:[%s6621_s24 + $0x4a8] sm:$0xff]  }
  0x85   : > { %5636 = vmatpush3.bf16.msra.mxu0 %v6176_v17  ;;  %v6231_v17 = vld [vmem:[%s6621_s24 + $0x4e0] sm:$0xff]  }
  0x86   : > { %5658 = vmatpush3.bf16.msra.mxu1 %v6177_v19  ;;  %5665 = vmatprep.subr.bf16.mxu0 %v6182_v22  ;;  %v6233_v19 = vld [vmem:[%s6621_s24 + $0x4a0] sm:$0xff]   ;;  %v6236_v22 = vld [vmem:[%s6621_s24 + $0x418] sm:$0xff]  }
  0x87   : > { %5687 = vmatprep.subr.bf16.mxu1 %v6183_v23  ;;  %v6237_v23 = vld [vmem:[%s6621_s24 + $0x498] sm:$0xff]  }
  0x88   : > { %1321 = vmatmul.mubr.bf16.vlgmr.msra.gmra.mxu0 %v1088_v20  ;;  %v6234_v20 = vld [vmem:[%s6621_s24 + $0x458] sm:$0xff]  }
  0x89   : > { %1361 = vmatmul.mubr.bf16.vlgmr.msra.gmra.mxu1 %v1090_v21  ;;  %5666 = vmatpush3.bf16.msra.mxu0 %v6184_v25  ;;  %v6235_v21 = vld [vmem:[%s6621_s24 + $0x4d8] sm:$0xff]   ;;  %v6239_v25 = vld [vmem:[%s6621_s24 + $0x4d0] sm:$0xff]  }
  0x8a   : > { %5688 = vmatpush3.bf16.msra.mxu1 %v6185_v27  ;;  %1706 = vmatprep.mubr.bf16.mxu0 %v1461_v24  ;;  %v6238_v24 = vld [vmem:[%s6621_s24 + $0x450] sm:$0xff]  }
  0x8b   : > { %5667 = vmatprep.subr.bf16.mxu0 %v6186_v28  ;;  %1746 = vmatprep.mubr.bf16.mxu1 %v1477_v26  ;;  %v6240_v26 = vld [vmem:[%s6621_s24 + $0x410] sm:$0xff]   ;;  %v6242_v28 = vld [vmem:[%s6621_s24 + $0x448] sm:$0xff]  }
  0x8c   : > { %5689 = vmatprep.subr.bf16.mxu1 %v6187_v29  ;;  %v6241_v27 = vld [vmem:[%s6621_s24 + $0x490] sm:$0xff]   ;;  %v6243_v29 = vld [vmem:[%s6621_s24 + $0x4c8] sm:$0xff]  }
  0x8d   : > { %5668 = vmatpush3.bf16.msra.mxu0 %v6188_v30  ;;  %v6244_v30 = vld [vmem:[%s6621_s24 + $0x408] sm:$0xff]  }
  0x8e   : > { %5690 = vmatpush3.bf16.msra.mxu1 %v6189_v31  ;;  %5669 = vmatprep.subr.bf16.mxu0 %v6190_v32  ;;  %v6245_v31 = vld [vmem:[%s6621_s24 + $0x488] sm:$0xff]   ;;  %v6246_v32 = vld [vmem:[%s6621_s24 + $0x440] sm:$0xff]  }
  0x8f   : > { %5691 = vmatprep.subr.bf16.mxu1 %v6191_v33  ;;  %v6247_v33 = vld [vmem:[%s6621_s24 + $0x4c0] sm:$0xff]  }
  0x91   : > { %5670 = vmatpush3.bf16.msra.mxu0 %v6192_v34  ;;  %v6248_v34 = vld [vmem:[%s6621_s24 + $0x400] sm:$0xff]  }
  0x92   : > { %5692 = vmatpush3.bf16.msra.mxu1 %v6193_v35  ;;  %5671 = vmatprep.subr.bf16.mxu0 %v6194_v36  ;;  %v6249_v35 = vld [vmem:[%s6621_s24 + $0x480] sm:$0xff]  }
  0x93   : > { %5693 = vmatprep.subr.bf16.mxu1 %v6195_v37  ;;  %v1755_v36 = vld [vmem:[%s6614_s21] sm:$0xcc]  ;;  %v1756_v37 = vld [vmem:[%s6614_s21 + $0x8] sm:$0xcc] }
  0x95   : > { %5672 = vmatpush3.bf16.msra.mxu0 %v6196_v38  ;;  %v4894_v38 = vcombine.low %v1755_v36, %v1755_v36 }
  0x96   : > { %5694 = vmatpush3.bf16.msra.mxu1 %v6197_v39  ;;  %5673 = vmatprep.subr.bf16.mxu0 %v6198_v40  ;;  %v4895_v39 = vcombine.high %v1755_v36, %v1755_v36  ;;  %v4896_v40 = vcombine.low %v1756_v37, %v1756_v37  ;;  %v6292_v36 = vld [vmem:[%s6621_s24 + $0x638] sm:$0xff]  }
  0x97   : > { %5695 = vmatprep.subr.bf16.mxu1 %v6199_v41  ;;  %v4897_v41 = vcombine.high %v1756_v37, %v1756_v37 }
  0x98   : > { %v1833_v45 = vrot.slane %v4895_v39, 2 }
  0x99   : > { %5674 = vmatpush3.bf16.msra.mxu0 %v6200_v43  ;;  %v6255_v43 = vld [vmem:[%s6621_s24 + $0x5f8] sm:$0xff]  }
  0x9a   : > { %5696 = vmatpush3.bf16.msra.mxu1 %v6201_v44  ;;  %5675 = vmatprep.subr.bf16.mxu0 %v6202_v46  ;;  %v1832_v44 = vrot.slane %v4894_v38, 2  ;;  %v1834_v46 = vrot.slane %v4896_v40, 2 }
  0x9b   : > { %5697 = vmatprep.subr.bf16.mxu1 %v6203_v47  ;;  %v1835_v47 = vrot.slane %v4897_v41, 2 }
  0x9d   : > { %5676 = vmatpush3.bf16.msra.mxu0 %v6204_v49  ;;  %v6257_v49 = vld [vmem:[%s6621_s24 + $0x5b8] sm:$0xff]  }
  0x9e   : > { %5698 = vmatpush3.bf16.msra.mxu1 %v6205_v51  ;;  %5677 = vmatprep.subr.bf16.mxu0 %v6206_v53  ;;  %v6259_v51 = vld [vmem:[%s6621_s24 + $0x5f0] sm:$0xff]  }
  0x9f   : > { %5699 = vmatprep.subr.bf16.mxu1 %v6207_v55  ;;  %v6261_v53 = vld [vmem:[%s6621_s24 + $0x5b0] sm:$0xff]   ;;  %v6263_v55 = vld [vmem:[%s6621_s24 + $0x5e8] sm:$0xff]  }
  0xa1   : > { %5678 = vmatpush3.bf16.msra.mxu0 %v6208_v57  ;;  %v6265_v57 = vld [vmem:[%s6621_s24 + $0x5a8] sm:$0xff]  }
  0xa2   : > { %5700 = vmatpush3.bf16.msra.mxu1 %v6209_v59  ;;  %5679 = vmatprep.subr.bf16.mxu0 %v6210_v61  ;;  %v6267_v59 = vld [vmem:[%s6621_s24 + $0x5e0] sm:$0xff]  }
  0xa3   : > { %5701 = vmatprep.subr.bf16.mxu1 %v6211_v63  ;;  %v6269_v61 = vld [vmem:[%s6621_s24 + $0x5a0] sm:$0xff]   ;;  %v6271_v63 = vld [vmem:[%s6621_s24 + $0x5d8] sm:$0xff]  }
  0xa5   : > { %5680 = vmatpush3.bf16.msra.mxu0 %v6212_v0  ;;  %v6272_v0 = vld [vmem:[%s6621_s24 + $0x518] sm:$0xff]  }
  0xa6   : > { %5702 = vmatpush3.bf16.msra.mxu1 %v6213_v1  ;;  %5709 = vmatprep.subr.bf16.mxu0 %v6218_v4  ;;  %v6273_v1 = vld [vmem:[%s6621_s24 + $0x598] sm:$0xff]   ;;  %v6276_v4 = vld [vmem:[%s6621_s24 + $0x510] sm:$0xff]  }
  0xa7   : > { %5731 = vmatprep.subr.bf16.mxu1 %v6219_v5  ;;  %v6277_v5 = vld [vmem:[%s6621_s24 + $0x590] sm:$0xff]  }
  0xa8   : > { %1707 = vmatmul.mubr.bf16.vlgmr.msra.gmra.mxu0 %v1453_v2  ;;  %v6274_v2 = vld [vmem:[%s6621_s24 + $0x550] sm:$0xff]  }
  0xa9   : > { %1747 = vmatmul.mubr.bf16.vlgmr.msra.gmra.mxu1 %v1469_v3  ;;  %5710 = vmatpush3.bf16.msra.mxu0 %v6220_v6  ;;  %v6275_v3 = vld [vmem:[%s6621_s24 + $0x5d0] sm:$0xff]   ;;  %v6278_v6 = vld [vmem:[%s6621_s24 + $0x548] sm:$0xff]  }
  0xaa   : > { %5732 = vmatpush3.bf16.msra.mxu1 %v6221_v7  ;;  %5711 = vmatprep.subr.bf16.mxu0 %v6222_v8  ;;  %v6279_v7 = vld [vmem:[%s6621_s24 + $0x5c8] sm:$0xff]  }
  0xab   : > { %5733 = vmatprep.subr.bf16.mxu1 %v6223_v9  ;;  %2064 = vmatprep.mubr.bf16.mxu0 %v1833_v45  ;;  %v6280_v8 = vld [vmem:[%s6621_s24 + $0x508] sm:$0xff]  }
  0xac   : > { %2104 = vmatprep.mubr.bf16.mxu1 %v1835_v47  ;;  %v6281_v9 = vld [vmem:[%s6621_s24 + $0x588] sm:$0xff]   ;;  %v6295_v47 = vld [vmem:[%s6621_s24 + $0x6f0] sm:$0xff]  }
  0xad   : > { %5712 = vmatpush3.bf16.msra.mxu0 %v6224_v10  ;;  %v6282_v10 = vld [vmem:[%s6621_s24 + $0x540] sm:$0xff]  }
  0xae   : > { %5734 = vmatpush3.bf16.msra.mxu1 %v6225_v11  ;;  %5713 = vmatprep.subr.bf16.mxu0 %v6226_v12  ;;  %v6283_v11 = vld [vmem:[%s6621_s24 + $0x5c0] sm:$0xff]  }
  0xaf   : > { %5735 = vmatprep.subr.bf16.mxu1 %v6227_v13  ;;  %v6284_v12 = vld [vmem:[%s6621_s24 + $0x500] sm:$0xff]  }
  0xb0   : > { %v6285_v13 = vld [vmem:[%s6621_s24 + $0x580] sm:$0xff]  }
  0xb1   : > { %5714 = vmatpush3.bf16.msra.mxu0 %v6228_v14  ;;  %v2113_v14 = vld [vmem:[%s6614_s21] sm:$0xcc] }
  0xb2   : > { %5736 = vmatpush3.bf16.msra.mxu1 %v6229_v15  ;;  %5715 = vmatprep.subr.bf16.mxu0 %v6230_v16  ;;  %v6861_v15 = vld [vmem:[%s6614_s21 + $0x10] sm:$0x11] }
  0xb3   : > { %5737 = vmatprep.subr.bf16.mxu1 %v6231_v17  ;;  %v4994_v16 = vcombine.low %v2113_v14, %v6861_v15  ;;  %v4995_v17 = vcombine.high %v2113_v14, %v6861_v15 }
  0xb5   : > { %5716 = vmatpush3.bf16.msra.mxu0 %v6232_v18  ;;  %v2114_v18 = vld [vmem:[%s6614_s21 + $0x8] sm:$0xcc] }
  0xb6   : > { %5738 = vmatpush3.bf16.msra.mxu1 %v6233_v19  ;;  %5717 = vmatprep.subr.bf16.mxu0 %v6234_v20  ;;  %v6867_v19 = vld [vmem:[%s6614_s21 + $0x18] sm:$0x11] }
  0xb7   : > { %5739 = vmatprep.subr.bf16.mxu1 %v6235_v21  ;;  %v4996_v20 = vcombine.low %v2114_v18, %v6867_v19  ;;  %v4997_v21 = vcombine.high %v2114_v18, %v6867_v19 }
  0xb9   : > { %5718 = vmatpush3.bf16.msra.mxu0 %v6236_v22  ;;  %v6290_v22 = vld [vmem:[%s6621_s24 + $0x678] sm:$0xff]  }
  0xba   : > { %5740 = vmatpush3.bf16.msra.mxu1 %v6237_v23  ;;  %5719 = vmatprep.subr.bf16.mxu0 %v6238_v24  ;;  %v2207_v23 = vshrl.u32 %v4995_v17, 16  ;;  %v2210_v24 = vshll.u32 %v4995_v17, 16 }
  0xbb   : > { %5741 = vmatprep.subr.bf16.mxu1 %v6239_v25  ;;  %v2199_v25 = vshrl.u32 %v4994_v16, 16 }
  0xbd   : > { %5720 = vmatpush3.bf16.msra.mxu0 %v6240_v26  ;;  %v2202_v26 = vshll.u32 %v4994_v16, 16 }
  0xbe   : > { %5742 = vmatpush3.bf16.msra.mxu1 %v6241_v27  ;;  %5721 = vmatprep.subr.bf16.mxu0 %v6242_v28  ;;  %v2223_v27 = vshrl.u32 %v4997_v21, 16  ;;  %v2226_v28 = vshll.u32 %v4997_v21, 16  ;;  %v6326_v21 = vld [vmem:[%s6621_s24 + $0x778] sm:$0xff]  }
  0xbf   : > { %5743 = vmatprep.subr.bf16.mxu1 %v6243_v29  ;;  %v2215_v29 = vshrl.u32 %v4996_v20, 16 }
  0xc0   : > { %v2225_v37 = vrot.slane %v2223_v27, 2  ;;  %v2228_v38 = vrot.slane %v2226_v28, 3 }
  0xc1   : > { %5722 = vmatpush3.bf16.msra.mxu0 %v6244_v30  ;;  %v2218_v30 = vshll.u32 %v4996_v20, 16  ;;  %v2217_v39 = vrot.slane %v2215_v29, 2 }
  0xc2   : > { %5744 = vmatpush3.bf16.msra.mxu1 %v6245_v31  ;;  %5723 = vmatprep.subr.bf16.mxu0 %v6246_v32  ;;  %v6291_v31 = vld [vmem:[%s6621_s24 + $0x6f8] sm:$0xff]   ;;  %v2209_v32 = vrot.slane %v2207_v23, 2 }
  0xc3   : > { %5745 = vmatprep.subr.bf16.mxu1 %v6247_v33  ;;  %v2212_v33 = vrot.slane %v2210_v24, 3  ;;  %v2220_v40 = vrot.slane %v2218_v30, 3  ;;  %v6327_v23 = vld [vmem:[%s6621_s24 + $0x7f8] sm:$0xff]  }
  0xc5   : > { %5724 = vmatpush3.bf16.msra.mxu0 %v6248_v34  ;;  %v2201_v34 = vrot.slane %v2199_v25, 2  ;;  %v2213_v41 = vor.u32 %v2212_v33, %v2209_v32  ;;  %v2221_v45 = vor.u32 %v2220_v40, %v2217_v39  ;;  %v6329_v33 = vld [vmem:[%s6621_s24 + $0x7b8] sm:$0xff]   ;;  %v6334_v39 = vld [vmem:[%s6621_s24 + $0x768] sm:$0xff]  }
  0xc6   : > { %5746 = vmatpush3.bf16.msra.mxu1 %v6249_v35  ;;  %5753 = vmatprep.subr.bf16.mxu0 %v6254_v42  ;;  %v2204_v35 = vrot.slane %v2202_v26, 3  ;;  %v6335_v40 = vld [vmem:[%s6621_s24 + $0x7e8] sm:$0xff]  }
  0xc7   : > { %5775 = vmatprep.subr.bf16.mxu1 %v6255_v43  ;;  %v6293_v43 = vld [vmem:[%s6621_s24 + $0x6b8] sm:$0xff]  }
  0xc8   : > { %2065 = vmatmul.mubr.bf16.vlgmr.msra.gmra.mxu0 %v1832_v44  ;;  %v2205_v42 = vor.u32 %v2204_v35, %v2201_v34  ;;  %v2229_v44 = vor.u32 %v2228_v38, %v2225_v37  ;;  %v6330_v35 = vld [vmem:[%s6621_s24 + $0x770] sm:$0xff]  }
  0xc9   : > { %2105 = vmatmul.mubr.bf16.vlgmr.msra.gmra.mxu1 %v1834_v46  ;;  %5754 = vmatpush3.bf16.msra.mxu0 %v6256_v48  ;;  %v6294_v46 = vld [vmem:[%s6621_s24 + $0x670] sm:$0xff]  }
  0xca   : > { %5776 = vmatpush3.bf16.msra.mxu1 %v6257_v49  ;;  %5755 = vmatprep.subr.bf16.mxu0 %v6258_v50  ;;  %v6296_v48 = vld [vmem:[%s6621_s24 + $0x630] sm:$0xff]   ;;  %v6298_v50 = vld [vmem:[%s6621_s24 + $0x668] sm:$0xff]  }
  0xcb   : > { %5777 = vmatprep.subr.bf16.mxu1 %v6259_v51  ;;  %2458 = vmatprep.mubr.bf16.mxu0 %v2213_v41  ;;  %v6297_v49 = vld [vmem:[%s6621_s24 + $0x6b0] sm:$0xff]   ;;  %v6299_v51 = vld [vmem:[%s6621_s24 + $0x6e8] sm:$0xff]  }
  0xcc   : > { %2498 = vmatprep.mubr.bf16.mxu1 %v2229_v44  ;;  %v6332_v37 = vld [vmem:[%s6621_s24 + $0x730] sm:$0xff]   ;;  %v6336_v41 = vld [vmem:[%s6621_s24 + $0x728] sm:$0xff]   ;;  %v6339_v44 = vld [vmem:[%s6621_s24 + $0x7e0] sm:$0xff]  }
  0xcd   : > { %5756 = vmatpush3.bf16.msra.mxu0 %v6260_v52  ;;  %v6300_v52 = vld [vmem:[%s6621_s24 + $0x628] sm:$0xff]   ;;  %v6333_v38 = vld [vmem:[%s6621_s24 + $0x7b0] sm:$0xff]  }
  0xce   : > { %5778 = vmatpush3.bf16.msra.mxu1 %v6261_v53  ;;  %5757 = vmatprep.subr.bf16.mxu0 %v6262_v54  ;;  %v6301_v53 = vld [vmem:[%s6621_s24 + $0x6a8] sm:$0xff]   ;;  %v6302_v54 = vld [vmem:[%s6621_s24 + $0x660] sm:$0xff]  }
  0xcf   : > { %5779 = vmatprep.subr.bf16.mxu1 %v6263_v55  ;;  %v6303_v55 = vld [vmem:[%s6621_s24 + $0x6e0] sm:$0xff]  }
  0xd1   : > { %5758 = vmatpush3.bf16.msra.mxu0 %v6264_v56  ;;  %v6304_v56 = vld [vmem:[%s6621_s24 + $0x620] sm:$0xff]  }
  0xd2   : > { %5780 = vmatpush3.bf16.msra.mxu1 %v6265_v57  ;;  %5759 = vmatprep.subr.bf16.mxu0 %v6266_v58  ;;  %v6305_v57 = vld [vmem:[%s6621_s24 + $0x6a0] sm:$0xff]   ;;  %v6306_v58 = vld [vmem:[%s6621_s24 + $0x658] sm:$0xff]  }
  0xd3   : > { %5781 = vmatprep.subr.bf16.mxu1 %v6267_v59  ;;  %v6307_v59 = vld [vmem:[%s6621_s24 + $0x6d8] sm:$0xff]  }
  0xd5   : > { %5760 = vmatpush3.bf16.msra.mxu0 %v6268_v60  ;;  %v6308_v60 = vld [vmem:[%s6621_s24 + $0x618] sm:$0xff]  }
  0xd6   : > { %5782 = vmatpush3.bf16.msra.mxu1 %v6269_v61  ;;  %5761 = vmatprep.subr.bf16.mxu0 %v6270_v62  ;;  %v6309_v61 = vld [vmem:[%s6621_s24 + $0x698] sm:$0xff]   ;;  %v6310_v62 = vld [vmem:[%s6621_s24 + $0x650] sm:$0xff]  }
  0xd7   : > { %5783 = vmatprep.subr.bf16.mxu1 %v6271_v63  ;;  %v6311_v63 = vld [vmem:[%s6621_s24 + $0x6d0] sm:$0xff]  }
  0xd9   : > { %5762 = vmatpush3.bf16.msra.mxu0 %v6272_v0  ;;  %v6312_v0 = vld [vmem:[%s6621_s24 + $0x610] sm:$0xff]  }
  0xda   : > { %5784 = vmatpush3.bf16.msra.mxu1 %v6273_v1  ;;  %5763 = vmatprep.subr.bf16.mxu0 %v6274_v2  ;;  %v6313_v1 = vld [vmem:[%s6621_s24 + $0x690] sm:$0xff]   ;;  %v6314_v2 = vld [vmem:[%s6621_s24 + $0x648] sm:$0xff]  }
  0xdb   : > { %5785 = vmatprep.subr.bf16.mxu1 %v6275_v3  ;;  %v6315_v3 = vld [vmem:[%s6621_s24 + $0x6c8] sm:$0xff]  }
  0xdd   : > { %5764 = vmatpush3.bf16.msra.mxu0 %v6276_v4  ;;  %v6316_v4 = vld [vmem:[%s6621_s24 + $0x608] sm:$0xff]  }
  0xde   : > { %5786 = vmatpush3.bf16.msra.mxu1 %v6277_v5  ;;  %5765 = vmatprep.subr.bf16.mxu0 %v6278_v6  ;;  %v6317_v5 = vld [vmem:[%s6621_s24 + $0x688] sm:$0xff]   ;;  %v6318_v6 = vld [vmem:[%s6621_s24 + $0x640] sm:$0xff]  }
  0xdf   : > { %5787 = vmatprep.subr.bf16.mxu1 %v6279_v7  ;;  %v6319_v7 = vld [vmem:[%s6621_s24 + $0x6c0] sm:$0xff]  }
  0xe1   : > { %5766 = vmatpush3.bf16.msra.mxu0 %v6280_v8  ;;  %v6320_v8 = vld [vmem:[%s6621_s24 + $0x600] sm:$0xff]  }
  0xe2   : > { %5788 = vmatpush3.bf16.msra.mxu1 %v6281_v9  ;;  %5767 = vmatprep.subr.bf16.mxu0 %v6282_v10  ;;  %v6321_v10 = vld [vmem:[%s6621_s24 + $0x680] sm:$0xff]  }
  0xe3   : > { %5789 = vmatprep.subr.bf16.mxu1 %v6283_v11 }
  0xe5   : > { %5768 = vmatpush3.bf16.msra.mxu0 %v6284_v12  ;;  %v6904_v12 = vld [vmem:[%s6614_s21] sm:$0x88] }
  0xe6   : > { %5790 = vmatpush3.bf16.msra.mxu1 %v6285_v13  ;;  %5797 = vmatprep.subr.bf16.mxu0 %v6290_v22  ;;  %v6907_v13 = vld [vmem:[%s6614_s21 + $0x8] sm:$0x88]  ;;  %v5095_v16 = vcombine.high %v6904_v12, %v6861_v15  ;;  %v5094_v18 = vcombine.low %v6904_v12, %v6861_v15  ;;  %v6328_v15 = vld [vmem:[%s6621_s24 + $0x738] sm:$0xff]  }
  0xe7   : > { %5819 = vmatprep.subr.bf16.mxu1 %v6291_v31  ;;  %v5097_v17 = vcombine.high %v6907_v13, %v6867_v19  ;;  %v5096_v20 = vcombine.low %v6907_v13, %v6867_v19 }
  0xe8   : > { %2459 = vmatmul.mubr.bf16.vlgmr.msra.gmra.mxu0 %v2205_v42  ;;  %v2585_v27 = vrot.slane %v5095_v16, 3  ;;  %v2584_v29 = vrot.slane %v5094_v18, 3  ;;  %v6337_v42 = vld [vmem:[%s6621_s24 + $0x7a8] sm:$0xff]  }
  0xe9   : > { %2499 = vmatmul.mubr.bf16.vlgmr.msra.gmra.mxu1 %v2221_v45  ;;  %5798 = vmatpush3.bf16.msra.mxu0 %v6292_v36  ;;  %v2587_v28 = vrot.slane %v5097_v17, 3  ;;  %v2586_v30 = vrot.slane %v5096_v20, 3  ;;  %v6331_v36 = vld [vmem:[%s6621_s24 + $0x7f0] sm:$0xff]   ;;  %v6340_v45 = vld [vmem:[%s6621_s24 + $0x720] sm:$0xff]  }
  0xea   : > { %5820 = vmatpush3.bf16.msra.mxu1 %v6293_v43  ;;  %5799 = vmatprep.subr.bf16.mxu0 %v6294_v46  ;;  %v6338_v43 = vld [vmem:[%s6621_s24 + $0x760] sm:$0xff]  }
  0xeb   : > { %5821 = vmatprep.subr.bf16.mxu1 %v6295_v47  ;;  %2816 = vmatprep.mubr.bf16.mxu0 %v2585_v27  ;;  %v6341_v46 = vld [vmem:[%s6621_s24 + $0x7a0] sm:$0xff]   ;;  %v6342_v47 = vld [vmem:[%s6621_s24 + $0x758] sm:$0xff]  }
  0xec   : > { %2856 = vmatprep.mubr.bf16.mxu1 %v2587_v28 }
  0xed   : > { %5800 = vmatpush3.bf16.msra.mxu0 %v6296_v48  ;;  %v6343_v48 = vld [vmem:[%s6621_s24 + $0x7d8] sm:$0xff]  }
  0xee   : > { %5822 = vmatpush3.bf16.msra.mxu1 %v6297_v49  ;;  %5801 = vmatprep.subr.bf16.mxu0 %v6298_v50  ;;  %v6344_v49 = vld [vmem:[%s6621_s24 + $0x718] sm:$0xff]  }
  0xef   : > { %5823 = vmatprep.subr.bf16.mxu1 %v6299_v51  ;;  %v6345_v50 = vld [vmem:[%s6621_s24 + $0x798] sm:$0xff]   ;;  %v6346_v51 = vld [vmem:[%s6621_s24 + $0x750] sm:$0xff]  }
  0xf1   : > { %5802 = vmatpush3.bf16.msra.mxu0 %v6300_v52  ;;  %v6347_v52 = vld [vmem:[%s6621_s24 + $0x7d0] sm:$0xff]  }
  0xf2   : > { %5824 = vmatpush3.bf16.msra.mxu1 %v6301_v53  ;;  %5803 = vmatprep.subr.bf16.mxu0 %v6302_v54  ;;  %v6348_v53 = vld [vmem:[%s6621_s24 + $0x710] sm:$0xff]  }
  0xf3   : > { %5825 = vmatprep.subr.bf16.mxu1 %v6303_v55  ;;  %v6349_v54 = vld [vmem:[%s6621_s24 + $0x790] sm:$0xff]   ;;  %v6350_v55 = vld [vmem:[%s6621_s24 + $0x748] sm:$0xff]  }
  0xf5   : > { %5804 = vmatpush3.bf16.msra.mxu0 %v6304_v56  ;;  %v6351_v56 = vld [vmem:[%s6621_s24 + $0x7c8] sm:$0xff]  }
  0xf6   : > { %5826 = vmatpush3.bf16.msra.mxu1 %v6305_v57  ;;  %5805 = vmatprep.subr.bf16.mxu0 %v6306_v58  ;;  %v6352_v57 = vld [vmem:[%s6621_s24 + $0x708] sm:$0xff]  }
  0xf7   : > { %5827 = vmatprep.subr.bf16.mxu1 %v6307_v59  ;;  %v6353_v58 = vld [vmem:[%s6621_s24 + $0x788] sm:$0xff]   ;;  %v6354_v59 = vld [vmem:[%s6621_s24 + $0x740] sm:$0xff]  }
  0xf9   : > { %5806 = vmatpush3.bf16.msra.mxu0 %v6308_v60 }
  0xfa   : > { %5828 = vmatpush3.bf16.msra.mxu1 %v6309_v61  ;;  %5807 = vmatprep.subr.bf16.mxu0 %v6310_v62  ;;  %v6355_v61 = vld [vmem:[%s6621_s24 + $0x7c0] sm:$0xff]  }
  0xfb   : > { %5829 = vmatprep.subr.bf16.mxu1 %v6311_v63  ;;  %v6356_v63 = vld [vmem:[%s6621_s24 + $0x700] sm:$0xff]  }
  0xfd   : > { %5808 = vmatpush3.bf16.msra.mxu0 %v6312_v0 }
  0xfe   : > { %5830 = vmatpush3.bf16.msra.mxu1 %v6313_v1  ;;  %5809 = vmatprep.subr.bf16.mxu0 %v6314_v2  ;;  %v6357_v1 = vld [vmem:[%s6621_s24 + $0x780] sm:$0xff]   ;;  %v6952_v2 = vld [vmem:[%s6614_s21 + $0x10] sm:$0x33] }
  0xff   : > { %5831 = vmatprep.subr.bf16.mxu1 %v6315_v3  ;;  %v6955_v3 = vld [vmem:[%s6614_s21 + $0x18] sm:$0x33] }
 0x101   : > { %5810 = vmatpush3.bf16.msra.mxu0 %v6316_v4 }
 0x102   : > { %5832 = vmatpush3.bf16.msra.mxu1 %v6317_v5  ;;  %5811 = vmatprep.subr.bf16.mxu0 %v6318_v6  ;;  %v5195_v6 = vcombine.high %v6904_v12, %v6952_v2 }
 0x103   : > { %5833 = vmatprep.subr.bf16.mxu1 %v6319_v7  ;;  %v5197_v7 = vcombine.high %v6907_v13, %v6955_v3 }
 0x104   : > { %v2951_v20 = vshrl.u32 %v5195_v6, 16 }
 0x105   : > { %5812 = vmatpush3.bf16.msra.mxu0 %v6320_v8  ;;  %v5194_v8 = vcombine.low %v6904_v12, %v6952_v2 }
 0x106   : > { %5834 = vmatpush3.bf16.msra.mxu1 %v6321_v10  ;;  %5841 = vmatprep.subr.bf16.mxu0 %v6326_v21  ;;  %v6362_v10 = vld [vmem:[%s6621_s24 + $0x878] sm:$0xff]   ;;  %v2954_v21 = vshll.u32 %v5195_v6, 16  ;;  %v2953_v28 = vrot.slane %v2951_v20, 3  ;;  %v6389_v6 = vld [vmem:[%s6621_s24 + $0x888] sm:$0xff]   ;;  %v6393_v20 = vld [vmem:[%s6621_s24 + $0x880] sm:$0xff]  }
 0x107   : > { %5863 = vmatprep.subr.bf16.mxu1 %v6327_v23  ;;  %v2970_v23 = vshll.u32 %v5197_v7, 16 }
 0x108   : > { %v5549_v9 = vpop.f32.mrf.mxu0  ;;  %2817 = vmatmul.mubr.bf16.vlgmr.msra.gmra.mxu0 %v2584_v29  ;;  %v2956_v29 = vrot.slane %v2954_v21, 4 }
 0x109   : > { %v5571_v11 = vpop.f32.mrf.mxu1  ;;  %2857 = vmatmul.mubr.bf16.vlgmr.msra.gmra.mxu1 %v2586_v30  ;;  %5842 = vmatpush3.bf16.msra.mxu0 %v6328_v15  ;;  %v6364_v15 = vld [vmem:[%s6621_s24 + $0x838] sm:$0xff]  }
 0x10a   : > { %v5550_v14 = vpop.f32.mrf.mxu0  ;;  %5864 = vmatpush3.bf16.msra.mxu1 %v6329_v33  ;;  %5843 = vmatprep.subr.bf16.mxu0 %v6330_v35 }
 0x10b   : > { %v5572_v22 = vpop.f32.mrf.mxu1  ;;  %v5551_v24 = vadd.f32 %v5550_v14, %v5549_v9  ;;  %5865 = vmatprep.subr.bf16.mxu1 %v6331_v36  ;;  %v5196_v9 = vcombine.low %v6907_v13, %v6955_v3  ;;  %v6363_v14 = vld [vmem:[%s6621_s24 + $0x8f8] sm:$0xff]   ;;  %v2957_v36 = vor.u32 %v2956_v29, %v2953_v28  ;;  %v6402_v29 = vld [vmem:[%s6621_s24 + $0x970] sm:$0xff]  }
 0x10c   : > { %v5573_v25 = vadd.f32 %v5572_v22, %v5571_v11  ;;  %v5552_v26 = vpop.f32.mrf.mxu0  ;;  %v2967_v22 = vshrl.u32 %v5197_v7, 16  ;;  %v6401_v28 = vld [vmem:[%s6621_s24 + $0x9b8] sm:$0xff]  }
 0x10d   : > { %v5574_v31 = vpop.f32.mrf.mxu1  ;;  %5844 = vmatpush3.bf16.msra.mxu0 %v6332_v37  ;;  %v2959_v13 = vshrl.u32 %v5196_v9, 16  ;;  %v2962_v26 = vshll.u32 %v5196_v9, 16  ;;  %3202 = vmatprep.mubr.bf16.mxu0 %v2957_v36  ;;  %v6413_v36 = vld [vmem:[%s6621_s24 + $0x9a0] sm:$0xff]  }
 0x10e   : > { %v6920_v19 = vadd.f32 %v5573_v25, %v5551_v24  ;;  %v5553_v32 = vpop.f32.mrf.mxu0  ;;  %5866 = vmatpush3.bf16.msra.mxu1 %v6333_v38  ;;  %5845 = vmatprep.subr.bf16.mxu0 %v6334_v39  ;;  %v2943_v24 = vshrl.u32 %v5194_v8, 16  ;;  %v2946_v25 = vshll.u32 %v5194_v8, 16  ;;  %v2969_v30 = vrot.slane %v2967_v22, 3  ;;  %v6390_v8 = vld [vmem:[%s6621_s24 + $0x840] sm:$0xff]  }
 0x10f   : > { %v5575_v34 = vpop.f32.mrf.mxu1  ;;  %5867 = vmatprep.subr.bf16.mxu1 %v6335_v40  ;;  %v2972_v31 = vrot.slane %v2970_v23, 4  ;;  %v2964_v35 = vrot.slane %v2962_v26, 4  ;;  %v6398_v23 = vld [vmem:[%s6621_s24 + $0x978] sm:$0xff]   ;;  %v5296_v26 = vcombine.low %v6955_v3, %v6955_v3 }
 0x110   : > { %v2945_v32 = vrot.slane %v2943_v24, 3  ;;  %v2948_v33 = vrot.slane %v2946_v25, 4  ;;  %v2961_v34 = vrot.slane %v2959_v13, 3  ;;  %v6399_v24 = vld [vmem:[%s6621_s24 + $0x9f8] sm:$0xff]   ;;  %v5294_v13 = vcombine.low %v6952_v2, %v6952_v2 }
 0x111   : > { %5846 = vmatpush3.bf16.msra.mxu0 %v6336_v41  ;;  %v2973_v37 = vor.u32 %v2972_v31, %v2969_v30  ;;  %v6366_v41 = vld [vmem:[%s6621_s24 + $0x870] sm:$0xff]   ;;  %v6406_v31 = vld [vmem:[%s6621_s24 + $0x968] sm:$0xff]  }
 0x112   : > { %5868 = vmatpush3.bf16.msra.mxu1 %v6337_v42  ;;  %5847 = vmatprep.subr.bf16.mxu0 %v6338_v43  ;;  %v2949_v39 = vor.u32 %v2948_v33, %v2945_v32  ;;  %v2965_v40 = vor.u32 %v2964_v35, %v2961_v34  ;;  %v6367_v42 = vld [vmem:[%s6621_s24 + $0x8f0] sm:$0xff]   ;;  %v5295_v43 = vcombine.high %v6952_v2, %v6952_v2  ;;  %v6409_v32 = vld [vmem:[%s6621_s24 + $0x9a8] sm:$0xff]   ;;  %v6410_v33 = vld [vmem:[%s6621_s24 + $0x960] sm:$0xff]  }
 0x113   : > { %5869 = vmatprep.subr.bf16.mxu1 %v6339_v44  ;;  %3242 = vmatprep.mubr.bf16.mxu1 %v2973_v37  ;;  %v5297_v44 = vcombine.high %v6955_v3, %v6955_v3  ;;  %v6403_v30 = vld [vmem:[%s6621_s24 + $0x9f0] sm:$0xff]   ;;  %v6411_v34 = vld [vmem:[%s6621_s24 + $0x9e0] sm:$0xff]   ;;  %v6414_v37 = vld [vmem:[%s6621_s24 + $0x958] sm:$0xff]  }
 0x114   : > { %v6404_v2 = vld [vmem:[%s6621_s24 + $0x930] sm:$0xff]   ;;  %v6412_v35 = vld [vmem:[%s6621_s24 + $0x920] sm:$0xff]  }
 0x115   : > { %5848 = vmatpush3.bf16.msra.mxu0 %v6340_v45  ;;  %v6368_v45 = vld [vmem:[%s6621_s24 + $0x830] sm:$0xff]  }
 0x116   : > { %5870 = vmatpush3.bf16.msra.mxu1 %v6341_v46  ;;  %5849 = vmatprep.subr.bf16.mxu0 %v6342_v47  ;;  %v6369_v46 = vld [vmem:[%s6621_s24 + $0x8b0] sm:$0xff]   ;;  %v6370_v47 = vld [vmem:[%s6621_s24 + $0x868] sm:$0xff]  }
 0x117   : > { %5871 = vmatprep.subr.bf16.mxu1 %v6343_v48  ;;  %v6371_v48 = vld [vmem:[%s6621_s24 + $0x8e8] sm:$0xff]   ;;  %v6405_v3 = vld [vmem:[%s6621_s24 + $0x9b0] sm:$0xff]  }
 0x119   : > { %5850 = vmatpush3.bf16.msra.mxu0 %v6344_v49  ;;  %v6372_v49 = vld [vmem:[%s6621_s24 + $0x828] sm:$0xff]  }
 0x11a   : > { %5872 = vmatpush3.bf16.msra.mxu1 %v6345_v50  ;;  %5851 = vmatprep.subr.bf16.mxu0 %v6346_v51  ;;  %v6373_v50 = vld [vmem:[%s6621_s24 + $0x8a8] sm:$0xff]   ;;  %v6374_v51 = vld [vmem:[%s6621_s24 + $0x860] sm:$0xff]  }
 0x11b   : > { %5873 = vmatprep.subr.bf16.mxu1 %v6347_v52  ;;  %v6375_v52 = vld [vmem:[%s6621_s24 + $0x8e0] sm:$0xff]  }
 0x11d   : > { %5852 = vmatpush3.bf16.msra.mxu0 %v6348_v53  ;;  %v6376_v53 = vld [vmem:[%s6621_s24 + $0x820] sm:$0xff]  }
 0x11e   : > { %5874 = vmatpush3.bf16.msra.mxu1 %v6349_v54  ;;  %5853 = vmatprep.subr.bf16.mxu0 %v6350_v55  ;;  %v6377_v54 = vld [vmem:[%s6621_s24 + $0x8a0] sm:$0xff]   ;;  %v6378_v55 = vld [vmem:[%s6621_s24 + $0x858] sm:$0xff]  }
 0x11f   : > { %5875 = vmatprep.subr.bf16.mxu1 %v6351_v56  ;;  %v6379_v56 = vld [vmem:[%s6621_s24 + $0x8d8] sm:$0xff]  }
 0x121   : > { %5854 = vmatpush3.bf16.msra.mxu0 %v6352_v57  ;;  %v6380_v57 = vld [vmem:[%s6621_s24 + $0x818] sm:$0xff]  }
 0x122   : > { %5876 = vmatpush3.bf16.msra.mxu1 %v6353_v58  ;;  %5855 = vmatprep.subr.bf16.mxu0 %v6354_v59  ;;  %v6381_v58 = vld [vmem:[%s6621_s24 + $0x898] sm:$0xff]   ;;  %v6382_v59 = vld [vmem:[%s6621_s24 + $0x850] sm:$0xff]  }
 0x123   : > { %5877 = vmatprep.subr.bf16.mxu1 %v6355_v61  ;;  %v6384_v61 = vld [vmem:[%s6621_s24 + $0x810] sm:$0xff]  }
 0x125   : > { %5856 = vmatpush3.bf16.msra.mxu0 %v6356_v63  ;;  %v6386_v63 = vld [vmem:[%s6621_s24 + $0x848] sm:$0xff]  }
 0x126   : > { %5878 = vmatpush3.bf16.msra.mxu1 %v6357_v1  ;;  %5885 = vmatprep.subr.bf16.mxu0 %v6362_v10 }
 0x127   : > { %5907 = vmatprep.subr.bf16.mxu1 %v6363_v14 }
 0x128   : > { %v5593_v60 = vpop.f32.mrf.mxu0  ;;  %3203 = vmatmul.mubr.bf16.vlgmr.msra.gmra.mxu0 %v2949_v39  ;;  %v6416_v39 = vld [vmem:[%s6621_s24 + $0x918] sm:$0xff]  }
 0x129   : > { %v5615_v62 = vpop.f32.mrf.mxu1  ;;  %3243 = vmatmul.mubr.bf16.vlgmr.msra.gmra.mxu1 %v2965_v40  ;;  %5886 = vmatpush3.bf16.msra.mxu0 %v6364_v15  ;;  %v6407_v15 = vld [vmem:[%s6621_s24 + $0x9e8] sm:$0xff]   ;;  %v6417_v40 = vld [vmem:[%s6621_s24 + $0x998] sm:$0xff]  }
 0x12a   : > { %v5594_v0 = vpop.f32.mrf.mxu0  ;;  %5887 = vmatprep.subr.bf16.mxu0 %v6366_v41  ;;  %3548 = vmatprep.mubr.bf16.mxu0 %v5295_v43  ;;  %v6418_v41 = vld [vmem:[%s6621_s24 + $0x950] sm:$0xff]  }
 0x12b   : > { %v5595_v4 = vadd.f32 %v5594_v0, %v5593_v60  ;;  %v5616_v5 = vpop.f32.mrf.mxu1  ;;  %3588 = vmatprep.mubr.bf16.mxu1 %v5297_v44  ;;  %v6383_v60 = vld [vmem:[%s6621_s24 + $0x8d0] sm:$0xff]   ;;  %v6387_v0 = vld [vmem:[%s6621_s24 + $0x8c8] sm:$0xff]  }
 0x12c   : > { %v5596_v11 = vpop.f32.mrf.mxu0  ;;  %v5617_v17 = vadd.f32 %v5616_v5, %v5615_v62  ;;  %v6385_v62 = vld [vmem:[%s6621_s24 + $0x890] sm:$0xff]  }
 0x12d   : > { %v966_v16 = vadd.f32 %v5595_v4, %v6920_v19  ;;  %v5618_v18 = vpop.f32.mrf.mxu1  ;;  %v6365_v19 = vld [vmem:[%s6621_s24 + $0x8b8] sm:$0xff]   ;;  %5888 = vmatpush3.bf16.msra.mxu0 %v6368_v45  ;;  %v6388_v4 = vld [vmem:[%s6621_s24 + $0x808] sm:$0xff]   ;;  %v6391_v11 = vld [vmem:[%s6621_s24 + $0x8c0] sm:$0xff]  }
 0x12e   : > { %v5597_v12 = vpop.f32.mrf.mxu0  ;;  %5908 = vmatpush3.bf16.msra.mxu1 %v6365_v19  ;;  %5889 = vmatprep.subr.bf16.mxu0 %v6370_v47  ;;  %v6408_v19 = vld [vmem:[%s6621_s24 + $0x928] sm:$0xff]   ;;  %v6420_v43 = vld [vmem:[%s6621_s24 + $0x910] sm:$0xff]  }
 0x12f   : > { %v5619_v27 = vpop.f32.mrf.mxu1  ;;  %v6970_v38 = vadd.f32 %v5617_v17, %v966_v16  ;;  %5909 = vmatprep.subr.bf16.mxu1 %v6367_v42  ;;  %v6392_v17 = vld [vmem:[%s6621_s24 + $0x800] sm:$0xff]   ;;  %v6419_v42 = vld [vmem:[%s6621_s24 + $0x9d0] sm:$0xff]   ;;  %v6422_v45 = vld [vmem:[%s6621_s24 + $0x948] sm:$0xff]  }
 0x130   : > { %v6400_v27 = vld [vmem:[%s6621_s24 + $0x938] sm:$0xff]   ;;  %v6421_v44 = vld [vmem:[%s6621_s24 + $0x990] sm:$0xff]  }
 0x131   : > { %5890 = vmatpush3.bf16.msra.mxu0 %v6372_v49 }
 0x132   : > { %5910 = vmatpush3.bf16.msra.mxu1 %v6369_v46  ;;  %5891 = vmatprep.subr.bf16.mxu0 %v6374_v51  ;;  %v6423_v46 = vld [vmem:[%s6621_s24 + $0x9c8] sm:$0xff]  }
 0x133   : > { %5911 = vmatprep.subr.bf16.mxu1 %v6371_v48  ;;  %v6424_v48 = vld [vmem:[%s6621_s24 + $0x908] sm:$0xff]  }
 0x135   : > { %5892 = vmatpush3.bf16.msra.mxu0 %v6376_v53 }
 0x136   : > { %5912 = vmatpush3.bf16.msra.mxu1 %v6373_v50  ;;  %5893 = vmatprep.subr.bf16.mxu0 %v6378_v55  ;;  %v6425_v50 = vld [vmem:[%s6621_s24 + $0x988] sm:$0xff]   ;;  %v6427_v55 = vld [vmem:[%s6621_s24 + $0x9c0] sm:$0xff]  }
 0x137   : > { %5913 = vmatprep.subr.bf16.mxu1 %v6375_v52  ;;  %v6426_v52 = vld [vmem:[%s6621_s24 + $0x940] sm:$0xff]  }
 0x139   : > { %5894 = vmatpush3.bf16.msra.mxu0 %v6380_v57 }
 0x13a   : > { %5914 = vmatpush3.bf16.msra.mxu1 %v6377_v54  ;;  %5895 = vmatprep.subr.bf16.mxu0 %v6382_v59 }
 0x13b   : > { %5915 = vmatprep.subr.bf16.mxu1 %v6379_v56 }
 0x13d   : > { %5896 = vmatpush3.bf16.msra.mxu0 %v6384_v61  ;;  %v3597_v61 = vld [vmem:[%s6614_s21 + $0x10] sm:$0x77] }
 0x13e   : > { %5916 = vmatpush3.bf16.msra.mxu1 %v6381_v58  ;;  %5897 = vmatprep.subr.bf16.mxu0 %v6386_v63  ;;  %v6428_v58 = vld [vmem:[%s6621_s24 + $0x900] sm:$0xff]  }
 0x13f   : > { %5917 = vmatprep.subr.bf16.mxu1 %v6383_v60  ;;  %v6429_v60 = vld [vmem:[%s6621_s24 + $0x980] sm:$0xff]  }
 0x141   : > { %5898 = vmatpush3.bf16.msra.mxu0 %v6388_v4  ;;  %v5395_v4 = vcombine.high %v3597_v61, %v3597_v61 }
 0x142   : > { %5918 = vmatpush3.bf16.msra.mxu1 %v6385_v62  ;;  %5899 = vmatprep.subr.bf16.mxu0 %v6390_v8  ;;  %v3598_v62 = vld [vmem:[%s6614_s21 + $0x18] sm:$0x77] }
 0x143   : > { %5919 = vmatprep.subr.bf16.mxu1 %v6387_v0  ;;  %v5397_v8 = vcombine.high %v3598_v62, %v3598_v62 }
 0x145   : > { %5900 = vmatpush3.bf16.msra.mxu0 %v6392_v17 }
 0x146   : > { %5920 = vmatpush3.bf16.msra.mxu1 %v6389_v6  ;;  %5929 = vmatprep.subr.bf16.mxu0 %v6398_v23  ;;  %v6434_v6 = vld [vmem:[%s6621_s24 + $0xa78] sm:$0xff]  }
 0x147   : > { %5921 = vmatprep.subr.bf16.mxu1 %v6391_v11  ;;  %v3682_v11 = vshrl.u32 %v5395_v4, 16 }
 0x148   : > { %v5637_v1 = vpop.f32.mrf.mxu0  ;;  %3549 = vmatmul.mubr.bf16.vlgmr.msra.gmra.mxu0 %v5294_v13 }
 0x149   : > { %v5659_v5 = vpop.f32.mrf.mxu1  ;;  %5930 = vmatpush3.bf16.msra.mxu0 %v6400_v27 }
 0x14a   : > { %v5638_v7 = vpop.f32.mrf.mxu0  ;;  %5922 = vmatpush3.bf16.msra.mxu1 %v6393_v20  ;;  %5931 = vmatprep.subr.bf16.mxu0 %v6402_v29  ;;  %v3698_v20 = vshll.u32 %v5397_v8, 16 }
 0x14b   : > { %v5639_v9 = vadd.f32 %v5638_v7, %v5637_v1  ;;  %v5660_v10 = vpop.f32.mrf.mxu1  ;;  %5951 = vmatprep.subr.bf16.mxu1 %v6399_v24  ;;  %v5394_v1 = vcombine.low %v3597_v61, %v3597_v61  ;;  %v6436_v24 = vld [vmem:[%s6621_s24 + $0xa38] sm:$0xff]   ;;  %v3979_v61 = vld [vmem:[%s6614_s21 + $0x10] sm:$0x66] }
 0x14c   : > { %v5661_v14 = vadd.f32 %v5660_v10, %v5659_v5  ;;  %v5640_v16 = vpop.f32.mrf.mxu0  ;;  %v5396_v5 = vcombine.low %v3598_v62, %v3598_v62 }
 0x14d   : > { %v5662_v18 = vpop.f32.mrf.mxu1  ;;  %3589 = vmatmul.mubr.bf16.vlgmr.msra.gmra.mxu1 %v5296_v26  ;;  %5932 = vmatpush3.bf16.msra.mxu0 %v6404_v2  ;;  %v3675_v16 = vshrl.u32 %v5394_v1, 16  ;;  %v3677_v17 = vshll.u32 %v5394_v1, 16  ;;  %v6438_v2 = vld [vmem:[%s6621_s24 + $0xa70] sm:$0xff]   ;;  %v5495_v1 = vcombine.high %v3979_v61, %v3979_v61 }
 0x14e   : > { %v1363_v21 = vadd.f32 %v5661_v14, %v5639_v9  ;;  %v5641_v22 = vpop.f32.mrf.mxu0  ;;  %5952 = vmatpush3.bf16.msra.mxu1 %v6401_v28  ;;  %5933 = vmatprep.subr.bf16.mxu0 %v6406_v31  ;;  %v6435_v9 = vld [vmem:[%s6621_s24 + $0xaf8] sm:$0xff]   ;;  %v3684_v14 = vshll.u32 %v5395_v4, 16  ;;  %v3696_v18 = vshrl.u32 %v5397_v8, 16  ;;  %v6440_v31 = vld [vmem:[%s6621_s24 + $0xa30] sm:$0xff]  }
 0x14f   : > { %v5663_v12 = vpop.f32.mrf.mxu1  ;;  %5953 = vmatprep.subr.bf16.mxu1 %v6403_v30  ;;  %v3691_v22 = vshll.u32 %v5396_v5, 16  ;;  %v6437_v28 = vld [vmem:[%s6621_s24 + $0xab8] sm:$0xff]  }
 0x150   : > { %v7007_v25 = vadd.f32 %v1363_v21, %v6970_v38  ;;  %v6415_v38 = vld [vmem:[%s6621_s24 + $0x9d8] sm:$0xff]   ;;  %v3689_v21 = vshrl.u32 %v5396_v5, 16  ;;  %v3686_v23 = vrot.slane %v3684_v14, 1  ;;  %v3679_v12 = vrot.slane %v3677_v17, 1 }
 0x151   : > { %5934 = vmatpush3.bf16.msra.mxu0 %v6408_v19  ;;  %v3693_v13 = vrot.slane %v3691_v22, 1  ;;  %v6442_v19 = vld [vmem:[%s6621_s24 + $0xa68] sm:$0xff]   ;;  %v3980_v4 = vld [vmem:[%s6614_s21 + $0x18] sm:$0x66]  ;;  %v4057_v14 = vrot.slane %v5495_v1, 1 }
 0x152   : > { %5954 = vmatpush3.bf16.msra.mxu1 %v6405_v3  ;;  %5935 = vmatprep.subr.bf16.mxu0 %v6410_v33  ;;  %v3687_v26 = vor.u32 %v3686_v23, %v3682_v11  ;;  %v3680_v27 = vor.u32 %v3679_v12, %v3675_v16  ;;  %v6439_v3 = vld [vmem:[%s6621_s24 + $0xaf0] sm:$0xff]   ;;  %v6444_v33 = vld [vmem:[%s6621_s24 + $0xa28] sm:$0xff]   ;;  %v5496_v8 = vcombine.low %v3980_v4, %v3980_v4 }
 0x153   : > { %5955 = vmatprep.subr.bf16.mxu1 %v6407_v15  ;;  %v3694_v30 = vor.u32 %v3693_v13, %v3689_v21  ;;  %v6441_v15 = vld [vmem:[%s6621_s24 + $0xab0] sm:$0xff]  }
 0x154   : > { %3930 = vmatprep.mubr.bf16.mxu0 %v3687_v26 }
 0x155   : > { %5936 = vmatpush3.bf16.msra.mxu0 %v6412_v35  ;;  %v6446_v35 = vld [vmem:[%s6621_s24 + $0xa60] sm:$0xff]  }
 0x156   : > { %5956 = vmatpush3.bf16.msra.mxu1 %v6409_v32  ;;  %5937 = vmatprep.subr.bf16.mxu0 %v6414_v37  ;;  %v6443_v32 = vld [vmem:[%s6621_s24 + $0xae8] sm:$0xff]   ;;  %v6448_v37 = vld [vmem:[%s6621_s24 + $0xa20] sm:$0xff]  }
 0x157   : > { %5957 = vmatprep.subr.bf16.mxu1 %v6411_v34  ;;  %v6445_v34 = vld [vmem:[%s6621_s24 + $0xaa8] sm:$0xff]  }
 0x159   : > { %5938 = vmatpush3.bf16.msra.mxu0 %v6416_v39  ;;  %v6450_v39 = vld [vmem:[%s6621_s24 + $0xa58] sm:$0xff]  }
 0x15a   : > { %5958 = vmatpush3.bf16.msra.mxu1 %v6413_v36  ;;  %5939 = vmatprep.subr.bf16.mxu0 %v6418_v41  ;;  %v6447_v36 = vld [vmem:[%s6621_s24 + $0xae0] sm:$0xff]   ;;  %v6452_v41 = vld [vmem:[%s6621_s24 + $0xa18] sm:$0xff]  }
 0x15b   : > { %5959 = vmatprep.subr.bf16.mxu1 %v6415_v38  ;;  %v6449_v38 = vld [vmem:[%s6621_s24 + $0xaa0] sm:$0xff]  }
 0x15d   : > { %5940 = vmatpush3.bf16.msra.mxu0 %v6420_v43  ;;  %v6454_v43 = vld [vmem:[%s6621_s24 + $0xa50] sm:$0xff]  }
 0x15e   : > { %5960 = vmatpush3.bf16.msra.mxu1 %v6417_v40  ;;  %5941 = vmatprep.subr.bf16.mxu0 %v6422_v45  ;;  %v6451_v40 = vld [vmem:[%s6621_s24 + $0xad8] sm:$0xff]   ;;  %v6456_v45 = vld [vmem:[%s6621_s24 + $0xa10] sm:$0xff]  }
 0x15f   : > { %5961 = vmatprep.subr.bf16.mxu1 %v6419_v42  ;;  %v6453_v42 = vld [vmem:[%s6621_s24 + $0xa98] sm:$0xff]  }
 0x161   : > { %5942 = vmatpush3.bf16.msra.mxu0 %v6424_v48  ;;  %v6459_v48 = vld [vmem:[%s6621_s24 + $0xac8] sm:$0xff]  }
 0x162   : > { %5962 = vmatpush3.bf16.msra.mxu1 %v6421_v44  ;;  %5943 = vmatprep.subr.bf16.mxu0 %v6426_v52  ;;  %v6455_v44 = vld [vmem:[%s6621_s24 + $0xad0] sm:$0xff]   ;;  %v6461_v52 = vld [vmem:[%s6621_s24 + $0xa88] sm:$0xff]  }
 0x163   : > { %5963 = vmatprep.subr.bf16.mxu1 %v6423_v46  ;;  %v6457_v46 = vld [vmem:[%s6621_s24 + $0xa90] sm:$0xff]  }
 0x165   : > { %5944 = vmatpush3.bf16.msra.mxu0 %v6428_v58  ;;  %v6463_v58 = vld [vmem:[%s6621_s24 + $0xac0] sm:$0xff]  }
 0x166   : > { %5964 = vmatpush3.bf16.msra.mxu1 %v6425_v50  ;;  %5973 = vmatprep.subr.bf16.mxu0 %v6434_v6 }
 0x167   : > { %5965 = vmatprep.subr.bf16.mxu1 %v6427_v55  ;;  %v6462_v55 = vld [vmem:[%s6621_s24 + $0xa40] sm:$0xff]  }
 0x168   : > { %v5681_v47 = vpop.f32.mrf.mxu0  ;;  %3931 = vmatmul.mubr.bf16.vlgmr.msra.gmra.mxu0 %v3680_v27 }
 0x169   : > { %v5703_v49 = vpop.f32.mrf.mxu1  ;;  %5974 = vmatpush3.bf16.msra.mxu0 %v6436_v24  ;;  %4288 = vmatprep.mubr.bf16.mxu0 %v4057_v14 }
 0x16a   : > { %v5682_v51 = vpop.f32.mrf.mxu0  ;;  %5966 = vmatpush3.bf16.msra.mxu1 %v6429_v60  ;;  %5975 = vmatprep.subr.bf16.mxu0 %v6438_v2 }
 0x16b   : > { %v5683_v53 = vadd.f32 %v5682_v51, %v5681_v47  ;;  %v5704_v54 = vpop.f32.mrf.mxu1  ;;  %5995 = vmatprep.subr.bf16.mxu1 %v6435_v9  ;;  %v6458_v47 = vld [vmem:[%s6621_s24 + $0xa48] sm:$0xff]   ;;  %v5497_v9 = vcombine.high %v3980_v4, %v3980_v4 }
 0x16c   : > { %v5705_v56 = vadd.f32 %v5704_v54, %v5703_v49  ;;  %v5684_v57 = vpop.f32.mrf.mxu0  ;;  %v6460_v51 = vld [vmem:[%s6621_s24 + $0xa08] sm:$0xff]  }
 0x16d   : > { %v5706_v59 = vpop.f32.mrf.mxu1  ;;  %5976 = vmatpush3.bf16.msra.mxu0 %v6440_v31  ;;  %v4059_v17 = vrot.slane %v5497_v9, 1 }
 0x16e   : > { %v1749_v63 = vadd.f32 %v5705_v56, %v5683_v53  ;;  %v5685_v0 = vpop.f32.mrf.mxu0  ;;  %5977 = vmatprep.subr.bf16.mxu0 %v6442_v19 }
 0x16f   : > { %v5707_v7 = vpop.f32.mrf.mxu1  ;;  %v5494_v0 = vcombine.low %v3979_v61, %v3979_v61 }
 0x170   : > { %v7048_v10 = vadd.f32 %v1749_v63, %v7007_v25  ;;  %v3700_v25 = vrot.slane %v3698_v20, 1  ;;  %v6464_v63 = vld [vmem:[%s6621_s24 + $0xa00] sm:$0xff]  }
 0x171   : > { %5978 = vmatpush3.bf16.msra.mxu0 %v6444_v33  ;;  %v6465_v7 = vld [vmem:[%s6621_s24 + $0xa80] sm:$0xff]   ;;  %v4056_v16 = vrot.slane %v5494_v0, 1 }
 0x172   : > { %v3701_v29 = vor.u32 %v3700_v25, %v3696_v18  ;;  %5979 = vmatprep.subr.bf16.mxu0 %v6446_v35  ;;  %v4058_v18 = vrot.slane %v5496_v8, 1 }
 0x174   : > { %3970 = vmatprep.mubr.bf16.mxu1 %v3701_v29 }
 0x175   : > { %3971 = vmatmul.mubr.bf16.vlgmr.msra.gmra.mxu1 %v3694_v30  ;;  %5980 = vmatpush3.bf16.msra.mxu0 %v6448_v37 }
 0x176   : > { %5996 = vmatpush3.bf16.msra.mxu1 %v6437_v28  ;;  %5981 = vmatprep.subr.bf16.mxu0 %v6450_v39 }
 0x177   : > { %5997 = vmatprep.subr.bf16.mxu1 %v6439_v3  ;;  %4328 = vmatprep.mubr.bf16.mxu1 %v4059_v17 }
 0x179   : > { %5982 = vmatpush3.bf16.msra.mxu0 %v6452_v41 }
 0x17a   : > { %5998 = vmatpush3.bf16.msra.mxu1 %v6441_v15  ;;  %5983 = vmatprep.subr.bf16.mxu0 %v6454_v43 }
 0x17b   : > { %5999 = vmatprep.subr.bf16.mxu1 %v6443_v32 }
 0x17d   : > { %5984 = vmatpush3.bf16.msra.mxu0 %v6456_v45 }
 0x17e   : > { %6000 = vmatpush3.bf16.msra.mxu1 %v6445_v34  ;;  %5985 = vmatprep.subr.bf16.mxu0 %v6458_v47 }
 0x17f   : > { %6001 = vmatprep.subr.bf16.mxu1 %v6447_v36 }
 0x181   : > { %5986 = vmatpush3.bf16.msra.mxu0 %v6460_v51 }
 0x182   : > { %6002 = vmatpush3.bf16.msra.mxu1 %v6449_v38  ;;  %5987 = vmatprep.subr.bf16.mxu0 %v6462_v55 }
 0x183   : > { %6003 = vmatprep.subr.bf16.mxu1 %v6451_v40 }
 0x185   : > { %5988 = vmatpush3.bf16.msra.mxu0 %v6464_v63 }
 0x186   : > { %6004 = vmatpush3.bf16.msra.mxu1 %v6453_v42 }
 0x187   : > { %6005 = vmatprep.subr.bf16.mxu1 %v6455_v44 }
 0x188   : > { %v5725_v49 = vpop.f32.mrf.mxu0  ;;  %4289 = vmatmul.mubr.bf16.vlgmr.msra.gmra.mxu0 %v4056_v16 }
 0x189   : > { %v5747_v50 = vpop.f32.mrf.mxu1 }
 0x18a   : > { %v5726_v53 = vpop.f32.mrf.mxu0  ;;  %6006 = vmatpush3.bf16.msra.mxu1 %v6457_v46 }
 0x18b   : > { %v5748_v54 = vpop.f32.mrf.mxu1  ;;  %v5727_v56 = vadd.f32 %v5726_v53, %v5725_v49  ;;  %6007 = vmatprep.subr.bf16.mxu1 %v6459_v48 }
 0x18c   : > { %v5749_v57 = vadd.f32 %v5748_v54, %v5747_v50  ;;  %v5728_v59 = vpop.f32.mrf.mxu0 }
 0x18d   : > { %v5750_v60 = vpop.f32.mrf.mxu1 }
 0x18e   : > { %v2107_v62 = vadd.f32 %v5749_v57, %v5727_v56  ;;  %v5729_v5 = vpop.f32.mrf.mxu0  ;;  %6008 = vmatpush3.bf16.msra.mxu1 %v6461_v52 }
 0x18f   : > { %v5751_v6 = vpop.f32.mrf.mxu1  ;;  %6009 = vmatprep.subr.bf16.mxu1 %v6463_v58 }
 0x190   : > { %v2112_v11 = vadd.f32 %v2107_v62, %v7048_v10 }
 0x192   : > { %6010 = vmatpush3.bf16.msra.mxu1 %v6465_v7 }
 0x195   : > { %4329 = vmatmul.mubr.bf16.vlgmr.msra.gmra.mxu1 %v4058_v18 }
 0x1a8   : > { %v5769_v20 = vpop.f32.mrf.mxu0 }
 0x1a9   : > { %v5791_v21 = vpop.f32.mrf.mxu1 }
 0x1aa   : > { %v5770_v22 = vpop.f32.mrf.mxu0 }
 0x1ab   : > { %v5771_v23 = vadd.f32 %v5770_v22, %v5769_v20  ;;  %v5792_v12 = vpop.f32.mrf.mxu1 }
 0x1ac   : > { %v5793_v24 = vadd.f32 %v5792_v12, %v5791_v21  ;;  %v5772_v25 = vpop.f32.mrf.mxu0 }
 0x1ad   : > { %v5794_v13 = vpop.f32.mrf.mxu1  ;;  %v5530_v25 = vld [vmem:[%s264_s27] ss:$0 sm:$0xff] }
 0x1ae   : > { %v2501_v10 = vadd.f32 %v5793_v24, %v5771_v23  ;;  %v5773_v26 = vpop.f32.mrf.mxu0 }
 0x1af   : > { %v5795_v27 = vpop.f32.mrf.mxu1 }
 0x1b0   : > { %v2506_v28 = vadd.f32 %v2501_v10, %v2112_v11 }
 0x1c8   : > { %v5813_v29 = vpop.f32.mrf.mxu0 }
 0x1c9   : > { %v5835_v30 = vpop.f32.mrf.mxu1 }
 0x1ca   : > { %v5814_v2 = vpop.f32.mrf.mxu0 }
 0x1cb   : > { %v5815_v3 = vadd.f32 %v5814_v2, %v5813_v29  ;;  %v5836_v31 = vpop.f32.mrf.mxu1 }
 0x1cc   : > { %v5837_v15 = vadd.f32 %v5836_v31, %v5835_v30  ;;  %v5816_v19 = vpop.f32.mrf.mxu0 }
 0x1cd   : > { %v5838_v32 = vpop.f32.mrf.mxu1 }
 0x1ce   : > { %v2859_v33 = vadd.f32 %v5837_v15, %v5815_v3  ;;  %v5817_v34 = vpop.f32.mrf.mxu0 }
 0x1cf   : > { %v5839_v35 = vpop.f32.mrf.mxu1 }
 0x1d0   : > { %v2864_v36 = vadd.f32 %v2859_v33, %v2506_v28 }
 0x1e8   : > { %v5857_v37 = vpop.f32.mrf.mxu0 }
 0x1e9   : > { %v5879_v38 = vpop.f32.mrf.mxu1 }
 0x1ea   : > { %v5858_v39 = vpop.f32.mrf.mxu0 }
 0x1eb   : > { %v5880_v40 = vpop.f32.mrf.mxu1  ;;  %v5859_v41 = vadd.f32 %v5858_v39, %v5857_v37 }
 0x1ec   : > { %v5881_v42 = vadd.f32 %v5880_v40, %v5879_v38  ;;  %v5860_v43 = vpop.f32.mrf.mxu0 }
 0x1ed   : > { %v5882_v44 = vpop.f32.mrf.mxu1 }
 0x1ee   : > { %v3245_v45 = vadd.f32 %v5881_v42, %v5859_v41  ;;  %v5861_v46 = vpop.f32.mrf.mxu0 }
 0x1ef   : > { %v5883_v47 = vpop.f32.mrf.mxu1 }
 0x1f0   : > { %v3250_v48 = vadd.f32 %v3245_v45, %v2864_v36 }
 0x208   : > { %v5901_v49 = vpop.f32.mrf.mxu0 }
 0x20a   : > { %v5902_v51 = vpop.f32.mrf.mxu0 }
 0x20b   : > { %v5903_v53 = vadd.f32 %v5902_v51, %v5901_v49 }
 0x20c   : > { %v5904_v55 = vpop.f32.mrf.mxu0 }
 0x20d   : > { %v5923_v50 = vpop.f32.mrf.mxu1 }
 0x20e   : > { %v5905_v58 = vpop.f32.mrf.mxu0 }
 0x20f   : > { %v5924_v52 = vpop.f32.mrf.mxu1 }
 0x210   : > { %v5925_v54 = vadd.f32 %v5924_v52, %v5923_v50 }
 0x211   : > { %v5926_v56 = vpop.f32.mrf.mxu1 }
 0x212   : > { %v3591_v57 = vadd.f32 %v5925_v54, %v5903_v53 }
 0x213   : > { %v5927_v59 = vpop.f32.mrf.mxu1 }
 0x214   : > { %v3596_v60 = vadd.f32 %v3591_v57, %v3250_v48 }
 0x228   : > { %v5945_v61 = vpop.f32.mrf.mxu0 }
 0x22a   : > { %v5946_v63 = vpop.f32.mrf.mxu0 }
 0x22b   : > { %v5947_v7 = vadd.f32 %v5946_v63, %v5945_v61 }
 0x22c   : > { %v5948_v1 = vpop.f32.mrf.mxu0 }
 0x22e   : > { %v5949_v5 = vpop.f32.mrf.mxu0 }
 0x235   : > { %v5967_v62 = vpop.f32.mrf.mxu1 }
 0x237   : > { %v5968_v0 = vpop.f32.mrf.mxu1 }
 0x238   : > { %v5969_v8 = vadd.f32 %v5968_v0, %v5967_v62 }
 0x239   : > { %v5970_v4 = vpop.f32.mrf.mxu1 }
 0x23a   : > { %v3973_v14 = vadd.f32 %v5969_v8, %v5947_v7 }
 0x23b   : > { %v5971_v6 = vpop.f32.mrf.mxu1 }
 0x23c   : > { %v3978_v23 = vadd.f32 %v3973_v14, %v3596_v60 }
 0x248   : > { %v5989_v9 = vpop.f32.mrf.mxu0 }
 0x24a   : > { %v5990_v16 = vpop.f32.mrf.mxu0 }
 0x24b   : > { %v5991_v17 = vadd.f32 %v5990_v16, %v5989_v9 }
 0x24c   : > { %v5992_v21 = vpop.f32.mrf.mxu0 }
 0x24e   : > { %v5993_v24 = vpop.f32.mrf.mxu0 }
 0x255   : > { %v6011_v11 = vpop.f32.mrf.mxu1 }
 0x257   : > { %v6012_v18 = vpop.f32.mrf.mxu1 }
 0x258   : > { %v6013_v20 = vadd.f32 %v6012_v18, %v6011_v11 }
 0x259   : > { %v6014_v22 = vpop.f32.mrf.mxu1 }
 0x25a   : > { %v4331_v12 = vadd.f32 %v6013_v20, %v5991_v17 }
 0x25b   : > { %v6015_v13 = vpop.f32.mrf.mxu1 }
 0x25c   : > { %v4336_v10 = vadd.f32 %v4331_v12, %v3978_v23 }
 0x25e   : > { %v4344_v26 = vadd.f32 %v5530_v25, %v4336_v10 }
 0x260   : > { %vm4345_vm0 = vcmp.ge.f32.partialorder %v4344_v26, 0.0  ;;  %v4346_v27 = vmul.f32 0.1, %v4344_v26 }
 0x262   : > { %v4347_v28 = vsel %vm4345_vm0, %v4344_v26, %v4346_v27 }
 0x263   : > { %v4348_v29 = vpack.c.bf16 %v4347_v28, %v4347_v28 }
 0x265   : > { %4349 = vst [vmem:[%s276_s6] sm:$0x3] %v4348_v29 }
 0x266 PF: > { %s13_s18 = sadd.s32 1, %s6524_s18   ;;  %s7118_s12 = smov %s6504_s13 }
 0x267   : > { %p10_p12 = scmp.ge.s32.totalorder %s13_s18, 18   ;;  %s7119_s13 = smov %s6597_s25 }
 0x268   : > { %s7120_s14 = smov %s6516_s16  ;;  %s7121_s15 = smov %s6520_s17 }
 0x269   : > { %s7122_s16 = smov %s7125_s19  ;;  %s7123_s17 = smov %s7129_s20 }
 0x26a   :  { %12 = sbr.rel (!%p10_p12) target bundleno = 4 (0x4), region = 106 }

// kernel: discriminator_s_forward.9
= control target key start
LH: loop header
LB: loop body
LE: loop exit
PB: predicated region body
PF: predicated region fallthrough
CT: control target
= control target key end

     0   :  { %s7707_s12 = smov 0   ;;  %s7709_s13 = smov 0   ;;  %s8585_s0 = inlined_call_operand.vmem [shape: bf16[2,1,8,1024], index: 0, kind: input, shape index: {}]   ;;  %s8586_s1 = inlined_call_operand.vmem [shape: bf16[4,5,1024,256], index: 1, kind: input, shape index: {}]   ;;  %s8587_s2 = inlined_call_operand.vmem [shape: f32[1,1024], index: 2, kind: input, shape index: {}]   ;;  %s8588_s3 = inlined_call_operand.vmem [shape: bf16[2,4,1024], index: 3, kind: output, shape index: {}]  }
   0x1   :  { %s7711_s14 = smov 0   ;;  %s7713_s15 = smov 0  }
   0x2   :  { %s7715_s16 = smov 0  }
   0x3 LB: > { %s28_s17 = sadd.s32 1, %s7677_s14  ;;  %s32_s18 = sadd.s32 1, %s7681_s15  ;;  %s7685_s16 = sphi %s7715_s16, %s13_s16   ;;  %s7681_s15 = sphi %s7713_s15, %s8592_s15   ;;  %s7677_s14 = sphi %s7711_s14, %s8591_s14   ;;  %s7673_s13 = sphi %s7709_s13, %s8590_s13   ;;  %s7669_s12 = sphi %s7707_s12, %s8589_s12  }
   0x4   : > { %p30_p0 = scmp.ge.s32.totalorder %s28_s17, 4  ;;  %p5401_p1 = scmp.ge.s32.totalorder %s7685_s16, 1 }
   0x5   : > { %p186_p2 = scmp.lt.s32.totalorder %s7685_s16, 9 }
   0x6   : > { %s8594_s17 = smov (%p30_p0, %s28_s17), 0  ;;  %s8596_s18 = smov (!%p30_p0, %s32_s18), %s7681_s15 }
   0x7   : > { %p187_p3 = pnand %p5401_p1, %p186_p2  ;;  %p34_p4 = scmp.ge.s32.totalorder %s8596_s18, 2 }
   0x8   : > { %p240_p5 = scmp.lt.s32.totalorder (!%p187_p3), %s7669_s12, 3  ;;  %p231_p6 = scmp.lt.s32.totalorder (!%p187_p3), %s7673_s13, 1 }
   0x9   : > { %s8598_s18 = smov (%p34_p4, %s8596_s18), 0  ;;  %190 = sbr.rel (%p187_p3) target bundleno = 869 (0x365), region = 32 }
   0xa   : > { %s5405_s28 = sshll.u32 (!%p187_p3), %s7669_s12, 1 }
   0xb   : > { %p246_p7 = scmp.lt.s32.totalorder (!%p187_p3), %s5405_s28, 7 }
   0xe   : > { %s241_s19 = scalar_select %p240_p5, %s7669_s12, 3 }
   0xf   : > { %s8600_s13 = smov (!%p231_p6, %s7673_s13), 1  ;;  %s8602_s28 = smov (!%p246_p7, %s5405_s28), 7 }
  0x10   : > { %s6606_s20 = smul.u32 5120, %s241_s19  ;;  %s6605_s24 = sshll.u32 %s8600_s13, 5 }
  0x11   : > { %s7800_s27 = scalar_lea.vmem %s8585_s0, %s6605_s24  ;;  %s248_s4 = scalar_lea.vmem %s8587_s2, %s8602_s28 }
  0x12   : > { %s7746_s23 = scalar_lea.vmem %s8586_s1, %s6606_s20  ;;  %v396_v47 = vld [vmem:[%s7800_s27] sm:$0x77]  ;;  %v397_v49 = vld [vmem:[%s7800_s27 + $0x8] sm:$0x77]  ;;  %s5407_s5 = sshll.u32 %s8600_s13, 3 }
  0x13   : > { %v6647_v0 = vld [vmem:[%s7746_s23 + $0x474] ss:$8 sps:$4 sm:$0xff]   ;;  %v6651_v2 = vld [vmem:[%s7746_s23 + $0x470] ss:$8 sps:$4 sm:$0xff]   ;;  %v6653_v4 = vld [vmem:[%s7746_s23 + $0x464] ss:$8 sps:$4 sm:$0xff]   ;;  %v5538_v48 = vcombine.high %v396_v47, %v396_v47  ;;  %v5540_v52 = vcombine.high %v397_v49, %v397_v49  ;;  %s260_s6 = sadd.s32 %s5407_s5, %s8602_s28 }
  0x14   : > { %v6649_v1 = vld [vmem:[%s7746_s23 + $0x574] ss:$8 sps:$4 sm:$0xff]   ;;  %1253 = vmatprep.subr.bf16.mxu0 %v6647_v0  ;;  %v6652_v3 = vld [vmem:[%s7746_s23 + $0x570] ss:$8 sps:$4 sm:$0xff]   ;;  %v6655_v5 = vld [vmem:[%s7746_s23 + $0x564] ss:$8 sps:$4 sm:$0xff]  }
  0x15   : > { %1294 = vmatprep.subr.bf16.mxu1 %v6649_v1  ;;  %1254 = vmatpush1.bf16.msra.mxu0 %v6651_v2  ;;  %v6657_v6 = vld [vmem:[%s7746_s23 + $0x460] ss:$8 sps:$4 sm:$0xff]   ;;  %v6659_v8 = vld [vmem:[%s7746_s23 + $0x454] ss:$8 sps:$4 sm:$0xff]   ;;  %v6663_v10 = vld [vmem:[%s7746_s23 + $0x450] ss:$8 sps:$4 sm:$0xff]   ;;  %v5537_v2 = vcombine.low %v396_v47, %v396_v47 }
  0x16   : > { %1295 = vmatpush1.bf16.msra.mxu1 %v6652_v3  ;;  %1255 = vmatprep.subr.bf16.mxu0 %v6653_v4  ;;  %v6658_v7 = vld [vmem:[%s7746_s23 + $0x560] ss:$8 sps:$4 sm:$0xff]   ;;  %v6661_v9 = vld [vmem:[%s7746_s23 + $0x554] ss:$8 sps:$4 sm:$0xff]   ;;  %v6664_v11 = vld [vmem:[%s7746_s23 + $0x550] ss:$8 sps:$4 sm:$0xff]   ;;  %v5539_v3 = vcombine.low %v397_v49, %v397_v49 }
  0x17   : > { %1296 = vmatprep.subr.bf16.mxu1 %v6655_v5  ;;  %v6665_v12 = vld [vmem:[%s7746_s23 + $0x444] ss:$8 sps:$4 sm:$0xff]   ;;  %v6669_v14 = vld [vmem:[%s7746_s23 + $0x440] ss:$8 sps:$4 sm:$0xff]   ;;  %v6671_v16 = vld [vmem:[%s7746_s23 + $0x434] ss:$8 sps:$4 sm:$0xff]  }
  0x18   : > { %v6667_v13 = vld [vmem:[%s7746_s23 + $0x544] ss:$8 sps:$4 sm:$0xff]   ;;  %v6670_v15 = vld [vmem:[%s7746_s23 + $0x540] ss:$8 sps:$4 sm:$0xff]   ;;  %v6673_v17 = vld [vmem:[%s7746_s23 + $0x534] ss:$8 sps:$4 sm:$0xff]  }
  0x19   : > { %1256 = vmatpush1.bf16.msra.mxu0 %v6657_v6  ;;  %v6675_v18 = vld [vmem:[%s7746_s23 + $0x430] ss:$8 sps:$4 sm:$0xff]   ;;  %v6677_v20 = vld [vmem:[%s7746_s23 + $0x424] ss:$8 sps:$4 sm:$0xff]   ;;  %v6681_v22 = vld [vmem:[%s7746_s23 + $0x420] ss:$8 sps:$4 sm:$0xff]  }
  0x1a   : > { %1297 = vmatpush1.bf16.msra.mxu1 %v6658_v7  ;;  %1257 = vmatprep.subr.bf16.mxu0 %v6659_v8  ;;  %v6676_v19 = vld [vmem:[%s7746_s23 + $0x530] ss:$8 sps:$4 sm:$0xff]   ;;  %v6679_v21 = vld [vmem:[%s7746_s23 + $0x524] ss:$8 sps:$4 sm:$0xff]   ;;  %v6682_v23 = vld [vmem:[%s7746_s23 + $0x520] ss:$8 sps:$4 sm:$0xff]  }
  0x1b   : > { %1298 = vmatprep.subr.bf16.mxu1 %v6661_v9  ;;  %v6683_v24 = vld [vmem:[%s7746_s23 + $0x414] ss:$8 sps:$4 sm:$0xff]   ;;  %v6687_v26 = vld [vmem:[%s7746_s23 + $0x410] ss:$8 sps:$4 sm:$0xff]   ;;  %v6689_v28 = vld [vmem:[%s7746_s23 + $0x404] ss:$8 sps:$4 sm:$0xff]  }
  0x1c   : > { %v6685_v25 = vld [vmem:[%s7746_s23 + $0x514] ss:$8 sps:$4 sm:$0xff]   ;;  %v6688_v27 = vld [vmem:[%s7746_s23 + $0x510] ss:$8 sps:$4 sm:$0xff]   ;;  %v6691_v29 = vld [vmem:[%s7746_s23 + $0x504] ss:$8 sps:$4 sm:$0xff]  }
  0x1d   : > { %1258 = vmatpush1.bf16.msra.mxu0 %v6663_v10  ;;  %v6693_v30 = vld [vmem:[%s7746_s23 + $0x400] ss:$8 sps:$4 sm:$0xff]   ;;  %v6695_v32 = vld [vmem:[%s7746_s23 + $0x4f4] ss:$8 sps:$4 sm:$0xff]   ;;  %v6699_v34 = vld [vmem:[%s7746_s23 + $0x4f0] ss:$8 sps:$4 sm:$0xff]  }
  0x1e   : > { %1299 = vmatpush1.bf16.msra.mxu1 %v6664_v11  ;;  %1259 = vmatprep.subr.bf16.mxu0 %v6665_v12  ;;  %v6694_v31 = vld [vmem:[%s7746_s23 + $0x500] ss:$8 sps:$4 sm:$0xff]   ;;  %v6697_v33 = vld [vmem:[%s7746_s23 + $0x5f4] ss:$8 sps:$4 sm:$0xff]   ;;  %v6700_v35 = vld [vmem:[%s7746_s23 + $0x5f0] ss:$8 sps:$4 sm:$0xff]  }
  0x1f   : > { %1300 = vmatprep.subr.bf16.mxu1 %v6667_v13  ;;  %v6701_v36 = vld [vmem:[%s7746_s23 + $0x4e4] ss:$8 sps:$4 sm:$0xff]   ;;  %v6705_v38 = vld [vmem:[%s7746_s23 + $0x4e0] ss:$8 sps:$4 sm:$0xff]   ;;  %v6707_v40 = vld [vmem:[%s7746_s23 + $0x4d4] ss:$8 sps:$4 sm:$0xff]  }
  0x20   : > { %v6703_v37 = vld [vmem:[%s7746_s23 + $0x5e4] ss:$8 sps:$4 sm:$0xff]   ;;  %v6706_v39 = vld [vmem:[%s7746_s23 + $0x5e0] ss:$8 sps:$4 sm:$0xff]   ;;  %v6709_v41 = vld [vmem:[%s7746_s23 + $0x5d4] ss:$8 sps:$4 sm:$0xff]  }
  0x21   : > { %1260 = vmatpush1.bf16.msra.mxu0 %v6669_v14  ;;  %v6711_v42 = vld [vmem:[%s7746_s23 + $0x4d0] ss:$8 sps:$4 sm:$0xff]   ;;  %v6713_v44 = vld [vmem:[%s7746_s23 + $0x4c4] ss:$8 sps:$4 sm:$0xff]   ;;  %v6717_v46 = vld [vmem:[%s7746_s23 + $0x4c0] ss:$8 sps:$4 sm:$0xff]  }
  0x22   : > { %1301 = vmatpush1.bf16.msra.mxu1 %v6670_v15  ;;  %1261 = vmatprep.subr.bf16.mxu0 %v6671_v16  ;;  %v6712_v43 = vld [vmem:[%s7746_s23 + $0x5d0] ss:$8 sps:$4 sm:$0xff]   ;;  %v6715_v45 = vld [vmem:[%s7746_s23 + $0x5c4] ss:$8 sps:$4 sm:$0xff]   ;;  %v6718_v50 = vld [vmem:[%s7746_s23 + $0x5c0] ss:$8 sps:$4 sm:$0xff]  }
  0x23   : > { %1302 = vmatprep.subr.bf16.mxu1 %v6673_v17  ;;  %v6719_v51 = vld [vmem:[%s7746_s23 + $0x4b4] ss:$8 sps:$4 sm:$0xff]   ;;  %v557_v54 = vshrl.u32 %v5538_v48, 16  ;;  %v559_v55 = vshll.u32 %v5538_v48, 16  ;;  %v571_v56 = vshrl.u32 %v5540_v52, 16  ;;  %v573_v57 = vshll.u32 %v5540_v52, 16 }
  0x24   : > { %v6721_v53 = vld [vmem:[%s7746_s23 + $0x5b4] ss:$8 sps:$4 sm:$0xff]   ;;  %v6723_v59 = vld [vmem:[%s7746_s23 + $0x4b0] ss:$8 sps:$4 sm:$0xff]   ;;  %v6725_v62 = vld [vmem:[%s7746_s23 + $0x4a4] ss:$8 sps:$4 sm:$0xff]  }
  0x25   : > { %1262 = vmatpush1.bf16.msra.mxu0 %v6675_v18  ;;  %v561_v58 = vrot.slane %v559_v55, 1  ;;  %v6724_v60 = vld [vmem:[%s7746_s23 + $0x5b0] ss:$8 sps:$4 sm:$0xff]   ;;  %v575_v61 = vrot.slane %v573_v57, 1  ;;  %v6727_v63 = vld [vmem:[%s7746_s23 + $0x5a4] ss:$8 sps:$4 sm:$0xff]  }
  0x26   : > { %1303 = vmatpush1.bf16.msra.mxu1 %v6676_v19  ;;  %1263 = vmatprep.subr.bf16.mxu0 %v6677_v20  ;;  %v6729_v4 = vld [vmem:[%s7746_s23 + $0x4a0] ss:$8 sps:$4 sm:$0xff]   ;;  %v6731_v6 = vld [vmem:[%s7746_s23 + $0x494] ss:$8 sps:$4 sm:$0xff]   ;;  %v552_v8 = vshll.u32 %v5537_v2, 16  ;;  %v566_v9 = vshll.u32 %v5539_v3, 16 }
  0x27   : > { %1304 = vmatprep.subr.bf16.mxu1 %v6679_v21  ;;  %v562_v0 = vor.u32 %v561_v58, %v557_v54  ;;  %v576_v1 = vor.u32 %v575_v61, %v571_v56  ;;  %v6730_v5 = vld [vmem:[%s7746_s23 + $0x5a0] ss:$8 sps:$4 sm:$0xff]   ;;  %v6733_v7 = vld [vmem:[%s7746_s23 + $0x594] ss:$8 sps:$4 sm:$0xff]   ;;  %v6735_v10 = vld [vmem:[%s7746_s23 + $0x490] ss:$8 sps:$4 sm:$0xff]  }
  0x28   : > { %v6736_v11 = vld [vmem:[%s7746_s23 + $0x590] ss:$8 sps:$4 sm:$0xff]   ;;  %v6737_v12 = vld [vmem:[%s7746_s23 + $0x484] ss:$8 sps:$4 sm:$0xff]   ;;  %v550_v14 = vshrl.u32 %v5537_v2, 16  ;;  %v554_v15 = vrot.slane %v552_v8, 1 }
  0x29   : > { %1264 = vmatpush1.bf16.msra.mxu0 %v6681_v22  ;;  %1285 = vmatprep.mubr.bf16.mxu0 %v562_v0  ;;  %v6739_v13 = vld [vmem:[%s7746_s23 + $0x584] ss:$8 sps:$4 sm:$0xff]   ;;  %v564_v16 = vshrl.u32 %v5539_v3, 16  ;;  %v568_v17 = vrot.slane %v566_v9, 1  ;;  %v6741_v18 = vld [vmem:[%s7746_s23 + $0x480] ss:$8 sps:$4 sm:$0xff]  }
  0x2a   : > { %1305 = vmatpush1.bf16.msra.mxu1 %v6682_v23  ;;  %1265 = vmatprep.subr.bf16.mxu0 %v6683_v24  ;;  %v6742_v19 = vld [vmem:[%s7746_s23 + $0x580] ss:$8 sps:$4 sm:$0xff]   ;;  %v6749_v20 = vld [vmem:[%s7746_s23 + $0x674] ss:$8 sps:$4 sm:$0xff]   ;;  %v555_v22 = vor.u32 %v554_v15, %v550_v14  ;;  %v6747_v24 = vld [vmem:[%s7746_s23 + $0x670] ss:$8 sps:$4 sm:$0xff]  }
  0x2b   : > { %1306 = vmatprep.subr.bf16.mxu1 %v6685_v25  ;;  %1326 = vmatprep.mubr.bf16.mxu1 %v576_v1  ;;  %v6752_v21 = vld [vmem:[%s7746_s23 + $0x774] ss:$8 sps:$4 sm:$0xff]   ;;  %v569_v23 = vor.u32 %v568_v17, %v564_v16  ;;  %v6750_v25 = vld [vmem:[%s7746_s23 + $0x770] ss:$8 sps:$4 sm:$0xff]   ;;  %v6791_v52 = vld [vmem:[%s7746_s23 + $0x604] ss:$8 sps:$4 sm:$0xff]  }
  0x2c   : > { %v6788_v47 = vld [vmem:[%s7746_s23 + $0x714] ss:$8 sps:$4 sm:$0xff]   ;;  %v6783_v48 = vld [vmem:[%s7746_s23 + $0x610] ss:$8 sps:$4 sm:$0xff]   ;;  %v6794_v54 = vld [vmem:[%s7746_s23 + $0x704] ss:$8 sps:$4 sm:$0xff]  }
  0x2d   : > { %1266 = vmatpush1.bf16.msra.mxu0 %v6687_v26  ;;  %v6755_v26 = vld [vmem:[%s7746_s23 + $0x664] ss:$8 sps:$4 sm:$0xff]   ;;  %v6786_v49 = vld [vmem:[%s7746_s23 + $0x710] ss:$8 sps:$4 sm:$0xff]   ;;  %v6789_v58 = vld [vmem:[%s7746_s23 + $0x600] ss:$8 sps:$4 sm:$0xff]  }
  0x2e   : > { %1307 = vmatpush1.bf16.msra.mxu1 %v6688_v27  ;;  %1267 = vmatprep.subr.bf16.mxu0 %v6689_v28  ;;  %v6758_v27 = vld [vmem:[%s7746_s23 + $0x764] ss:$8 sps:$4 sm:$0xff]   ;;  %v6753_v28 = vld [vmem:[%s7746_s23 + $0x660] ss:$8 sps:$4 sm:$0xff]   ;;  %v6800_v0 = vld [vmem:[%s7746_s23 + $0x7f4] ss:$8 sps:$4 sm:$0xff]  }
  0x2f   : > { %1308 = vmatprep.subr.bf16.mxu1 %v6691_v29  ;;  %v6756_v29 = vld [vmem:[%s7746_s23 + $0x760] ss:$8 sps:$4 sm:$0xff]   ;;  %v6795_v3 = vld [vmem:[%s7746_s23 + $0x6f0] ss:$8 sps:$4 sm:$0xff]   ;;  %v6815_v14 = vld [vmem:[%s7746_s23 + $0x6c4] ss:$8 sps:$4 sm:$0xff]  }
  0x30   : > { %v6801_v8 = vld [vmem:[%s7746_s23 + $0x6e0] ss:$8 sps:$4 sm:$0xff]   ;;  %v6818_v15 = vld [vmem:[%s7746_s23 + $0x7c4] ss:$8 sps:$4 sm:$0xff]   ;;  %s5408_s7 = sshll.u32 %s260_s6, 1 }
  0x31   : > { %1268 = vmatpush1.bf16.msra.mxu0 %v6693_v30  ;;  %v6761_v30 = vld [vmem:[%s7746_s23 + $0x654] ss:$8 sps:$4 sm:$0xff]   ;;  %v6804_v9 = vld [vmem:[%s7746_s23 + $0x7e0] ss:$8 sps:$4 sm:$0xff]   ;;  %s262_s10 = scalar_lea.vmem %s8588_s3, %s5408_s7 }
  0x32   : > { %1309 = vmatpush1.bf16.msra.mxu1 %v6694_v31  ;;  %1269 = vmatprep.subr.bf16.mxu0 %v6695_v32  ;;  %v6764_v31 = vld [vmem:[%s7746_s23 + $0x754] ss:$8 sps:$4 sm:$0xff]   ;;  %v6759_v32 = vld [vmem:[%s7746_s23 + $0x650] ss:$8 sps:$4 sm:$0xff]   ;;  %v6813_v16 = vld [vmem:[%s7746_s23 + $0x6c0] ss:$8 sps:$4 sm:$0xff]  }
  0x33   : > { %1310 = vmatprep.subr.bf16.mxu1 %v6697_v33  ;;  %v6762_v33 = vld [vmem:[%s7746_s23 + $0x750] ss:$8 sps:$4 sm:$0xff]   ;;  %v6816_v17 = vld [vmem:[%s7746_s23 + $0x7c0] ss:$8 sps:$4 sm:$0xff]  }
  0x35   : > { %1270 = vmatpush2.bf16.msra.mxu0 %v6699_v34  ;;  %v6767_v34 = vld [vmem:[%s7746_s23 + $0x644] ss:$8 sps:$4 sm:$0xff]  }
  0x36   : > { %1311 = vmatpush2.bf16.msra.mxu1 %v6700_v35  ;;  %1271 = vmatprep.subr.bf16.mxu0 %v6701_v36  ;;  %v6770_v35 = vld [vmem:[%s7746_s23 + $0x744] ss:$8 sps:$4 sm:$0xff]   ;;  %v6765_v36 = vld [vmem:[%s7746_s23 + $0x640] ss:$8 sps:$4 sm:$0xff]  }
  0x37   : > { %1312 = vmatprep.subr.bf16.mxu1 %v6703_v37  ;;  %v6768_v37 = vld [vmem:[%s7746_s23 + $0x740] ss:$8 sps:$4 sm:$0xff]  }
  0x39   : > { %1272 = vmatpush2.bf16.msra.mxu0 %v6705_v38  ;;  %v6773_v38 = vld [vmem:[%s7746_s23 + $0x634] ss:$8 sps:$4 sm:$0xff]  }
  0x3a   : > { %1313 = vmatpush2.bf16.msra.mxu1 %v6706_v39  ;;  %1273 = vmatprep.subr.bf16.mxu0 %v6707_v40  ;;  %v6776_v39 = vld [vmem:[%s7746_s23 + $0x734] ss:$8 sps:$4 sm:$0xff]   ;;  %v6771_v40 = vld [vmem:[%s7746_s23 + $0x630] ss:$8 sps:$4 sm:$0xff]  }
  0x3b   : > { %1314 = vmatprep.subr.bf16.mxu1 %v6709_v41  ;;  %v6774_v41 = vld [vmem:[%s7746_s23 + $0x730] ss:$8 sps:$4 sm:$0xff]  }
  0x3d   : > { %1274 = vmatpush2.bf16.msra.mxu0 %v6711_v42  ;;  %v6779_v42 = vld [vmem:[%s7746_s23 + $0x624] ss:$8 sps:$4 sm:$0xff]  }
  0x3e   : > { %1315 = vmatpush2.bf16.msra.mxu1 %v6712_v43  ;;  %1275 = vmatprep.subr.bf16.mxu0 %v6713_v44  ;;  %v6782_v43 = vld [vmem:[%s7746_s23 + $0x724] ss:$8 sps:$4 sm:$0xff]   ;;  %v6777_v44 = vld [vmem:[%s7746_s23 + $0x620] ss:$8 sps:$4 sm:$0xff]  }
  0x3f   : > { %1316 = vmatprep.subr.bf16.mxu1 %v6715_v45  ;;  %v6780_v45 = vld [vmem:[%s7746_s23 + $0x720] ss:$8 sps:$4 sm:$0xff]  }
  0x41   : > { %1276 = vmatpush2.bf16.msra.mxu0 %v6717_v46  ;;  %v6785_v46 = vld [vmem:[%s7746_s23 + $0x614] ss:$8 sps:$4 sm:$0xff]  }
  0x42   : > { %1317 = vmatpush2.bf16.msra.mxu1 %v6718_v50  ;;  %1277 = vmatprep.subr.bf16.mxu0 %v6719_v51  ;;  %v7853_v50 = vld [vmem:[%s7800_s27 + $0x10] sm:$0x77]  ;;  %v7856_v51 = vld [vmem:[%s7800_s27 + $0x18] sm:$0x77] }
  0x43   : > { %1318 = vmatprep.subr.bf16.mxu1 %v6721_v53  ;;  %v5542_v53 = vcombine.high %v7853_v50, %v7853_v50  ;;  %v5544_v55 = vcombine.high %v7856_v51, %v7856_v51 }
  0x45   : > { %1278 = vmatpush2.bf16.msra.mxu0 %v6723_v59  ;;  %v585_v56 = vshrl.u32 %v5542_v53, 16  ;;  %v587_v57 = vshll.u32 %v5542_v53, 16  ;;  %v6792_v59 = vld [vmem:[%s7746_s23 + $0x700] ss:$8 sps:$4 sm:$0xff]   ;;  %v601_v61 = vshll.u32 %v5544_v55, 16 }
  0x46   : > { %1319 = vmatpush2.bf16.msra.mxu1 %v6724_v60  ;;  %1279 = vmatprep.subr.bf16.mxu0 %v6725_v62  ;;  %v599_v60 = vshrl.u32 %v5544_v55, 16  ;;  %v6797_v62 = vld [vmem:[%s7746_s23 + $0x6f4] ss:$8 sps:$4 sm:$0xff]   ;;  %v7914_v53 = vld [vmem:[%s7800_s27 + $0x8] sm:$0x33] }
  0x47   : > { %1320 = vmatprep.subr.bf16.mxu1 %v6727_v63  ;;  %v589_v63 = vrot.slane %v587_v57, 1  ;;  %v603_v1 = vrot.slane %v601_v61, 1  ;;  %v6864_v55 = vld [vmem:[%s7746_s23 + $0x154] ss:$8 sps:$4 sm:$0xff]   ;;  %v5676_v57 = vcombine.high %v7914_v53, %v7914_v53  ;;  %v6870_v61 = vld [vmem:[%s7746_s23 + $0x144] ss:$8 sps:$4 sm:$0xff]  }
  0x49   : > { %1280 = vmatpush2.bf16.msra.mxu0 %v6729_v4  ;;  %v590_v2 = vor.u32 %v589_v63, %v585_v56  ;;  %v6798_v4 = vld [vmem:[%s7746_s23 + $0x7f0] ss:$8 sps:$4 sm:$0xff]   ;;  %v6868_v63 = vld [vmem:[%s7746_s23 + $0x140] ss:$8 sps:$4 sm:$0xff]  }
  0x4a   : > { %1321 = vmatpush2.bf16.msra.mxu1 %v6730_v5  ;;  %1281 = vmatprep.subr.bf16.mxu0 %v6731_v6  ;;  %v604_v5 = vor.u32 %v603_v1, %v599_v60  ;;  %v6803_v6 = vld [vmem:[%s7746_s23 + $0x6e4] ss:$8 sps:$4 sm:$0xff]   ;;  %v6876_v1 = vld [vmem:[%s7746_s23 + $0x134] ss:$8 sps:$4 sm:$0xff]  }
  0x4b   : > { %1322 = vmatprep.subr.bf16.mxu1 %v6733_v7  ;;  %v6806_v7 = vld [vmem:[%s7746_s23 + $0x7e4] ss:$8 sps:$4 sm:$0xff]  }
  0x4c   : > { %v6867_v60 = vld [vmem:[%s7746_s23 + $0x44] ss:$8 sps:$4 sm:$0xff]  }
  0x4d   : > { %1282 = vmatpush2.bf16.msra.mxu0 %v6735_v10  ;;  %v6809_v10 = vld [vmem:[%s7746_s23 + $0x6d4] ss:$8 sps:$4 sm:$0xff]  }
  0x4e   : > { %1323 = vmatpush2.bf16.msra.mxu1 %v6736_v11  ;;  %1283 = vmatprep.subr.bf16.mxu0 %v6737_v12  ;;  %v6812_v11 = vld [vmem:[%s7746_s23 + $0x7d4] ss:$8 sps:$4 sm:$0xff]   ;;  %v6807_v12 = vld [vmem:[%s7746_s23 + $0x6d0] ss:$8 sps:$4 sm:$0xff]  }
  0x4f   : > { %1324 = vmatprep.subr.bf16.mxu1 %v6739_v13  ;;  %v6810_v13 = vld [vmem:[%s7746_s23 + $0x7d0] ss:$8 sps:$4 sm:$0xff]  }
  0x51   : > { %1284 = vmatpush2.bf16.msra.mxu0 %v6741_v18  ;;  %v6821_v18 = vld [vmem:[%s7746_s23 + $0x6b4] ss:$8 sps:$4 sm:$0xff]  }
  0x52   : > { %1325 = vmatpush2.bf16.msra.mxu1 %v6742_v19  ;;  %1335 = vmatprep.subr.bf16.mxu0 %v6749_v20  ;;  %v6824_v19 = vld [vmem:[%s7746_s23 + $0x7b4] ss:$8 sps:$4 sm:$0xff]   ;;  %v6819_v20 = vld [vmem:[%s7746_s23 + $0x6b0] ss:$8 sps:$4 sm:$0xff]  }
  0x53   : > { %1376 = vmatprep.subr.bf16.mxu1 %v6752_v21  ;;  %v6822_v21 = vld [vmem:[%s7746_s23 + $0x7b0] ss:$8 sps:$4 sm:$0xff]  }
  0x54   : > { %1286 = vmatmul.mubr.bf16.vlgmr.msra.gmra.mxu0 %v555_v22  ;;  %v6827_v22 = vld [vmem:[%s7746_s23 + $0x6a4] ss:$8 sps:$4 sm:$0xff]  }
  0x55   : > { %1327 = vmatmul.mubr.bf16.vlgmr.msra.gmra.mxu1 %v569_v23  ;;  %1336 = vmatpush1.bf16.msra.mxu0 %v6747_v24  ;;  %v6830_v23 = vld [vmem:[%s7746_s23 + $0x7a4] ss:$8 sps:$4 sm:$0xff]   ;;  %v6825_v24 = vld [vmem:[%s7746_s23 + $0x6a0] ss:$8 sps:$4 sm:$0xff]  }
  0x56   : > { %1377 = vmatpush1.bf16.msra.mxu1 %v6750_v25  ;;  %1337 = vmatprep.subr.bf16.mxu0 %v6755_v26  ;;  %v6828_v25 = vld [vmem:[%s7746_s23 + $0x7a0] ss:$8 sps:$4 sm:$0xff]   ;;  %v5541_v26 = vcombine.low %v7853_v50, %v7853_v50 }
  0x57   : > { %1378 = vmatprep.subr.bf16.mxu1 %v6758_v27  ;;  %1367 = vmatprep.mubr.bf16.mxu0 %v590_v2  ;;  %v5543_v27 = vcombine.low %v7856_v51, %v7856_v51  ;;  %v6853_v50 = vld [vmem:[%s7746_s23 + $0x60] ss:$8 sps:$4 sm:$0xff]   ;;  %v6871_v2 = vld [vmem:[%s7746_s23 + $0x30] ss:$8 sps:$4 sm:$0xff]  }
  0x58   : > { %1408 = vmatprep.mubr.bf16.mxu1 %v604_v5  ;;  %v6856_v51 = vld [vmem:[%s7746_s23 + $0x160] ss:$8 sps:$4 sm:$0xff]   ;;  %v6882_v5 = vld [vmem:[%s7746_s23 + $0x124] ss:$8 sps:$4 sm:$0xff]  }
  0x59   : > { %1338 = vmatpush1.bf16.msra.mxu0 %v6753_v28  ;;  %v6833_v28 = vld [vmem:[%s7746_s23 + $0x694] ss:$8 sps:$4 sm:$0xff]  }
  0x5a   : > { %1379 = vmatpush1.bf16.msra.mxu1 %v6756_v29  ;;  %1339 = vmatprep.subr.bf16.mxu0 %v6761_v30  ;;  %v6836_v29 = vld [vmem:[%s7746_s23 + $0x794] ss:$8 sps:$4 sm:$0xff]   ;;  %v6831_v30 = vld [vmem:[%s7746_s23 + $0x690] ss:$8 sps:$4 sm:$0xff]  }
  0x5b   : > { %1380 = vmatprep.subr.bf16.mxu1 %v6764_v31  ;;  %v6834_v31 = vld [vmem:[%s7746_s23 + $0x790] ss:$8 sps:$4 sm:$0xff]  }
  0x5d   : > { %1340 = vmatpush1.bf16.msra.mxu0 %v6759_v32  ;;  %v580_v32 = vshll.u32 %v5541_v26, 16 }
  0x5e   : > { %1381 = vmatpush1.bf16.msra.mxu1 %v6762_v33  ;;  %1341 = vmatprep.subr.bf16.mxu0 %v6767_v34  ;;  %v594_v33 = vshll.u32 %v5543_v27, 16  ;;  %v6839_v34 = vld [vmem:[%s7746_s23 + $0x684] ss:$8 sps:$4 sm:$0xff]  }
  0x5f   : > { %1382 = vmatprep.subr.bf16.mxu1 %v6770_v35  ;;  %v6842_v35 = vld [vmem:[%s7746_s23 + $0x784] ss:$8 sps:$4 sm:$0xff]  }
  0x61   : > { %1342 = vmatpush1.bf16.msra.mxu0 %v6765_v36  ;;  %v6837_v36 = vld [vmem:[%s7746_s23 + $0x680] ss:$8 sps:$4 sm:$0xff]  }
  0x62   : > { %1383 = vmatpush1.bf16.msra.mxu1 %v6768_v37  ;;  %1343 = vmatprep.subr.bf16.mxu0 %v6773_v38  ;;  %v6840_v37 = vld [vmem:[%s7746_s23 + $0x780] ss:$8 sps:$4 sm:$0xff]   ;;  %v578_v38 = vshrl.u32 %v5541_v26, 16  ;;  %v6907_v26 = vld [vmem:[%s7746_s23 + $0xd0] ss:$8 sps:$4 sm:$0xff]  }
  0x63   : > { %1384 = vmatprep.subr.bf16.mxu1 %v6776_v39  ;;  %v582_v39 = vrot.slane %v580_v32, 1  ;;  %v6921_v32 = vld [vmem:[%s7746_s23 + $0xb4] ss:$8 sps:$4 sm:$0xff]  }
  0x65   : > { %1344 = vmatpush1.bf16.msra.mxu0 %v6771_v40  ;;  %v592_v40 = vshrl.u32 %v5543_v27, 16  ;;  %v6910_v27 = vld [vmem:[%s7746_s23 + $0x1d0] ss:$8 sps:$4 sm:$0xff]  }
  0x66   : > { %1385 = vmatpush1.bf16.msra.mxu1 %v6774_v41  ;;  %1345 = vmatprep.subr.bf16.mxu0 %v6779_v42  ;;  %v596_v41 = vrot.slane %v594_v33, 1  ;;  %v6849_v42 = vld [vmem:[%s7746_s23 + $0x74] ss:$8 sps:$4 sm:$0xff]  }
  0x67   : > { %1386 = vmatprep.subr.bf16.mxu1 %v6782_v43  ;;  %v6852_v43 = vld [vmem:[%s7746_s23 + $0x174] ss:$8 sps:$4 sm:$0xff]  }
  0x68   : > { %v6924_v33 = vld [vmem:[%s7746_s23 + $0x1b4] ss:$8 sps:$4 sm:$0xff]  }
  0x69   : > { %1346 = vmatpush1.bf16.msra.mxu0 %v6777_v44  ;;  %v583_v44 = vor.u32 %v582_v39, %v578_v38  ;;  %v6925_v38 = vld [vmem:[%s7746_s23 + $0xa0] ss:$8 sps:$4 sm:$0xff]  }
  0x6a   : > { %1387 = vmatpush1.bf16.msra.mxu1 %v6780_v45  ;;  %1347 = vmatprep.subr.bf16.mxu0 %v6785_v46  ;;  %v597_v45 = vor.u32 %v596_v41, %v592_v40  ;;  %v6847_v46 = vld [vmem:[%s7746_s23 + $0x70] ss:$8 sps:$4 sm:$0xff]   ;;  %v6928_v39 = vld [vmem:[%s7746_s23 + $0x1a0] ss:$8 sps:$4 sm:$0xff]   ;;  %v6933_v40 = vld [vmem:[%s7746_s23 + $0x94] ss:$8 sps:$4 sm:$0xff]  }
  0x6b   : > { %1388 = vmatprep.subr.bf16.mxu1 %v6788_v47  ;;  %v6850_v47 = vld [vmem:[%s7746_s23 + $0x170] ss:$8 sps:$4 sm:$0xff]   ;;  %v6936_v41 = vld [vmem:[%s7746_s23 + $0x194] ss:$8 sps:$4 sm:$0xff]  }
  0x6d   : > { %1348 = vmatpush1.bf16.msra.mxu0 %v6783_v48  ;;  %v6855_v48 = vld [vmem:[%s7746_s23 + $0x64] ss:$8 sps:$4 sm:$0xff]  }
  0x6e   : > { %1389 = vmatpush1.bf16.msra.mxu1 %v6786_v49  ;;  %1349 = vmatprep.subr.bf16.mxu0 %v6791_v52  ;;  %v6858_v49 = vld [vmem:[%s7746_s23 + $0x164] ss:$8 sps:$4 sm:$0xff]  }
  0x6f   : > { %1390 = vmatprep.subr.bf16.mxu1 %v6794_v54  ;;  %v7911_v52 = vld [vmem:[%s7800_s27] sm:$0x33]  ;;  %v6861_v54 = vld [vmem:[%s7746_s23 + $0x54] ss:$8 sps:$4 sm:$0xff]  }
  0x70   : > { %v5674_v56 = vcombine.high %v7911_v52, %v7911_v52 }
  0x71   : > { %1350 = vmatpush1.bf16.msra.mxu0 %v6789_v58  ;;  %v6859_v58 = vld [vmem:[%s7746_s23 + $0x50] ss:$8 sps:$4 sm:$0xff]  }
  0x72   : > { %1391 = vmatpush1.bf16.msra.mxu1 %v6792_v59  ;;  %1351 = vmatprep.subr.bf16.mxu0 %v6797_v62  ;;  %v6862_v59 = vld [vmem:[%s7746_s23 + $0x150] ss:$8 sps:$4 sm:$0xff]   ;;  %v6865_v62 = vld [vmem:[%s7746_s23 + $0x40] ss:$8 sps:$4 sm:$0xff]  }
  0x73   : > { %1392 = vmatprep.subr.bf16.mxu1 %v6800_v0  ;;  %v6873_v0 = vld [vmem:[%s7746_s23 + $0x34] ss:$8 sps:$4 sm:$0xff]  }
  0x75   : > { %1352 = vmatpush2.bf16.msra.mxu0 %v6795_v3  ;;  %v6874_v3 = vld [vmem:[%s7746_s23 + $0x130] ss:$8 sps:$4 sm:$0xff]  }
  0x76   : > { %1393 = vmatpush2.bf16.msra.mxu1 %v6798_v4  ;;  %1353 = vmatprep.subr.bf16.mxu0 %v6803_v6  ;;  %v6879_v4 = vld [vmem:[%s7746_s23 + $0x24] ss:$8 sps:$4 sm:$0xff]   ;;  %v6877_v6 = vld [vmem:[%s7746_s23 + $0x20] ss:$8 sps:$4 sm:$0xff]  }
  0x77   : > { %1394 = vmatprep.subr.bf16.mxu1 %v6806_v7  ;;  %v6880_v7 = vld [vmem:[%s7746_s23 + $0x120] ss:$8 sps:$4 sm:$0xff]  }
  0x79   : > { %1354 = vmatpush2.bf16.msra.mxu0 %v6801_v8  ;;  %v6885_v8 = vld [vmem:[%s7746_s23 + $0x14] ss:$8 sps:$4 sm:$0xff]  }
  0x7a   : > { %1395 = vmatpush2.bf16.msra.mxu1 %v6804_v9  ;;  %1355 = vmatprep.subr.bf16.mxu0 %v6809_v10  ;;  %v6888_v9 = vld [vmem:[%s7746_s23 + $0x114] ss:$8 sps:$4 sm:$0xff]   ;;  %v6883_v10 = vld [vmem:[%s7746_s23 + $0x10] ss:$8 sps:$4 sm:$0xff]  }
  0x7b   : > { %1396 = vmatprep.subr.bf16.mxu1 %v6812_v11  ;;  %v6886_v11 = vld [vmem:[%s7746_s23 + $0x110] ss:$8 sps:$4 sm:$0xff]  }
  0x7d   : > { %1356 = vmatpush2.bf16.msra.mxu0 %v6807_v12  ;;  %v6891_v12 = vld [vmem:[%s7746_s23 + $0x4] ss:$8 sps:$4 sm:$0xff]  }
  0x7e   : > { %1397 = vmatpush2.bf16.msra.mxu1 %v6810_v13  ;;  %1357 = vmatprep.subr.bf16.mxu0 %v6815_v14  ;;  %v6894_v13 = vld [vmem:[%s7746_s23 + $0x104] ss:$8 sps:$4 sm:$0xff]   ;;  %v6889_v14 = vld [vmem:[%s7746_s23] ss:$8 sps:$4 sm:$0xff]  }
  0x7f   : > { %1398 = vmatprep.subr.bf16.mxu1 %v6818_v15  ;;  %v6892_v15 = vld [vmem:[%s7746_s23 + $0x100] ss:$8 sps:$4 sm:$0xff]  }
  0x81   : > { %1358 = vmatpush2.bf16.msra.mxu0 %v6813_v16  ;;  %v6897_v16 = vld [vmem:[%s7746_s23 + $0xf4] ss:$8 sps:$4 sm:$0xff]  }
  0x82   : > { %1399 = vmatpush2.bf16.msra.mxu1 %v6816_v17  ;;  %1359 = vmatprep.subr.bf16.mxu0 %v6821_v18  ;;  %v6900_v17 = vld [vmem:[%s7746_s23 + $0x1f4] ss:$8 sps:$4 sm:$0xff]   ;;  %v6895_v18 = vld [vmem:[%s7746_s23 + $0xf0] ss:$8 sps:$4 sm:$0xff]  }
  0x83   : > { %1400 = vmatprep.subr.bf16.mxu1 %v6824_v19  ;;  %v6898_v19 = vld [vmem:[%s7746_s23 + $0x1f0] ss:$8 sps:$4 sm:$0xff]  }
  0x85   : > { %1360 = vmatpush2.bf16.msra.mxu0 %v6819_v20  ;;  %v6903_v20 = vld [vmem:[%s7746_s23 + $0xe4] ss:$8 sps:$4 sm:$0xff]  }
  0x86   : > { %1401 = vmatpush2.bf16.msra.mxu1 %v6822_v21  ;;  %1361 = vmatprep.subr.bf16.mxu0 %v6827_v22  ;;  %v6906_v21 = vld [vmem:[%s7746_s23 + $0x1e4] ss:$8 sps:$4 sm:$0xff]   ;;  %v6901_v22 = vld [vmem:[%s7746_s23 + $0xe0] ss:$8 sps:$4 sm:$0xff]  }
  0x87   : > { %1402 = vmatprep.subr.bf16.mxu1 %v6830_v23  ;;  %v6904_v23 = vld [vmem:[%s7746_s23 + $0x1e0] ss:$8 sps:$4 sm:$0xff]  }
  0x89   : > { %1362 = vmatpush2.bf16.msra.mxu0 %v6825_v24  ;;  %v6909_v24 = vld [vmem:[%s7746_s23 + $0xd4] ss:$8 sps:$4 sm:$0xff]  }
  0x8a   : > { %1403 = vmatpush2.bf16.msra.mxu1 %v6828_v25  ;;  %1363 = vmatprep.subr.bf16.mxu0 %v6833_v28  ;;  %v6912_v25 = vld [vmem:[%s7746_s23 + $0x1d4] ss:$8 sps:$4 sm:$0xff]   ;;  %v6915_v28 = vld [vmem:[%s7746_s23 + $0xc4] ss:$8 sps:$4 sm:$0xff]  }
  0x8b   : > { %1404 = vmatprep.subr.bf16.mxu1 %v6836_v29  ;;  %v6918_v29 = vld [vmem:[%s7746_s23 + $0x1c4] ss:$8 sps:$4 sm:$0xff]  }
  0x8d   : > { %1364 = vmatpush2.bf16.msra.mxu0 %v6831_v30  ;;  %v6913_v30 = vld [vmem:[%s7746_s23 + $0xc0] ss:$8 sps:$4 sm:$0xff]  }
  0x8e   : > { %1405 = vmatpush2.bf16.msra.mxu1 %v6834_v31  ;;  %1365 = vmatprep.subr.bf16.mxu0 %v6839_v34  ;;  %v6916_v31 = vld [vmem:[%s7746_s23 + $0x1c0] ss:$8 sps:$4 sm:$0xff]   ;;  %v6919_v34 = vld [vmem:[%s7746_s23 + $0xb0] ss:$8 sps:$4 sm:$0xff]  }
  0x8f   : > { %1406 = vmatprep.subr.bf16.mxu1 %v6842_v35  ;;  %v6922_v35 = vld [vmem:[%s7746_s23 + $0x1b0] ss:$8 sps:$4 sm:$0xff]  }
  0x91   : > { %1366 = vmatpush2.bf16.msra.mxu0 %v6837_v36  ;;  %v6927_v36 = vld [vmem:[%s7746_s23 + $0xa4] ss:$8 sps:$4 sm:$0xff]  }
  0x92   : > { %1407 = vmatpush2.bf16.msra.mxu1 %v6840_v37  ;;  %2085 = vmatprep.subr.bf16.mxu0 %v6849_v42  ;;  %v6930_v37 = vld [vmem:[%s7746_s23 + $0x1a4] ss:$8 sps:$4 sm:$0xff]   ;;  %v6931_v42 = vld [vmem:[%s7746_s23 + $0x90] ss:$8 sps:$4 sm:$0xff]  }
  0x93   : > { %2126 = vmatprep.subr.bf16.mxu1 %v6852_v43  ;;  %v6934_v43 = vld [vmem:[%s7746_s23 + $0x190] ss:$8 sps:$4 sm:$0xff]  }
  0x94   : > { %1368 = vmatmul.mubr.bf16.vlgmr.msra.gmra.mxu0 %v583_v44  ;;  %v6939_v44 = vld [vmem:[%s7746_s23 + $0x84] ss:$8 sps:$4 sm:$0xff]  }
  0x95   : > { %1409 = vmatmul.mubr.bf16.vlgmr.msra.gmra.mxu1 %v597_v45  ;;  %2086 = vmatpush1.bf16.msra.mxu0 %v6847_v46  ;;  %v6942_v45 = vld [vmem:[%s7746_s23 + $0x184] ss:$8 sps:$4 sm:$0xff]   ;;  %v6937_v46 = vld [vmem:[%s7746_s23 + $0x80] ss:$8 sps:$4 sm:$0xff]  }
  0x96   : > { %2127 = vmatpush1.bf16.msra.mxu1 %v6850_v47  ;;  %2087 = vmatprep.subr.bf16.mxu0 %v6855_v48  ;;  %v6940_v47 = vld [vmem:[%s7746_s23 + $0x180] ss:$8 sps:$4 sm:$0xff]   ;;  %v6949_v48 = vld [vmem:[%s7746_s23 + $0x274] ss:$8 sps:$4 sm:$0xff]  }
  0x97   : > { %2128 = vmatprep.subr.bf16.mxu1 %v6858_v49  ;;  %2117 = vmatprep.mubr.bf16.mxu0 %v5674_v56  ;;  %v6952_v49 = vld [vmem:[%s7746_s23 + $0x374] ss:$8 sps:$4 sm:$0xff]  }
  0x98   : > { %2158 = vmatprep.mubr.bf16.mxu1 %v5676_v57  ;;  %v7985_v56 = vld [vmem:[%s7800_s27 + $0x10] sm:$0x33]  ;;  %v7988_v57 = vld [vmem:[%s7800_s27 + $0x18] sm:$0x33] }
  0x99   : > { %2088 = vmatpush1.bf16.msra.mxu0 %v6853_v50  ;;  %v6947_v50 = vld [vmem:[%s7746_s23 + $0x270] ss:$8 sps:$4 sm:$0xff]  }
  0x9a   : > { %2129 = vmatpush1.bf16.msra.mxu1 %v6856_v51  ;;  %2089 = vmatprep.subr.bf16.mxu0 %v6861_v54  ;;  %v6950_v51 = vld [vmem:[%s7746_s23 + $0x370] ss:$8 sps:$4 sm:$0xff]   ;;  %v5673_v54 = vcombine.low %v7911_v52, %v7911_v52  ;;  %v5678_v52 = vcombine.high %v7985_v56, %v7985_v56 }
  0x9b   : > { %2130 = vmatprep.subr.bf16.mxu1 %v6864_v55  ;;  %v5675_v55 = vcombine.low %v7914_v53, %v7914_v53  ;;  %v5680_v53 = vcombine.high %v7988_v57, %v7988_v57 }
  0x9d   : > { %2090 = vmatpush1.bf16.msra.mxu0 %v6859_v58  ;;  %v6955_v58 = vld [vmem:[%s7746_s23 + $0x264] ss:$8 sps:$4 sm:$0xff]  }
  0x9e   : > { %2131 = vmatpush1.bf16.msra.mxu1 %v6862_v59  ;;  %2091 = vmatprep.subr.bf16.mxu0 %v6867_v60  ;;  %v6958_v59 = vld [vmem:[%s7746_s23 + $0x364] ss:$8 sps:$4 sm:$0xff]   ;;  %v6953_v60 = vld [vmem:[%s7746_s23 + $0x260] ss:$8 sps:$4 sm:$0xff]  }
  0x9f   : > { %2132 = vmatprep.subr.bf16.mxu1 %v6870_v61  ;;  %v6956_v61 = vld [vmem:[%s7746_s23 + $0x360] ss:$8 sps:$4 sm:$0xff]  }
  0xa1   : > { %2092 = vmatpush1.bf16.msra.mxu0 %v6865_v62  ;;  %v6961_v62 = vld [vmem:[%s7746_s23 + $0x254] ss:$8 sps:$4 sm:$0xff]  }
  0xa2   : > { %2133 = vmatpush1.bf16.msra.mxu1 %v6868_v63  ;;  %2093 = vmatprep.subr.bf16.mxu0 %v6873_v0  ;;  %v6964_v63 = vld [vmem:[%s7746_s23 + $0x354] ss:$8 sps:$4 sm:$0xff]   ;;  %v6959_v0 = vld [vmem:[%s7746_s23 + $0x250] ss:$8 sps:$4 sm:$0xff]  }
  0xa3   : > { %2134 = vmatprep.subr.bf16.mxu1 %v6876_v1  ;;  %v6962_v1 = vld [vmem:[%s7746_s23 + $0x350] ss:$8 sps:$4 sm:$0xff]  }
  0xa5   : > { %2094 = vmatpush1.bf16.msra.mxu0 %v6871_v2  ;;  %v6967_v2 = vld [vmem:[%s7746_s23 + $0x244] ss:$8 sps:$4 sm:$0xff]  }
  0xa6   : > { %2135 = vmatpush1.bf16.msra.mxu1 %v6874_v3  ;;  %2095 = vmatprep.subr.bf16.mxu0 %v6879_v4  ;;  %v6970_v3 = vld [vmem:[%s7746_s23 + $0x344] ss:$8 sps:$4 sm:$0xff]   ;;  %v6965_v4 = vld [vmem:[%s7746_s23 + $0x240] ss:$8 sps:$4 sm:$0xff]  }
  0xa7   : > { %2136 = vmatprep.subr.bf16.mxu1 %v6882_v5  ;;  %v6968_v5 = vld [vmem:[%s7746_s23 + $0x340] ss:$8 sps:$4 sm:$0xff]  }
  0xa9   : > { %2096 = vmatpush1.bf16.msra.mxu0 %v6877_v6  ;;  %v6973_v6 = vld [vmem:[%s7746_s23 + $0x234] ss:$8 sps:$4 sm:$0xff]  }
  0xaa   : > { %2137 = vmatpush1.bf16.msra.mxu1 %v6880_v7  ;;  %2097 = vmatprep.subr.bf16.mxu0 %v6885_v8  ;;  %v6976_v7 = vld [vmem:[%s7746_s23 + $0x334] ss:$8 sps:$4 sm:$0xff]   ;;  %v6971_v8 = vld [vmem:[%s7746_s23 + $0x230] ss:$8 sps:$4 sm:$0xff]  }
  0xab   : > { %2138 = vmatprep.subr.bf16.mxu1 %v6888_v9  ;;  %v6974_v9 = vld [vmem:[%s7746_s23 + $0x330] ss:$8 sps:$4 sm:$0xff]  }
  0xad   : > { %2098 = vmatpush1.bf16.msra.mxu0 %v6883_v10  ;;  %v6979_v10 = vld [vmem:[%s7746_s23 + $0x224] ss:$8 sps:$4 sm:$0xff]  }
  0xae   : > { %2139 = vmatpush1.bf16.msra.mxu1 %v6886_v11  ;;  %2099 = vmatprep.subr.bf16.mxu0 %v6891_v12  ;;  %v6982_v11 = vld [vmem:[%s7746_s23 + $0x324] ss:$8 sps:$4 sm:$0xff]   ;;  %v6977_v12 = vld [vmem:[%s7746_s23 + $0x220] ss:$8 sps:$4 sm:$0xff]  }
  0xaf   : > { %2140 = vmatprep.subr.bf16.mxu1 %v6894_v13  ;;  %v6980_v13 = vld [vmem:[%s7746_s23 + $0x320] ss:$8 sps:$4 sm:$0xff]  }
  0xb1   : > { %2100 = vmatpush1.bf16.msra.mxu0 %v6889_v14  ;;  %v6985_v14 = vld [vmem:[%s7746_s23 + $0x214] ss:$8 sps:$4 sm:$0xff]  }
  0xb2   : > { %2141 = vmatpush1.bf16.msra.mxu1 %v6892_v15  ;;  %2101 = vmatprep.subr.bf16.mxu0 %v6897_v16  ;;  %v6988_v15 = vld [vmem:[%s7746_s23 + $0x314] ss:$8 sps:$4 sm:$0xff]   ;;  %v6983_v16 = vld [vmem:[%s7746_s23 + $0x210] ss:$8 sps:$4 sm:$0xff]  }
  0xb3   : > { %2142 = vmatprep.subr.bf16.mxu1 %v6900_v17  ;;  %v6986_v17 = vld [vmem:[%s7746_s23 + $0x310] ss:$8 sps:$4 sm:$0xff]  }
  0xb5   : > { %2102 = vmatpush2.bf16.msra.mxu0 %v6895_v18  ;;  %v6991_v18 = vld [vmem:[%s7746_s23 + $0x204] ss:$8 sps:$4 sm:$0xff]  }
  0xb6   : > { %2143 = vmatpush2.bf16.msra.mxu1 %v6898_v19  ;;  %2103 = vmatprep.subr.bf16.mxu0 %v6903_v20  ;;  %v6994_v19 = vld [vmem:[%s7746_s23 + $0x304] ss:$8 sps:$4 sm:$0xff]   ;;  %v6989_v20 = vld [vmem:[%s7746_s23 + $0x200] ss:$8 sps:$4 sm:$0xff]  }
  0xb7   : > { %2144 = vmatprep.subr.bf16.mxu1 %v6906_v21  ;;  %v6992_v21 = vld [vmem:[%s7746_s23 + $0x300] ss:$8 sps:$4 sm:$0xff]  }
  0xb9   : > { %2104 = vmatpush2.bf16.msra.mxu0 %v6901_v22  ;;  %v6997_v22 = vld [vmem:[%s7746_s23 + $0x2f4] ss:$8 sps:$4 sm:$0xff]  }
  0xba   : > { %2145 = vmatpush2.bf16.msra.mxu1 %v6904_v23  ;;  %2105 = vmatprep.subr.bf16.mxu0 %v6909_v24  ;;  %v7000_v23 = vld [vmem:[%s7746_s23 + $0x3f4] ss:$8 sps:$4 sm:$0xff]   ;;  %v6995_v24 = vld [vmem:[%s7746_s23 + $0x2f0] ss:$8 sps:$4 sm:$0xff]  }
  0xbb   : > { %2146 = vmatprep.subr.bf16.mxu1 %v6912_v25  ;;  %v6998_v25 = vld [vmem:[%s7746_s23 + $0x3f0] ss:$8 sps:$4 sm:$0xff]  }
  0xbd   : > { %2106 = vmatpush2.bf16.msra.mxu0 %v6907_v26  ;;  %v7003_v26 = vld [vmem:[%s7746_s23 + $0x2e4] ss:$8 sps:$4 sm:$0xff]  }
  0xbe   : > { %2147 = vmatpush2.bf16.msra.mxu1 %v6910_v27  ;;  %2107 = vmatprep.subr.bf16.mxu0 %v6915_v28  ;;  %v7006_v27 = vld [vmem:[%s7746_s23 + $0x3e4] ss:$8 sps:$4 sm:$0xff]   ;;  %v7001_v28 = vld [vmem:[%s7746_s23 + $0x2e0] ss:$8 sps:$4 sm:$0xff]  }
  0xbf   : > { %2148 = vmatprep.subr.bf16.mxu1 %v6918_v29  ;;  %v7004_v29 = vld [vmem:[%s7746_s23 + $0x3e0] ss:$8 sps:$4 sm:$0xff]  }
  0xc1   : > { %2108 = vmatpush2.bf16.msra.mxu0 %v6913_v30  ;;  %v7009_v30 = vld [vmem:[%s7746_s23 + $0x2d4] ss:$8 sps:$4 sm:$0xff]  }
  0xc2   : > { %2149 = vmatpush2.bf16.msra.mxu1 %v6916_v31  ;;  %2109 = vmatprep.subr.bf16.mxu0 %v6921_v32  ;;  %v7012_v31 = vld [vmem:[%s7746_s23 + $0x3d4] ss:$8 sps:$4 sm:$0xff]   ;;  %v7007_v32 = vld [vmem:[%s7746_s23 + $0x2d0] ss:$8 sps:$4 sm:$0xff]  }
  0xc3   : > { %2150 = vmatprep.subr.bf16.mxu1 %v6924_v33  ;;  %v7010_v33 = vld [vmem:[%s7746_s23 + $0x3d0] ss:$8 sps:$4 sm:$0xff]  }
  0xc5   : > { %2110 = vmatpush2.bf16.msra.mxu0 %v6919_v34  ;;  %v7015_v34 = vld [vmem:[%s7746_s23 + $0x2c4] ss:$8 sps:$4 sm:$0xff]  }
  0xc6   : > { %2151 = vmatpush2.bf16.msra.mxu1 %v6922_v35  ;;  %2111 = vmatprep.subr.bf16.mxu0 %v6927_v36  ;;  %v7018_v35 = vld [vmem:[%s7746_s23 + $0x3c4] ss:$8 sps:$4 sm:$0xff]   ;;  %v7013_v36 = vld [vmem:[%s7746_s23 + $0x2c0] ss:$8 sps:$4 sm:$0xff]  }
  0xc7   : > { %2152 = vmatprep.subr.bf16.mxu1 %v6930_v37  ;;  %v7016_v37 = vld [vmem:[%s7746_s23 + $0x3c0] ss:$8 sps:$4 sm:$0xff]  }
  0xc9   : > { %2112 = vmatpush2.bf16.msra.mxu0 %v6925_v38  ;;  %v7021_v38 = vld [vmem:[%s7746_s23 + $0x2b4] ss:$8 sps:$4 sm:$0xff]  }
  0xca   : > { %2153 = vmatpush2.bf16.msra.mxu1 %v6928_v39  ;;  %2113 = vmatprep.subr.bf16.mxu0 %v6933_v40  ;;  %v7024_v39 = vld [vmem:[%s7746_s23 + $0x3b4] ss:$8 sps:$4 sm:$0xff]   ;;  %v7019_v40 = vld [vmem:[%s7746_s23 + $0x2b0] ss:$8 sps:$4 sm:$0xff]  }
  0xcb   : > { %2154 = vmatprep.subr.bf16.mxu1 %v6936_v41  ;;  %v7022_v41 = vld [vmem:[%s7746_s23 + $0x3b0] ss:$8 sps:$4 sm:$0xff]  }
  0xcd   : > { %2114 = vmatpush2.bf16.msra.mxu0 %v6931_v42  ;;  %v7027_v42 = vld [vmem:[%s7746_s23 + $0x2a4] ss:$8 sps:$4 sm:$0xff]  }
  0xce   : > { %2155 = vmatpush2.bf16.msra.mxu1 %v6934_v43  ;;  %2115 = vmatprep.subr.bf16.mxu0 %v6939_v44  ;;  %v7030_v43 = vld [vmem:[%s7746_s23 + $0x3a4] ss:$8 sps:$4 sm:$0xff]   ;;  %v7025_v44 = vld [vmem:[%s7746_s23 + $0x2a0] ss:$8 sps:$4 sm:$0xff]  }
  0xcf   : > { %2156 = vmatprep.subr.bf16.mxu1 %v6942_v45  ;;  %v7028_v45 = vld [vmem:[%s7746_s23 + $0x3a0] ss:$8 sps:$4 sm:$0xff]  }
  0xd1   : > { %2116 = vmatpush2.bf16.msra.mxu0 %v6937_v46  ;;  %v7033_v46 = vld [vmem:[%s7746_s23 + $0x294] ss:$8 sps:$4 sm:$0xff]  }
  0xd2   : > { %2157 = vmatpush2.bf16.msra.mxu1 %v6940_v47  ;;  %2167 = vmatprep.subr.bf16.mxu0 %v6949_v48  ;;  %v7036_v47 = vld [vmem:[%s7746_s23 + $0x394] ss:$8 sps:$4 sm:$0xff]   ;;  %v7031_v48 = vld [vmem:[%s7746_s23 + $0x290] ss:$8 sps:$4 sm:$0xff]  }
  0xd3   : > { %2208 = vmatprep.subr.bf16.mxu1 %v6952_v49  ;;  %v7034_v49 = vld [vmem:[%s7746_s23 + $0x390] ss:$8 sps:$4 sm:$0xff]  }
  0xd4   : > { %2118 = vmatmul.mubr.bf16.vlgmr.msra.gmra.mxu0 %v5673_v54  ;;  %v8053_v54 = vld [vmem:[%s7800_s27] sm:$0x66] }
  0xd5   : > { %2159 = vmatmul.mubr.bf16.vlgmr.msra.gmra.mxu1 %v5675_v55  ;;  %2168 = vmatpush1.bf16.msra.mxu0 %v6947_v50  ;;  %v7039_v50 = vld [vmem:[%s7746_s23 + $0x284] ss:$8 sps:$4 sm:$0xff]  }
  0xd6   : > { %2209 = vmatpush1.bf16.msra.mxu1 %v6950_v51  ;;  %2169 = vmatprep.subr.bf16.mxu0 %v6955_v58  ;;  %v7042_v51 = vld [vmem:[%s7746_s23 + $0x384] ss:$8 sps:$4 sm:$0xff]   ;;  %v7037_v58 = vld [vmem:[%s7746_s23 + $0x280] ss:$8 sps:$4 sm:$0xff]  }
  0xd7   : > { %2210 = vmatprep.subr.bf16.mxu1 %v6958_v59  ;;  %2199 = vmatprep.mubr.bf16.mxu0 %v5678_v52  ;;  %v8056_v55 = vld [vmem:[%s7800_s27 + $0x8] sm:$0x66]  ;;  %v7049_v52 = vld [vmem:[%s7746_s23 + $0x874] ss:$8 sps:$4 sm:$0xff]  }
  0xd8   : > { %2240 = vmatprep.mubr.bf16.mxu1 %v5680_v53  ;;  %v7040_v59 = vld [vmem:[%s7746_s23 + $0x380] ss:$8 sps:$4 sm:$0xff]   ;;  %v7052_v53 = vld [vmem:[%s7746_s23 + $0x974] ss:$8 sps:$4 sm:$0xff]  }
  0xd9   : > { %2170 = vmatpush1.bf16.msra.mxu0 %v6953_v60  ;;  %v5938_v60 = vcombine.high %v8053_v54, %v8053_v54 }
  0xda   : > { %2211 = vmatpush1.bf16.msra.mxu1 %v6956_v61  ;;  %2171 = vmatprep.subr.bf16.mxu0 %v6961_v62  ;;  %v5940_v61 = vcombine.high %v8056_v55, %v8056_v55  ;;  %v5677_v62 = vcombine.low %v7985_v56, %v7985_v56 }
  0xdb   : > { %2212 = vmatprep.subr.bf16.mxu1 %v6964_v63  ;;  %v5679_v63 = vcombine.low %v7988_v57, %v7988_v57  ;;  %v7053_v57 = vld [vmem:[%s7746_s23 + $0x860] ss:$8 sps:$4 sm:$0xff]  }
  0xdd   : > { %2172 = vmatpush1.bf16.msra.mxu0 %v6959_v0  ;;  %v7047_v0 = vld [vmem:[%s7746_s23 + $0x870] ss:$8 sps:$4 sm:$0xff]  }
  0xde   : > { %2213 = vmatpush1.bf16.msra.mxu1 %v6962_v1  ;;  %2173 = vmatprep.subr.bf16.mxu0 %v6967_v2  ;;  %v7050_v1 = vld [vmem:[%s7746_s23 + $0x970] ss:$8 sps:$4 sm:$0xff]   ;;  %v7055_v2 = vld [vmem:[%s7746_s23 + $0x864] ss:$8 sps:$4 sm:$0xff]  }
  0xdf   : > { %2214 = vmatprep.subr.bf16.mxu1 %v6970_v3  ;;  %v7058_v3 = vld [vmem:[%s7746_s23 + $0x964] ss:$8 sps:$4 sm:$0xff]  }
  0xe1   : > { %2174 = vmatpush1.bf16.msra.mxu0 %v6965_v4  ;;  %v2403_v4 = vrot.slane %v5938_v60, 1  ;;  %v7121_v60 = vld [vmem:[%s7746_s23 + $0x8b4] ss:$8 sps:$4 sm:$0xff]  }
  0xe2   : > { %2215 = vmatpush1.bf16.msra.mxu1 %v6968_v5  ;;  %2175 = vmatprep.subr.bf16.mxu0 %v6973_v6  ;;  %v2405_v5 = vrot.slane %v5940_v61, 1  ;;  %v7124_v61 = vld [vmem:[%s7746_s23 + $0x9b4] ss:$8 sps:$4 sm:$0xff]  }
  0xe3   : > { %2216 = vmatprep.subr.bf16.mxu1 %v6976_v7 }
  0xe5   : > { %2176 = vmatpush1.bf16.msra.mxu0 %v6971_v8  ;;  %v7056_v8 = vld [vmem:[%s7746_s23 + $0x960] ss:$8 sps:$4 sm:$0xff]  }
  0xe6   : > { %2217 = vmatpush1.bf16.msra.mxu1 %v6974_v9  ;;  %2177 = vmatprep.subr.bf16.mxu0 %v6979_v10 }
  0xe7   : > { %2218 = vmatprep.subr.bf16.mxu1 %v6982_v11  ;;  %v7061_v11 = vld [vmem:[%s7746_s23 + $0x854] ss:$8 sps:$4 sm:$0xff]  }
  0xe9   : > { %2178 = vmatpush1.bf16.msra.mxu0 %v6977_v12  ;;  %v7064_v12 = vld [vmem:[%s7746_s23 + $0x954] ss:$8 sps:$4 sm:$0xff]  }
  0xea   : > { %2219 = vmatpush1.bf16.msra.mxu1 %v6980_v13  ;;  %2179 = vmatprep.subr.bf16.mxu0 %v6985_v14 }
  0xeb   : > { %2220 = vmatprep.subr.bf16.mxu1 %v6988_v15 }
  0xed   : > { %2180 = vmatpush1.bf16.msra.mxu0 %v6983_v16  ;;  %v7059_v16 = vld [vmem:[%s7746_s23 + $0x850] ss:$8 sps:$4 sm:$0xff]  }
  0xee   : > { %2221 = vmatpush1.bf16.msra.mxu1 %v6986_v17  ;;  %2181 = vmatprep.subr.bf16.mxu0 %v6991_v18  ;;  %v7062_v17 = vld [vmem:[%s7746_s23 + $0x950] ss:$8 sps:$4 sm:$0xff]  }
  0xef   : > { %2222 = vmatprep.subr.bf16.mxu1 %v6994_v19 }
  0xf1   : > { %2182 = vmatpush1.bf16.msra.mxu0 %v6989_v20  ;;  %v7067_v20 = vld [vmem:[%s7746_s23 + $0x844] ss:$8 sps:$4 sm:$0xff]  }
  0xf2   : > { %2223 = vmatpush1.bf16.msra.mxu1 %v6992_v21  ;;  %2183 = vmatprep.subr.bf16.mxu0 %v6997_v22  ;;  %v7070_v21 = vld [vmem:[%s7746_s23 + $0x944] ss:$8 sps:$4 sm:$0xff]   ;;  %v7065_v22 = vld [vmem:[%s7746_s23 + $0x840] ss:$8 sps:$4 sm:$0xff]  }
  0xf3   : > { %2224 = vmatprep.subr.bf16.mxu1 %v7000_v23  ;;  %v7068_v23 = vld [vmem:[%s7746_s23 + $0x940] ss:$8 sps:$4 sm:$0xff]  }
  0xf5   : > { %2184 = vmatpush2.bf16.msra.mxu0 %v6995_v24  ;;  %v7073_v24 = vld [vmem:[%s7746_s23 + $0x834] ss:$8 sps:$4 sm:$0xff]  }
  0xf6   : > { %2225 = vmatpush2.bf16.msra.mxu1 %v6998_v25  ;;  %2185 = vmatprep.subr.bf16.mxu0 %v7003_v26  ;;  %v7076_v25 = vld [vmem:[%s7746_s23 + $0x934] ss:$8 sps:$4 sm:$0xff]   ;;  %v7071_v26 = vld [vmem:[%s7746_s23 + $0x830] ss:$8 sps:$4 sm:$0xff]  }
  0xf7   : > { %2226 = vmatprep.subr.bf16.mxu1 %v7006_v27  ;;  %v7074_v27 = vld [vmem:[%s7746_s23 + $0x930] ss:$8 sps:$4 sm:$0xff]  }
  0xf9   : > { %2186 = vmatpush2.bf16.msra.mxu0 %v7001_v28  ;;  %v7079_v28 = vld [vmem:[%s7746_s23 + $0x824] ss:$8 sps:$4 sm:$0xff]  }
  0xfa   : > { %2227 = vmatpush2.bf16.msra.mxu1 %v7004_v29  ;;  %2187 = vmatprep.subr.bf16.mxu0 %v7009_v30  ;;  %v7082_v29 = vld [vmem:[%s7746_s23 + $0x924] ss:$8 sps:$4 sm:$0xff]   ;;  %v7077_v30 = vld [vmem:[%s7746_s23 + $0x820] ss:$8 sps:$4 sm:$0xff]  }
  0xfb   : > { %2228 = vmatprep.subr.bf16.mxu1 %v7012_v31  ;;  %v7080_v31 = vld [vmem:[%s7746_s23 + $0x920] ss:$8 sps:$4 sm:$0xff]  }
  0xfd   : > { %2188 = vmatpush2.bf16.msra.mxu0 %v7007_v32  ;;  %v7085_v32 = vld [vmem:[%s7746_s23 + $0x814] ss:$8 sps:$4 sm:$0xff]  }
  0xfe   : > { %2229 = vmatpush2.bf16.msra.mxu1 %v7010_v33  ;;  %2189 = vmatprep.subr.bf16.mxu0 %v7015_v34  ;;  %v7088_v33 = vld [vmem:[%s7746_s23 + $0x914] ss:$8 sps:$4 sm:$0xff]   ;;  %v7083_v34 = vld [vmem:[%s7746_s23 + $0x810] ss:$8 sps:$4 sm:$0xff]  }
  0xff   : > { %2230 = vmatprep.subr.bf16.mxu1 %v7018_v35  ;;  %v7086_v35 = vld [vmem:[%s7746_s23 + $0x910] ss:$8 sps:$4 sm:$0xff]  }
 0x101   : > { %2190 = vmatpush2.bf16.msra.mxu0 %v7013_v36  ;;  %v7091_v36 = vld [vmem:[%s7746_s23 + $0x804] ss:$8 sps:$4 sm:$0xff]  }
 0x102   : > { %2231 = vmatpush2.bf16.msra.mxu1 %v7016_v37  ;;  %2191 = vmatprep.subr.bf16.mxu0 %v7021_v38  ;;  %v7094_v37 = vld [vmem:[%s7746_s23 + $0x904] ss:$8 sps:$4 sm:$0xff]   ;;  %v7089_v38 = vld [vmem:[%s7746_s23 + $0x800] ss:$8 sps:$4 sm:$0xff]  }
 0x103   : > { %2232 = vmatprep.subr.bf16.mxu1 %v7024_v39  ;;  %v7092_v39 = vld [vmem:[%s7746_s23 + $0x900] ss:$8 sps:$4 sm:$0xff]  }
 0x105   : > { %2192 = vmatpush2.bf16.msra.mxu0 %v7019_v40  ;;  %v7097_v40 = vld [vmem:[%s7746_s23 + $0x8f4] ss:$8 sps:$4 sm:$0xff]  }
 0x106   : > { %2233 = vmatpush2.bf16.msra.mxu1 %v7022_v41  ;;  %2193 = vmatprep.subr.bf16.mxu0 %v7027_v42  ;;  %v7100_v41 = vld [vmem:[%s7746_s23 + $0x9f4] ss:$8 sps:$4 sm:$0xff]   ;;  %v7095_v42 = vld [vmem:[%s7746_s23 + $0x8f0] ss:$8 sps:$4 sm:$0xff]  }
 0x107   : > { %2234 = vmatprep.subr.bf16.mxu1 %v7030_v43  ;;  %v7098_v43 = vld [vmem:[%s7746_s23 + $0x9f0] ss:$8 sps:$4 sm:$0xff]  }
 0x109   : > { %2194 = vmatpush2.bf16.msra.mxu0 %v7025_v44  ;;  %v7103_v44 = vld [vmem:[%s7746_s23 + $0x8e4] ss:$8 sps:$4 sm:$0xff]  }
 0x10a   : > { %2235 = vmatpush2.bf16.msra.mxu1 %v7028_v45  ;;  %2195 = vmatprep.subr.bf16.mxu0 %v7033_v46  ;;  %v7106_v45 = vld [vmem:[%s7746_s23 + $0x9e4] ss:$8 sps:$4 sm:$0xff]   ;;  %v7101_v46 = vld [vmem:[%s7746_s23 + $0x8e0] ss:$8 sps:$4 sm:$0xff]  }
 0x10b   : > { %2236 = vmatprep.subr.bf16.mxu1 %v7036_v47  ;;  %v7104_v47 = vld [vmem:[%s7746_s23 + $0x9e0] ss:$8 sps:$4 sm:$0xff]  }
 0x10d   : > { %2196 = vmatpush2.bf16.msra.mxu0 %v7031_v48  ;;  %v7109_v48 = vld [vmem:[%s7746_s23 + $0x8d4] ss:$8 sps:$4 sm:$0xff]  }
 0x10e   : > { %2237 = vmatpush2.bf16.msra.mxu1 %v7034_v49  ;;  %2197 = vmatprep.subr.bf16.mxu0 %v7039_v50  ;;  %v7112_v49 = vld [vmem:[%s7746_s23 + $0x9d4] ss:$8 sps:$4 sm:$0xff]   ;;  %v7107_v50 = vld [vmem:[%s7746_s23 + $0x8d0] ss:$8 sps:$4 sm:$0xff]  }
 0x10f   : > { %2238 = vmatprep.subr.bf16.mxu1 %v7042_v51  ;;  %v7110_v51 = vld [vmem:[%s7746_s23 + $0x9d0] ss:$8 sps:$4 sm:$0xff]  }
 0x111   : > { %2198 = vmatpush2.bf16.msra.mxu0 %v7037_v58  ;;  %v7115_v58 = vld [vmem:[%s7746_s23 + $0x8c4] ss:$8 sps:$4 sm:$0xff]  }
 0x112   : > { %2239 = vmatpush2.bf16.msra.mxu1 %v7040_v59  ;;  %3058 = vmatprep.subr.bf16.mxu0 %v7049_v52  ;;  %v7118_v59 = vld [vmem:[%s7746_s23 + $0x9c4] ss:$8 sps:$4 sm:$0xff]   ;;  %v7113_v52 = vld [vmem:[%s7746_s23 + $0x8c0] ss:$8 sps:$4 sm:$0xff]  }
 0x113   : > { %3099 = vmatprep.subr.bf16.mxu1 %v7052_v53  ;;  %v7116_v53 = vld [vmem:[%s7746_s23 + $0x9c0] ss:$8 sps:$4 sm:$0xff]  }
 0x114   : > { %v1287_v6 = vpop.f32.mrf.mxu0  ;;  %2200 = vmatmul.mubr.bf16.vlgmr.msra.gmra.mxu0 %v5677_v62  ;;  %v7119_v62 = vld [vmem:[%s7746_s23 + $0x8b0] ss:$8 sps:$4 sm:$0xff]  }
 0x115   : > { %v1328_v7 = vpop.f32.mrf.mxu1  ;;  %2241 = vmatmul.mubr.bf16.vlgmr.msra.gmra.mxu1 %v5679_v63  ;;  %3059 = vmatpush1.bf16.msra.mxu0 %v7047_v0  ;;  %v7122_v63 = vld [vmem:[%s7746_s23 + $0x9b0] ss:$8 sps:$4 sm:$0xff]   ;;  %v7127_v0 = vld [vmem:[%s7746_s23 + $0x8a4] ss:$8 sps:$4 sm:$0xff]  }
 0x116   : > { %v8074_v56 = vadd.f32 %v1328_v7, %v1287_v6  ;;  %3100 = vmatpush1.bf16.msra.mxu1 %v7050_v1  ;;  %v1289_v9 = vpop.f32.mrf.mxu0  ;;  %3060 = vmatprep.subr.bf16.mxu0 %v7055_v2  ;;  %v7130_v1 = vld [vmem:[%s7746_s23 + $0x9a4] ss:$8 sps:$4 sm:$0xff]   ;;  %v7125_v2 = vld [vmem:[%s7746_s23 + $0x8a0] ss:$8 sps:$4 sm:$0xff]   ;;  %v7131_v6 = vld [vmem:[%s7746_s23 + $0x890] ss:$8 sps:$4 sm:$0xff]  }
 0x117   : > { %v1330_v10 = vpop.f32.mrf.mxu1  ;;  %3101 = vmatprep.subr.bf16.mxu1 %v7058_v3  ;;  %3090 = vmatprep.mubr.bf16.mxu0 %v2403_v4  ;;  %v7128_v3 = vld [vmem:[%s7746_s23 + $0x9a0] ss:$8 sps:$4 sm:$0xff]   ;;  %v7133_v4 = vld [vmem:[%s7746_s23 + $0x894] ss:$8 sps:$4 sm:$0xff]   ;;  %v7134_v7 = vld [vmem:[%s7746_s23 + $0x990] ss:$8 sps:$4 sm:$0xff]  }
 0x118   : > { %v8080_v13 = vadd.f32 %v1330_v10, %v1289_v9  ;;  %3131 = vmatprep.mubr.bf16.mxu1 %v2405_v5  ;;  %v1291_v14 = vpop.f32.mrf.mxu0  ;;  %v7136_v5 = vld [vmem:[%s7746_s23 + $0x994] ss:$8 sps:$4 sm:$0xff]  }
 0x119   : > { %v1332_v15 = vpop.f32.mrf.mxu1  ;;  %3061 = vmatpush1.bf16.msra.mxu0 %v7053_v57  ;;  %v7139_v57 = vld [vmem:[%s7746_s23 + $0x884] ss:$8 sps:$4 sm:$0xff]   ;;  %v8135_v9 = vld [vmem:[%s7800_s27 + $0x10] sm:$0x66]  ;;  %v8138_v10 = vld [vmem:[%s7800_s27 + $0x18] sm:$0x66] }
 0x11a   : > { %3102 = vmatpush1.bf16.msra.mxu1 %v7056_v8  ;;  %v1292_v18 = vpop.f32.mrf.mxu0  ;;  %3062 = vmatprep.subr.bf16.mxu0 %v7061_v11  ;;  %v7142_v8 = vld [vmem:[%s7746_s23 + $0x984] ss:$8 sps:$4 sm:$0xff]   ;;  %v5937_v11 = vcombine.low %v8053_v54, %v8053_v54  ;;  %v7137_v14 = vld [vmem:[%s7746_s23 + $0x880] ss:$8 sps:$4 sm:$0xff]   ;;  %v5944_v54 = vcombine.high %v8138_v10, %v8138_v10 }
 0x11b   : > { %v1333_v19 = vpop.f32.mrf.mxu1  ;;  %3103 = vmatprep.subr.bf16.mxu1 %v7064_v12  ;;  %v5939_v12 = vcombine.low %v8056_v55, %v8056_v55  ;;  %v7140_v15 = vld [vmem:[%s7746_s23 + $0x980] ss:$8 sps:$4 sm:$0xff]   ;;  %v7147_v18 = vld [vmem:[%s7746_s23 + $0xa70] ss:$8 sps:$4 sm:$0xff]  }
 0x11c   : > { %v5942_v19 = vcombine.high %v8135_v9, %v8135_v9  ;;  %v2402_v55 = vrot.slane %v5937_v11, 1  ;;  %v7209_v11 = vld [vmem:[%s7746_s23 + $0xad4] ss:$8 sps:$4 sm:$0xff]  }
 0x11d   : > { %3063 = vmatpush1.bf16.msra.mxu0 %v7059_v16  ;;  %v7149_v16 = vld [vmem:[%s7746_s23 + $0xa74] ss:$8 sps:$4 sm:$0xff]  }
 0x11e   : > { %3104 = vmatpush1.bf16.msra.mxu1 %v7062_v17  ;;  %3064 = vmatprep.subr.bf16.mxu0 %v7067_v20  ;;  %v7152_v17 = vld [vmem:[%s7746_s23 + $0xb74] ss:$8 sps:$4 sm:$0xff]   ;;  %v2404_v20 = vrot.slane %v5939_v12, 1 }
 0x11f   : > { %3105 = vmatprep.subr.bf16.mxu1 %v7070_v21  ;;  %v7150_v21 = vld [vmem:[%s7746_s23 + $0xb70] ss:$8 sps:$4 sm:$0xff]   ;;  %v7212_v12 = vld [vmem:[%s7746_s23 + $0xbd4] ss:$8 sps:$4 sm:$0xff]  }
 0x121   : > { %3065 = vmatpush1.bf16.msra.mxu0 %v7065_v22  ;;  %v7155_v22 = vld [vmem:[%s7746_s23 + $0xa64] ss:$8 sps:$4 sm:$0xff]  }
 0x122   : > { %3106 = vmatpush1.bf16.msra.mxu1 %v7068_v23  ;;  %3066 = vmatprep.subr.bf16.mxu0 %v7073_v24  ;;  %v7158_v23 = vld [vmem:[%s7746_s23 + $0xb64] ss:$8 sps:$4 sm:$0xff]   ;;  %v7153_v24 = vld [vmem:[%s7746_s23 + $0xa60] ss:$8 sps:$4 sm:$0xff]  }
 0x123   : > { %3107 = vmatprep.subr.bf16.mxu1 %v7076_v25  ;;  %v7156_v25 = vld [vmem:[%s7746_s23 + $0xb60] ss:$8 sps:$4 sm:$0xff]  }
 0x125   : > { %3067 = vmatpush1.bf16.msra.mxu0 %v7071_v26  ;;  %v2407_v26 = vrot.slane %v5942_v19, 1  ;;  %v7216_v19 = vld [vmem:[%s7746_s23 + $0xbc0] ss:$8 sps:$4 sm:$0xff]  }
 0x126   : > { %3108 = vmatpush1.bf16.msra.mxu1 %v7074_v27  ;;  %3068 = vmatprep.subr.bf16.mxu0 %v7079_v28  ;;  %v2409_v27 = vrot.slane %v5944_v54, 1  ;;  %v7221_v54 = vld [vmem:[%s7746_s23 + $0xab4] ss:$8 sps:$4 sm:$0xff]  }
 0x127   : > { %3109 = vmatprep.subr.bf16.mxu1 %v7082_v29 }
 0x129   : > { %3069 = vmatpush1.bf16.msra.mxu0 %v7077_v30 }
 0x12a   : > { %3110 = vmatpush1.bf16.msra.mxu1 %v7080_v31  ;;  %3070 = vmatprep.subr.bf16.mxu0 %v7085_v32 }
 0x12b   : > { %3111 = vmatprep.subr.bf16.mxu1 %v7088_v33  ;;  %v7161_v33 = vld [vmem:[%s7746_s23 + $0xa54] ss:$8 sps:$4 sm:$0xff]  }
 0x12d   : > { %3071 = vmatpush1.bf16.msra.mxu0 %v7083_v34  ;;  %v7164_v34 = vld [vmem:[%s7746_s23 + $0xb54] ss:$8 sps:$4 sm:$0xff]  }
 0x12e   : > { %3112 = vmatpush1.bf16.msra.mxu1 %v7086_v35  ;;  %3072 = vmatprep.subr.bf16.mxu0 %v7091_v36 }
 0x12f   : > { %3113 = vmatprep.subr.bf16.mxu1 %v7094_v37  ;;  %v7159_v37 = vld [vmem:[%s7746_s23 + $0xa50] ss:$8 sps:$4 sm:$0xff]  }
 0x131   : > { %3073 = vmatpush1.bf16.msra.mxu0 %v7089_v38  ;;  %v7162_v38 = vld [vmem:[%s7746_s23 + $0xb50] ss:$8 sps:$4 sm:$0xff]  }
 0x132   : > { %3114 = vmatpush1.bf16.msra.mxu1 %v7092_v39  ;;  %3074 = vmatprep.subr.bf16.mxu0 %v7097_v40 }
 0x133   : > { %3115 = vmatprep.subr.bf16.mxu1 %v7100_v41 }
 0x135   : > { %3075 = vmatpush2.bf16.msra.mxu0 %v7095_v42 }
 0x136   : > { %3116 = vmatpush2.bf16.msra.mxu1 %v7098_v43  ;;  %3076 = vmatprep.subr.bf16.mxu0 %v7103_v44  ;;  %v7170_v43 = vld [vmem:[%s7746_s23 + $0xb44] ss:$8 sps:$4 sm:$0xff]   ;;  %v7165_v44 = vld [vmem:[%s7746_s23 + $0xa40] ss:$8 sps:$4 sm:$0xff]  }
 0x137   : > { %3117 = vmatprep.subr.bf16.mxu1 %v7106_v45  ;;  %v7168_v45 = vld [vmem:[%s7746_s23 + $0xb40] ss:$8 sps:$4 sm:$0xff]  }
 0x139   : > { %3077 = vmatpush2.bf16.msra.mxu0 %v7101_v46  ;;  %v7173_v46 = vld [vmem:[%s7746_s23 + $0xa34] ss:$8 sps:$4 sm:$0xff]  }
 0x13a   : > { %3118 = vmatpush2.bf16.msra.mxu1 %v7104_v47  ;;  %3078 = vmatprep.subr.bf16.mxu0 %v7109_v48  ;;  %v7176_v47 = vld [vmem:[%s7746_s23 + $0xb34] ss:$8 sps:$4 sm:$0xff]   ;;  %v7171_v48 = vld [vmem:[%s7746_s23 + $0xa30] ss:$8 sps:$4 sm:$0xff]  }
 0x13b   : > { %3119 = vmatprep.subr.bf16.mxu1 %v7112_v49  ;;  %v7174_v49 = vld [vmem:[%s7746_s23 + $0xb30] ss:$8 sps:$4 sm:$0xff]  }
 0x13d   : > { %3079 = vmatpush2.bf16.msra.mxu0 %v7107_v50  ;;  %v7179_v50 = vld [vmem:[%s7746_s23 + $0xa24] ss:$8 sps:$4 sm:$0xff]  }
 0x13e   : > { %3120 = vmatpush2.bf16.msra.mxu1 %v7110_v51  ;;  %3080 = vmatprep.subr.bf16.mxu0 %v7115_v58  ;;  %v7182_v51 = vld [vmem:[%s7746_s23 + $0xb24] ss:$8 sps:$4 sm:$0xff]   ;;  %v7177_v58 = vld [vmem:[%s7746_s23 + $0xa20] ss:$8 sps:$4 sm:$0xff]  }
 0x13f   : > { %3121 = vmatprep.subr.bf16.mxu1 %v7118_v59  ;;  %v7180_v59 = vld [vmem:[%s7746_s23 + $0xb20] ss:$8 sps:$4 sm:$0xff]  }
 0x141   : > { %3081 = vmatpush2.bf16.msra.mxu0 %v7113_v52  ;;  %v7185_v52 = vld [vmem:[%s7746_s23 + $0xa14] ss:$8 sps:$4 sm:$0xff]  }
 0x142   : > { %3122 = vmatpush2.bf16.msra.mxu1 %v7116_v53  ;;  %3082 = vmatprep.subr.bf16.mxu0 %v7121_v60  ;;  %v7188_v53 = vld [vmem:[%s7746_s23 + $0xb14] ss:$8 sps:$4 sm:$0xff]   ;;  %v7183_v60 = vld [vmem:[%s7746_s23 + $0xa10] ss:$8 sps:$4 sm:$0xff]  }
 0x143   : > { %3123 = vmatprep.subr.bf16.mxu1 %v7124_v61  ;;  %v7186_v61 = vld [vmem:[%s7746_s23 + $0xb10] ss:$8 sps:$4 sm:$0xff]  }
 0x145   : > { %3083 = vmatpush2.bf16.msra.mxu0 %v7119_v62  ;;  %v7191_v62 = vld [vmem:[%s7746_s23 + $0xa04] ss:$8 sps:$4 sm:$0xff]  }
 0x146   : > { %3124 = vmatpush2.bf16.msra.mxu1 %v7122_v63  ;;  %3084 = vmatprep.subr.bf16.mxu0 %v7127_v0  ;;  %v7194_v63 = vld [vmem:[%s7746_s23 + $0xb04] ss:$8 sps:$4 sm:$0xff]   ;;  %v7189_v0 = vld [vmem:[%s7746_s23 + $0xa00] ss:$8 sps:$4 sm:$0xff]  }
 0x147   : > { %3125 = vmatprep.subr.bf16.mxu1 %v7130_v1  ;;  %v7192_v1 = vld [vmem:[%s7746_s23 + $0xb00] ss:$8 sps:$4 sm:$0xff]  }
 0x149   : > { %3085 = vmatpush2.bf16.msra.mxu0 %v7125_v2  ;;  %v7197_v2 = vld [vmem:[%s7746_s23 + $0xaf4] ss:$8 sps:$4 sm:$0xff]  }
 0x14a   : > { %3126 = vmatpush2.bf16.msra.mxu1 %v7128_v3  ;;  %3086 = vmatprep.subr.bf16.mxu0 %v7133_v4  ;;  %v7200_v3 = vld [vmem:[%s7746_s23 + $0xbf4] ss:$8 sps:$4 sm:$0xff]   ;;  %v7195_v4 = vld [vmem:[%s7746_s23 + $0xaf0] ss:$8 sps:$4 sm:$0xff]  }
 0x14b   : > { %3127 = vmatprep.subr.bf16.mxu1 %v7136_v5  ;;  %v7198_v5 = vld [vmem:[%s7746_s23 + $0xbf0] ss:$8 sps:$4 sm:$0xff]  }
 0x14d   : > { %3087 = vmatpush2.bf16.msra.mxu0 %v7131_v6  ;;  %v7203_v6 = vld [vmem:[%s7746_s23 + $0xae4] ss:$8 sps:$4 sm:$0xff]  }
 0x14e   : > { %3128 = vmatpush2.bf16.msra.mxu1 %v7134_v7  ;;  %3088 = vmatprep.subr.bf16.mxu0 %v7139_v57  ;;  %v7206_v7 = vld [vmem:[%s7746_s23 + $0xbe4] ss:$8 sps:$4 sm:$0xff]   ;;  %v7201_v57 = vld [vmem:[%s7746_s23 + $0xae0] ss:$8 sps:$4 sm:$0xff]  }
 0x14f   : > { %3129 = vmatprep.subr.bf16.mxu1 %v7142_v8  ;;  %v7204_v8 = vld [vmem:[%s7746_s23 + $0xbe0] ss:$8 sps:$4 sm:$0xff]  }
 0x151   : > { %3089 = vmatpush2.bf16.msra.mxu0 %v7137_v14  ;;  %v7207_v14 = vld [vmem:[%s7746_s23 + $0xad0] ss:$8 sps:$4 sm:$0xff]  }
 0x152   : > { %3130 = vmatpush2.bf16.msra.mxu1 %v7140_v15  ;;  %3140 = vmatprep.subr.bf16.mxu0 %v7149_v16  ;;  %v7210_v15 = vld [vmem:[%s7746_s23 + $0xbd0] ss:$8 sps:$4 sm:$0xff]   ;;  %v7215_v16 = vld [vmem:[%s7746_s23 + $0xac4] ss:$8 sps:$4 sm:$0xff]  }
 0x153   : > { %3181 = vmatprep.subr.bf16.mxu1 %v7152_v17  ;;  %v7218_v17 = vld [vmem:[%s7746_s23 + $0xbc4] ss:$8 sps:$4 sm:$0xff]  }
 0x154   : > { %v1369_v28 = vpop.f32.mrf.mxu0  ;;  %3091 = vmatmul.mubr.bf16.vlgmr.msra.gmra.mxu0 %v2402_v55  ;;  %v7224_v55 = vld [vmem:[%s7746_s23 + $0xbb4] ss:$8 sps:$4 sm:$0xff]  }
 0x155   : > { %v1410_v29 = vpop.f32.mrf.mxu1  ;;  %3132 = vmatmul.mubr.bf16.vlgmr.msra.gmra.mxu1 %v2404_v20  ;;  %v1370_v30 = vadd.f32 %v1369_v28, %v8074_v56  ;;  %3141 = vmatpush1.bf16.msra.mxu0 %v7147_v18  ;;  %v7213_v18 = vld [vmem:[%s7746_s23 + $0xac0] ss:$8 sps:$4 sm:$0xff]   ;;  %v7219_v20 = vld [vmem:[%s7746_s23 + $0xab0] ss:$8 sps:$4 sm:$0xff]   ;;  %v7233_v28 = vld [vmem:[%s7746_s23 + $0xa94] ss:$8 sps:$4 sm:$0xff]  }
 0x156   : > { %3182 = vmatpush1.bf16.msra.mxu1 %v7150_v21  ;;  %v1371_v31 = vpop.f32.mrf.mxu0  ;;  %3142 = vmatprep.subr.bf16.mxu0 %v7155_v22  ;;  %v7222_v21 = vld [vmem:[%s7746_s23 + $0xbb0] ss:$8 sps:$4 sm:$0xff]   ;;  %v7227_v22 = vld [vmem:[%s7746_s23 + $0xaa4] ss:$8 sps:$4 sm:$0xff]  }
 0x157   : > { %v1412_v32 = vpop.f32.mrf.mxu1  ;;  %3183 = vmatprep.subr.bf16.mxu1 %v7158_v23  ;;  %v8161_v35 = vadd.f32 %v1410_v29, %v1370_v30  ;;  %v1372_v36 = vadd.f32 %v1371_v31, %v8080_v13  ;;  %3172 = vmatprep.mubr.bf16.mxu0 %v2407_v26  ;;  %v7167_v13 = vld [vmem:[%s7746_s23 + $0xa44] ss:$8 sps:$4 sm:$0xff]   ;;  %v7225_v26 = vld [vmem:[%s7746_s23 + $0xaa0] ss:$8 sps:$4 sm:$0xff]   ;;  %v7236_v29 = vld [vmem:[%s7746_s23 + $0xb94] ss:$8 sps:$4 sm:$0xff]  }
 0x158   : > { %3213 = vmatprep.mubr.bf16.mxu1 %v2409_v27  ;;  %v1373_v56 = vpop.f32.mrf.mxu0  ;;  %v7230_v23 = vld [vmem:[%s7746_s23 + $0xba4] ss:$8 sps:$4 sm:$0xff]   ;;  %v7228_v27 = vld [vmem:[%s7746_s23 + $0xba0] ss:$8 sps:$4 sm:$0xff]  }
 0x159   : > { %v1414_v39 = vpop.f32.mrf.mxu1  ;;  %v8166_v40 = vadd.f32 %v1412_v32, %v1372_v36  ;;  %3143 = vmatpush1.bf16.msra.mxu0 %v7153_v24  ;;  %v8211_v24 = vld [vmem:[%s7800_s27] sm:$0xee]  ;;  %v7231_v32 = vld [vmem:[%s7746_s23 + $0xa90] ss:$8 sps:$4 sm:$0xff]  }
 0x15a   : > { %3184 = vmatpush1.bf16.msra.mxu1 %v7156_v25  ;;  %v1374_v41 = vpop.f32.mrf.mxu0  ;;  %3144 = vmatprep.subr.bf16.mxu0 %v7161_v33  ;;  %v8214_v25 = vld [vmem:[%s7800_s27 + $0x8] sm:$0xee]  ;;  %v6202_v30 = vcombine.high %v8211_v24, %v8211_v24  ;;  %v7234_v33 = vld [vmem:[%s7746_s23 + $0xb90] ss:$8 sps:$4 sm:$0xff]  }
 0x15b   : > { %v1415_v42 = vpop.f32.mrf.mxu1  ;;  %3185 = vmatprep.subr.bf16.mxu1 %v7164_v34  ;;  %v6204_v31 = vcombine.high %v8214_v25, %v8214_v25  ;;  %v7239_v34 = vld [vmem:[%s7746_s23 + $0xa84] ss:$8 sps:$4 sm:$0xff]   ;;  %v5941_v41 = vcombine.low %v8135_v9, %v8135_v9 }
 0x15c   : > { %v7242_v36 = vld [vmem:[%s7746_s23 + $0xb84] ss:$8 sps:$4 sm:$0xff]   ;;  %v5943_v42 = vcombine.low %v8138_v10, %v8138_v10 }
 0x15d   : > { %3145 = vmatpush1.bf16.msra.mxu0 %v7159_v37  ;;  %v3386_v37 = vshrl.u32 %v6202_v30, 16  ;;  %v3402_v56 = vshrl.u32 %v6204_v31, 16  ;;  %v3405_v39 = vshll.u32 %v6204_v31, 16  ;;  %v7294_v31 = vld [vmem:[%s7746_s23 + $0xd04] ss:$8 sps:$4 sm:$0xff]  }
 0x15e   : > { %3186 = vmatpush1.bf16.msra.mxu1 %v7162_v38  ;;  %3146 = vmatprep.subr.bf16.mxu0 %v7167_v13  ;;  %v3389_v38 = vshll.u32 %v6202_v30, 16  ;;  %v7237_v13 = vld [vmem:[%s7746_s23 + $0xa80] ss:$8 sps:$4 sm:$0xff]   ;;  %v2408_v10 = vrot.slane %v5943_v42, 1  ;;  %v7291_v30 = vld [vmem:[%s7746_s23 + $0xc04] ss:$8 sps:$4 sm:$0xff]  }
 0x15f   : > { %3187 = vmatprep.subr.bf16.mxu1 %v7170_v43  ;;  %v7240_v43 = vld [vmem:[%s7746_s23 + $0xb80] ss:$8 sps:$4 sm:$0xff]   ;;  %v3404_v9 = vrot.slane %v3402_v56, 1  ;;  %v7303_v56 = vld [vmem:[%s7746_s23 + $0xce4] ss:$8 sps:$4 sm:$0xff]  }
 0x160   : > { %v7304_v42 = vld [vmem:[%s7746_s23 + $0xde0] ss:$8 sps:$4 sm:$0xff]  }
 0x161   : > { %3147 = vmatpush1.bf16.msra.mxu0 %v7165_v44  ;;  %v7249_v44 = vld [vmem:[%s7746_s23 + $0xc74] ss:$8 sps:$4 sm:$0xff]  }
 0x162   : > { %3188 = vmatpush1.bf16.msra.mxu1 %v7168_v45  ;;  %3148 = vmatprep.subr.bf16.mxu0 %v7173_v46  ;;  %v7252_v45 = vld [vmem:[%s7746_s23 + $0xd74] ss:$8 sps:$4 sm:$0xff]   ;;  %v7247_v46 = vld [vmem:[%s7746_s23 + $0xc70] ss:$8 sps:$4 sm:$0xff]  }
 0x163   : > { %3189 = vmatprep.subr.bf16.mxu1 %v7176_v47  ;;  %v3388_v47 = vrot.slane %v3386_v37, 1  ;;  %v7295_v37 = vld [vmem:[%s7746_s23 + $0xcf0] ss:$8 sps:$4 sm:$0xff]  }
 0x165   : > { %3149 = vmatpush1.bf16.msra.mxu0 %v7171_v48  ;;  %v3391_v48 = vrot.slane %v3389_v38, 2  ;;  %v7298_v38 = vld [vmem:[%s7746_s23 + $0xdf0] ss:$8 sps:$4 sm:$0xff]  }
 0x166   : > { %3190 = vmatpush1.bf16.msra.mxu1 %v7174_v49  ;;  %3150 = vmatprep.subr.bf16.mxu0 %v7179_v50  ;;  %v3407_v49 = vrot.slane %v3405_v39, 2  ;;  %v2406_v50 = vrot.slane %v5941_v41, 1  ;;  %v7306_v39 = vld [vmem:[%s7746_s23 + $0xde4] ss:$8 sps:$4 sm:$0xff]   ;;  %v7301_v41 = vld [vmem:[%s7746_s23 + $0xce0] ss:$8 sps:$4 sm:$0xff]  }
 0x167   : > { %3191 = vmatprep.subr.bf16.mxu1 %v7182_v51  ;;  %v7250_v51 = vld [vmem:[%s7746_s23 + $0xd70] ss:$8 sps:$4 sm:$0xff]  }
 0x169   : > { %3151 = vmatpush1.bf16.msra.mxu0 %v7177_v58  ;;  %v7255_v58 = vld [vmem:[%s7746_s23 + $0xc64] ss:$8 sps:$4 sm:$0xff]  }
 0x16a   : > { %3192 = vmatpush1.bf16.msra.mxu1 %v7180_v59  ;;  %3152 = vmatprep.subr.bf16.mxu0 %v7185_v52  ;;  %v7258_v59 = vld [vmem:[%s7746_s23 + $0xd64] ss:$8 sps:$4 sm:$0xff]   ;;  %v7253_v52 = vld [vmem:[%s7746_s23 + $0xc60] ss:$8 sps:$4 sm:$0xff]  }
 0x16b   : > { %3193 = vmatprep.subr.bf16.mxu1 %v7188_v53  ;;  %v7256_v53 = vld [vmem:[%s7746_s23 + $0xd60] ss:$8 sps:$4 sm:$0xff]  }
 0x16d   : > { %3153 = vmatpush1.bf16.msra.mxu0 %v7183_v60  ;;  %v3392_v60 = vor.u32 %v3391_v48, %v3388_v47  ;;  %v7318_v47 = vld [vmem:[%s7746_s23 + $0xdc4] ss:$8 sps:$4 sm:$0xff]   ;;  %v7313_v48 = vld [vmem:[%s7746_s23 + $0xcc0] ss:$8 sps:$4 sm:$0xff]  }
 0x16e   : > { %3194 = vmatpush1.bf16.msra.mxu1 %v7186_v61  ;;  %3154 = vmatprep.subr.bf16.mxu0 %v7191_v62  ;;  %v3408_v61 = vor.u32 %v3407_v49, %v3404_v9  ;;  %v7316_v9 = vld [vmem:[%s7746_s23 + $0xdc0] ss:$8 sps:$4 sm:$0xff]   ;;  %v7321_v49 = vld [vmem:[%s7746_s23 + $0xcb4] ss:$8 sps:$4 sm:$0xff]  }
 0x16f   : > { %3195 = vmatprep.subr.bf16.mxu1 %v7194_v63 }
 0x171   : > { %3155 = vmatpush1.bf16.msra.mxu0 %v7189_v0 }
 0x172   : > { %3196 = vmatpush1.bf16.msra.mxu1 %v7192_v1  ;;  %3156 = vmatprep.subr.bf16.mxu0 %v7197_v2 }
 0x173   : > { %3197 = vmatprep.subr.bf16.mxu1 %v7200_v3  ;;  %v7261_v3 = vld [vmem:[%s7746_s23 + $0xc54] ss:$8 sps:$4 sm:$0xff]  }
 0x175   : > { %3157 = vmatpush2.bf16.msra.mxu0 %v7195_v4  ;;  %v7264_v4 = vld [vmem:[%s7746_s23 + $0xd54] ss:$8 sps:$4 sm:$0xff]  }
 0x176   : > { %3198 = vmatpush2.bf16.msra.mxu1 %v7198_v5  ;;  %3158 = vmatprep.subr.bf16.mxu0 %v7203_v6 }
 0x177   : > { %3199 = vmatprep.subr.bf16.mxu1 %v7206_v7  ;;  %v7259_v7 = vld [vmem:[%s7746_s23 + $0xc50] ss:$8 sps:$4 sm:$0xff]  }
 0x179   : > { %3159 = vmatpush2.bf16.msra.mxu0 %v7201_v57  ;;  %v7262_v57 = vld [vmem:[%s7746_s23 + $0xd50] ss:$8 sps:$4 sm:$0xff]  }
 0x17a   : > { %3200 = vmatpush2.bf16.msra.mxu1 %v7204_v8  ;;  %3160 = vmatprep.subr.bf16.mxu0 %v7209_v11 }
 0x17b   : > { %3201 = vmatprep.subr.bf16.mxu1 %v7212_v12 }
 0x17d   : > { %3161 = vmatpush2.bf16.msra.mxu0 %v7207_v14 }
 0x17e   : > { %3202 = vmatpush2.bf16.msra.mxu1 %v7210_v15  ;;  %3162 = vmatprep.subr.bf16.mxu0 %v7215_v16  ;;  %v7270_v15 = vld [vmem:[%s7746_s23 + $0xd44] ss:$8 sps:$4 sm:$0xff]   ;;  %v7265_v16 = vld [vmem:[%s7746_s23 + $0xc40] ss:$8 sps:$4 sm:$0xff]  }
 0x17f   : > { %3203 = vmatprep.subr.bf16.mxu1 %v7218_v17  ;;  %v7268_v17 = vld [vmem:[%s7746_s23 + $0xd40] ss:$8 sps:$4 sm:$0xff]  }
 0x181   : > { %3163 = vmatpush2.bf16.msra.mxu0 %v7213_v18  ;;  %v7273_v18 = vld [vmem:[%s7746_s23 + $0xc34] ss:$8 sps:$4 sm:$0xff]  }
 0x182   : > { %3204 = vmatpush2.bf16.msra.mxu1 %v7216_v19  ;;  %3164 = vmatprep.subr.bf16.mxu0 %v7221_v54  ;;  %v7276_v19 = vld [vmem:[%s7746_s23 + $0xd34] ss:$8 sps:$4 sm:$0xff]   ;;  %v7271_v54 = vld [vmem:[%s7746_s23 + $0xc30] ss:$8 sps:$4 sm:$0xff]  }
 0x183   : > { %3205 = vmatprep.subr.bf16.mxu1 %v7224_v55  ;;  %v7274_v55 = vld [vmem:[%s7746_s23 + $0xd30] ss:$8 sps:$4 sm:$0xff]  }
 0x185   : > { %3165 = vmatpush2.bf16.msra.mxu0 %v7219_v20  ;;  %v7279_v20 = vld [vmem:[%s7746_s23 + $0xc24] ss:$8 sps:$4 sm:$0xff]  }
 0x186   : > { %3206 = vmatpush2.bf16.msra.mxu1 %v7222_v21  ;;  %3166 = vmatprep.subr.bf16.mxu0 %v7227_v22  ;;  %v7282_v21 = vld [vmem:[%s7746_s23 + $0xd24] ss:$8 sps:$4 sm:$0xff]   ;;  %v7277_v22 = vld [vmem:[%s7746_s23 + $0xc20] ss:$8 sps:$4 sm:$0xff]  }
 0x187   : > { %3207 = vmatprep.subr.bf16.mxu1 %v7230_v23  ;;  %v7280_v23 = vld [vmem:[%s7746_s23 + $0xd20] ss:$8 sps:$4 sm:$0xff]  }
 0x189   : > { %3167 = vmatpush2.bf16.msra.mxu0 %v7225_v26  ;;  %v7285_v26 = vld [vmem:[%s7746_s23 + $0xc14] ss:$8 sps:$4 sm:$0xff]  }
 0x18a   : > { %3208 = vmatpush2.bf16.msra.mxu1 %v7228_v27  ;;  %3168 = vmatprep.subr.bf16.mxu0 %v7233_v28  ;;  %v7288_v27 = vld [vmem:[%s7746_s23 + $0xd14] ss:$8 sps:$4 sm:$0xff]   ;;  %v7283_v28 = vld [vmem:[%s7746_s23 + $0xc10] ss:$8 sps:$4 sm:$0xff]  }
 0x18b   : > { %3209 = vmatprep.subr.bf16.mxu1 %v7236_v29  ;;  %v7286_v29 = vld [vmem:[%s7746_s23 + $0xd10] ss:$8 sps:$4 sm:$0xff]  }
 0x18d   : > { %3169 = vmatpush2.bf16.msra.mxu0 %v7231_v32  ;;  %v7289_v32 = vld [vmem:[%s7746_s23 + $0xc00] ss:$8 sps:$4 sm:$0xff]  }
 0x18e   : > { %3210 = vmatpush2.bf16.msra.mxu1 %v7234_v33  ;;  %3170 = vmatprep.subr.bf16.mxu0 %v7239_v34  ;;  %v7292_v33 = vld [vmem:[%s7746_s23 + $0xd00] ss:$8 sps:$4 sm:$0xff]   ;;  %v7297_v34 = vld [vmem:[%s7746_s23 + $0xcf4] ss:$8 sps:$4 sm:$0xff]  }
 0x18f   : > { %3211 = vmatprep.subr.bf16.mxu1 %v7242_v36  ;;  %v7300_v36 = vld [vmem:[%s7746_s23 + $0xdf4] ss:$8 sps:$4 sm:$0xff]  }
 0x191   : > { %3171 = vmatpush2.bf16.msra.mxu0 %v7237_v13  ;;  %v7309_v13 = vld [vmem:[%s7746_s23 + $0xcd4] ss:$8 sps:$4 sm:$0xff]  }
 0x192   : > { %3212 = vmatpush2.bf16.msra.mxu1 %v7240_v43  ;;  %4089 = vmatprep.subr.bf16.mxu0 %v7249_v44  ;;  %v7312_v43 = vld [vmem:[%s7746_s23 + $0xdd4] ss:$8 sps:$4 sm:$0xff]   ;;  %v7307_v44 = vld [vmem:[%s7746_s23 + $0xcd0] ss:$8 sps:$4 sm:$0xff]  }
 0x193   : > { %4130 = vmatprep.subr.bf16.mxu1 %v7252_v45  ;;  %v7310_v45 = vld [vmem:[%s7746_s23 + $0xdd0] ss:$8 sps:$4 sm:$0xff]  }
 0x194   : > { %v2119_v62 = vpop.f32.mrf.mxu0  ;;  %3173 = vmatmul.mubr.bf16.vlgmr.msra.gmra.mxu0 %v2406_v50  ;;  %v7324_v50 = vld [vmem:[%s7746_s23 + $0xdb4] ss:$8 sps:$4 sm:$0xff]  }
 0x195   : > { %v2160_v63 = vpop.f32.mrf.mxu1  ;;  %3214 = vmatmul.mubr.bf16.vlgmr.msra.gmra.mxu1 %v2408_v10  ;;  %v2120_v0 = vadd.f32 %v2119_v62, %v8161_v35  ;;  %4090 = vmatpush1.bf16.msra.mxu0 %v7247_v46  ;;  %v7315_v46 = vld [vmem:[%s7746_s23 + $0xcc4] ss:$8 sps:$4 sm:$0xff]   ;;  %v7319_v10 = vld [vmem:[%s7746_s23 + $0xcb0] ss:$8 sps:$4 sm:$0xff]   ;;  %v7325_v62 = vld [vmem:[%s7746_s23 + $0xca0] ss:$8 sps:$4 sm:$0xff]  }
 0x196   : > { %4131 = vmatpush1.bf16.msra.mxu1 %v7250_v51  ;;  %v2121_v1 = vpop.f32.mrf.mxu0  ;;  %4091 = vmatprep.subr.bf16.mxu0 %v7255_v58  ;;  %v7322_v51 = vld [vmem:[%s7746_s23 + $0xdb0] ss:$8 sps:$4 sm:$0xff]   ;;  %v7327_v58 = vld [vmem:[%s7746_s23 + $0xca4] ss:$8 sps:$4 sm:$0xff]  }
 0x197   : > { %v2162_v2 = vpop.f32.mrf.mxu1  ;;  %4132 = vmatprep.subr.bf16.mxu1 %v7258_v59  ;;  %v8245_v5 = vadd.f32 %v2160_v63, %v2120_v0  ;;  %v2122_v6 = vadd.f32 %v2121_v1, %v8166_v40  ;;  %4121 = vmatprep.mubr.bf16.mxu0 %v3392_v60  ;;  %v7267_v40 = vld [vmem:[%s7746_s23 + $0xc44] ss:$8 sps:$4 sm:$0xff]   ;;  %v8299_v60 = vld [vmem:[%s7800_s27 + $0x10] sm:$0xee]  ;;  %v7328_v63 = vld [vmem:[%s7746_s23 + $0xda0] ss:$8 sps:$4 sm:$0xff]  }
 0x198   : > { %4162 = vmatprep.mubr.bf16.mxu1 %v3408_v61  ;;  %v2123_v35 = vpop.f32.mrf.mxu0  ;;  %v7330_v59 = vld [vmem:[%s7746_s23 + $0xda4] ss:$8 sps:$4 sm:$0xff]   ;;  %v8302_v61 = vld [vmem:[%s7800_s27 + $0x18] sm:$0xee] }
 0x199   : > { %v2164_v8 = vpop.f32.mrf.mxu1  ;;  %v8250_v11 = vadd.f32 %v2162_v2, %v2122_v6  ;;  %4092 = vmatpush1.bf16.msra.mxu0 %v7253_v52  ;;  %v6201_v52 = vcombine.low %v8211_v24, %v8211_v24  ;;  %v7333_v0 = vld [vmem:[%s7746_s23 + $0xc94] ss:$8 sps:$4 sm:$0xff]   ;;  %v6206_v24 = vcombine.high %v8299_v60, %v8299_v60  ;;  %v7339_v35 = vld [vmem:[%s7746_s23 + $0xc84] ss:$8 sps:$4 sm:$0xff]  }
 0x19a   : > { %4133 = vmatpush1.bf16.msra.mxu1 %v7256_v53  ;;  %v2124_v12 = vpop.f32.mrf.mxu0  ;;  %4093 = vmatprep.subr.bf16.mxu0 %v7261_v3  ;;  %v6203_v53 = vcombine.low %v8214_v25, %v8214_v25  ;;  %v7336_v1 = vld [vmem:[%s7746_s23 + $0xd94] ss:$8 sps:$4 sm:$0xff]   ;;  %v6208_v25 = vcombine.high %v8302_v61, %v8302_v61  ;;  %v7342_v8 = vld [vmem:[%s7746_s23 + $0xd84] ss:$8 sps:$4 sm:$0xff]  }
 0x19b   : > { %v2165_v14 = vpop.f32.mrf.mxu1  ;;  %4134 = vmatprep.subr.bf16.mxu1 %v7264_v4  ;;  %v3378_v2 = vshrl.u32 %v6201_v52, 16  ;;  %v3381_v3 = vshll.u32 %v6201_v52, 16  ;;  %v3418_v12 = vshrl.u32 %v6206_v24, 16  ;;  %v7373_v52 = vld [vmem:[%s7746_s23 + $0xe34] ss:$8 sps:$4 sm:$0xff]  }
 0x19c   : > { %v3394_v4 = vshrl.u32 %v6203_v53, 16  ;;  %v3397_v6 = vshll.u32 %v6203_v53, 16  ;;  %v3421_v14 = vshll.u32 %v6206_v24, 16  ;;  %v7376_v53 = vld [vmem:[%s7746_s23 + $0xf34] ss:$8 sps:$4 sm:$0xff]  }
 0x19d   : > { %4094 = vmatpush1.bf16.msra.mxu0 %v7259_v7  ;;  %v7331_v7 = vld [vmem:[%s7746_s23 + $0xc90] ss:$8 sps:$4 sm:$0xff]   ;;  %v7377_v24 = vld [vmem:[%s7746_s23 + $0xe20] ss:$8 sps:$4 sm:$0xff]  }
 0x19e   : > { %4135 = vmatpush1.bf16.msra.mxu1 %v7262_v57  ;;  %4095 = vmatprep.subr.bf16.mxu0 %v7267_v40  ;;  %v7334_v57 = vld [vmem:[%s7746_s23 + $0xd90] ss:$8 sps:$4 sm:$0xff]   ;;  %v3434_v40 = vshrl.u32 %v6208_v25, 16 }
 0x19f   : > { %4136 = vmatprep.subr.bf16.mxu1 %v7270_v15  ;;  %v3437_v15 = vshll.u32 %v6208_v25, 16  ;;  %v7380_v25 = vld [vmem:[%s7746_s23 + $0xf20] ss:$8 sps:$4 sm:$0xff]  }
 0x1a1   : > { %4096 = vmatpush1.bf16.msra.mxu0 %v7265_v16  ;;  %v3380_v16 = vrot.slane %v3378_v2, 1  ;;  %v7385_v2 = vld [vmem:[%s7746_s23 + $0xe14] ss:$8 sps:$4 sm:$0xff]  }
 0x1a2   : > { %4137 = vmatpush1.bf16.msra.mxu1 %v7268_v17  ;;  %4097 = vmatprep.subr.bf16.mxu0 %v7273_v18  ;;  %v3383_v17 = vrot.slane %v3381_v3, 2  ;;  %v3396_v18 = vrot.slane %v3394_v4, 1  ;;  %v7388_v3 = vld [vmem:[%s7746_s23 + $0xf14] ss:$8 sps:$4 sm:$0xff]   ;;  %v7383_v4 = vld [vmem:[%s7746_s23 + $0xe10] ss:$8 sps:$4 sm:$0xff]  }
 0x1a3   : > { %4138 = vmatprep.subr.bf16.mxu1 %v7276_v19  ;;  %v3399_v19 = vrot.slane %v3397_v6, 2  ;;  %v7386_v6 = vld [vmem:[%s7746_s23 + $0xf10] ss:$8 sps:$4 sm:$0xff]  }
 0x1a5   : > { %4098 = vmatpush1.bf16.msra.mxu0 %v7271_v54  ;;  %v7337_v54 = vld [vmem:[%s7746_s23 + $0xc80] ss:$8 sps:$4 sm:$0xff]  }
 0x1a6   : > { %4139 = vmatpush1.bf16.msra.mxu1 %v7274_v55  ;;  %4099 = vmatprep.subr.bf16.mxu0 %v7279_v20  ;;  %v7340_v55 = vld [vmem:[%s7746_s23 + $0xd80] ss:$8 sps:$4 sm:$0xff]   ;;  %v7349_v20 = vld [vmem:[%s7746_s23 + $0xe74] ss:$8 sps:$4 sm:$0xff]  }
 0x1a7   : > { %4140 = vmatprep.subr.bf16.mxu1 %v7282_v21  ;;  %v7352_v21 = vld [vmem:[%s7746_s23 + $0xf74] ss:$8 sps:$4 sm:$0xff]  }
 0x1a9   : > { %4100 = vmatpush1.bf16.msra.mxu0 %v7277_v22  ;;  %v3420_v22 = vrot.slane %v3418_v12, 1  ;;  %v7397_v12 = vld [vmem:[%s7746_s23 + $0xef4] ss:$8 sps:$4 sm:$0xff]  }
 0x1aa   : > { %4141 = vmatpush1.bf16.msra.mxu1 %v7280_v23  ;;  %4101 = vmatprep.subr.bf16.mxu0 %v7285_v26  ;;  %v3423_v23 = vrot.slane %v3421_v14, 2  ;;  %v3436_v26 = vrot.slane %v3434_v40, 1  ;;  %v7400_v14 = vld [vmem:[%s7746_s23 + $0xff4] ss:$8 sps:$4 sm:$0xff]   ;;  %v7395_v40 = vld [vmem:[%s7746_s23 + $0xef0] ss:$8 sps:$4 sm:$0xff]  }
 0x1ab   : > { %4142 = vmatprep.subr.bf16.mxu1 %v7288_v27  ;;  %v3439_v27 = vrot.slane %v3437_v15, 2  ;;  %v7398_v15 = vld [vmem:[%s7746_s23 + $0xff0] ss:$8 sps:$4 sm:$0xff]  }
 0x1ad   : > { %4102 = vmatpush1.bf16.msra.mxu0 %v7283_v28  ;;  %v3384_v28 = vor.u32 %v3383_v17, %v3380_v16  ;;  %v7403_v16 = vld [vmem:[%s7746_s23 + $0xee4] ss:$8 sps:$4 sm:$0xff]  }
 0x1ae   : > { %4143 = vmatpush1.bf16.msra.mxu1 %v7286_v29  ;;  %4103 = vmatprep.subr.bf16.mxu0 %v7291_v30  ;;  %v3400_v29 = vor.u32 %v3399_v19, %v3396_v18  ;;  %v7347_v30 = vld [vmem:[%s7746_s23 + $0xe70] ss:$8 sps:$4 sm:$0xff]   ;;  %v7406_v17 = vld [vmem:[%s7746_s23 + $0xfe4] ss:$8 sps:$4 sm:$0xff]   ;;  %v7401_v18 = vld [vmem:[%s7746_s23 + $0xee0] ss:$8 sps:$4 sm:$0xff]  }
 0x1af   : > { %4144 = vmatprep.subr.bf16.mxu1 %v7294_v31  ;;  %v7350_v31 = vld [vmem:[%s7746_s23 + $0xf70] ss:$8 sps:$4 sm:$0xff]   ;;  %v7404_v19 = vld [vmem:[%s7746_s23 + $0xfe0] ss:$8 sps:$4 sm:$0xff]  }
 0x1b1   : > { %4104 = vmatpush1.bf16.msra.mxu0 %v7289_v32  ;;  %v7355_v32 = vld [vmem:[%s7746_s23 + $0xe64] ss:$8 sps:$4 sm:$0xff]  }
 0x1b2   : > { %4145 = vmatpush1.bf16.msra.mxu1 %v7292_v33  ;;  %4105 = vmatprep.subr.bf16.mxu0 %v7297_v34  ;;  %v7358_v33 = vld [vmem:[%s7746_s23 + $0xf64] ss:$8 sps:$4 sm:$0xff]   ;;  %v3424_v34 = vor.u32 %v3423_v23, %v3420_v22 }
 0x1b3   : > { %4146 = vmatprep.subr.bf16.mxu1 %v7300_v36  ;;  %v3440_v36 = vor.u32 %v3439_v27, %v3436_v26  ;;  %v7415_v22 = vld [vmem:[%s7746_s23 + $0xec4] ss:$8 sps:$4 sm:$0xff]   ;;  %v7413_v26 = vld [vmem:[%s7746_s23 + $0xec0] ss:$8 sps:$4 sm:$0xff]  }
 0x1b4   : > { %v7418_v23 = vld [vmem:[%s7746_s23 + $0xfc4] ss:$8 sps:$4 sm:$0xff]   ;;  %v7416_v27 = vld [vmem:[%s7746_s23 + $0xfc0] ss:$8 sps:$4 sm:$0xff]  }
 0x1b5   : > { %4106 = vmatpush2.bf16.msra.mxu0 %v7295_v37 }
 0x1b6   : > { %4147 = vmatpush2.bf16.msra.mxu1 %v7298_v38  ;;  %4107 = vmatprep.subr.bf16.mxu0 %v7303_v56 }
 0x1b7   : > { %4148 = vmatprep.subr.bf16.mxu1 %v7306_v39  ;;  %v7353_v39 = vld [vmem:[%s7746_s23 + $0xe60] ss:$8 sps:$4 sm:$0xff]  }
 0x1b9   : > { %4108 = vmatpush2.bf16.msra.mxu0 %v7301_v41  ;;  %v7356_v41 = vld [vmem:[%s7746_s23 + $0xf60] ss:$8 sps:$4 sm:$0xff]  }
 0x1ba   : > { %4149 = vmatpush2.bf16.msra.mxu1 %v7304_v42  ;;  %4109 = vmatprep.subr.bf16.mxu0 %v7309_v13 }
 0x1bb   : > { %4150 = vmatprep.subr.bf16.mxu1 %v7312_v43  ;;  %v7361_v43 = vld [vmem:[%s7746_s23 + $0xe54] ss:$8 sps:$4 sm:$0xff]  }
 0x1bd   : > { %4110 = vmatpush2.bf16.msra.mxu0 %v7307_v44  ;;  %v7364_v44 = vld [vmem:[%s7746_s23 + $0xf54] ss:$8 sps:$4 sm:$0xff]  }
 0x1be   : > { %4151 = vmatpush2.bf16.msra.mxu1 %v7310_v45  ;;  %4111 = vmatprep.subr.bf16.mxu0 %v7315_v46 }
 0x1bf   : > { %4152 = vmatprep.subr.bf16.mxu1 %v7318_v47 }
 0x1c1   : > { %4112 = vmatpush2.bf16.msra.mxu0 %v7313_v48 }
 0x1c2   : > { %4153 = vmatpush2.bf16.msra.mxu1 %v7316_v9  ;;  %4113 = vmatprep.subr.bf16.mxu0 %v7321_v49  ;;  %v7359_v9 = vld [vmem:[%s7746_s23 + $0xe50] ss:$8 sps:$4 sm:$0xff]  }
 0x1c3   : > { %4154 = vmatprep.subr.bf16.mxu1 %v7324_v50  ;;  %v7362_v49 = vld [vmem:[%s7746_s23 + $0xf50] ss:$8 sps:$4 sm:$0xff]  }
 0x1c5   : > { %4114 = vmatpush2.bf16.msra.mxu0 %v7319_v10 }
 0x1c6   : > { %4155 = vmatpush2.bf16.msra.mxu1 %v7322_v51  ;;  %4115 = vmatprep.subr.bf16.mxu0 %v7327_v58  ;;  %v7370_v51 = vld [vmem:[%s7746_s23 + $0xf44] ss:$8 sps:$4 sm:$0xff]   ;;  %v7365_v58 = vld [vmem:[%s7746_s23 + $0xe40] ss:$8 sps:$4 sm:$0xff]  }
 0x1c7   : > { %4156 = vmatprep.subr.bf16.mxu1 %v7330_v59  ;;  %v7368_v59 = vld [vmem:[%s7746_s23 + $0xf40] ss:$8 sps:$4 sm:$0xff]  }
 0x1c9   : > { %4116 = vmatpush2.bf16.msra.mxu0 %v7325_v62  ;;  %v7371_v62 = vld [vmem:[%s7746_s23 + $0xe30] ss:$8 sps:$4 sm:$0xff]  }
 0x1ca   : > { %4157 = vmatpush2.bf16.msra.mxu1 %v7328_v63  ;;  %4117 = vmatprep.subr.bf16.mxu0 %v7333_v0  ;;  %v7374_v63 = vld [vmem:[%s7746_s23 + $0xf30] ss:$8 sps:$4 sm:$0xff]   ;;  %v7379_v0 = vld [vmem:[%s7746_s23 + $0xe24] ss:$8 sps:$4 sm:$0xff]  }
 0x1cb   : > { %4158 = vmatprep.subr.bf16.mxu1 %v7336_v1  ;;  %v7382_v1 = vld [vmem:[%s7746_s23 + $0xf24] ss:$8 sps:$4 sm:$0xff]  }
 0x1cd   : > { %4118 = vmatpush2.bf16.msra.mxu0 %v7331_v7  ;;  %v7391_v7 = vld [vmem:[%s7746_s23 + $0xe04] ss:$8 sps:$4 sm:$0xff]  }
 0x1ce   : > { %4159 = vmatpush2.bf16.msra.mxu1 %v7334_v57  ;;  %4119 = vmatprep.subr.bf16.mxu0 %v7339_v35  ;;  %v7394_v57 = vld [vmem:[%s7746_s23 + $0xf04] ss:$8 sps:$4 sm:$0xff]   ;;  %v7389_v35 = vld [vmem:[%s7746_s23 + $0xe00] ss:$8 sps:$4 sm:$0xff]  }
 0x1cf   : > { %4160 = vmatprep.subr.bf16.mxu1 %v7342_v8  ;;  %v7392_v8 = vld [vmem:[%s7746_s23 + $0xf00] ss:$8 sps:$4 sm:$0xff]  }
 0x1d1   : > { %4120 = vmatpush2.bf16.msra.mxu0 %v7337_v54  ;;  %v7409_v54 = vld [vmem:[%s7746_s23 + $0xed4] ss:$8 sps:$4 sm:$0xff]  }
 0x1d2   : > { %4161 = vmatpush2.bf16.msra.mxu1 %v7340_v55  ;;  %4171 = vmatprep.subr.bf16.mxu0 %v7349_v20  ;;  %v7412_v55 = vld [vmem:[%s7746_s23 + $0xfd4] ss:$8 sps:$4 sm:$0xff]   ;;  %v7407_v20 = vld [vmem:[%s7746_s23 + $0xed0] ss:$8 sps:$4 sm:$0xff]  }
 0x1d3   : > { %4212 = vmatprep.subr.bf16.mxu1 %v7352_v21  ;;  %v7410_v21 = vld [vmem:[%s7746_s23 + $0xfd0] ss:$8 sps:$4 sm:$0xff]  }
 0x1d4   : > { %v2201_v37 = vpop.f32.mrf.mxu0  ;;  %4122 = vmatmul.mubr.bf16.vlgmr.msra.gmra.mxu0 %v3384_v28  ;;  %v7421_v28 = vld [vmem:[%s7746_s23 + $0xeb4] ss:$8 sps:$4 sm:$0xff]  }
 0x1d5   : > { %v2242_v38 = vpop.f32.mrf.mxu1  ;;  %4163 = vmatmul.mubr.bf16.vlgmr.msra.gmra.mxu1 %v3400_v29  ;;  %v2202_v56 = vadd.f32 %v2201_v37, %v8245_v5  ;;  %4172 = vmatpush1.bf16.msra.mxu0 %v7347_v30  ;;  %v7424_v29 = vld [vmem:[%s7746_s23 + $0xfb4] ss:$8 sps:$4 sm:$0xff]   ;;  %v7419_v30 = vld [vmem:[%s7746_s23 + $0xeb0] ss:$8 sps:$4 sm:$0xff]   ;;  %v7425_v37 = vld [vmem:[%s7746_s23 + $0xea0] ss:$8 sps:$4 sm:$0xff]  }
 0x1d6   : > { %4213 = vmatpush1.bf16.msra.mxu1 %v7350_v31  ;;  %v2203_v42 = vpop.f32.mrf.mxu0  ;;  %4173 = vmatprep.subr.bf16.mxu0 %v7355_v32  ;;  %v7422_v31 = vld [vmem:[%s7746_s23 + $0xfb0] ss:$8 sps:$4 sm:$0xff]   ;;  %v7427_v32 = vld [vmem:[%s7746_s23 + $0xea4] ss:$8 sps:$4 sm:$0xff]  }
 0x1d7   : > { %v2244_v13 = vpop.f32.mrf.mxu1  ;;  %4214 = vmatprep.subr.bf16.mxu1 %v7358_v33  ;;  %v8329_v45 = vadd.f32 %v2242_v38, %v2202_v56  ;;  %v2204_v46 = vadd.f32 %v2203_v42, %v8250_v11  ;;  %4203 = vmatprep.mubr.bf16.mxu0 %v3424_v34  ;;  %v7367_v11 = vld [vmem:[%s7746_s23 + $0xe44] ss:$8 sps:$4 sm:$0xff]   ;;  %v6205_v34 = vcombine.low %v8299_v60, %v8299_v60  ;;  %v7428_v38 = vld [vmem:[%s7746_s23 + $0xfa0] ss:$8 sps:$4 sm:$0xff]   ;;  %v7433_v56 = vld [vmem:[%s7746_s23 + $0xe94] ss:$8 sps:$4 sm:$0xff]  }
 0x1d8   : > { %4244 = vmatprep.mubr.bf16.mxu1 %v3440_v36  ;;  %v2205_v5 = vpop.f32.mrf.mxu0  ;;  %v7430_v33 = vld [vmem:[%s7746_s23 + $0xfa4] ss:$8 sps:$4 sm:$0xff]   ;;  %v6207_v36 = vcombine.low %v8302_v61, %v8302_v61  ;;  %v7431_v61 = vld [vmem:[%s7746_s23 + $0xe90] ss:$8 sps:$4 sm:$0xff]  }
 0x1d9   : > { %v2246_v47 = vpop.f32.mrf.mxu1  ;;  %v8332_v48 = vadd.f32 %v2244_v13, %v2204_v46  ;;  %4174 = vmatpush1.bf16.msra.mxu0 %v7353_v39  ;;  %v7436_v39 = vld [vmem:[%s7746_s23 + $0xf94] ss:$8 sps:$4 sm:$0xff]   ;;  %v3413_v42 = vshll.u32 %v6205_v34, 16  ;;  %v7442_v46 = vld [vmem:[%s7746_s23 + $0xf84] ss:$8 sps:$4 sm:$0xff]  }
 0x1da   : > { %4215 = vmatpush1.bf16.msra.mxu1 %v7356_v41  ;;  %v2206_v50 = vpop.f32.mrf.mxu0  ;;  %4175 = vmatprep.subr.bf16.mxu0 %v7361_v43  ;;  %v3410_v41 = vshrl.u32 %v6205_v34, 16  ;;  %v3426_v60 = vshrl.u32 %v6207_v36, 16  ;;  %v3429_v13 = vshll.u32 %v6207_v36, 16  ;;  %v7434_v43 = vld [vmem:[%s7746_s23 + $0xf90] ss:$8 sps:$4 sm:$0xff]  }
 0x1db   : > { %v2247_v10 = vpop.f32.mrf.mxu1  ;;  %4216 = vmatprep.subr.bf16.mxu1 %v7364_v44  ;;  %v7439_v44 = vld [vmem:[%s7746_s23 + $0xe84] ss:$8 sps:$4 sm:$0xff]   ;;  %v3415_v47 = vrot.slane %v3413_v42, 2  ;;  %v7485_v34 = vld [vmem:[%s7746_s23 + $0x1014] ss:$8 sps:$4 sm:$0xff]  }
 0x1dc   : > { %v3412_v5 = vrot.slane %v3410_v41, 1  ;;  %v8391_v50 = vld [vmem:[%s7800_s27] sm:$0xcc]  ;;  %v8394_v10 = vld [vmem:[%s7800_s27 + $0x8] sm:$0xcc] }
 0x1dd   : > { %4176 = vmatpush1.bf16.msra.mxu0 %v7359_v9  ;;  %v3428_v9 = vrot.slane %v3426_v60, 1  ;;  %v7488_v36 = vld [vmem:[%s7746_s23 + $0x1114] ss:$8 sps:$4 sm:$0xff]   ;;  %v7489_v41 = vld [vmem:[%s7746_s23 + $0x1000] ss:$8 sps:$4 sm:$0xff]  }
 0x1de   : > { %4217 = vmatpush1.bf16.msra.mxu1 %v7362_v49  ;;  %4177 = vmatprep.subr.bf16.mxu0 %v7367_v11  ;;  %v3431_v49 = vrot.slane %v3429_v13, 2  ;;  %v7437_v11 = vld [vmem:[%s7746_s23 + $0xe80] ss:$8 sps:$4 sm:$0xff]   ;;  %v7497_v60 = vld [vmem:[%s7746_s23 + $0x10f4] ss:$8 sps:$4 sm:$0xff]  }
 0x1df   : > { %4218 = vmatprep.subr.bf16.mxu1 %v7370_v51  ;;  %v7440_v51 = vld [vmem:[%s7746_s23 + $0xf80] ss:$8 sps:$4 sm:$0xff]   ;;  %v7500_v13 = vld [vmem:[%s7746_s23 + $0x11f4] ss:$8 sps:$4 sm:$0xff]  }
 0x1e0   : > { %v7492_v42 = vld [vmem:[%s7746_s23 + $0x1100] ss:$8 sps:$4 sm:$0xff]  }
 0x1e1   : > { %4178 = vmatpush1.bf16.msra.mxu0 %v7365_v58  ;;  %v7449_v58 = vld [vmem:[%s7746_s23 + $0x1074] ss:$8 sps:$4 sm:$0xff]  }
 0x1e2   : > { %4219 = vmatpush1.bf16.msra.mxu1 %v7368_v59  ;;  %4179 = vmatprep.subr.bf16.mxu0 %v7373_v52  ;;  %v7452_v59 = vld [vmem:[%s7746_s23 + $0x1174] ss:$8 sps:$4 sm:$0xff]   ;;  %v6466_v52 = vcombine.high %v8391_v50, %v8391_v50 }
 0x1e3   : > { %4220 = vmatprep.subr.bf16.mxu1 %v7376_v53  ;;  %v6468_v53 = vcombine.high %v8394_v10, %v8394_v10 }
 0x1e5   : > { %4180 = vmatpush1.bf16.msra.mxu0 %v7371_v62  ;;  %v3416_v62 = vor.u32 %v3415_v47, %v3412_v5  ;;  %v7501_v5 = vld [vmem:[%s7746_s23 + $0x10e0] ss:$8 sps:$4 sm:$0xff]  }
 0x1e6   : > { %4221 = vmatpush1.bf16.msra.mxu1 %v7374_v63  ;;  %4181 = vmatprep.subr.bf16.mxu0 %v7379_v0  ;;  %v3432_v63 = vor.u32 %v3431_v49, %v3428_v9  ;;  %v7447_v0 = vld [vmem:[%s7746_s23 + $0x1070] ss:$8 sps:$4 sm:$0xff]   ;;  %v7504_v47 = vld [vmem:[%s7746_s23 + $0x11e0] ss:$8 sps:$4 sm:$0xff]   ;;  %v7509_v9 = vld [vmem:[%s7746_s23 + $0x10d4] ss:$8 sps:$4 sm:$0xff]  }
 0x1e7   : > { %4222 = vmatprep.subr.bf16.mxu1 %v7382_v1  ;;  %v7450_v1 = vld [vmem:[%s7746_s23 + $0x1170] ss:$8 sps:$4 sm:$0xff]   ;;  %v7512_v49 = vld [vmem:[%s7746_s23 + $0x11d4] ss:$8 sps:$4 sm:$0xff]  }
 0x1e9   : > { %4182 = vmatpush1.bf16.msra.mxu0 %v7377_v24  ;;  %v7455_v24 = vld [vmem:[%s7746_s23 + $0x1064] ss:$8 sps:$4 sm:$0xff]  }
 0x1ea   : > { %4223 = vmatpush1.bf16.msra.mxu1 %v7380_v25  ;;  %4183 = vmatprep.subr.bf16.mxu0 %v7385_v2  ;;  %v7458_v25 = vld [vmem:[%s7746_s23 + $0x1164] ss:$8 sps:$4 sm:$0xff]   ;;  %v4409_v2 = vrot.slane %v6466_v52, 2  ;;  %v7513_v52 = vld [vmem:[%s7746_s23 + $0x10c0] ss:$8 sps:$4 sm:$0xff]  }
 0x1eb   : > { %4224 = vmatprep.subr.bf16.mxu1 %v7388_v3  ;;  %v4411_v3 = vrot.slane %v6468_v53, 2  ;;  %v7516_v53 = vld [vmem:[%s7746_s23 + $0x11c0] ss:$8 sps:$4 sm:$0xff]  }
 0x1ed   : > { %4184 = vmatpush1.bf16.msra.mxu0 %v7383_v4 }
 0x1ee   : > { %4225 = vmatpush1.bf16.msra.mxu1 %v7386_v6  ;;  %4185 = vmatprep.subr.bf16.mxu0 %v7391_v7 }
 0x1ef   : > { %4226 = vmatprep.subr.bf16.mxu1 %v7394_v57  ;;  %v7453_v57 = vld [vmem:[%s7746_s23 + $0x1060] ss:$8 sps:$4 sm:$0xff]  }
 0x1f1   : > { %4186 = vmatpush1.bf16.msra.mxu0 %v7389_v35  ;;  %v7456_v35 = vld [vmem:[%s7746_s23 + $0x1160] ss:$8 sps:$4 sm:$0xff]  }
 0x1f2   : > { %4227 = vmatpush1.bf16.msra.mxu1 %v7392_v8  ;;  %4187 = vmatprep.subr.bf16.mxu0 %v7397_v12 }
 0x1f3   : > { %4228 = vmatprep.subr.bf16.mxu1 %v7400_v14  ;;  %v7461_v14 = vld [vmem:[%s7746_s23 + $0x1054] ss:$8 sps:$4 sm:$0xff]  }
 0x1f5   : > { %4188 = vmatpush2.bf16.msra.mxu0 %v7395_v40  ;;  %v7464_v40 = vld [vmem:[%s7746_s23 + $0x1154] ss:$8 sps:$4 sm:$0xff]  }
 0x1f6   : > { %4229 = vmatpush2.bf16.msra.mxu1 %v7398_v15  ;;  %4189 = vmatprep.subr.bf16.mxu0 %v7403_v16 }
 0x1f7   : > { %4230 = vmatprep.subr.bf16.mxu1 %v7406_v17 }
 0x1f9   : > { %4190 = vmatpush2.bf16.msra.mxu0 %v7401_v18  ;;  %v7459_v18 = vld [vmem:[%s7746_s23 + $0x1050] ss:$8 sps:$4 sm:$0xff]  }
 0x1fa   : > { %4231 = vmatpush2.bf16.msra.mxu1 %v7404_v19  ;;  %4191 = vmatprep.subr.bf16.mxu0 %v7409_v54  ;;  %v7462_v19 = vld [vmem:[%s7746_s23 + $0x1150] ss:$8 sps:$4 sm:$0xff]  }
 0x1fb   : > { %4232 = vmatprep.subr.bf16.mxu1 %v7412_v55 }
 0x1fd   : > { %4192 = vmatpush2.bf16.msra.mxu0 %v7407_v20  ;;  %v7467_v20 = vld [vmem:[%s7746_s23 + $0x1044] ss:$8 sps:$4 sm:$0xff]  }
 0x1fe   : > { %4233 = vmatpush2.bf16.msra.mxu1 %v7410_v21  ;;  %4193 = vmatprep.subr.bf16.mxu0 %v7415_v22  ;;  %v7470_v21 = vld [vmem:[%s7746_s23 + $0x1144] ss:$8 sps:$4 sm:$0xff]   ;;  %v7465_v22 = vld [vmem:[%s7746_s23 + $0x1040] ss:$8 sps:$4 sm:$0xff]  }
 0x1ff   : > { %4234 = vmatprep.subr.bf16.mxu1 %v7418_v23  ;;  %v7468_v23 = vld [vmem:[%s7746_s23 + $0x1140] ss:$8 sps:$4 sm:$0xff]  }
 0x201   : > { %4194 = vmatpush2.bf16.msra.mxu0 %v7413_v26  ;;  %v7473_v26 = vld [vmem:[%s7746_s23 + $0x1034] ss:$8 sps:$4 sm:$0xff]  }
 0x202   : > { %4235 = vmatpush2.bf16.msra.mxu1 %v7416_v27  ;;  %4195 = vmatprep.subr.bf16.mxu0 %v7421_v28  ;;  %v7476_v27 = vld [vmem:[%s7746_s23 + $0x1134] ss:$8 sps:$4 sm:$0xff]   ;;  %v7471_v28 = vld [vmem:[%s7746_s23 + $0x1030] ss:$8 sps:$4 sm:$0xff]  }
 0x203   : > { %4236 = vmatprep.subr.bf16.mxu1 %v7424_v29  ;;  %v7474_v29 = vld [vmem:[%s7746_s23 + $0x1130] ss:$8 sps:$4 sm:$0xff]  }
 0x205   : > { %4196 = vmatpush2.bf16.msra.mxu0 %v7419_v30  ;;  %v7479_v30 = vld [vmem:[%s7746_s23 + $0x1024] ss:$8 sps:$4 sm:$0xff]  }
 0x206   : > { %4237 = vmatpush2.bf16.msra.mxu1 %v7422_v31  ;;  %4197 = vmatprep.subr.bf16.mxu0 %v7427_v32  ;;  %v7482_v31 = vld [vmem:[%s7746_s23 + $0x1124] ss:$8 sps:$4 sm:$0xff]   ;;  %v7477_v32 = vld [vmem:[%s7746_s23 + $0x1020] ss:$8 sps:$4 sm:$0xff]  }
 0x207   : > { %4238 = vmatprep.subr.bf16.mxu1 %v7430_v33  ;;  %v7480_v33 = vld [vmem:[%s7746_s23 + $0x1120] ss:$8 sps:$4 sm:$0xff]  }
 0x209   : > { %4198 = vmatpush2.bf16.msra.mxu0 %v7425_v37  ;;  %v7483_v37 = vld [vmem:[%s7746_s23 + $0x1010] ss:$8 sps:$4 sm:$0xff]  }
 0x20a   : > { %4239 = vmatpush2.bf16.msra.mxu1 %v7428_v38  ;;  %4199 = vmatprep.subr.bf16.mxu0 %v7433_v56  ;;  %v7486_v38 = vld [vmem:[%s7746_s23 + $0x1110] ss:$8 sps:$4 sm:$0xff]   ;;  %v7491_v56 = vld [vmem:[%s7746_s23 + $0x1004] ss:$8 sps:$4 sm:$0xff]  }
 0x20b   : > { %4240 = vmatprep.subr.bf16.mxu1 %v7436_v39  ;;  %v7494_v39 = vld [vmem:[%s7746_s23 + $0x1104] ss:$8 sps:$4 sm:$0xff]  }
 0x20d   : > { %4200 = vmatpush2.bf16.msra.mxu0 %v7431_v61  ;;  %v7495_v61 = vld [vmem:[%s7746_s23 + $0x10f0] ss:$8 sps:$4 sm:$0xff]  }
 0x20e   : > { %4241 = vmatpush2.bf16.msra.mxu1 %v7434_v43  ;;  %4201 = vmatprep.subr.bf16.mxu0 %v7439_v44  ;;  %v7498_v43 = vld [vmem:[%s7746_s23 + $0x11f0] ss:$8 sps:$4 sm:$0xff]   ;;  %v7503_v44 = vld [vmem:[%s7746_s23 + $0x10e4] ss:$8 sps:$4 sm:$0xff]  }
 0x20f   : > { %4242 = vmatprep.subr.bf16.mxu1 %v7442_v46  ;;  %v7506_v46 = vld [vmem:[%s7746_s23 + $0x11e4] ss:$8 sps:$4 sm:$0xff]  }
 0x211   : > { %4202 = vmatpush2.bf16.msra.mxu0 %v7437_v11  ;;  %v7507_v11 = vld [vmem:[%s7746_s23 + $0x10d0] ss:$8 sps:$4 sm:$0xff]  }
 0x212   : > { %4243 = vmatpush2.bf16.msra.mxu1 %v7440_v51  ;;  %5064 = vmatprep.subr.bf16.mxu0 %v7449_v58  ;;  %v7510_v51 = vld [vmem:[%s7746_s23 + $0x11d0] ss:$8 sps:$4 sm:$0xff]   ;;  %v7515_v58 = vld [vmem:[%s7746_s23 + $0x10c4] ss:$8 sps:$4 sm:$0xff]  }
 0x213   : > { %5105 = vmatprep.subr.bf16.mxu1 %v7452_v59  ;;  %v7518_v59 = vld [vmem:[%s7746_s23 + $0x11c4] ss:$8 sps:$4 sm:$0xff]  }
 0x214   : > { %v3092_v4 = vpop.f32.mrf.mxu0  ;;  %4204 = vmatmul.mubr.bf16.vlgmr.msra.gmra.mxu0 %v3416_v62  ;;  %v7521_v62 = vld [vmem:[%s7746_s23 + $0x10b4] ss:$8 sps:$4 sm:$0xff]  }
 0x215   : > { %v3133_v6 = vpop.f32.mrf.mxu1  ;;  %4245 = vmatmul.mubr.bf16.vlgmr.msra.gmra.mxu1 %v3432_v63  ;;  %5065 = vmatpush1.bf16.msra.mxu0 %v7447_v0  ;;  %v7524_v63 = vld [vmem:[%s7746_s23 + $0x11b4] ss:$8 sps:$4 sm:$0xff]   ;;  %v7519_v0 = vld [vmem:[%s7746_s23 + $0x10b0] ss:$8 sps:$4 sm:$0xff]  }
 0x216   : > { %v8408_v7 = vadd.f32 %v3133_v6, %v3092_v4  ;;  %5106 = vmatpush1.bf16.msra.mxu1 %v7450_v1  ;;  %v3094_v8 = vpop.f32.mrf.mxu0  ;;  %5066 = vmatprep.subr.bf16.mxu0 %v7455_v24  ;;  %v7522_v1 = vld [vmem:[%s7746_s23 + $0x11b0] ss:$8 sps:$4 sm:$0xff]   ;;  %v7527_v24 = vld [vmem:[%s7746_s23 + $0x10a4] ss:$8 sps:$4 sm:$0xff]   ;;  %v7533_v4 = vld [vmem:[%s7746_s23 + $0x1094] ss:$8 sps:$4 sm:$0xff]  }
 0x217   : > { %v3135_v12 = vpop.f32.mrf.mxu1  ;;  %5107 = vmatprep.subr.bf16.mxu1 %v7458_v25  ;;  %5096 = vmatprep.mubr.bf16.mxu0 %v4409_v2  ;;  %v7530_v25 = vld [vmem:[%s7746_s23 + $0x11a4] ss:$8 sps:$4 sm:$0xff]   ;;  %v7525_v2 = vld [vmem:[%s7746_s23 + $0x10a0] ss:$8 sps:$4 sm:$0xff]   ;;  %v7536_v6 = vld [vmem:[%s7746_s23 + $0x1194] ss:$8 sps:$4 sm:$0xff]  }
 0x218   : > { %v8414_v15 = vadd.f32 %v3135_v12, %v3094_v8  ;;  %5137 = vmatprep.mubr.bf16.mxu1 %v4411_v3  ;;  %v3096_v16 = vpop.f32.mrf.mxu0  ;;  %v7528_v3 = vld [vmem:[%s7746_s23 + $0x11a0] ss:$8 sps:$4 sm:$0xff]   ;;  %v7539_v8 = vld [vmem:[%s7746_s23 + $0x1084] ss:$8 sps:$4 sm:$0xff]  }
 0x219   : > { %v3137_v17 = vpop.f32.mrf.mxu1  ;;  %5067 = vmatpush1.bf16.msra.mxu0 %v7453_v57  ;;  %v7531_v57 = vld [vmem:[%s7746_s23 + $0x1090] ss:$8 sps:$4 sm:$0xff]   ;;  %v7542_v12 = vld [vmem:[%s7746_s23 + $0x1184] ss:$8 sps:$4 sm:$0xff]  }
 0x21a   : > { %5108 = vmatpush1.bf16.msra.mxu1 %v7456_v35  ;;  %v3097_v54 = vpop.f32.mrf.mxu0  ;;  %5068 = vmatprep.subr.bf16.mxu0 %v7461_v14  ;;  %v7534_v35 = vld [vmem:[%s7746_s23 + $0x1190] ss:$8 sps:$4 sm:$0xff]   ;;  %v6465_v14 = vcombine.low %v8391_v50, %v8391_v50 }
 0x21b   : > { %v3138_v55 = vpop.f32.mrf.mxu1  ;;  %5109 = vmatprep.subr.bf16.mxu1 %v7464_v40  ;;  %v6467_v40 = vcombine.low %v8394_v10, %v8394_v10  ;;  %v8473_v16 = vld [vmem:[%s7800_s27 + $0x10] sm:$0xcc]  ;;  %v8476_v17 = vld [vmem:[%s7800_s27 + $0x18] sm:$0xcc] }
 0x21c   : > { %v7549_v54 = vld [vmem:[%s7746_s23 + $0x1274] ss:$8 sps:$4 sm:$0xff]   ;;  %v6470_v50 = vcombine.high %v8473_v16, %v8473_v16  ;;  %v6472_v10 = vcombine.high %v8476_v17, %v8476_v17 }
 0x21d   : > { %5069 = vmatpush1.bf16.msra.mxu0 %v7459_v18  ;;  %v7537_v18 = vld [vmem:[%s7746_s23 + $0x1080] ss:$8 sps:$4 sm:$0xff]   ;;  %v7552_v55 = vld [vmem:[%s7746_s23 + $0x1374] ss:$8 sps:$4 sm:$0xff]  }
 0x21e   : > { %5110 = vmatpush1.bf16.msra.mxu1 %v7462_v19  ;;  %5070 = vmatprep.subr.bf16.mxu0 %v7467_v20  ;;  %v7540_v19 = vld [vmem:[%s7746_s23 + $0x1180] ss:$8 sps:$4 sm:$0xff]   ;;  %v4408_v20 = vrot.slane %v6465_v14, 2 }
 0x21f   : > { %5111 = vmatprep.subr.bf16.mxu1 %v7470_v21  ;;  %v4410_v21 = vrot.slane %v6467_v40, 2  ;;  %v7601_v14 = vld [vmem:[%s7746_s23 + $0x12e0] ss:$8 sps:$4 sm:$0xff]  }
 0x220   : > { %v7604_v40 = vld [vmem:[%s7746_s23 + $0x13e0] ss:$8 sps:$4 sm:$0xff]  }
 0x221   : > { %5071 = vmatpush1.bf16.msra.mxu0 %v7465_v22  ;;  %v7547_v22 = vld [vmem:[%s7746_s23 + $0x1270] ss:$8 sps:$4 sm:$0xff]  }
 0x222   : > { %5112 = vmatpush1.bf16.msra.mxu1 %v7468_v23  ;;  %5072 = vmatprep.subr.bf16.mxu0 %v7473_v26  ;;  %v7550_v23 = vld [vmem:[%s7746_s23 + $0x1370] ss:$8 sps:$4 sm:$0xff]   ;;  %v7555_v26 = vld [vmem:[%s7746_s23 + $0x1264] ss:$8 sps:$4 sm:$0xff]  }
 0x223   : > { %5113 = vmatprep.subr.bf16.mxu1 %v7476_v27  ;;  %v7558_v27 = vld [vmem:[%s7746_s23 + $0x1364] ss:$8 sps:$4 sm:$0xff]  }
 0x225   : > { %5073 = vmatpush1.bf16.msra.mxu0 %v7471_v28  ;;  %v4413_v28 = vrot.slane %v6470_v50, 2  ;;  %v7615_v50 = vld [vmem:[%s7746_s23 + $0x12c4] ss:$8 sps:$4 sm:$0xff]  }
 0x226   : > { %5114 = vmatpush1.bf16.msra.mxu1 %v7474_v29  ;;  %5074 = vmatprep.subr.bf16.mxu0 %v7479_v30  ;;  %v4415_v29 = vrot.slane %v6472_v10, 2  ;;  %v7618_v10 = vld [vmem:[%s7746_s23 + $0x13c4] ss:$8 sps:$4 sm:$0xff]  }
 0x227   : > { %5115 = vmatprep.subr.bf16.mxu1 %v7482_v31 }
 0x229   : > { %5075 = vmatpush1.bf16.msra.mxu0 %v7477_v32 }
 0x22a   : > { %5116 = vmatpush1.bf16.msra.mxu1 %v7480_v33  ;;  %5076 = vmatprep.subr.bf16.mxu0 %v7485_v34  ;;  %v7553_v33 = vld [vmem:[%s7746_s23 + $0x1260] ss:$8 sps:$4 sm:$0xff]  }
 0x22b   : > { %5117 = vmatprep.subr.bf16.mxu1 %v7488_v36  ;;  %v7556_v34 = vld [vmem:[%s7746_s23 + $0x1360] ss:$8 sps:$4 sm:$0xff]  }
 0x22d   : > { %5077 = vmatpush1.bf16.msra.mxu0 %v7483_v37 }
 0x22e   : > { %5118 = vmatpush1.bf16.msra.mxu1 %v7486_v38  ;;  %5078 = vmatprep.subr.bf16.mxu0 %v7491_v56  ;;  %v7561_v38 = vld [vmem:[%s7746_s23 + $0x1254] ss:$8 sps:$4 sm:$0xff]  }
 0x22f   : > { %5119 = vmatprep.subr.bf16.mxu1 %v7494_v39  ;;  %v7564_v56 = vld [vmem:[%s7746_s23 + $0x1354] ss:$8 sps:$4 sm:$0xff]  }
 0x231   : > { %5079 = vmatpush1.bf16.msra.mxu0 %v7489_v41 }
 0x232   : > { %5120 = vmatpush1.bf16.msra.mxu1 %v7492_v42  ;;  %5080 = vmatprep.subr.bf16.mxu0 %v7497_v60 }
 0x233   : > { %5121 = vmatprep.subr.bf16.mxu1 %v7500_v13 }
 0x235   : > { %5081 = vmatpush2.bf16.msra.mxu0 %v7495_v61  ;;  %v7559_v61 = vld [vmem:[%s7746_s23 + $0x1250] ss:$8 sps:$4 sm:$0xff]  }
 0x236   : > { %5122 = vmatpush2.bf16.msra.mxu1 %v7498_v43  ;;  %5082 = vmatprep.subr.bf16.mxu0 %v7503_v44  ;;  %v7562_v43 = vld [vmem:[%s7746_s23 + $0x1350] ss:$8 sps:$4 sm:$0xff]  }
 0x237   : > { %5123 = vmatprep.subr.bf16.mxu1 %v7506_v46 }
 0x239   : > { %5083 = vmatpush2.bf16.msra.mxu0 %v7501_v5  ;;  %v7570_v5 = vld [vmem:[%s7746_s23 + $0x1344] ss:$8 sps:$4 sm:$0xff]  }
 0x23a   : > { %5124 = vmatpush2.bf16.msra.mxu1 %v7504_v47  ;;  %5084 = vmatprep.subr.bf16.mxu0 %v7509_v9  ;;  %v7565_v47 = vld [vmem:[%s7746_s23 + $0x1240] ss:$8 sps:$4 sm:$0xff]  }
 0x23b   : > { %5125 = vmatprep.subr.bf16.mxu1 %v7512_v49  ;;  %v7568_v9 = vld [vmem:[%s7746_s23 + $0x1340] ss:$8 sps:$4 sm:$0xff]   ;;  %v7573_v49 = vld [vmem:[%s7746_s23 + $0x1234] ss:$8 sps:$4 sm:$0xff]  }
 0x23d   : > { %5085 = vmatpush2.bf16.msra.mxu0 %v7507_v11  ;;  %v7576_v11 = vld [vmem:[%s7746_s23 + $0x1334] ss:$8 sps:$4 sm:$0xff]  }
 0x23e   : > { %5126 = vmatpush2.bf16.msra.mxu1 %v7510_v51  ;;  %5086 = vmatprep.subr.bf16.mxu0 %v7515_v58  ;;  %v7571_v51 = vld [vmem:[%s7746_s23 + $0x1230] ss:$8 sps:$4 sm:$0xff]  }
 0x23f   : > { %5127 = vmatprep.subr.bf16.mxu1 %v7518_v59  ;;  %v7574_v58 = vld [vmem:[%s7746_s23 + $0x1330] ss:$8 sps:$4 sm:$0xff]   ;;  %v7582_v59 = vld [vmem:[%s7746_s23 + $0x1324] ss:$8 sps:$4 sm:$0xff]  }
 0x241   : > { %5087 = vmatpush2.bf16.msra.mxu0 %v7513_v52  ;;  %v7577_v52 = vld [vmem:[%s7746_s23 + $0x1220] ss:$8 sps:$4 sm:$0xff]  }
 0x242   : > { %5128 = vmatpush2.bf16.msra.mxu1 %v7516_v53  ;;  %5088 = vmatprep.subr.bf16.mxu0 %v7521_v62  ;;  %v7580_v53 = vld [vmem:[%s7746_s23 + $0x1320] ss:$8 sps:$4 sm:$0xff]   ;;  %v7585_v62 = vld [vmem:[%s7746_s23 + $0x1214] ss:$8 sps:$4 sm:$0xff]  }
 0x243   : > { %5129 = vmatprep.subr.bf16.mxu1 %v7524_v63  ;;  %v7588_v63 = vld [vmem:[%s7746_s23 + $0x1314] ss:$8 sps:$4 sm:$0xff]  }
 0x245   : > { %5089 = vmatpush2.bf16.msra.mxu0 %v7519_v0  ;;  %v7583_v0 = vld [vmem:[%s7746_s23 + $0x1210] ss:$8 sps:$4 sm:$0xff]  }
 0x246   : > { %5130 = vmatpush2.bf16.msra.mxu1 %v7522_v1  ;;  %5090 = vmatprep.subr.bf16.mxu0 %v7527_v24  ;;  %v7586_v1 = vld [vmem:[%s7746_s23 + $0x1310] ss:$8 sps:$4 sm:$0xff]   ;;  %v7591_v24 = vld [vmem:[%s7746_s23 + $0x1204] ss:$8 sps:$4 sm:$0xff]  }
 0x247   : > { %5131 = vmatprep.subr.bf16.mxu1 %v7530_v25  ;;  %v7594_v25 = vld [vmem:[%s7746_s23 + $0x1304] ss:$8 sps:$4 sm:$0xff]  }
 0x249   : > { %5091 = vmatpush2.bf16.msra.mxu0 %v7525_v2  ;;  %v7589_v2 = vld [vmem:[%s7746_s23 + $0x1200] ss:$8 sps:$4 sm:$0xff]  }
 0x24a   : > { %5132 = vmatpush2.bf16.msra.mxu1 %v7528_v3  ;;  %5092 = vmatprep.subr.bf16.mxu0 %v7533_v4  ;;  %v7592_v3 = vld [vmem:[%s7746_s23 + $0x1300] ss:$8 sps:$4 sm:$0xff]   ;;  %v7597_v4 = vld [vmem:[%s7746_s23 + $0x12f4] ss:$8 sps:$4 sm:$0xff]  }
 0x24b   : > { %5133 = vmatprep.subr.bf16.mxu1 %v7536_v6  ;;  %v7600_v6 = vld [vmem:[%s7746_s23 + $0x13f4] ss:$8 sps:$4 sm:$0xff]  }
 0x24d   : > { %5093 = vmatpush2.bf16.msra.mxu0 %v7531_v57  ;;  %v7595_v57 = vld [vmem:[%s7746_s23 + $0x12f0] ss:$8 sps:$4 sm:$0xff]  }
 0x24e   : > { %5134 = vmatpush2.bf16.msra.mxu1 %v7534_v35  ;;  %5094 = vmatprep.subr.bf16.mxu0 %v7539_v8  ;;  %v7598_v35 = vld [vmem:[%s7746_s23 + $0x13f0] ss:$8 sps:$4 sm:$0xff]   ;;  %v7603_v8 = vld [vmem:[%s7746_s23 + $0x12e4] ss:$8 sps:$4 sm:$0xff]  }
 0x24f   : > { %5135 = vmatprep.subr.bf16.mxu1 %v7542_v12  ;;  %v7606_v12 = vld [vmem:[%s7746_s23 + $0x13e4] ss:$8 sps:$4 sm:$0xff]  }
 0x251   : > { %5095 = vmatpush2.bf16.msra.mxu0 %v7537_v18  ;;  %v7609_v18 = vld [vmem:[%s7746_s23 + $0x12d4] ss:$8 sps:$4 sm:$0xff]  }
 0x252   : > { %5136 = vmatpush2.bf16.msra.mxu1 %v7540_v19  ;;  %5146 = vmatprep.subr.bf16.mxu0 %v7549_v54  ;;  %v7612_v19 = vld [vmem:[%s7746_s23 + $0x13d4] ss:$8 sps:$4 sm:$0xff]   ;;  %v7607_v54 = vld [vmem:[%s7746_s23 + $0x12d0] ss:$8 sps:$4 sm:$0xff]  }
 0x253   : > { %5187 = vmatprep.subr.bf16.mxu1 %v7552_v55  ;;  %v7610_v55 = vld [vmem:[%s7746_s23 + $0x13d0] ss:$8 sps:$4 sm:$0xff]  }
 0x254   : > { %v3174_v30 = vpop.f32.mrf.mxu0  ;;  %5097 = vmatmul.mubr.bf16.vlgmr.msra.gmra.mxu0 %v4408_v20  ;;  %v7613_v20 = vld [vmem:[%s7746_s23 + $0x12c0] ss:$8 sps:$4 sm:$0xff]  }
 0x255   : > { %v3215_v31 = vpop.f32.mrf.mxu1  ;;  %5138 = vmatmul.mubr.bf16.vlgmr.msra.gmra.mxu1 %v4410_v21  ;;  %v3175_v32 = vadd.f32 %v3174_v30, %v8408_v7  ;;  %5147 = vmatpush1.bf16.msra.mxu0 %v7547_v22  ;;  %v7616_v21 = vld [vmem:[%s7746_s23 + $0x13c0] ss:$8 sps:$4 sm:$0xff]   ;;  %v7621_v22 = vld [vmem:[%s7746_s23 + $0x12b4] ss:$8 sps:$4 sm:$0xff]  }
 0x256   : > { %5188 = vmatpush1.bf16.msra.mxu1 %v7550_v23  ;;  %v3176_v36 = vpop.f32.mrf.mxu0  ;;  %5148 = vmatprep.subr.bf16.mxu0 %v7555_v26  ;;  %v7624_v23 = vld [vmem:[%s7746_s23 + $0x13b4] ss:$8 sps:$4 sm:$0xff]   ;;  %v7619_v26 = vld [vmem:[%s7746_s23 + $0x12b0] ss:$8 sps:$4 sm:$0xff]   ;;  %v7625_v30 = vld [vmem:[%s7746_s23 + $0x12a0] ss:$8 sps:$4 sm:$0xff]  }
 0x257   : > { %v3217_v37 = vpop.f32.mrf.mxu1  ;;  %5189 = vmatprep.subr.bf16.mxu1 %v7558_v27  ;;  %v3216_v39 = vadd.f32 %v3215_v31, %v3175_v32  ;;  %v3177_v41 = vadd.f32 %v3176_v36, %v8414_v15  ;;  %5178 = vmatprep.mubr.bf16.mxu0 %v4413_v28  ;;  %v7567_v15 = vld [vmem:[%s7746_s23 + $0x1244] ss:$8 sps:$4 sm:$0xff]   ;;  %v7622_v27 = vld [vmem:[%s7746_s23 + $0x13b0] ss:$8 sps:$4 sm:$0xff]   ;;  %v7628_v31 = vld [vmem:[%s7746_s23 + $0x13a0] ss:$8 sps:$4 sm:$0xff]  }
 0x258   : > { %5219 = vmatprep.mubr.bf16.mxu1 %v4415_v29  ;;  %v3178_v7 = vpop.f32.mrf.mxu0  ;;  %v7627_v28 = vld [vmem:[%s7746_s23 + $0x12a4] ss:$8 sps:$4 sm:$0xff]   ;;  %v7633_v32 = vld [vmem:[%s7746_s23 + $0x1294] ss:$8 sps:$4 sm:$0xff]   ;;  %v7634_v36 = vld [vmem:[%s7746_s23 + $0x1390] ss:$8 sps:$4 sm:$0xff]  }
 0x259   : > { %v3219_v42 = vpop.f32.mrf.mxu1  ;;  %v8497_v60 = vadd.f32 %v3216_v39, %v8329_v45  ;;  %v3218_v13 = vadd.f32 %v3217_v37, %v3177_v41  ;;  %5149 = vmatpush1.bf16.msra.mxu0 %v7553_v33  ;;  %v7630_v29 = vld [vmem:[%s7746_s23 + $0x13a4] ss:$8 sps:$4 sm:$0xff]   ;;  %v7636_v33 = vld [vmem:[%s7746_s23 + $0x1394] ss:$8 sps:$4 sm:$0xff]   ;;  %v6471_v39 = vcombine.low %v8476_v17, %v8476_v17  ;;  %v7637_v41 = vld [vmem:[%s7746_s23 + $0x1280] ss:$8 sps:$4 sm:$0xff]  }
 0x25a   : > { %5190 = vmatpush1.bf16.msra.mxu1 %v7556_v34  ;;  %v3179_v44 = vpop.f32.mrf.mxu0  ;;  %5150 = vmatprep.subr.bf16.mxu0 %v7561_v38  ;;  %v7631_v34 = vld [vmem:[%s7746_s23 + $0x1290] ss:$8 sps:$4 sm:$0xff]   ;;  %v7639_v37 = vld [vmem:[%s7746_s23 + $0x1284] ss:$8 sps:$4 sm:$0xff]   ;;  %v7640_v7 = vld [vmem:[%s7746_s23 + $0x1380] ss:$8 sps:$4 sm:$0xff]  }
 0x25b   : > { %v3220_v46 = vpop.f32.mrf.mxu1  ;;  %5191 = vmatprep.subr.bf16.mxu1 %v7564_v56  ;;  %v8504_v45 = vadd.f32 %v3218_v13, %v8332_v48  ;;  %v7579_v48 = vld [vmem:[%s7746_s23 + $0x1224] ss:$8 sps:$4 sm:$0xff]   ;;  %v6469_v56 = vcombine.low %v8473_v16, %v8473_v16  ;;  %v4414_v13 = vrot.slane %v6471_v39, 2 }
 0x25c   : > { %v7642_v38 = vld [vmem:[%s7746_s23 + $0x1384] ss:$8 sps:$4 sm:$0xff]  }
 0x25d   : > { %5151 = vmatpush1.bf16.msra.mxu0 %v7559_v61  ;;  %v4412_v42 = vrot.slane %v6469_v56, 2 }
 0x25e   : > { %5192 = vmatpush1.bf16.msra.mxu1 %v7562_v43  ;;  %5152 = vmatprep.subr.bf16.mxu0 %v7567_v15 }
 0x25f   : > { %5193 = vmatprep.subr.bf16.mxu1 %v7570_v5 }
 0x261   : > { %5153 = vmatpush1.bf16.msra.mxu0 %v7565_v47 }
 0x262   : > { %5194 = vmatpush1.bf16.msra.mxu1 %v7568_v9  ;;  %5154 = vmatprep.subr.bf16.mxu0 %v7573_v49 }
 0x263   : > { %5195 = vmatprep.subr.bf16.mxu1 %v7576_v11 }
 0x265   : > { %5155 = vmatpush1.bf16.msra.mxu0 %v7571_v51 }
 0x266   : > { %5196 = vmatpush1.bf16.msra.mxu1 %v7574_v58  ;;  %5156 = vmatprep.subr.bf16.mxu0 %v7579_v48 }
 0x267   : > { %5197 = vmatprep.subr.bf16.mxu1 %v7582_v59 }
 0x269   : > { %5157 = vmatpush1.bf16.msra.mxu0 %v7577_v52 }
 0x26a   : > { %5198 = vmatpush1.bf16.msra.mxu1 %v7580_v53  ;;  %5158 = vmatprep.subr.bf16.mxu0 %v7585_v62 }
 0x26b   : > { %5199 = vmatprep.subr.bf16.mxu1 %v7588_v63 }
 0x26d   : > { %5159 = vmatpush1.bf16.msra.mxu0 %v7583_v0 }
 0x26e   : > { %5200 = vmatpush1.bf16.msra.mxu1 %v7586_v1  ;;  %5160 = vmatprep.subr.bf16.mxu0 %v7591_v24 }
 0x26f   : > { %5201 = vmatprep.subr.bf16.mxu1 %v7594_v25 }
 0x271   : > { %5161 = vmatpush1.bf16.msra.mxu0 %v7589_v2 }
 0x272   : > { %5202 = vmatpush1.bf16.msra.mxu1 %v7592_v3  ;;  %5162 = vmatprep.subr.bf16.mxu0 %v7597_v4 }
 0x273   : > { %5203 = vmatprep.subr.bf16.mxu1 %v7600_v6 }
 0x275   : > { %5163 = vmatpush2.bf16.msra.mxu0 %v7595_v57 }
 0x276   : > { %5204 = vmatpush2.bf16.msra.mxu1 %v7598_v35  ;;  %5164 = vmatprep.subr.bf16.mxu0 %v7603_v8 }
 0x277   : > { %5205 = vmatprep.subr.bf16.mxu1 %v7606_v12 }
 0x279   : > { %5165 = vmatpush2.bf16.msra.mxu0 %v7601_v14 }
 0x27a   : > { %5206 = vmatpush2.bf16.msra.mxu1 %v7604_v40  ;;  %5166 = vmatprep.subr.bf16.mxu0 %v7609_v18  ;;  %v5232_v40 = vlaneseq }
 0x27b   : > { %5207 = vmatprep.subr.bf16.mxu1 %v7612_v19 }
 0x27d   : > { %5167 = vmatpush2.bf16.msra.mxu0 %v7607_v54  ;;  %v5230_v54 = vld [vmem:[%s248_s4] sm:$0x3] }
 0x27e   : > { %5208 = vmatpush2.bf16.msra.mxu1 %v7610_v55  ;;  %5168 = vmatprep.subr.bf16.mxu0 %v7615_v50 }
 0x27f   : > { %5209 = vmatprep.subr.bf16.mxu1 %v7618_v10 }
 0x281   : > { %5169 = vmatpush2.bf16.msra.mxu0 %v7613_v20 }
 0x282   : > { %5210 = vmatpush2.bf16.msra.mxu1 %v7616_v21  ;;  %5170 = vmatprep.subr.bf16.mxu0 %v7621_v22 }
 0x283   : > { %5211 = vmatprep.subr.bf16.mxu1 %v7624_v23 }
 0x285   : > { %5171 = vmatpush2.bf16.msra.mxu0 %v7619_v26 }
 0x286   : > { %5212 = vmatpush2.bf16.msra.mxu1 %v7622_v27  ;;  %5172 = vmatprep.subr.bf16.mxu0 %v7627_v28 }
 0x287   : > { %5213 = vmatprep.subr.bf16.mxu1 %v7630_v29 }
 0x289   : > { %5173 = vmatpush2.bf16.msra.mxu0 %v7625_v30 }
 0x28a   : > { %5214 = vmatpush2.bf16.msra.mxu1 %v7628_v31  ;;  %5174 = vmatprep.subr.bf16.mxu0 %v7633_v32 }
 0x28b   : > { %5215 = vmatprep.subr.bf16.mxu1 %v7636_v33 }
 0x28d   : > { %5175 = vmatpush2.bf16.msra.mxu0 %v7631_v34 }
 0x28e   : > { %5216 = vmatpush2.bf16.msra.mxu1 %v7634_v36  ;;  %5176 = vmatprep.subr.bf16.mxu0 %v7639_v37 }
 0x28f   : > { %5217 = vmatprep.subr.bf16.mxu1 %v7642_v38 }
 0x291   : > { %5177 = vmatpush2.bf16.msra.mxu0 %v7637_v41 }
 0x292   : > { %5218 = vmatpush2.bf16.msra.mxu1 %v7640_v7 }
 0x294   : > { %v4123_v61 = vpop.f32.mrf.mxu0  ;;  %5179 = vmatmul.mubr.bf16.vlgmr.msra.gmra.mxu0 %v4412_v42 }
 0x295   : > { %v4164_v43 = vpop.f32.mrf.mxu1  ;;  %5220 = vmatmul.mubr.bf16.vlgmr.msra.gmra.mxu1 %v4414_v13 }
 0x296   : > { %v4165_v44 = vadd.f32 %v4164_v43, %v4123_v61  ;;  %v4125_v46 = vpop.f32.mrf.mxu0 }
 0x297   : > { %v4166_v16 = vpop.f32.mrf.mxu1 }
 0x298   : > { %v4167_v15 = vadd.f32 %v4166_v16, %v4125_v46  ;;  %v4127_v5 = vpop.f32.mrf.mxu0 }
 0x299   : > { %v4168_v17 = vpop.f32.mrf.mxu1 }
 0x29a   : > { %v4128_v47 = vpop.f32.mrf.mxu0 }
 0x29b   : > { %v4169_v9 = vpop.f32.mrf.mxu1 }
 0x2d4   : > { %v4205_v49 = vpop.f32.mrf.mxu0 }
 0x2d5   : > { %v4246_v11 = vpop.f32.mrf.mxu1  ;;  %v4206_v51 = vadd.f32 %v4205_v49, %v4165_v44 }
 0x2d6   : > { %v4207_v58 = vpop.f32.mrf.mxu0 }
 0x2d7   : > { %v4248_v48 = vpop.f32.mrf.mxu1  ;;  %v4247_v59 = vadd.f32 %v4246_v11, %v4206_v51  ;;  %v4208_v52 = vadd.f32 %v4207_v58, %v4167_v15 }
 0x2d8   : > { %v4209_v53 = vpop.f32.mrf.mxu0 }
 0x2d9   : > { %v4250_v62 = vpop.f32.mrf.mxu1  ;;  %v4253_v63 = vadd.f32 %v4247_v59, %v8497_v60  ;;  %v4249_v0 = vadd.f32 %v4248_v48, %v4208_v52  ;;  %v5233_v60 = vshrl.u32 %v5232_v40, 7 }
 0x2da   : > { %v4210_v1 = vpop.f32.mrf.mxu0 }
 0x2db   : > { %v4251_v24 = vpop.f32.mrf.mxu1  ;;  %v4254_v25 = vadd.f32 %v4249_v0, %v8504_v45  ;;  %v5234_v45 = vsub.s32 0, %v5233_v60  ;;  %v5238_v10 = vsub.s32 1, %v5233_v60 }
 0x2dd   : > { %v5235_v23 = vrot.slane %v5230_v54, %v5234_v45  ;;  %v5239_v31 = vrot.slane %v5230_v54, %v5238_v10 }
 0x314   : > { %v5098_v2 = vpop.f32.mrf.mxu0 }
 0x315   : > { %v5139_v3 = vpop.f32.mrf.mxu1 }
 0x316   : > { %v5140_v4 = vadd.f32 %v5139_v3, %v5098_v2  ;;  %v5100_v6 = vpop.f32.mrf.mxu0 }
 0x317   : > { %v5141_v57 = vpop.f32.mrf.mxu1 }
 0x318   : > { %v5102_v35 = vpop.f32.mrf.mxu0  ;;  %v5142_v55 = vadd.f32 %v5141_v57, %v5100_v6 }
 0x319   : > { %v5143_v8 = vpop.f32.mrf.mxu1 }
 0x31a   : > { %v5103_v12 = vpop.f32.mrf.mxu0 }
 0x31b   : > { %v5144_v14 = vpop.f32.mrf.mxu1 }
 0x354   : > { %v5180_v18 = vpop.f32.mrf.mxu0 }
 0x355   : > { %v5221_v19 = vpop.f32.mrf.mxu1  ;;  %v5181_v50 = vadd.f32 %v5180_v18, %v5140_v4 }
 0x356   : > { %v5182_v20 = vpop.f32.mrf.mxu0 }
 0x357   : > { %v5223_v21 = vpop.f32.mrf.mxu1  ;;  %v5222_v22 = vadd.f32 %v5221_v19, %v5181_v50  ;;  %v5183_v26 = vadd.f32 %v5182_v20, %v5142_v55 }
 0x358   : > { %v5184_v27 = vpop.f32.mrf.mxu0 }
 0x359   : > { %v5225_v28 = vpop.f32.mrf.mxu1  ;;  %v5228_v29 = vadd.f32 %v5222_v22, %v4253_v63  ;;  %v5224_v30 = vadd.f32 %v5223_v21, %v5183_v26 }
 0x35a   : > { %v5185_v32 = vpop.f32.mrf.mxu0 }
 0x35b   : > { %v5226_v33 = vpop.f32.mrf.mxu1  ;;  %v5242_v34 = vadd.f32 %v5235_v23, %v5228_v29  ;;  %v5229_v36 = vadd.f32 %v5224_v30, %v4254_v25 }
 0x35d   : > { %v5246_v37 = vmul.f32 0.1, %v5242_v34  ;;  %v5243_v38 = vadd.f32 %v5239_v31, %v5229_v36  ;;  %vm5244_vm0 = vcmp.ge.f32.partialorder %v5242_v34, 0.0 }
 0x35f   : > { %vm5245_vm1 = vcmp.ge.f32.partialorder %v5243_v38, 0.0  ;;  %v5247_v56 = vmul.f32 0.1, %v5243_v38  ;;  %v5248_v39 = vsel %vm5244_vm0, %v5242_v34, %v5246_v37 }
 0x361   : > { %v5249_v41 = vsel %vm5245_vm1, %v5243_v38, %v5247_v56 }
 0x362   : > { %v6601_v7 = vpack.c.bf16 %v5249_v41, %v5248_v39 }
 0x364   : > { %6602 = vst.sshfl [vmem:[%s262_s10] sm:$0x33 pattern:$0x76325410] %v6601_v7 }
 0x365 PF: > { %s13_s16 = sadd.s32 1, %s7685_s16   ;;  %s8589_s12 = smov %s7677_s14 }
 0x366   : > { %p10_p8 = scmp.ge.s32.totalorder %s13_s16, 10   ;;  %s8590_s13 = smov %s7681_s15 }
 0x367   : > { %s8591_s14 = smov %s8594_s17  ;;  %s8592_s15 = smov %s8598_s18 }
 0x368   :  { %12 = sbr.rel (!%p10_p8) target bundleno = 3 (0x3), region = 72 }

</bundles_post_ra>
